<compile_context>
chip_gen: v7x
topology: tpu7x:2x2x1
jax: 0.10.0
libtpu: 0.0.40
codegen_flags: <defaults>
</compile_context>

<pallas_src>
import functools

import jax
import jax.numpy as jnp
import numpy as np
from jax import lax
from jax.experimental import pallas as pl
from jax.experimental.pallas import tpu as pltpu

EPS = 1e-5   # torch.nn.BatchNorm2d default eps
LANE = 128   # TPU lane width


def _round_up(n, m):
    return ((n + m - 1) // m) * m


# ----------------------------- Pallas kernels ------------------------------

def _conv1_shortcut_kernel(xp_ref, w1_ref, cb1_ref, ws_ref, cbs_ref,
                           y1_ref, ys_ref, st1_ref, sts_ref, acc_ref):
    """Per image: y1 = conv3x3(x)+b1 (row-fused K), ys = conv1x1(x)+bs,
    plus per-image BN partial statistics [sum; sum of squares].

    xp_ref : (H+2, W+2, Cip) bf16  spatially padded, lane-padded input
    w1_ref : (3, 3*Cip, Cop) bf16  conv1 weights with kw folded into K
    ws_ref : (Cip, Cop)      bf16  1x1 projection-shortcut weights
    y1/ys  : (H, W, Cop)     bf16  pre-BN activations (bf16 in HBM)
    st*    : (2, Cop)        f32   per-image [sum; sum of squares]
    acc_ref: (H*W, Cop)      f32   VMEM accumulator scratch
    """
    H, W, C = y1_ref.shape
    Cip = ws_ref.shape[0]

    for kh in range(3):                                   # static unroll
        # operand lanes = [kw=0 | kw=1 | kw=2], each Cip wide -> K = 3*Cip
        operand = jnp.concatenate(
            [xp_ref[kh:kh + H, kw:kw + W, :] for kw in range(3)], axis=-1
        ).reshape(H * W, 3 * Cip)
        part = jnp.dot(operand, w1_ref[kh], preferred_element_type=jnp.float32)
        if kh == 0:
            acc_ref[...] = part
        else:
            acc_ref[...] += part
        if kh == 1:
            # Centre tap == unshifted input (lane-aligned slice of the
            # operand) -> 1x1 shortcut.  Stored immediately so only acc_ref
            # stays live across the row loop.
            ys = jnp.dot(operand[:, Cip:2 * Cip], ws_ref[...],
                         preferred_element_type=jnp.float32) + cbs_ref[...]
            ys_ref[...] = ys.reshape(H, W, C).astype(ys_ref.dtype)
            sts_ref[...] = jnp.concatenate(
                [jnp.sum(ys, axis=0, keepdims=True),
                 jnp.sum(ys * ys, axis=0, keepdims=True)], axis=0)

    y1 = acc_ref[...] + cb1_ref[...]                      # f32
    y1_ref[...] = y1.reshape(H, W, C).astype(y1_ref.dtype)
    st1_ref[...] = jnp.concatenate(
        [jnp.sum(y1, axis=0, keepdims=True),
         jnp.sum(y1 * y1, axis=0, keepdims=True)], axis=0)


def _bn1_relu_conv2_kernel(y1_ref, st1_ref, g1_ref, b1_ref, w2_ref, cb2_ref,
                           y2_ref, st2_ref, hpad_ref, acc_ref, *, inv_m):
    """Per image: h1 = relu(BN1(y1)) using global batch stats, then
    y2 = conv3x3(h1)+b2 (row-fused K) and per-image BN2 partial stats."""
    H, W, C = y2_ref.shape

    # BN1 from global sums (one-pass var, clamped >= 0); all stat math in f32.
    mean = st1_ref[0:1, :] * inv_m
    var = jnp.maximum(st1_ref[1:2, :] * inv_m - mean * mean, 0.0)
    scale = g1_ref[...] * lax.rsqrt(var + EPS)
    shift = b1_ref[...] - mean * scale
    y1 = y1_ref[...].astype(jnp.float32).reshape(H * W, C)
    h1 = jnp.maximum(y1 * scale + shift, 0.0).astype(hpad_ref.dtype)

    # SAME-padding halo: zero only the border ring each step (safe with a
    # "parallel" grid axis on megacore parts); interior is fully overwritten.
    zr = jnp.zeros((1, W + 2, C), hpad_ref.dtype)
    zc = jnp.zeros((H + 2, 1, C), hpad_ref.dtype)
    hpad_ref[0:1, :, :] = zr
    hpad_ref[H + 1:H + 2, :, :] = zr
    hpad_ref[:, 0:1, :] = zc
    hpad_ref[:, W + 1:W + 2, :] = zc
    hpad_ref[1:H + 1, 1:W + 1, :] = h1.reshape(H, W, C)

    for kh in range(3):                                   # static unroll
        operand = jnp.concatenate(
            [hpad_ref[kh:kh + H, kw:kw + W, :] for kw in range(3)], axis=-1
        ).reshape(H * W, 3 * C)
        part = jnp.dot(operand, w2_ref[kh], preferred_element_type=jnp.float32)
        if kh == 0:
            acc_ref[...] = part
        else:
            acc_ref[...] += part

    y2 = acc_ref[...] + cb2_ref[...]                      # f32
    y2_ref[...] = y2.reshape(H, W, C).astype(y2_ref.dtype)
    st2_ref[...] = jnp.concatenate(
        [jnp.sum(y2, axis=0, keepdims=True),
         jnp.sum(y2 * y2, axis=0, keepdims=True)], axis=0)


def _bn_add_relu_kernel(y2_ref, ys_ref, st2_ref, sts_ref,
                        g2_ref, b2_ref, gs_ref, bs_ref, o_ref, *, inv_m):
    """out = relu(BN2(y2) + BN_shortcut(ys)) on lane-dense (TM, Cop) tiles."""
    m2 = st2_ref[0:1, :] * inv_m
    v2 = jnp.maximum(st2_ref[1:2, :] * inv_m - m2 * m2, 0.0)
    sc2 = g2_ref[...] * lax.rsqrt(v2 + EPS)
    sh2 = b2_ref[...] - m2 * sc2

    ms = sts_ref[0:1, :] * inv_m
    vs = jnp.maximum(sts_ref[1:2, :] * inv_m - ms * ms, 0.0)
    scs = gs_ref[...] * lax.rsqrt(vs + EPS)
    shs = bs_ref[...] - ms * scs

    y2 = y2_ref[...].astype(jnp.float32)
    ys = ys_ref[...].astype(jnp.float32)
    o_ref[...] = jnp.maximum(y2 * sc2 + sh2 + ys * scs + shs, 0.0)


# ------------------------------- wrapper -----------------------------------

@jax.jit
def resblock_forward(x_nchw, params):
    # NCHW (PyTorch) -> NHWC (kernel layout)
    x = jnp.transpose(x_nchw, (0, 2, 3, 1)).astype(jnp.float32)
    B, H, W, Cin = x.shape
    Cout = params["w1"].shape[-1]
    Cip = _round_up(Cin, LANE)     # lane-dense channel padding
    Cop = _round_up(Cout, LANE)
    M = B * H * W
    inv_m = 1.0 / float(M)

    # bf16 spatially padded + lane-padded input (halves input DMA and VMEM).
    xp = jnp.pad(x, ((0, 0), (1, 1), (1, 1), (0, Cip - Cin))).astype(jnp.bfloat16)

    # Row-fused weights: (kh, 3*C, Cop) so each kernel row is one K=3*C matmul.
    w1 = jnp.pad(params["w1"],
                 ((0, 0), (0, 0), (0, Cip - Cin), (0, Cop - Cout))
                 ).reshape(3, 3 * Cip, Cop).astype(jnp.bfloat16)
    w2 = jnp.pad(params["w2"],
                 ((0, 0), (0, 0), (0, Cop - Cout), (0, Cop - Cout))
                 ).reshape(3, 3 * Cop, Cop).astype(jnp.bfloat16)
    ws = jnp.pad(params["ws"],
                 ((0, Cip - Cin), (0, Cop - Cout))).astype(jnp.bfloat16)

    def vec(p):
        # (1, Cout) -> (1, Cop) f32.  NOTE: gamma MUST stay zero-padded so the
        # padded lanes remain inert (scale = 0 * rsqrt(eps) -> BN output 0).
        return jnp.pad(p.astype(jnp.float32), ((0, 0), (0, Cop - Cout)))

    cb1, g1, b1 = vec(params["cb1"]), vec(params["g1"]), vec(params["b1"])
    cb2, g2, b2 = vec(params["cb2"]), vec(params["g2"]), vec(params["b2"])
    cbs, gs, bs = vec(params["cbs"]), vec(params["gs"]), vec(params["bs"])

    vmem_limit = 32 * 1024 * 1024   # safe on v5e/v6e (128 MiB) and v7x (64 MiB)
    cp_par = pltpu.CompilerParams(dimension_semantics=("parallel",),
                                  vmem_limit_bytes=vmem_limit)

    vec_spec = pl.BlockSpec((1, Cop), lambda b: (0, 0))
    stg_spec = pl.BlockSpec((2, Cop), lambda b: (0, 0))            # global stats in
    stp_spec = pl.BlockSpec((None, 2, Cop), lambda b: (b, 0, 0))   # per-image stats out
    img_in = pl.BlockSpec((None, H + 2, W + 2, Cip), lambda b: (b, 0, 0, 0))
    img_out = pl.BlockSpec((None, H, W, Cop), lambda b: (b, 0, 0, 0))

    # ---- pass 1: conv1 + 1x1 projection shortcut + per-image BN partials ----
    y1, ys, st1, sts = pl.pallas_call(
        _conv1_shortcut_kernel,
        grid=(B,),
        in_specs=[
            img_in,
            pl.BlockSpec((3, 3 * Cip, Cop), lambda b: (0, 0, 0)),   # resident weights
            vec_spec,
            pl.BlockSpec((Cip, Cop), lambda b: (0, 0)),
            vec_spec,
        ],
        out_specs=(img_out, img_out, stp_spec, stp_spec),
        out_shape=(
            jax.ShapeDtypeStruct((B, H, W, Cop), jnp.bfloat16),
            jax.ShapeDtypeStruct((B, H, W, Cop), jnp.bfloat16),
            jax.ShapeDtypeStruct((B, 2, Cop), jnp.float32),
            jax.ShapeDtypeStruct((B, 2, Cop), jnp.float32),
        ),
        scratch_shapes=[pltpu.VMEM((H * W, Cop), jnp.float32)],
        compiler_params=cp_par,
    )(xp, w1, cb1, ws, cbs)

    # Tiny XLA reductions of per-image partials -> global batch statistics.
    st1g = jnp.sum(st1, axis=0)
    stsg = jnp.sum(sts, axis=0)

    # ---- pass 2: BN1 (global stats) + ReLU + conv2 + per-image BN2 partials ----
    y2, st2 = pl.pallas_call(
        functools.partial(_bn1_relu_conv2_kernel, inv_m=inv_m),
        grid=(B,),
        in_specs=[
            pl.BlockSpec((None, H, W, Cop), lambda b: (b, 0, 0, 0)),
            stg_spec, vec_spec, vec_spec,
            pl.BlockSpec((3, 3 * Cop, Cop), lambda b: (0, 0, 0)),
            vec_spec,
        ],
        out_specs=(img_out, stp_spec),
        out_shape=(
            jax.ShapeDtypeStruct((B, H, W, Cop), jnp.bfloat16),
            jax.ShapeDtypeStruct((B, 2, Cop), jnp.float32),
        ),
        scratch_shapes=[pltpu.VMEM((H + 2, W + 2, Cop), jnp.bfloat16),
                        pltpu.VMEM((H * W, Cop), jnp.float32)],
        compiler_params=cp_par,
    )(y1, st1g, g1, b1, w2, cb2)

    st2g = jnp.sum(st2, axis=0)

    # ---- pass 3: BN2 + BN_shortcut + residual add + ReLU (elementwise) ----
    y2f = y2.reshape(M, Cop)
    ysf = ys.reshape(M, Cop)
    TM = M
    for cand in (1024, 512, 256, 128, 64, 32, 16, 8):   # fixed lane-dense tiles
        if M % cand == 0:
            TM = cand
            break
    row_spec = pl.BlockSpec((TM, Cop), lambda i: (i, 0))
    cst = pl.BlockSpec((2, Cop), lambda i: (0, 0))
    cvec = pl.BlockSpec((1, Cop), lambda i: (0, 0))
    out_flat = pl.pallas_call(
        functools.partial(_bn_add_relu_kernel, inv_m=inv_m),
        grid=(M // TM,),
        in_specs=[row_spec, row_spec, cst, cst, cvec, cvec, cvec, cvec],
        out_specs=row_spec,
        out_shape=jax.ShapeDtypeStruct((M, Cop), jnp.float32),
        compiler_params=cp_par,
    )(y2f, ysf, st2g, stsg, g2, b2, gs, bs)

    out = out_flat.reshape(B, H, W, Cop)[:, :, :, :Cout]
    # NHWC -> NCHW to match the PyTorch module output convention
    return jnp.transpose(out, (0, 3, 1, 2))


def init_params(key, cin, cout):
    """Deterministic synthetic parameters (shapes dictated by the module).
    NOTE: implements the projection-shortcut case (in_channels != out_channels)."""
    ks = jax.random.split(key, 6)
    w1 = 0.1 * jax.random.normal(ks[0], (3, 3, cin, cout), jnp.float32)   # HWIO
    w2 = 0.1 * jax.random.normal(ks[1], (3, 3, cout, cout), jnp.float32)  # HWIO
    ws = 0.1 * jax.random.normal(ks[2], (cin, cout), jnp.float32)         # 1x1, IO
    cb1 = 0.05 * jax.random.normal(ks[3], (1, cout), jnp.float32)         # conv biases
    cb2 = 0.05 * jax.random.normal(ks[4], (1, cout), jnp.float32)
    cbs = 0.05 * jax.random.normal(ks[5], (1, cout), jnp.float32)
    ones = jnp.ones((1, cout), jnp.float32)    # BN weight init (PyTorch default)
    zeros = jnp.zeros((1, cout), jnp.float32)  # BN bias init
    return dict(w1=w1, cb1=cb1, g1=ones, b1=zeros,
                w2=w2, cb2=cb2, g2=ones, b2=zeros,
                ws=ws, cbs=cbs, gs=ones, bs=zeros)


# ----------------------------- pure-JAX reference ---------------------------

def _bn_stats(y):
    m = jnp.mean(y, axis=(0, 1, 2))
    v = jnp.mean(jnp.square(y - m), axis=(0, 1, 2))   # biased var (train mode)
    return m, v


def _bn_apply(yq, m, v, g, b):
    return g.reshape(-1) * (yq - m) * lax.rsqrt(v + EPS) + b.reshape(-1)


def _q(y):   # mirrors the kernel's bf16 HBM storage of the pre-BN activations
    return y.astype(jnp.bfloat16).astype(jnp.float32)


def resblock_reference(x_nchw, params):
    """Mirrors the kernel's precision choices: bf16 MXU operands + f32
    accumulation, f32 batch statistics, bf16 storage of y1 / y2 / ys."""
    dn = ("NHWC", "HWIO", "NHWC")
    x = jnp.transpose(x_nchw, (0, 2, 3, 1)).astype(jnp.float32)
    xb = x.astype(jnp.bfloat16)

    y1 = lax.conv_general_dilated(
        xb, params["w1"].astype(jnp.bfloat16), (1, 1), "SAME",
        dimension_numbers=dn, preferred_element_type=jnp.float32
    ) + params["cb1"].reshape(-1)
    m1, v1 = _bn_stats(y1)
    h1 = jnp.maximum(_bn_apply(_q(y1), m1, v1, params["g1"], params["b1"]), 0.0)

    y2 = lax.conv_general_dilated(
        h1.astype(jnp.bfloat16), params["w2"].astype(jnp.bfloat16), (1, 1), "SAME",
        dimension_numbers=dn, preferred_element_type=jnp.float32
    ) + params["cb2"].reshape(-1)
    m2, v2 = _bn_stats(y2)

    ys = lax.conv_general_dilated(
        xb, params["ws"][None, None].astype(jnp.bfloat16), (1, 1), "VALID",
        dimension_numbers=dn, preferred_element_type=jnp.float32
    ) + params["cbs"].reshape(-1)
    ms, vs = _bn_stats(ys)

    h2 = _bn_apply(_q(y2), m2, v2, params["g2"], params["b2"])
    hs = _bn_apply(_q(ys), ms, vs, params["gs"], params["bs"])
    return jnp.transpose(jnp.maximum(h2 + hs, 0.0), (0, 3, 1, 2))


# --------------------------------- main --------------------------------------

if __name__ == "__main__":
    key = jax.random.PRNGKey(0)
    kx, kp = jax.random.split(key)
    B, Cin, Cout, H, W = 2, 4, 8, 16, 16
    x = jax.random.normal(kx, (B, Cin, H, W), jnp.float32)  # NCHW like PyTorch
    params = init_params(kp, Cin, Cout)

    out = resblock_forward(x, params)
    jax.block_until_ready(out)
    assert out.shape == (B, Cout, H, W)

    ref = resblock_reference(x, params)
    out_np, ref_np = np.asarray(out), np.asarray(ref)
    # bf16 storage of the pre-BN intermediates bounds per-element accuracy to
    # ~1 bf16 ulp / batch-std (a few 1e-2) when kernel and reference land on
    # different sides of a rounding boundary; the elementwise tolerance covers
    # those rare flips while the mean-abs check keeps systematic error tight.
    np.testing.assert_allclose(out_np, ref_np, rtol=5e-2, atol=5e-2)
    assert float(np.mean(np.abs(out_np - ref_np))) < 2e-3
    print("KERNEL_OK")
</pallas_src>

<mosaic_0001>
module attributes {stable_mosaic.version = 11 : i64} {
  func.func @_conv1_shortcut_kernel(%arg0: i32, %arg1: memref<1x18x18x128xbf16, #tpu.memory_space<vmem>>, %arg2: memref<3x384x128xbf16, #tpu.memory_space<vmem>>, %arg3: memref<1x128xf32, #tpu.memory_space<vmem>>, %arg4: memref<128x128xbf16, #tpu.memory_space<vmem>>, %arg5: memref<1x128xf32, #tpu.memory_space<vmem>>, %arg6: memref<1x16x16x128xbf16, #tpu.memory_space<vmem>>, %arg7: memref<1x16x16x128xbf16, #tpu.memory_space<vmem>>, %arg8: memref<1x2x128xf32, #tpu.memory_space<vmem>>, %arg9: memref<1x2x128xf32, #tpu.memory_space<vmem>>, %arg10: memref<256x128xf32, #tpu.memory_space<vmem>>) attributes {dimension_semantics = [#tpu.dimension_semantics<parallel>], iteration_bounds = array<i64: 2>, scalar_prefetch = 0 : i64, scratch_operands = 1 : i64, tpu.core_type = #tpu.core_type<tc>, window_params = [{transform_indices = @transform_0, window_bounds = array<i64: 1, 18, 18, 128>}, {pipeline_mode = #tpu.pipeline_mode<synchronous>, transform_indices = @transform_1, window_bounds = array<i64: 3, 384, 128>}, {pipeline_mode = #tpu.pipeline_mode<synchronous>, transform_indices = @transform_2, window_bounds = array<i64: 1, 128>}, {pipeline_mode = #tpu.pipeline_mode<synchronous>, transform_indices = @transform_3, window_bounds = array<i64: 128, 128>}, {pipeline_mode = #tpu.pipeline_mode<synchronous>, transform_indices = @transform_4, window_bounds = array<i64: 1, 128>}, {transform_indices = @transform_5, window_bounds = array<i64: 1, 16, 16, 128>}, {transform_indices = @transform_6, window_bounds = array<i64: 1, 16, 16, 128>}, {transform_indices = @transform_7, window_bounds = array<i64: 1, 2, 128>}, {transform_indices = @transform_8, window_bounds = array<i64: 1, 2, 128>}]} {
    %c0 = arith.constant 0 : index
    %c0_0 = arith.constant 0 : index
    %c0_1 = arith.constant 0 : index
    %c0_2 = arith.constant 0 : index
    %0 = vector.load %arg1[%c0, %c0_0, %c0_1, %c0_2] : memref<1x18x18x128xbf16, #tpu.memory_space<vmem>>, vector<1x16x16x128xbf16>
    %1 = vector.shape_cast %0 : vector<1x16x16x128xbf16> to vector<16x16x128xbf16>
    %c0_3 = arith.constant 0 : index
    %c0_4 = arith.constant 0 : index
    %c1 = arith.constant 1 : index
    %c0_5 = arith.constant 0 : index
    %2 = vector.load %arg1[%c0_3, %c0_4, %c1, %c0_5] : memref<1x18x18x128xbf16, #tpu.memory_space<vmem>>, vector<1x16x16x128xbf16>
    %3 = vector.shape_cast %2 : vector<1x16x16x128xbf16> to vector<16x16x128xbf16>
    %c0_6 = arith.constant 0 : index
    %c0_7 = arith.constant 0 : index
    %c2 = arith.constant 2 : index
    %c0_8 = arith.constant 0 : index
    %4 = vector.load %arg1[%c0_6, %c0_7, %c2, %c0_8] : memref<1x18x18x128xbf16, #tpu.memory_space<vmem>>, vector<1x16x16x128xbf16>
    %5 = vector.shape_cast %4 : vector<1x16x16x128xbf16> to vector<16x16x128xbf16>
    %6 = tpu.concatenate %1, %3, %5 in 2 : vector<16x16x128xbf16>, vector<16x16x128xbf16>, vector<16x16x128xbf16> -> vector<16x16x384xbf16>
    %7 = vector.shape_cast %6 : vector<16x16x384xbf16> to vector<256x384xbf16>
    %c0_9 = arith.constant 0 : index
    %c0_10 = arith.constant 0 : index
    %c0_11 = arith.constant 0 : index
    %8 = vector.load %arg2[%c0_9, %c0_10, %c0_11] : memref<3x384x128xbf16, #tpu.memory_space<vmem>>, vector<1x384x128xbf16>
    %9 = vector.shape_cast %8 : vector<1x384x128xbf16> to vector<384x128xbf16>
    %cst = arith.constant dense<0.000000e+00> : vector<256x128xf32>
    %10 = tpu.matmul %7, %9, %cst {dimension_numbers = #tpu.dot_dimension_numbers<[1], [0], [0], [1], [0, 0, 1, 1], [], []>} : vector<256x384xbf16>, vector<384x128xbf16>, vector<256x128xf32> -> vector<256x128xf32>
    %c0_12 = arith.constant 0 : index
    %c0_13 = arith.constant 0 : index
    %11 = vector.load %arg10[%c0_12, %c0_13] : memref<256x128xf32, #tpu.memory_space<vmem>>, vector<256x128xf32>
    tpu.vector_store %arg10[%c0_12, %c0_13], %10 {strides = array<i32>} : memref<256x128xf32, #tpu.memory_space<vmem>>, vector<256x128xf32>,
    %c0_14 = arith.constant 0 : index
    %c1_15 = arith.constant 1 : index
    %c0_16 = arith.constant 0 : index
    %c0_17 = arith.constant 0 : index
    %12 = vector.load %arg1[%c0_14, %c1_15, %c0_16, %c0_17] : memref<1x18x18x128xbf16, #tpu.memory_space<vmem>>, vector<1x16x16x128xbf16>
    %13 = vector.shape_cast %12 : vector<1x16x16x128xbf16> to vector<16x16x128xbf16>
    %c0_18 = arith.constant 0 : index
    %c1_19 = arith.constant 1 : index
    %c1_20 = arith.constant 1 : index
    %c0_21 = arith.constant 0 : index
    %14 = vector.load %arg1[%c0_18, %c1_19, %c1_20, %c0_21] : memref<1x18x18x128xbf16, #tpu.memory_space<vmem>>, vector<1x16x16x128xbf16>
    %15 = vector.shape_cast %14 : vector<1x16x16x128xbf16> to vector<16x16x128xbf16>
    %c0_22 = arith.constant 0 : index
    %c1_23 = arith.constant 1 : index
    %c2_24 = arith.constant 2 : index
    %c0_25 = arith.constant 0 : index
    %16 = vector.load %arg1[%c0_22, %c1_23, %c2_24, %c0_25] : memref<1x18x18x128xbf16, #tpu.memory_space<vmem>>, vector<1x16x16x128xbf16>
    %17 = vector.shape_cast %16 : vector<1x16x16x128xbf16> to vector<16x16x128xbf16>
    %18 = tpu.concatenate %13, %15, %17 in 2 : vector<16x16x128xbf16>, vector<16x16x128xbf16>, vector<16x16x128xbf16> -> vector<16x16x384xbf16>
    %19 = vector.shape_cast %18 : vector<16x16x384xbf16> to vector<256x384xbf16>
    %c1_26 = arith.constant 1 : index
    %c0_27 = arith.constant 0 : index
    %c0_28 = arith.constant 0 : index
    %20 = vector.load %arg2[%c1_26, %c0_27, %c0_28] : memref<3x384x128xbf16, #tpu.memory_space<vmem>>, vector<1x384x128xbf16>
    %21 = vector.shape_cast %20 : vector<1x384x128xbf16> to vector<384x128xbf16>
    %cst_29 = arith.constant dense<0.000000e+00> : vector<256x128xf32>
    %22 = tpu.matmul %19, %21, %cst_29 {dimension_numbers = #tpu.dot_dimension_numbers<[1], [0], [0], [1], [0, 0, 1, 1], [], []>} : vector<256x384xbf16>, vector<384x128xbf16>, vector<256x128xf32> -> vector<256x128xf32>
    %c0_30 = arith.constant 0 : index
    %c0_31 = arith.constant 0 : index
    %23 = vector.load %arg10[%c0_30, %c0_31] : memref<256x128xf32, #tpu.memory_space<vmem>>, vector<256x128xf32>
    %24 = arith.addf %23, %22 : vector<256x128xf32>
    %c0_32 = arith.constant 0 : index
    %c0_33 = arith.constant 0 : index
    %25 = vector.load %arg10[%c0_32, %c0_33] : memref<256x128xf32, #tpu.memory_space<vmem>>, vector<256x128xf32>
    tpu.vector_store %arg10[%c0_32, %c0_33], %24 {strides = array<i32>} : memref<256x128xf32, #tpu.memory_space<vmem>>, vector<256x128xf32>,
    %26 = vector.extract_strided_slice %19 {offsets = [0, 128], sizes = [256, 128], strides = [1, 1]} : vector<256x384xbf16> to vector<256x128xbf16>
    %c0_34 = arith.constant 0 : index
    %c0_35 = arith.constant 0 : index
    %27 = vector.load %arg4[%c0_34, %c0_35] : memref<128x128xbf16, #tpu.memory_space<vmem>>, vector<128x128xbf16>
    %cst_36 = arith.constant dense<0.000000e+00> : vector<256x128xf32>
    %28 = tpu.matmul %26, %27, %cst_36 {dimension_numbers = #tpu.dot_dimension_numbers<[1], [0], [0], [1], [0, 0, 1, 1], [], []>} : vector<256x128xbf16>, vector<128x128xbf16>, vector<256x128xf32> -> vector<256x128xf32>
    %c0_37 = arith.constant 0 : index
    %c0_38 = arith.constant 0 : index
    %29 = vector.load %arg5[%c0_37, %c0_38] : memref<1x128xf32, #tpu.memory_space<vmem>>, vector<1x128xf32>
    %30 = vector.broadcast %29 : vector<1x128xf32> to vector<256x128xf32>
    %31 = arith.addf %28, %30 : vector<256x128xf32>
    %32 = vector.shape_cast %31 : vector<256x128xf32> to vector<16x16x128xf32>
    %33 = arith.truncf %32 : vector<16x16x128xf32> to vector<16x16x128xbf16>
    %c0_39 = arith.constant 0 : index
    %c0_40 = arith.constant 0 : index
    %c0_41 = arith.constant 0 : index
    %c0_42 = arith.constant 0 : index
    %34 = vector.load %arg7[%c0_39, %c0_40, %c0_41, %c0_42] : memref<1x16x16x128xbf16, #tpu.memory_space<vmem>>, vector<1x16x16x128xbf16>
    %35 = vector.shape_cast %34 : vector<1x16x16x128xbf16> to vector<16x16x128xbf16>
    %36 = vector.shape_cast %33 : vector<16x16x128xbf16> to vector<1x16x16x128xbf16>
    tpu.vector_store %arg7[%c0_39, %c0_40, %c0_41, %c0_42], %36 {strides = array<i32>} : memref<1x16x16x128xbf16, #tpu.memory_space<vmem>>, vector<1x16x16x128xbf16>,
    %cst_43 = arith.constant dense<0.000000e+00> : vector<128xf32>
    %37 = vector.multi_reduction <add>, %31, %cst_43 [0] : vector<256x128xf32> to vector<128xf32>
    %38 = vector.shape_cast %37 : vector<128xf32> to vector<1x128xf32>
    %39 = arith.mulf %31, %31 : vector<256x128xf32>
    %cst_44 = arith.constant dense<0.000000e+00> : vector<128xf32>
    %40 = vector.multi_reduction <add>, %39, %cst_44 [0] : vector<256x128xf32> to vector<128xf32>
    %41 = vector.shape_cast %40 : vector<128xf32> to vector<1x128xf32>
    %42 = tpu.concatenate %38, %41 in 0 : vector<1x128xf32>, vector<1x128xf32> -> vector<2x128xf32>
    %c0_45 = arith.constant 0 : index
    %c0_46 = arith.constant 0 : index
    %c0_47 = arith.constant 0 : index
    %43 = vector.load %arg9[%c0_45, %c0_46, %c0_47] : memref<1x2x128xf32, #tpu.memory_space<vmem>>, vector<1x2x128xf32>
    %44 = vector.shape_cast %43 : vector<1x2x128xf32> to vector<2x128xf32>
    %45 = vector.shape_cast %42 : vector<2x128xf32> to vector<1x2x128xf32>
    tpu.vector_store %arg9[%c0_45, %c0_46, %c0_47], %45 {strides = array<i32>} : memref<1x2x128xf32, #tpu.memory_space<vmem>>, vector<1x2x128xf32>,
    %c0_48 = arith.constant 0 : index
    %c2_49 = arith.constant 2 : index
    %c0_50 = arith.constant 0 : index
    %c0_51 = arith.constant 0 : index
    %46 = vector.load %arg1[%c0_48, %c2_49, %c0_50, %c0_51] : memref<1x18x18x128xbf16, #tpu.memory_space<vmem>>, vector<1x16x16x128xbf16>
    %47 = vector.shape_cast %46 : vector<1x16x16x128xbf16> to vector<16x16x128xbf16>
    %c0_52 = arith.constant 0 : index
    %c2_53 = arith.constant 2 : index
    %c1_54 = arith.constant 1 : index
    %c0_55 = arith.constant 0 : index
    %48 = vector.load %arg1[%c0_52, %c2_53, %c1_54, %c0_55] : memref<1x18x18x128xbf16, #tpu.memory_space<vmem>>, vector<1x16x16x128xbf16>
    %49 = vector.shape_cast %48 : vector<1x16x16x128xbf16> to vector<16x16x128xbf16>
    %c0_56 = arith.constant 0 : index
    %c2_57 = arith.constant 2 : index
    %c2_58 = arith.constant 2 : index
    %c0_59 = arith.constant 0 : index
    %50 = vector.load %arg1[%c0_56, %c2_57, %c2_58, %c0_59] : memref<1x18x18x128xbf16, #tpu.memory_space<vmem>>, vector<1x16x16x128xbf16>
    %51 = vector.shape_cast %50 : vector<1x16x16x128xbf16> to vector<16x16x128xbf16>
    %52 = tpu.concatenate %47, %49, %51 in 2 : vector<16x16x128xbf16>, vector<16x16x128xbf16>, vector<16x16x128xbf16> -> vector<16x16x384xbf16>
    %53 = vector.shape_cast %52 : vector<16x16x384xbf16> to vector<256x384xbf16>
    %c2_60 = arith.constant 2 : index
    %c0_61 = arith.constant 0 : index
    %c0_62 = arith.constant 0 : index
    %54 = vector.load %arg2[%c2_60, %c0_61, %c0_62] : memref<3x384x128xbf16, #tpu.memory_space<vmem>>, vector<1x384x128xbf16>
    %55 = vector.shape_cast %54 : vector<1x384x128xbf16> to vector<384x128xbf16>
    %cst_63 = arith.constant dense<0.000000e+00> : vector<256x128xf32>
    %56 = tpu.matmul %53, %55, %cst_63 {dimension_numbers = #tpu.dot_dimension_numbers<[1], [0], [0], [1], [0, 0, 1, 1], [], []>} : vector<256x384xbf16>, vector<384x128xbf16>, vector<256x128xf32> -> vector<256x128xf32>
    %c0_64 = arith.constant 0 : index
    %c0_65 = arith.constant 0 : index
    %57 = vector.load %arg10[%c0_64, %c0_65] : memref<256x128xf32, #tpu.memory_space<vmem>>, vector<256x128xf32>
    %58 = arith.addf %57, %56 : vector<256x128xf32>
    %c0_66 = arith.constant 0 : index
    %c0_67 = arith.constant 0 : index
    %59 = vector.load %arg10[%c0_66, %c0_67] : memref<256x128xf32, #tpu.memory_space<vmem>>, vector<256x128xf32>
    tpu.vector_store %arg10[%c0_66, %c0_67], %58 {strides = array<i32>} : memref<256x128xf32, #tpu.memory_space<vmem>>, vector<256x128xf32>,
    %c0_68 = arith.constant 0 : index
    %c0_69 = arith.constant 0 : index
    %60 = vector.load %arg10[%c0_68, %c0_69] : memref<256x128xf32, #tpu.memory_space<vmem>>, vector<256x128xf32>
    %c0_70 = arith.constant 0 : index
    %c0_71 = arith.constant 0 : index
    %61 = vector.load %arg3[%c0_70, %c0_71] : memref<1x128xf32, #tpu.memory_space<vmem>>, vector<1x128xf32>
    %62 = vector.broadcast %61 : vector<1x128xf32> to vector<256x128xf32>
    %63 = arith.addf %60, %62 : vector<256x128xf32>
    %64 = vector.shape_cast %63 : vector<256x128xf32> to vector<16x16x128xf32>
    %65 = arith.truncf %64 : vector<16x16x128xf32> to vector<16x16x128xbf16>
    %c0_72 = arith.constant 0 : index
    %c0_73 = arith.constant 0 : index
    %c0_74 = arith.constant 0 : index
    %c0_75 = arith.constant 0 : index
    %66 = vector.load %arg6[%c0_72, %c0_73, %c0_74, %c0_75] : memref<1x16x16x128xbf16, #tpu.memory_space<vmem>>, vector<1x16x16x128xbf16>
    %67 = vector.shape_cast %66 : vector<1x16x16x128xbf16> to vector<16x16x128xbf16>
    %68 = vector.shape_cast %65 : vector<16x16x128xbf16> to vector<1x16x16x128xbf16>
    tpu.vector_store %arg6[%c0_72, %c0_73, %c0_74, %c0_75], %68 {strides = array<i32>} : memref<1x16x16x128xbf16, #tpu.memory_space<vmem>>, vector<1x16x16x128xbf16>,
    %cst_76 = arith.constant dense<0.000000e+00> : vector<128xf32>
    %69 = vector.multi_reduction <add>, %63, %cst_76 [0] : vector<256x128xf32> to vector<128xf32>
    %70 = vector.shape_cast %69 : vector<128xf32> to vector<1x128xf32>
    %71 = arith.mulf %63, %63 : vector<256x128xf32>
    %cst_77 = arith.constant dense<0.000000e+00> : vector<128xf32>
    %72 = vector.multi_reduction <add>, %71, %cst_77 [0] : vector<256x128xf32> to vector<128xf32>
    %73 = vector.shape_cast %72 : vector<128xf32> to vector<1x128xf32>
    %74 = tpu.concatenate %70, %73 in 0 : vector<1x128xf32>, vector<1x128xf32> -> vector<2x128xf32>
    %c0_78 = arith.constant 0 : index
    %c0_79 = arith.constant 0 : index
    %c0_80 = arith.constant 0 : index
    %75 = vector.load %arg8[%c0_78, %c0_79, %c0_80] : memref<1x2x128xf32, #tpu.memory_space<vmem>>, vector<1x2x128xf32>
    %76 = vector.shape_cast %75 : vector<1x2x128xf32> to vector<2x128xf32>
    %77 = vector.shape_cast %74 : vector<2x128xf32> to vector<1x2x128xf32>
    tpu.vector_store %arg8[%c0_78, %c0_79, %c0_80], %77 {strides = array<i32>} : memref<1x2x128xf32, #tpu.memory_space<vmem>>, vector<1x2x128xf32>,
    return
  }
  func.func @transform_0(%arg0: i32) -> (i32, i32, i32, i32) {
    %c0_i32 = arith.constant 0 : i32
    %c0_i32_0 = arith.constant 0 : i32
    %c0_i32_1 = arith.constant 0 : i32
    %c0_i32_2 = arith.constant 0 : i32
    return %arg0, %c0_i32, %c0_i32_0, %c0_i32_1 : i32, i32, i32, i32
  }
  func.func @transform_1(%arg0: i32) -> (i32, i32, i32) {
    %c0_i32 = arith.constant 0 : i32
    %c0_i32_0 = arith.constant 0 : i32
    %c0_i32_1 = arith.constant 0 : i32
    %c0_i32_2 = arith.constant 0 : i32
    return %c0_i32, %c0_i32_0, %c0_i32_1 : i32, i32, i32
  }
  func.func @transform_2(%arg0: i32) -> (i32, i32) {
    %c0_i32 = arith.constant 0 : i32
    %c0_i32_0 = arith.constant 0 : i32
    %c0_i32_1 = arith.constant 0 : i32
    return %c0_i32, %c0_i32_0 : i32, i32
  }
  func.func @transform_3(%arg0: i32) -> (i32, i32) {
    %c0_i32 = arith.constant 0 : i32
    %c0_i32_0 = arith.constant 0 : i32
    %c0_i32_1 = arith.constant 0 : i32
    return %c0_i32, %c0_i32_0 : i32, i32
  }
  func.func @transform_4(%arg0: i32) -> (i32, i32) {
    %c0_i32 = arith.constant 0 : i32
    %c0_i32_0 = arith.constant 0 : i32
    %c0_i32_1 = arith.constant 0 : i32
    return %c0_i32, %c0_i32_0 : i32, i32
  }
  func.func @transform_5(%arg0: i32) -> (i32, i32, i32, i32) {
    %c0_i32 = arith.constant 0 : i32
    %c0_i32_0 = arith.constant 0 : i32
    %c0_i32_1 = arith.constant 0 : i32
    %c0_i32_2 = arith.constant 0 : i32
    return %arg0, %c0_i32, %c0_i32_0, %c0_i32_1 : i32, i32, i32, i32
  }
  func.func @transform_6(%arg0: i32) -> (i32, i32, i32, i32) {
    %c0_i32 = arith.constant 0 : i32
    %c0_i32_0 = arith.constant 0 : i32
    %c0_i32_1 = arith.constant 0 : i32
    %c0_i32_2 = arith.constant 0 : i32
    return %arg0, %c0_i32, %c0_i32_0, %c0_i32_1 : i32, i32, i32, i32
  }
  func.func @transform_7(%arg0: i32) -> (i32, i32, i32) {
    %c0_i32 = arith.constant 0 : i32
    %c0_i32_0 = arith.constant 0 : i32
    %c0_i32_1 = arith.constant 0 : i32
    return %arg0, %c0_i32, %c0_i32_0 : i32, i32, i32
  }
  func.func @transform_8(%arg0: i32) -> (i32, i32, i32) {
    %c0_i32 = arith.constant 0 : i32
    %c0_i32_0 = arith.constant 0 : i32
    %c0_i32_1 = arith.constant 0 : i32
    return %arg0, %c0_i32, %c0_i32_0 : i32, i32, i32
  }
}

module attributes {stable_mosaic.version = 11 : i64} {
  func.func @_bn1_relu_conv2_kernel(%arg0: i32, %arg1: memref<1x16x16x128xbf16, #tpu.memory_space<vmem>>, %arg2: memref<2x128xf32, #tpu.memory_space<vmem>>, %arg3: memref<1x128xf32, #tpu.memory_space<vmem>>, %arg4: memref<1x128xf32, #tpu.memory_space<vmem>>, %arg5: memref<3x384x128xbf16, #tpu.memory_space<vmem>>, %arg6: memref<1x128xf32, #tpu.memory_space<vmem>>, %arg7: memref<1x16x16x128xbf16, #tpu.memory_space<vmem>>, %arg8: memref<1x2x128xf32, #tpu.memory_space<vmem>>, %arg9: memref<18x18x128xbf16, #tpu.memory_space<vmem>>, %arg10: memref<256x128xf32, #tpu.memory_space<vmem>>) attributes {dimension_semantics = [#tpu.dimension_semantics<parallel>], iteration_bounds = array<i64: 2>, scalar_prefetch = 0 : i64, scratch_operands = 2 : i64, tpu.core_type = #tpu.core_type<tc>, window_params = [{transform_indices = @transform_0, window_bounds = array<i64: 1, 16, 16, 128>}, {pipeline_mode = #tpu.pipeline_mode<synchronous>, transform_indices = @transform_1, window_bounds = array<i64: 2, 128>}, {pipeline_mode = #tpu.pipeline_mode<synchronous>, transform_indices = @transform_2, window_bounds = array<i64: 1, 128>}, {pipeline_mode = #tpu.pipeline_mode<synchronous>, transform_indices = @transform_3, window_bounds = array<i64: 1, 128>}, {pipeline_mode = #tpu.pipeline_mode<synchronous>, transform_indices = @transform_4, window_bounds = array<i64: 3, 384, 128>}, {pipeline_mode = #tpu.pipeline_mode<synchronous>, transform_indices = @transform_5, window_bounds = array<i64: 1, 128>}, {transform_indices = @transform_6, window_bounds = array<i64: 1, 16, 16, 128>}, {transform_indices = @transform_7, window_bounds = array<i64: 1, 2, 128>}]} {
    %c0 = arith.constant 0 : index
    %c0_0 = arith.constant 0 : index
    %0 = vector.load %arg2[%c0, %c0_0] : memref<2x128xf32, #tpu.memory_space<vmem>>, vector<1x128xf32>
    %cst = arith.constant 0.001953125 : f32
    %1 = vector.broadcast %cst : f32 to vector<1x128xf32>
    %2 = arith.mulf %0, %1 : vector<1x128xf32>
    %c1 = arith.constant 1 : index
    %c0_1 = arith.constant 0 : index
    %3 = vector.load %arg2[%c1, %c0_1] : memref<2x128xf32, #tpu.memory_space<vmem>>, vector<1x128xf32>
    %cst_2 = arith.constant 0.001953125 : f32
    %4 = vector.broadcast %cst_2 : f32 to vector<1x128xf32>
    %5 = arith.mulf %3, %4 : vector<1x128xf32>
    %6 = arith.mulf %2, %2 : vector<1x128xf32>
    %7 = arith.subf %5, %6 : vector<1x128xf32>
    %cst_3 = arith.constant 0.000000e+00 : f32
    %8 = vector.broadcast %cst_3 : f32 to vector<1x128xf32>
    %9 = arith.maximumf %7, %8 : vector<1x128xf32>
    %c0_4 = arith.constant 0 : index
    %c0_5 = arith.constant 0 : index
    %10 = vector.load %arg3[%c0_4, %c0_5] : memref<1x128xf32, #tpu.memory_space<vmem>>, vector<1x128xf32>
    %cst_6 = arith.constant 9.99999974E-6 : f32
    %11 = vector.broadcast %cst_6 : f32 to vector<1x128xf32>
    %12 = arith.addf %9, %11 : vector<1x128xf32>
    %13 = math.rsqrt %12 : vector<1x128xf32>
    %14 = arith.mulf %10, %13 : vector<1x128xf32>
    %c0_7 = arith.constant 0 : index
    %c0_8 = arith.constant 0 : index
    %15 = vector.load %arg4[%c0_7, %c0_8] : memref<1x128xf32, #tpu.memory_space<vmem>>, vector<1x128xf32>
    %16 = arith.mulf %2, %14 : vector<1x128xf32>
    %17 = arith.subf %15, %16 : vector<1x128xf32>
    %c0_9 = arith.constant 0 : index
    %c0_10 = arith.constant 0 : index
    %c0_11 = arith.constant 0 : index
    %c0_12 = arith.constant 0 : index
    %18 = vector.load %arg1[%c0_9, %c0_10, %c0_11, %c0_12] : memref<1x16x16x128xbf16, #tpu.memory_space<vmem>>, vector<1x16x16x128xbf16>
    %19 = vector.shape_cast %18 : vector<1x16x16x128xbf16> to vector<16x16x128xbf16>
    %20 = arith.extf %19 : vector<16x16x128xbf16> to vector<16x16x128xf32>
    %21 = vector.shape_cast %20 : vector<16x16x128xf32> to vector<256x128xf32>
    %22 = vector.broadcast %14 : vector<1x128xf32> to vector<256x128xf32>
    %23 = arith.mulf %21, %22 : vector<256x128xf32>
    %24 = vector.broadcast %17 : vector<1x128xf32> to vector<256x128xf32>
    %25 = arith.addf %23, %24 : vector<256x128xf32>
    %cst_13 = arith.constant 0.000000e+00 : f32
    %26 = vector.broadcast %cst_13 : f32 to vector<256x128xf32>
    %27 = arith.maximumf %25, %26 : vector<256x128xf32>
    %28 = arith.truncf %27 : vector<256x128xf32> to vector<256x128xbf16>
    %cst_14 = arith.constant 0.000000e+00 : bf16
    %29 = vector.broadcast %cst_14 : bf16 to vector<1x18x128xbf16>
    %cst_15 = arith.constant 0.000000e+00 : bf16
    %30 = vector.broadcast %cst_15 : bf16 to vector<18x1x128xbf16>
    %c0_16 = arith.constant 0 : index
    %c0_17 = arith.constant 0 : index
    %c0_18 = arith.constant 0 : index
    %31 = vector.load %arg9[%c0_16, %c0_17, %c0_18] : memref<18x18x128xbf16, #tpu.memory_space<vmem>>, vector<1x18x128xbf16>
    tpu.vector_store %arg9[%c0_16, %c0_17, %c0_18], %29 {strides = array<i32>} : memref<18x18x128xbf16, #tpu.memory_space<vmem>>, vector<1x18x128xbf16>,
    %c17 = arith.constant 17 : index
    %c0_19 = arith.constant 0 : index
    %c0_20 = arith.constant 0 : index
    %32 = vector.load %arg9[%c17, %c0_19, %c0_20] : memref<18x18x128xbf16, #tpu.memory_space<vmem>>, vector<1x18x128xbf16>
    tpu.vector_store %arg9[%c17, %c0_19, %c0_20], %29 {strides = array<i32>} : memref<18x18x128xbf16, #tpu.memory_space<vmem>>, vector<1x18x128xbf16>,
    %c0_21 = arith.constant 0 : index
    %c0_22 = arith.constant 0 : index
    %c0_23 = arith.constant 0 : index
    %33 = vector.load %arg9[%c0_21, %c0_22, %c0_23] : memref<18x18x128xbf16, #tpu.memory_space<vmem>>, vector<18x1x128xbf16>
    tpu.vector_store %arg9[%c0_21, %c0_22, %c0_23], %30 {strides = array<i32>} : memref<18x18x128xbf16, #tpu.memory_space<vmem>>, vector<18x1x128xbf16>,
    %c0_24 = arith.constant 0 : index
    %c17_25 = arith.constant 17 : index
    %c0_26 = arith.constant 0 : index
    %34 = vector.load %arg9[%c0_24, %c17_25, %c0_26] : memref<18x18x128xbf16, #tpu.memory_space<vmem>>, vector<18x1x128xbf16>
    tpu.vector_store %arg9[%c0_24, %c17_25, %c0_26], %30 {strides = array<i32>} : memref<18x18x128xbf16, #tpu.memory_space<vmem>>, vector<18x1x128xbf16>,
    %35 = vector.shape_cast %28 : vector<256x128xbf16> to vector<16x16x128xbf16>
    %c1_27 = arith.constant 1 : index
    %c1_28 = arith.constant 1 : index
    %c0_29 = arith.constant 0 : index
    %36 = vector.load %arg9[%c1_27, %c1_28, %c0_29] : memref<18x18x128xbf16, #tpu.memory_space<vmem>>, vector<16x16x128xbf16>
    tpu.vector_store %arg9[%c1_27, %c1_28, %c0_29], %35 {strides = array<i32>} : memref<18x18x128xbf16, #tpu.memory_space<vmem>>, vector<16x16x128xbf16>,
    %c0_30 = arith.constant 0 : index
    %c0_31 = arith.constant 0 : index
    %c0_32 = arith.constant 0 : index
    %37 = vector.load %arg9[%c0_30, %c0_31, %c0_32] : memref<18x18x128xbf16, #tpu.memory_space<vmem>>, vector<16x16x128xbf16>
    %c0_33 = arith.constant 0 : index
    %c1_34 = arith.constant 1 : index
    %c0_35 = arith.constant 0 : index
    %38 = vector.load %arg9[%c0_33, %c1_34, %c0_35] : memref<18x18x128xbf16, #tpu.memory_space<vmem>>, vector<16x16x128xbf16>
    %c0_36 = arith.constant 0 : index
    %c2 = arith.constant 2 : index
    %c0_37 = arith.constant 0 : index
    %39 = vector.load %arg9[%c0_36, %c2, %c0_37] : memref<18x18x128xbf16, #tpu.memory_space<vmem>>, vector<16x16x128xbf16>
    %40 = tpu.concatenate %37, %38, %39 in 2 : vector<16x16x128xbf16>, vector<16x16x128xbf16>, vector<16x16x128xbf16> -> vector<16x16x384xbf16>
    %41 = vector.shape_cast %40 : vector<16x16x384xbf16> to vector<256x384xbf16>
    %c0_38 = arith.constant 0 : index
    %c0_39 = arith.constant 0 : index
    %c0_40 = arith.constant 0 : index
    %42 = vector.load %arg5[%c0_38, %c0_39, %c0_40] : memref<3x384x128xbf16, #tpu.memory_space<vmem>>, vector<1x384x128xbf16>
    %43 = vector.shape_cast %42 : vector<1x384x128xbf16> to vector<384x128xbf16>
    %cst_41 = arith.constant dense<0.000000e+00> : vector<256x128xf32>
    %44 = tpu.matmul %41, %43, %cst_41 {dimension_numbers = #tpu.dot_dimension_numbers<[1], [0], [0], [1], [0, 0, 1, 1], [], []>} : vector<256x384xbf16>, vector<384x128xbf16>, vector<256x128xf32> -> vector<256x128xf32>
    %c0_42 = arith.constant 0 : index
    %c0_43 = arith.constant 0 : index
    %45 = vector.load %arg10[%c0_42, %c0_43] : memref<256x128xf32, #tpu.memory_space<vmem>>, vector<256x128xf32>
    tpu.vector_store %arg10[%c0_42, %c0_43], %44 {strides = array<i32>} : memref<256x128xf32, #tpu.memory_space<vmem>>, vector<256x128xf32>,
    %c1_44 = arith.constant 1 : index
    %c0_45 = arith.constant 0 : index
    %c0_46 = arith.constant 0 : index
    %46 = vector.load %arg9[%c1_44, %c0_45, %c0_46] : memref<18x18x128xbf16, #tpu.memory_space<vmem>>, vector<16x16x128xbf16>
    %c1_47 = arith.constant 1 : index
    %c1_48 = arith.constant 1 : index
    %c0_49 = arith.constant 0 : index
    %47 = vector.load %arg9[%c1_47, %c1_48, %c0_49] : memref<18x18x128xbf16, #tpu.memory_space<vmem>>, vector<16x16x128xbf16>
    %c1_50 = arith.constant 1 : index
    %c2_51 = arith.constant 2 : index
    %c0_52 = arith.constant 0 : index
    %48 = vector.load %arg9[%c1_50, %c2_51, %c0_52] : memref<18x18x128xbf16, #tpu.memory_space<vmem>>, vector<16x16x128xbf16>
    %49 = tpu.concatenate %46, %47, %48 in 2 : vector<16x16x128xbf16>, vector<16x16x128xbf16>, vector<16x16x128xbf16> -> vector<16x16x384xbf16>
    %50 = vector.shape_cast %49 : vector<16x16x384xbf16> to vector<256x384xbf16>
    %c1_53 = arith.constant 1 : index
    %c0_54 = arith.constant 0 : index
    %c0_55 = arith.constant 0 : index
    %51 = vector.load %arg5[%c1_53, %c0_54, %c0_55] : memref<3x384x128xbf16, #tpu.memory_space<vmem>>, vector<1x384x128xbf16>
    %52 = vector.shape_cast %51 : vector<1x384x128xbf16> to vector<384x128xbf16>
    %cst_56 = arith.constant dense<0.000000e+00> : vector<256x128xf32>
    %53 = tpu.matmul %50, %52, %cst_56 {dimension_numbers = #tpu.dot_dimension_numbers<[1], [0], [0], [1], [0, 0, 1, 1], [], []>} : vector<256x384xbf16>, vector<384x128xbf16>, vector<256x128xf32> -> vector<256x128xf32>
    %c0_57 = arith.constant 0 : index
    %c0_58 = arith.constant 0 : index
    %54 = vector.load %arg10[%c0_57, %c0_58] : memref<256x128xf32, #tpu.memory_space<vmem>>, vector<256x128xf32>
    %55 = arith.addf %54, %53 : vector<256x128xf32>
    %c0_59 = arith.constant 0 : index
    %c0_60 = arith.constant 0 : index
    %56 = vector.load %arg10[%c0_59, %c0_60] : memref<256x128xf32, #tpu.memory_space<vmem>>, vector<256x128xf32>
    tpu.vector_store %arg10[%c0_59, %c0_60], %55 {strides = array<i32>} : memref<256x128xf32, #tpu.memory_space<vmem>>, vector<256x128xf32>,
    %c2_61 = arith.constant 2 : index
    %c0_62 = arith.constant 0 : index
    %c0_63 = arith.constant 0 : index
    %57 = vector.load %arg9[%c2_61, %c0_62, %c0_63] : memref<18x18x128xbf16, #tpu.memory_space<vmem>>, vector<16x16x128xbf16>
    %c2_64 = arith.constant 2 : index
    %c1_65 = arith.constant 1 : index
    %c0_66 = arith.constant 0 : index
    %58 = vector.load %arg9[%c2_64, %c1_65, %c0_66] : memref<18x18x128xbf16, #tpu.memory_space<vmem>>, vector<16x16x128xbf16>
    %c2_67 = arith.constant 2 : index
    %c2_68 = arith.constant 2 : index
    %c0_69 = arith.constant 0 : index
    %59 = vector.load %arg9[%c2_67, %c2_68, %c0_69] : memref<18x18x128xbf16, #tpu.memory_space<vmem>>, vector<16x16x128xbf16>
    %60 = tpu.concatenate %57, %58, %59 in 2 : vector<16x16x128xbf16>, vector<16x16x128xbf16>, vector<16x16x128xbf16> -> vector<16x16x384xbf16>
    %61 = vector.shape_cast %60 : vector<16x16x384xbf16> to vector<256x384xbf16>
    %c2_70 = arith.constant 2 : index
    %c0_71 = arith.constant 0 : index
    %c0_72 = arith.constant 0 : index
    %62 = vector.load %arg5[%c2_70, %c0_71, %c0_72] : memref<3x384x128xbf16, #tpu.memory_space<vmem>>, vector<1x384x128xbf16>
    %63 = vector.shape_cast %62 : vector<1x384x128xbf16> to vector<384x128xbf16>
    %cst_73 = arith.constant dense<0.000000e+00> : vector<256x128xf32>
    %64 = tpu.matmul %61, %63, %cst_73 {dimension_numbers = #tpu.dot_dimension_numbers<[1], [0], [0], [1], [0, 0, 1, 1], [], []>} : vector<256x384xbf16>, vector<384x128xbf16>, vector<256x128xf32> -> vector<256x128xf32>
    %c0_74 = arith.constant 0 : index
    %c0_75 = arith.constant 0 : index
    %65 = vector.load %arg10[%c0_74, %c0_75] : memref<256x128xf32, #tpu.memory_space<vmem>>, vector<256x128xf32>
    %66 = arith.addf %65, %64 : vector<256x128xf32>
    %c0_76 = arith.constant 0 : index
    %c0_77 = arith.constant 0 : index
    %67 = vector.load %arg10[%c0_76, %c0_77] : memref<256x128xf32, #tpu.memory_space<vmem>>, vector<256x128xf32>
    tpu.vector_store %arg10[%c0_76, %c0_77], %66 {strides = array<i32>} : memref<256x128xf32, #tpu.memory_space<vmem>>, vector<256x128xf32>,
    %c0_78 = arith.constant 0 : index
    %c0_79 = arith.constant 0 : index
    %68 = vector.load %arg10[%c0_78, %c0_79] : memref<256x128xf32, #tpu.memory_space<vmem>>, vector<256x128xf32>
    %c0_80 = arith.constant 0 : index
    %c0_81 = arith.constant 0 : index
    %69 = vector.load %arg6[%c0_80, %c0_81] : memref<1x128xf32, #tpu.memory_space<vmem>>, vector<1x128xf32>
    %70 = vector.broadcast %69 : vector<1x128xf32> to vector<256x128xf32>
    %71 = arith.addf %68, %70 : vector<256x128xf32>
    %72 = vector.shape_cast %71 : vector<256x128xf32> to vector<16x16x128xf32>
    %73 = arith.truncf %72 : vector<16x16x128xf32> to vector<16x16x128xbf16>
    %c0_82 = arith.constant 0 : index
    %c0_83 = arith.constant 0 : index
    %c0_84 = arith.constant 0 : index
    %c0_85 = arith.constant 0 : index
    %74 = vector.load %arg7[%c0_82, %c0_83, %c0_84, %c0_85] : memref<1x16x16x128xbf16, #tpu.memory_space<vmem>>, vector<1x16x16x128xbf16>
    %75 = vector.shape_cast %74 : vector<1x16x16x128xbf16> to vector<16x16x128xbf16>
    %76 = vector.shape_cast %73 : vector<16x16x128xbf16> to vector<1x16x16x128xbf16>
    tpu.vector_store %arg7[%c0_82, %c0_83, %c0_84, %c0_85], %76 {strides = array<i32>} : memref<1x16x16x128xbf16, #tpu.memory_space<vmem>>, vector<1x16x16x128xbf16>,
    %cst_86 = arith.constant dense<0.000000e+00> : vector<128xf32>
    %77 = vector.multi_reduction <add>, %71, %cst_86 [0] : vector<256x128xf32> to vector<128xf32>
    %78 = vector.shape_cast %77 : vector<128xf32> to vector<1x128xf32>
    %79 = arith.mulf %71, %71 : vector<256x128xf32>
    %cst_87 = arith.constant dense<0.000000e+00> : vector<128xf32>
    %80 = vector.multi_reduction <add>, %79, %cst_87 [0] : vector<256x128xf32> to vector<128xf32>
    %81 = vector.shape_cast %80 : vector<128xf32> to vector<1x128xf32>
    %82 = tpu.concatenate %78, %81 in 0 : vector<1x128xf32>, vector<1x128xf32> -> vector<2x128xf32>
    %c0_88 = arith.constant 0 : index
    %c0_89 = arith.constant 0 : index
    %c0_90 = arith.constant 0 : index
    %83 = vector.load %arg8[%c0_88, %c0_89, %c0_90] : memref<1x2x128xf32, #tpu.memory_space<vmem>>, vector<1x2x128xf32>
    %84 = vector.shape_cast %83 : vector<1x2x128xf32> to vector<2x128xf32>
    %85 = vector.shape_cast %82 : vector<2x128xf32> to vector<1x2x128xf32>
    tpu.vector_store %arg8[%c0_88, %c0_89, %c0_90], %85 {strides = array<i32>} : memref<1x2x128xf32, #tpu.memory_space<vmem>>, vector<1x2x128xf32>,
    return
  }
  func.func @transform_0(%arg0: i32) -> (i32, i32, i32, i32) {
    %c0_i32 = arith.constant 0 : i32
    %c0_i32_0 = arith.constant 0 : i32
    %c0_i32_1 = arith.constant 0 : i32
    %c0_i32_2 = arith.constant 0 : i32
    return %arg0, %c0_i32, %c0_i32_0, %c0_i32_1 : i32, i32, i32, i32
  }
  func.func @transform_1(%arg0: i32) -> (i32, i32) {
    %c0_i32 = arith.constant 0 : i32
    %c0_i32_0 = arith.constant 0 : i32
    %c0_i32_1 = arith.constant 0 : i32
    return %c0_i32, %c0_i32_0 : i32, i32
  }
  func.func @transform_2(%arg0: i32) -> (i32, i32) {
    %c0_i32 = arith.constant 0 : i32
    %c0_i32_0 = arith.constant 0 : i32
    %c0_i32_1 = arith.constant 0 : i32
    return %c0_i32, %c0_i32_0 : i32, i32
  }
  func.func @transform_3(%arg0: i32) -> (i32, i32) {
    %c0_i32 = arith.constant 0 : i32
    %c0_i32_0 = arith.constant 0 : i32
    %c0_i32_1 = arith.constant 0 : i32
    return %c0_i32, %c0_i32_0 : i32, i32
  }
  func.func @transform_4(%arg0: i32) -> (i32, i32, i32) {
    %c0_i32 = arith.constant 0 : i32
    %c0_i32_0 = arith.constant 0 : i32
    %c0_i32_1 = arith.constant 0 : i32
    %c0_i32_2 = arith.constant 0 : i32
    return %c0_i32, %c0_i32_0, %c0_i32_1 : i32, i32, i32
  }
  func.func @transform_5(%arg0: i32) -> (i32, i32) {
    %c0_i32 = arith.constant 0 : i32
    %c0_i32_0 = arith.constant 0 : i32
    %c0_i32_1 = arith.constant 0 : i32
    return %c0_i32, %c0_i32_0 : i32, i32
  }
  func.func @transform_6(%arg0: i32) -> (i32, i32, i32, i32) {
    %c0_i32 = arith.constant 0 : i32
    %c0_i32_0 = arith.constant 0 : i32
    %c0_i32_1 = arith.constant 0 : i32
    %c0_i32_2 = arith.constant 0 : i32
    return %arg0, %c0_i32, %c0_i32_0, %c0_i32_1 : i32, i32, i32, i32
  }
  func.func @transform_7(%arg0: i32) -> (i32, i32, i32) {
    %c0_i32 = arith.constant 0 : i32
    %c0_i32_0 = arith.constant 0 : i32
    %c0_i32_1 = arith.constant 0 : i32
    return %arg0, %c0_i32, %c0_i32_0 : i32, i32, i32
  }
}

module attributes {stable_mosaic.version = 11 : i64} {
  func.func @_bn_add_relu_kernel(%arg0: i32, %arg1: memref<512x128xbf16, #tpu.memory_space<vmem>>, %arg2: memref<512x128xbf16, #tpu.memory_space<vmem>>, %arg3: memref<2x128xf32, #tpu.memory_space<vmem>>, %arg4: memref<2x128xf32, #tpu.memory_space<vmem>>, %arg5: memref<1x128xf32, #tpu.memory_space<vmem>>, %arg6: memref<1x128xf32, #tpu.memory_space<vmem>>, %arg7: memref<1x128xf32, #tpu.memory_space<vmem>>, %arg8: memref<1x128xf32, #tpu.memory_space<vmem>>, %arg9: memref<512x128xf32, #tpu.memory_space<vmem>>) attributes {dimension_semantics = [#tpu.dimension_semantics<parallel>], iteration_bounds = array<i64: 1>, scalar_prefetch = 0 : i64, scratch_operands = 0 : i64, tpu.core_type = #tpu.core_type<tc>, window_params = [{transform_indices = @transform_0, window_bounds = array<i64: 512, 128>}, {transform_indices = @transform_1, window_bounds = array<i64: 512, 128>}, {pipeline_mode = #tpu.pipeline_mode<synchronous>, transform_indices = @transform_2, window_bounds = array<i64: 2, 128>}, {pipeline_mode = #tpu.pipeline_mode<synchronous>, transform_indices = @transform_3, window_bounds = array<i64: 2, 128>}, {pipeline_mode = #tpu.pipeline_mode<synchronous>, transform_indices = @transform_4, window_bounds = array<i64: 1, 128>}, {pipeline_mode = #tpu.pipeline_mode<synchronous>, transform_indices = @transform_5, window_bounds = array<i64: 1, 128>}, {pipeline_mode = #tpu.pipeline_mode<synchronous>, transform_indices = @transform_6, window_bounds = array<i64: 1, 128>}, {pipeline_mode = #tpu.pipeline_mode<synchronous>, transform_indices = @transform_7, window_bounds = array<i64: 1, 128>}, {transform_indices = @transform_8, window_bounds = array<i64: 512, 128>}]} {
    %c0 = arith.constant 0 : index
    %c0_0 = arith.constant 0 : index
    %0 = vector.load %arg3[%c0, %c0_0] : memref<2x128xf32, #tpu.memory_space<vmem>>, vector<1x128xf32>
    %cst = arith.constant 0.001953125 : f32
    %1 = vector.broadcast %cst : f32 to vector<1x128xf32>
    %2 = arith.mulf %0, %1 : vector<1x128xf32>
    %c1 = arith.constant 1 : index
    %c0_1 = arith.constant 0 : index
    %3 = vector.load %arg3[%c1, %c0_1] : memref<2x128xf32, #tpu.memory_space<vmem>>, vector<1x128xf32>
    %cst_2 = arith.constant 0.001953125 : f32
    %4 = vector.broadcast %cst_2 : f32 to vector<1x128xf32>
    %5 = arith.mulf %3, %4 : vector<1x128xf32>
    %6 = arith.mulf %2, %2 : vector<1x128xf32>
    %7 = arith.subf %5, %6 : vector<1x128xf32>
    %cst_3 = arith.constant 0.000000e+00 : f32
    %8 = vector.broadcast %cst_3 : f32 to vector<1x128xf32>
    %9 = arith.maximumf %7, %8 : vector<1x128xf32>
    %c0_4 = arith.constant 0 : index
    %c0_5 = arith.constant 0 : index
    %10 = vector.load %arg5[%c0_4, %c0_5] : memref<1x128xf32, #tpu.memory_space<vmem>>, vector<1x128xf32>
    %cst_6 = arith.constant 9.99999974E-6 : f32
    %11 = vector.broadcast %cst_6 : f32 to vector<1x128xf32>
    %12 = arith.addf %9, %11 : vector<1x128xf32>
    %13 = math.rsqrt %12 : vector<1x128xf32>
    %14 = arith.mulf %10, %13 : vector<1x128xf32>
    %c0_7 = arith.constant 0 : index
    %c0_8 = arith.constant 0 : index
    %15 = vector.load %arg6[%c0_7, %c0_8] : memref<1x128xf32, #tpu.memory_space<vmem>>, vector<1x128xf32>
    %16 = arith.mulf %2, %14 : vector<1x128xf32>
    %17 = arith.subf %15, %16 : vector<1x128xf32>
    %c0_9 = arith.constant 0 : index
    %c0_10 = arith.constant 0 : index
    %18 = vector.load %arg4[%c0_9, %c0_10] : memref<2x128xf32, #tpu.memory_space<vmem>>, vector<1x128xf32>
    %cst_11 = arith.constant 0.001953125 : f32
    %19 = vector.broadcast %cst_11 : f32 to vector<1x128xf32>
    %20 = arith.mulf %18, %19 : vector<1x128xf32>
    %c1_12 = arith.constant 1 : index
    %c0_13 = arith.constant 0 : index
    %21 = vector.load %arg4[%c1_12, %c0_13] : memref<2x128xf32, #tpu.memory_space<vmem>>, vector<1x128xf32>
    %cst_14 = arith.constant 0.001953125 : f32
    %22 = vector.broadcast %cst_14 : f32 to vector<1x128xf32>
    %23 = arith.mulf %21, %22 : vector<1x128xf32>
    %24 = arith.mulf %20, %20 : vector<1x128xf32>
    %25 = arith.subf %23, %24 : vector<1x128xf32>
    %cst_15 = arith.constant 0.000000e+00 : f32
    %26 = vector.broadcast %cst_15 : f32 to vector<1x128xf32>
    %27 = arith.maximumf %25, %26 : vector<1x128xf32>
    %c0_16 = arith.constant 0 : index
    %c0_17 = arith.constant 0 : index
    %28 = vector.load %arg7[%c0_16, %c0_17] : memref<1x128xf32, #tpu.memory_space<vmem>>, vector<1x128xf32>
    %cst_18 = arith.constant 9.99999974E-6 : f32
    %29 = vector.broadcast %cst_18 : f32 to vector<1x128xf32>
    %30 = arith.addf %27, %29 : vector<1x128xf32>
    %31 = math.rsqrt %30 : vector<1x128xf32>
    %32 = arith.mulf %28, %31 : vector<1x128xf32>
    %c0_19 = arith.constant 0 : index
    %c0_20 = arith.constant 0 : index
    %33 = vector.load %arg8[%c0_19, %c0_20] : memref<1x128xf32, #tpu.memory_space<vmem>>, vector<1x128xf32>
    %34 = arith.mulf %20, %32 : vector<1x128xf32>
    %35 = arith.subf %33, %34 : vector<1x128xf32>
    %c0_21 = arith.constant 0 : index
    %c0_22 = arith.constant 0 : index
    %36 = vector.load %arg1[%c0_21, %c0_22] : memref<512x128xbf16, #tpu.memory_space<vmem>>, vector<512x128xbf16>
    %37 = arith.extf %36 : vector<512x128xbf16> to vector<512x128xf32>
    %c0_23 = arith.constant 0 : index
    %c0_24 = arith.constant 0 : index
    %38 = vector.load %arg2[%c0_23, %c0_24] : memref<512x128xbf16, #tpu.memory_space<vmem>>, vector<512x128xbf16>
    %39 = arith.extf %38 : vector<512x128xbf16> to vector<512x128xf32>
    %40 = vector.broadcast %14 : vector<1x128xf32> to vector<512x128xf32>
    %41 = arith.mulf %37, %40 : vector<512x128xf32>
    %42 = vector.broadcast %17 : vector<1x128xf32> to vector<512x128xf32>
    %43 = arith.addf %41, %42 : vector<512x128xf32>
    %44 = vector.broadcast %32 : vector<1x128xf32> to vector<512x128xf32>
    %45 = arith.mulf %39, %44 : vector<512x128xf32>
    %46 = arith.addf %43, %45 : vector<512x128xf32>
    %47 = vector.broadcast %35 : vector<1x128xf32> to vector<512x128xf32>
    %48 = arith.addf %46, %47 : vector<512x128xf32>
    %cst_25 = arith.constant 0.000000e+00 : f32
    %49 = vector.broadcast %cst_25 : f32 to vector<512x128xf32>
    %50 = arith.maximumf %48, %49 : vector<512x128xf32>
    %c0_26 = arith.constant 0 : index
    %c0_27 = arith.constant 0 : index
    %51 = vector.load %arg9[%c0_26, %c0_27] : memref<512x128xf32, #tpu.memory_space<vmem>>, vector<512x128xf32>
    tpu.vector_store %arg9[%c0_26, %c0_27], %50 {strides = array<i32>} : memref<512x128xf32, #tpu.memory_space<vmem>>, vector<512x128xf32>,
    return
  }
  func.func @transform_0(%arg0: i32) -> (i32, i32) {
    %c0_i32 = arith.constant 0 : i32
    %c0_i32_0 = arith.constant 0 : i32
    return %arg0, %c0_i32 : i32, i32
  }
  func.func @transform_1(%arg0: i32) -> (i32, i32) {
    %c0_i32 = arith.constant 0 : i32
    %c0_i32_0 = arith.constant 0 : i32
    return %arg0, %c0_i32 : i32, i32
  }
  func.func @transform_2(%arg0: i32) -> (i32, i32) {
    %c0_i32 = arith.constant 0 : i32
    %c0_i32_0 = arith.constant 0 : i32
    %c0_i32_1 = arith.constant 0 : i32
    return %c0_i32, %c0_i32_0 : i32, i32
  }
  func.func @transform_3(%arg0: i32) -> (i32, i32) {
    %c0_i32 = arith.constant 0 : i32
    %c0_i32_0 = arith.constant 0 : i32
    %c0_i32_1 = arith.constant 0 : i32
    return %c0_i32, %c0_i32_0 : i32, i32
  }
  func.func @transform_4(%arg0: i32) -> (i32, i32) {
    %c0_i32 = arith.constant 0 : i32
    %c0_i32_0 = arith.constant 0 : i32
    %c0_i32_1 = arith.constant 0 : i32
    return %c0_i32, %c0_i32_0 : i32, i32
  }
  func.func @transform_5(%arg0: i32) -> (i32, i32) {
    %c0_i32 = arith.constant 0 : i32
    %c0_i32_0 = arith.constant 0 : i32
    %c0_i32_1 = arith.constant 0 : i32
    return %c0_i32, %c0_i32_0 : i32, i32
  }
  func.func @transform_6(%arg0: i32) -> (i32, i32) {
    %c0_i32 = arith.constant 0 : i32
    %c0_i32_0 = arith.constant 0 : i32
    %c0_i32_1 = arith.constant 0 : i32
    return %c0_i32, %c0_i32_0 : i32, i32
  }
  func.func @transform_7(%arg0: i32) -> (i32, i32) {
    %c0_i32 = arith.constant 0 : i32
    %c0_i32_0 = arith.constant 0 : i32
    %c0_i32_1 = arith.constant 0 : i32
    return %c0_i32, %c0_i32_0 : i32, i32
  }
  func.func @transform_8(%arg0: i32) -> (i32, i32) {
    %c0_i32 = arith.constant 0 : i32
    %c0_i32_0 = arith.constant 0 : i32
    return %arg0, %c0_i32 : i32, i32
  }
}

</mosaic_0001>

<bundles_post_ra>
// kernel: resblock_forward.5
= control target key start
LH: loop header
LB: loop body
LE: loop exit
PB: predicated region body
PF: predicated region fallthrough
CT: control target
= control target key end

     0   :  { %v314_v0 = vlaneseq  ;;  %s2138_s0 = inlined_call_operand.vmem [shape: bf16[512,128], index: 0, kind: input, shape index: {}]   ;;  %s2139_s2 = inlined_call_operand.vmem [shape: f32[2,128], index: 2, kind: input, shape index: {}]   ;;  %s2140_s3 = inlined_call_operand.vmem [shape: f32[2,128], index: 3, kind: input, shape index: {}]   ;;  %s2141_s1 = inlined_call_operand.vmem [shape: bf16[512,128], index: 1, kind: input, shape index: {}]   ;;  %s2142_s4 = inlined_call_operand.vmem [shape: f32[1,128], index: 4, kind: input, shape index: {}]   ;;  %s2143_s6 = inlined_call_operand.vmem [shape: f32[1,128], index: 6, kind: input, shape index: {}]   ;;  %s2144_s5 = inlined_call_operand.vmem [shape: f32[1,128], index: 5, kind: input, shape index: {}]   ;;  %s2145_s7 = inlined_call_operand.vmem [shape: f32[1,128], index: 7, kind: input, shape index: {}]   ;;  %s2146_s8 = inlined_call_operand.vmem [shape: f32[512,128], index: 8, kind: output, shape index: {}]  }
   0x1   :  { %v29_v1 = vld [vmem:[%s2139_s2] sm:$0x1]  ;;  %v31_v2 = vld [vmem:[%s2139_s2 + $0x1] sm:$0x1]  ;;  %v1188_v14 = vld [vmem:[%s2138_s0 + $0x8] sm:$0xff]  }
   0x2   :  { %v1162_v3 = vmul.f32 0.001953125, %v29_v1  ;;  %v32_v4 = vmul.f32 0.001953125, %v31_v2  ;;  %v43_v5 = vld [vmem:[%s2140_s3] sm:$0x1]  ;;  %v45_v7 = vld [vmem:[%s2140_s3 + $0x1] sm:$0x1]  ;;  %v795_v24 = vunpack.c.l.bf16 %v1188_v14  ;;  %v796_v29 = vunpack.c.h.bf16 %v1188_v14 }
   0x3   :  { %v1167_v6 = vmul.f32 0.001953125, %v43_v5  ;;  %v1175_v8 = vld [vmem:[%s2138_s0] sm:$0xff]   ;;  %v46_v10 = vmul.f32 0.001953125, %v45_v7  ;;  %v315_v13 = vshrl.u32 %v314_v0, 7  ;;  %v1198_v19 = vld [vmem:[%s2141_s1 + $0x8] sm:$0xff]   ;;  %v1203_v20 = vld [vmem:[%s2138_s0 + $0x10] sm:$0xff]  }
   0x4   :  { %v33_v9 = vmul.f32 %v1162_v3, %v1162_v3  ;;  %v791_v11 = vunpack.c.l.bf16 %v1175_v8  ;;  %v1183_v12 = vld [vmem:[%s2141_s1] sm:$0xff]   ;;  %v792_v17 = vunpack.c.h.bf16 %v1175_v8  ;;  %v1208_v21 = vld [vmem:[%s2141_s1 + $0x10] sm:$0xff]   ;;  %v923_v25 = vunpack.c.l.bf16 %v1198_v19  ;;  %v1217_v26 = vld [vmem:[%s2138_s0 + $0x18] sm:$0xff]  }
   0x5   :  { %v47_v15 = vmul.f32 %v1167_v6, %v1167_v6  ;;  %v919_v16 = vunpack.c.l.bf16 %v1183_v12  ;;  %v920_v18 = vunpack.c.h.bf16 %v1183_v12  ;;  %v1210_v23 = vsub.s32 0, %v315_v13  ;;  %v1222_v27 = vld [vmem:[%s2141_s1 + $0x18] sm:$0xff]   ;;  %v1230_v32 = vld [vmem:[%s2138_s0 + $0x20] sm:$0xff]   ;;  %v1243_v38 = vld [vmem:[%s2138_s0 + $0x28] sm:$0xff]  }
   0x6   :  { %v34_v22 = vsub.f32 %v32_v4, %v33_v9  ;;  %v924_v30 = vunpack.c.h.bf16 %v1198_v19  ;;  %v799_v31 = vunpack.c.l.bf16 %v1203_v20  ;;  %v1235_v33 = vld [vmem:[%s2141_s1 + $0x20] sm:$0xff]   ;;  %v927_v35 = vunpack.c.l.bf16 %v1208_v21  ;;  %v1251_v43 = vld [vmem:[%s2141_s1 + $0x28] sm:$0xff]   ;;  %v1259_v48 = vld [vmem:[%s2138_s0 + $0x30] sm:$0xff]  }
   0x7   :  { %v48_v28 = vsub.f32 %v46_v10, %v47_v15  ;;  %v800_v36 = vunpack.c.h.bf16 %v1203_v20  ;;  %v1264_v49 = vld [vmem:[%s2141_s1 + $0x30] sm:$0xff]   ;;  %v1272_v54 = vld [vmem:[%s2138_s0 + $0x38] sm:$0xff]   ;;  %v1285_v59 = vld [vmem:[%s2138_s0 + $0x40] sm:$0xff]   ;;  %v2148_v20 = vunpack.c.l.bf16 %v1217_v26 }
   0x8   :  { %v35_v34 = vmax.f32 %v34_v22, 0.0  ;;  %v1277_v55 = vld [vmem:[%s2141_s1 + $0x38] sm:$0xff]   ;;  %v1290_v60 = vld [vmem:[%s2141_s1 + $0x40] sm:$0xff]   ;;  %v1298_v0 = vld [vmem:[%s2138_s0 + $0x48] sm:$0xff]  }
   0x9   :  { %v49_v39 = vmax.f32 %v48_v28, 0.0  ;;  %v1303_v1 = vld [vmem:[%s2141_s1 + $0x48] sm:$0xff]   ;;  %v1312_v9 = vld [vmem:[%s2138_s0 + $0x50] sm:$0xff]   ;;  %v1340_v28 = vld [vmem:[%s2138_s0 + $0x60] sm:$0xff]  }
   0xa   :  { %v37_v44 = vadd.f32 1e-05, %v35_v34  ;;  %v1317_v10 = vld [vmem:[%s2141_s1 + $0x50] sm:$0xff]   ;;  %v1326_v34 = vld [vmem:[%s2138_s0 + $0x58] sm:$0xff]   ;;  %v1345_v13 = vld [vmem:[%s2141_s1 + $0x60] sm:$0xff]  }
   0xb   :  { %v51_v50 = vadd.f32 1e-05, %v49_v39  ;;  %v1331_v39 = vld [vmem:[%s2141_s1 + $0x58] sm:$0xff]   ;;  %v1354_v22 = vld [vmem:[%s2138_s0 + $0x68] sm:$0xff]   ;;  %v1368_v15 = vld [vmem:[%s2138_s0 + $0x70] sm:$0xff]  }
   0xc   :  { %1107 = vrsqrt.f32 %v37_v44  ;;  %v1359_v5 = vld [vmem:[%s2141_s1 + $0x68] sm:$0xff]   ;;  %v1373_v2 = vld [vmem:[%s2141_s1 + $0x70] sm:$0xff]   ;;  %v1387_v62 = vld [vmem:[%s2141_s1 + $0x78] sm:$0xff]  }
   0xd   :  { %1109 = vrsqrt.f32 %v51_v50  ;;  %v1382_v50 = vld [vmem:[%s2138_s0 + $0x78] sm:$0xff]   ;;  %v36_v63 = vld [vmem:[%s2142_s4] sm:$0x1]  ;;  %v1416_v53 = vld [vmem:[%s2138_s0 + $0x88] sm:$0xff]  }
   0xe   :  { %v1399_v58 = vld [vmem:[%s2138_s0 + $0x80] sm:$0xff]   ;;  %v1425_v61 = vld [vmem:[%s2141_s1 + $0x88] sm:$0xff]   ;;  %v1433_v47 = vld [vmem:[%s2138_s0 + $0x90] sm:$0xff]  }
   0xf   :  { %v1404_v57 = vld [vmem:[%s2141_s1 + $0x80] sm:$0xff]   ;;  %v987_v40 = vunpack.c.l.bf16 %v1425_v61 }
  0x10   :  { %v50_v4 = vld [vmem:[%s2143_s6] sm:$0x1] }
  0x11   :  { %v40_v7 = vld [vmem:[%s2144_s5] sm:$0x1] }
  0x12   :  { %v54_v41 = vld [vmem:[%s2145_s7] sm:$0x1] }
  0x16   :  { %v1108_v52 = vpop.eup %1107 }
  0x17   :  { %v1110_v56 = vpop.eup %1109  ;;  %v39_v44 = vmul.f32 %v1108_v52, %v36_v63  ;;  %v988_v63 = vunpack.c.h.bf16 %v1425_v61  ;;  %v2206_v61 = vunpack.c.l.bf16 %v1433_v47 }
  0x18   :  { %v53_v46 = vmul.f32 %v1110_v56, %v50_v4 }
  0x19   :  { %v41_v42 = vmul.f32 %v39_v44, %v1162_v3  ;;  %v1446_v45 = vrot.slane %v39_v44, %v1210_v23 }
  0x1a   :  { %v55_v56 = vmul.f32 %v53_v46, %v1167_v6  ;;  %v1452_v4 = vrot.slane %v53_v46, %v1210_v23 }
  0x1b   :  { %v42_v52 = vsub.f32 %v40_v7, %v41_v42  ;;  %v319_v51 = vmul.f32 %v791_v11, %v1446_v45  ;;  %v320_v44 = vmul.f32 %v792_v17, %v1446_v45  ;;  %v321_v6 = vmul.f32 %v795_v24, %v1446_v45 }
  0x1c   :  { %v56_v37 = vsub.f32 %v54_v41, %v55_v56  ;;  %v459_v46 = vmul.f32 %v919_v16, %v1452_v4  ;;  %v460_v42 = vmul.f32 %v920_v18, %v1452_v4  ;;  %v461_v11 = vmul.f32 %v923_v25, %v1452_v4 }
  0x1d   :  { %v1475_v8 = vrot.slane %v42_v52, %v1210_v23  ;;  %v322_v17 = vmul.f32 %v796_v29, %v1446_v45  ;;  %v462_v24 = vmul.f32 %v924_v30, %v1452_v4  ;;  %v323_v12 = vmul.f32 %v799_v31, %v1446_v45 }
  0x1e   :  { %v1487_v16 = vrot.slane %v56_v37, %v1210_v23  ;;  %v463_v18 = vmul.f32 %v927_v35, %v1452_v4  ;;  %v324_v14 = vmul.f32 %v800_v36, %v1446_v45  ;;  %v2147_v25 = vunpack.c.h.bf16 %v1208_v21 }
  0x1f   :  { %v389_v29 = vadd.f32 %v1475_v8, %v319_v51  ;;  %v390_v30 = vadd.f32 %v1475_v8, %v320_v44  ;;  %v391_v31 = vadd.f32 %v1475_v8, %v321_v6  ;;  %v392_v23 = vadd.f32 %v1475_v8, %v322_v17 }
  0x20   :  { %v464_v19 = vmul.f32 %v2147_v25, %v1452_v4  ;;  %v393_v37 = vadd.f32 %v1475_v8, %v323_v12  ;;  %v394_v35 = vadd.f32 %v1475_v8, %v324_v14  ;;  %v325_v36 = vmul.f32 %v2148_v20, %v1446_v45 }
  0x21   :  { %v2149_v21 = vunpack.c.l.bf16 %v1222_v27  ;;  %v523_v7 = vadd.f32 %v459_v46, %v389_v29  ;;  %v524_v51 = vadd.f32 %v460_v42, %v390_v30  ;;  %v525_v52 = vadd.f32 %v461_v11, %v391_v31 }
  0x22   :  { %v526_v56 = vadd.f32 %v462_v24, %v392_v23  ;;  %v527_v44 = vadd.f32 %v463_v18, %v393_v37  ;;  %v528_v6 = vadd.f32 %v464_v19, %v394_v35  ;;  %v395_v17 = vadd.f32 %v1475_v8, %v325_v36 }
  0x23   :  { %v465_v41 = vmul.f32 %v2149_v21, %v1452_v4  ;;  %v2150_v12 = vunpack.c.h.bf16 %v1217_v26  ;;  %v593_v25 = vadd.f32 %v1487_v16, %v523_v7  ;;  %v594_v20 = vadd.f32 %v1487_v16, %v524_v51 }
  0x24   :  { %v595_v3 = vadd.f32 %v1487_v16, %v525_v52  ;;  %v596_v21 = vadd.f32 %v1487_v16, %v526_v56  ;;  %v597_v46 = vadd.f32 %v1487_v16, %v527_v44  ;;  %v598_v42 = vadd.f32 %v1487_v16, %v528_v6 }
  0x25   :  { %v326_v14 = vmul.f32 %v2150_v12, %v1446_v45  ;;  %v529_v11 = vadd.f32 %v465_v41, %v395_v17  ;;  %v657_v18 = vmax.f32 %v593_v25, 0.0  ;;  %v658_v19 = vmax.f32 %v594_v20, 0.0 }
  0x26   :  { %v659_v29 = vmax.f32 %v595_v3, 0.0  ;;  %v660_v26 = vmax.f32 %v596_v21, 0.0  ;;  %v661_v30 = vmax.f32 %v597_v46, 0.0  ;;  %v662_v31 = vmax.f32 %v598_v42, 0.0 }
  0x27   :  { %v396_v24 = vadd.f32 %v1475_v8, %v326_v14  ;;  %v599_v23 = vadd.f32 %v1487_v16, %v529_v11  ;;  %v2151_v37 = vunpack.c.h.bf16 %v1222_v27  ;;  %721 = vst [vmem:[%s2146_s8] sm:$0xff] %v657_v18  ;;  %722 = vst [vmem:[%s2146_s8 + $0x8] sm:$0xff] %v658_v19  ;;  %v2152_v27 = vunpack.c.l.bf16 %v1230_v32 }
  0x28   :  { %723 = vst [vmem:[%s2146_s8 + $0x10] sm:$0xff] %v659_v29  ;;  %724 = vst [vmem:[%s2146_s8 + $0x18] sm:$0xff] %v660_v26  ;;  %v2153_v36 = vunpack.c.l.bf16 %v1235_v33  ;;  %v2154_v7 = vunpack.c.h.bf16 %v1230_v32  ;;  %v2155_v52 = vunpack.c.h.bf16 %v1235_v33  ;;  %v2156_v17 = vunpack.c.l.bf16 %v1243_v38 }
  0x29   :  { %v466_v35 = vmul.f32 %v2151_v37, %v1452_v4  ;;  %v327_v3 = vmul.f32 %v2152_v27, %v1446_v45  ;;  %725 = vst [vmem:[%s2146_s8 + $0x20] sm:$0xff] %v661_v30  ;;  %726 = vst [vmem:[%s2146_s8 + $0x28] sm:$0xff] %v662_v31  ;;  %v663_v44 = vmax.f32 %v599_v23, 0.0  ;;  %v2157_v32 = vunpack.c.l.bf16 %v1251_v43 }
  0x2a   :  { %v467_v41 = vmul.f32 %v2153_v36, %v1452_v4  ;;  %v328_v51 = vmul.f32 %v2154_v7, %v1446_v45  ;;  %v468_v56 = vmul.f32 %v2155_v52, %v1452_v4  ;;  %v329_v12 = vmul.f32 %v2156_v17, %v1446_v45 }
  0x2b   :  { %v530_v6 = vadd.f32 %v466_v35, %v396_v24  ;;  %v469_v14 = vmul.f32 %v2157_v32, %v1452_v4  ;;  %v397_v33 = vadd.f32 %v1475_v8, %v327_v3  ;;  %v2158_v20 = vunpack.c.h.bf16 %v1243_v38  ;;  %727 = vst [vmem:[%s2146_s8 + $0x30] sm:$0xff] %v663_v44 }
  0x2c   :  { %v398_v25 = vadd.f32 %v1475_v8, %v328_v51  ;;  %v2159_v46 = vunpack.c.h.bf16 %v1251_v43  ;;  %v399_v24 = vadd.f32 %v1475_v8, %v329_v12  ;;  %v2160_v18 = vunpack.c.l.bf16 %v1259_v48 }
  0x2d   :  { %v330_v21 = vmul.f32 %v2158_v20, %v1446_v45  ;;  %v600_v11 = vadd.f32 %v1487_v16, %v530_v6  ;;  %v2161_v38 = vunpack.c.l.bf16 %v1264_v49  ;;  %v531_v26 = vadd.f32 %v467_v41, %v397_v33 }
  0x2e   :  { %v470_v42 = vmul.f32 %v2159_v46, %v1452_v4  ;;  %v331_v19 = vmul.f32 %v2160_v18, %v1446_v45  ;;  %v532_v30 = vadd.f32 %v468_v56, %v398_v25  ;;  %v2162_v31 = vunpack.c.h.bf16 %v1259_v48 }
  0x2f   :  { %v471_v29 = vmul.f32 %v2161_v38, %v1452_v4  ;;  %v400_v43 = vadd.f32 %v1475_v8, %v330_v21  ;;  %v664_v37 = vmax.f32 %v600_v11, 0.0  ;;  %v533_v35 = vadd.f32 %v469_v14, %v399_v24 }
  0x30   :  { %v332_v23 = vmul.f32 %v2162_v31, %v1446_v45  ;;  %v401_v27 = vadd.f32 %v1475_v8, %v331_v19  ;;  %v2163_v3 = vunpack.c.h.bf16 %v1264_v49  ;;  %v601_v7 = vadd.f32 %v1487_v16, %v531_v26 }
  0x31   :  { %v602_v51 = vadd.f32 %v1487_v16, %v532_v30  ;;  %v534_v41 = vadd.f32 %v470_v42, %v400_v43  ;;  %728 = vst [vmem:[%s2146_s8 + $0x38] sm:$0xff] %v664_v37  ;;  %v603_v48 = vadd.f32 %v1487_v16, %v533_v35  ;;  %v2164_v44 = vunpack.c.l.bf16 %v1272_v54 }
  0x32   :  { %v472_v36 = vmul.f32 %v2163_v3, %v1452_v4  ;;  %v402_v52 = vadd.f32 %v1475_v8, %v332_v23  ;;  %v535_v56 = vadd.f32 %v471_v29, %v401_v27  ;;  %v2165_v49 = vunpack.c.l.bf16 %v1277_v55 }
  0x33   :  { %v333_v6 = vmul.f32 %v2164_v44, %v1446_v45  ;;  %v665_v12 = vmax.f32 %v601_v7, 0.0  ;;  %v666_v32 = vmax.f32 %v602_v51, 0.0  ;;  %v604_v14 = vadd.f32 %v1487_v16, %v534_v41 }
  0x34   :  { %v473_v17 = vmul.f32 %v2165_v49, %v1452_v4  ;;  %v536_v33 = vadd.f32 %v472_v36, %v402_v52  ;;  %v667_v25 = vmax.f32 %v603_v48, 0.0  ;;  %v605_v20 = vadd.f32 %v1487_v16, %v535_v56 }
  0x35   :  { %v403_v21 = vadd.f32 %v1475_v8, %v333_v6  ;;  %v2166_v46 = vunpack.c.h.bf16 %v1272_v54  ;;  %729 = vst [vmem:[%s2146_s8 + $0x40] sm:$0xff] %v665_v12  ;;  %730 = vst [vmem:[%s2146_s8 + $0x48] sm:$0xff] %v666_v32  ;;  %v668_v11 = vmax.f32 %v604_v14, 0.0  ;;  %v2167_v18 = vunpack.c.h.bf16 %v1277_v55 }
  0x36   :  { %v606_v24 = vadd.f32 %v1487_v16, %v536_v33  ;;  %v2168_v38 = vunpack.c.l.bf16 %v1285_v59  ;;  %731 = vst [vmem:[%s2146_s8 + $0x50] sm:$0xff] %v667_v25  ;;  %v669_v29 = vmax.f32 %v605_v20, 0.0  ;;  %v2169_v43 = vunpack.c.l.bf16 %v1290_v60 }
  0x37   :  { %v334_v42 = vmul.f32 %v2166_v46, %v1446_v45  ;;  %v474_v19 = vmul.f32 %v2167_v18, %v1452_v4  ;;  %v537_v26 = vadd.f32 %v473_v17, %v403_v21  ;;  %732 = vst [vmem:[%s2146_s8 + $0x58] sm:$0xff] %v668_v11  ;;  %v2170_v37 = vunpack.c.h.bf16 %v1285_v59 }
  0x38   :  { %v335_v54 = vmul.f32 %v2168_v38, %v1446_v45  ;;  %v475_v31 = vmul.f32 %v2169_v43, %v1452_v4  ;;  %v670_v55 = vmax.f32 %v606_v24, 0.0  ;;  %v2171_v27 = vunpack.c.h.bf16 %v1290_v60  ;;  %733 = vst [vmem:[%s2146_s8 + $0x60] sm:$0xff] %v669_v29 }
  0x39   :  { %v404_v30 = vadd.f32 %v1475_v8, %v334_v42  ;;  %v336_v35 = vmul.f32 %v2170_v37, %v1446_v45  ;;  %v607_v36 = vadd.f32 %v1487_v16, %v537_v26  ;;  %v2172_v51 = vunpack.c.l.bf16 %v1298_v0 }
  0x3a   :  { %v405_v23 = vadd.f32 %v1475_v8, %v335_v54  ;;  %v476_v3 = vmul.f32 %v2171_v27, %v1452_v4  ;;  %v2173_v52 = vunpack.c.l.bf16 %v1303_v1  ;;  %734 = vst [vmem:[%s2146_s8 + $0x68] sm:$0xff] %v670_v55  ;;  %v2174_v56 = vunpack.c.h.bf16 %v1298_v0 }
  0x3b   :  { %v538_v7 = vadd.f32 %v474_v19, %v404_v30  ;;  %v337_v41 = vmul.f32 %v2172_v51, %v1446_v45  ;;  %v406_v48 = vadd.f32 %v1475_v8, %v336_v35  ;;  %v2175_v6 = vunpack.c.h.bf16 %v1303_v1 }
  0x3c   :  { %v477_v59 = vmul.f32 %v2173_v52, %v1452_v4  ;;  %v539_v60 = vadd.f32 %v475_v31, %v405_v23  ;;  %v338_v44 = vmul.f32 %v2174_v56, %v1446_v45  ;;  %v671_v17 = vmax.f32 %v607_v36, 0.0 }
  0x3d   :  { %v478_v49 = vmul.f32 %v2175_v6, %v1452_v4  ;;  %v608_v12 = vadd.f32 %v1487_v16, %v538_v7  ;;  %v407_v32 = vadd.f32 %v1475_v8, %v337_v41  ;;  %v2176_v14 = vunpack.c.l.bf16 %v1312_v9 }
  0x3e   :  { %v609_v25 = vadd.f32 %v1487_v16, %v539_v60  ;;  %v540_v20 = vadd.f32 %v476_v3, %v406_v48  ;;  %v408_v21 = vadd.f32 %v1475_v8, %v338_v44  ;;  %v2177_v0 = vunpack.c.l.bf16 %v1317_v10  ;;  %735 = vst [vmem:[%s2146_s8 + $0x70] sm:$0xff] %v671_v17 }
  0x3f   :  { %v339_v33 = vmul.f32 %v2176_v14, %v1446_v45  ;;  %v672_v1 = vmax.f32 %v608_v12, 0.0  ;;  %v541_v42 = vadd.f32 %v477_v59, %v407_v32  ;;  %v2178_v24 = vunpack.c.h.bf16 %v1312_v9 }
  0x40   :  { %v479_v46 = vmul.f32 %v2177_v0, %v1452_v4  ;;  %v673_v19 = vmax.f32 %v609_v25, 0.0  ;;  %v610_v38 = vadd.f32 %v1487_v16, %v540_v20  ;;  %v542_v54 = vadd.f32 %v478_v49, %v408_v21 }
  0x41   :  { %v409_v11 = vadd.f32 %v1475_v8, %v339_v33  ;;  %v340_v18 = vmul.f32 %v2178_v24, %v1446_v45  ;;  %v2179_v29 = vunpack.c.h.bf16 %v1317_v10  ;;  %736 = vst [vmem:[%s2146_s8 + $0x78] sm:$0xff] %v672_v1  ;;  %v611_v30 = vadd.f32 %v1487_v16, %v541_v42 }
  0x42   :  { %v2180_v9 = vunpack.c.l.bf16 %v1326_v34  ;;  %737 = vst [vmem:[%s2146_s8 + $0x80] sm:$0xff] %v673_v19  ;;  %v674_v23 = vmax.f32 %v610_v38, 0.0  ;;  %v612_v10 = vadd.f32 %v1487_v16, %v542_v54  ;;  %v2181_v37 = vunpack.c.l.bf16 %v1331_v39 }
  0x43   :  { %v480_v26 = vmul.f32 %v2179_v29, %v1452_v4  ;;  %v543_v43 = vadd.f32 %v479_v46, %v409_v11  ;;  %v410_v31 = vadd.f32 %v1475_v8, %v340_v18  ;;  %v2182_v27 = vunpack.c.h.bf16 %v1326_v34 }
  0x44   :  { %v341_v55 = vmul.f32 %v2180_v9, %v1446_v45  ;;  %v481_v35 = vmul.f32 %v2181_v37, %v1452_v4  ;;  %v675_v36 = vmax.f32 %v611_v30, 0.0  ;;  %738 = vst [vmem:[%s2146_s8 + $0x88] sm:$0xff] %v674_v23  ;;  %v676_v52 = vmax.f32 %v612_v10, 0.0 }
  0x45   :  { %v342_v3 = vmul.f32 %v2182_v27, %v1446_v45  ;;  %v613_v7 = vadd.f32 %v1487_v16, %v543_v43  ;;  %v544_v51 = vadd.f32 %v480_v26, %v410_v31  ;;  %v2183_v60 = vunpack.c.h.bf16 %v1331_v39 }
  0x46   :  { %v411_v41 = vadd.f32 %v1475_v8, %v341_v55  ;;  %v2184_v34 = vunpack.c.l.bf16 %v1340_v28  ;;  %739 = vst [vmem:[%s2146_s8 + $0x90] sm:$0xff] %v675_v36  ;;  %v2185_v17 = vunpack.c.l.bf16 %v1345_v13  ;;  %740 = vst [vmem:[%s2146_s8 + $0x98] sm:$0xff] %v676_v52  ;;  %v2186_v14 = vunpack.c.h.bf16 %v1340_v28 }
  0x47   :  { %v412_v59 = vadd.f32 %v1475_v8, %v342_v3  ;;  %v482_v48 = vmul.f32 %v2183_v60, %v1452_v4  ;;  %v677_v44 = vmax.f32 %v613_v7, 0.0  ;;  %v614_v6 = vadd.f32 %v1487_v16, %v544_v51 }
  0x48   :  { %v343_v56 = vmul.f32 %v2184_v34, %v1446_v45  ;;  %v545_v49 = vadd.f32 %v481_v35, %v411_v41  ;;  %v483_v12 = vmul.f32 %v2185_v17, %v1452_v4  ;;  %v344_v33 = vmul.f32 %v2186_v14, %v1446_v45 }
  0x49   :  { %v546_v39 = vadd.f32 %v482_v48, %v412_v59  ;;  %v2187_v25 = vunpack.c.h.bf16 %v1345_v13  ;;  %741 = vst [vmem:[%s2146_s8 + $0xa0] sm:$0xff] %v677_v44  ;;  %v678_v21 = vmax.f32 %v614_v6, 0.0  ;;  %v2188_v46 = vunpack.c.l.bf16 %v1354_v22 }
  0x4a   :  { %v413_v32 = vadd.f32 %v1475_v8, %v343_v56  ;;  %v615_v0 = vadd.f32 %v1487_v16, %v545_v49  ;;  %v2189_v42 = vunpack.c.l.bf16 %v1359_v5  ;;  %v414_v13 = vadd.f32 %v1475_v8, %v344_v33 }
  0x4b   :  { %v484_v20 = vmul.f32 %v2187_v25, %v1452_v4  ;;  %v345_v1 = vmul.f32 %v2188_v46, %v1446_v45  ;;  %v616_v11 = vadd.f32 %v1487_v16, %v546_v39  ;;  %v2190_v18 = vunpack.c.h.bf16 %v1354_v22  ;;  %742 = vst [vmem:[%s2146_s8 + $0xa8] sm:$0xff] %v678_v21 }
  0x4c   :  { %v485_v28 = vmul.f32 %v2189_v42, %v1452_v4  ;;  %v547_v24 = vadd.f32 %v483_v12, %v413_v32  ;;  %v679_v38 = vmax.f32 %v615_v0, 0.0  ;;  %v2191_v29 = vunpack.c.h.bf16 %v1359_v5 }
  0x4d   :  { %v346_v19 = vmul.f32 %v2190_v18, %v1446_v45  ;;  %v415_v54 = vadd.f32 %v1475_v8, %v345_v1  ;;  %v2192_v30 = vunpack.c.l.bf16 %v1368_v15  ;;  %v680_v31 = vmax.f32 %v616_v11, 0.0 }
  0x4e   :  { %v486_v26 = vmul.f32 %v2191_v29, %v1452_v4  ;;  %v617_v9 = vadd.f32 %v1487_v16, %v547_v24  ;;  %v548_v22 = vadd.f32 %v484_v20, %v414_v13  ;;  %743 = vst [vmem:[%s2146_s8 + $0xb0] sm:$0xff] %v679_v38  ;;  %v2193_v5 = vunpack.c.l.bf16 %v1373_v2  ;;  %v1093_v38 = vld [vmem:[%s2141_s1 + $0x90] sm:$0xff]  }
  0x4f   :  { %v347_v43 = vmul.f32 %v2192_v30, %v1446_v45  ;;  %v416_v55 = vadd.f32 %v1475_v8, %v346_v19  ;;  %v549_v23 = vadd.f32 %v485_v28, %v415_v54  ;;  %v2194_v35 = vunpack.c.h.bf16 %v1368_v15  ;;  %744 = vst [vmem:[%s2146_s8 + $0xb8] sm:$0xff] %v680_v31 }
  0x50   :  { %v487_v37 = vmul.f32 %v2193_v5, %v1452_v4  ;;  %v681_v3 = vmax.f32 %v617_v9, 0.0  ;;  %v618_v36 = vadd.f32 %v1487_v16, %v548_v22  ;;  %v2195_v51 = vunpack.c.h.bf16 %v1373_v2 }
  0x51   :  { %v417_v10 = vadd.f32 %v1475_v8, %v347_v43  ;;  %v348_v27 = vmul.f32 %v2194_v35, %v1446_v45  ;;  %v550_v7 = vadd.f32 %v486_v26, %v416_v55  ;;  %v619_v52 = vadd.f32 %v1487_v16, %v549_v23 }
  0x52   :  { %v488_v41 = vmul.f32 %v2195_v51, %v1452_v4  ;;  %v2196_v15 = vunpack.c.l.bf16 %v1382_v50  ;;  %745 = vst [vmem:[%s2146_s8 + $0xc0] sm:$0xff] %v681_v3  ;;  %v682_v34 = vmax.f32 %v618_v36, 0.0  ;;  %v2197_v2 = vunpack.c.l.bf16 %v1387_v62  ;;  %v1094_v51 = vld [vmem:[%s2141_s1 + $0x98] sm:$0xff]  }
  0x53   :  { %v551_v59 = vadd.f32 %v487_v37, %v417_v10  ;;  %v418_v60 = vadd.f32 %v1475_v8, %v348_v27  ;;  %v620_v56 = vadd.f32 %v1487_v16, %v550_v7  ;;  %v2198_v6 = vunpack.c.h.bf16 %v1382_v50 }
  0x54   :  { %v349_v48 = vmul.f32 %v2196_v15, %v1446_v45  ;;  %v489_v44 = vmul.f32 %v2197_v2, %v1452_v4  ;;  %v683_v17 = vmax.f32 %v619_v52, 0.0  ;;  %746 = vst [vmem:[%s2146_s8 + $0xc8] sm:$0xff] %v682_v34  ;;  %v2199_v25 = vunpack.c.h.bf16 %v1387_v62 }
  0x55   :  { %v350_v49 = vmul.f32 %v2198_v6, %v1446_v45  ;;  %v621_v12 = vadd.f32 %v1487_v16, %v551_v59  ;;  %v552_v39 = vadd.f32 %v488_v41, %v418_v60  ;;  %v684_v14 = vmax.f32 %v620_v56, 0.0 }
  0x56   :  { %v419_v32 = vadd.f32 %v1475_v8, %v349_v48  ;;  %v490_v20 = vmul.f32 %v2199_v25, %v1452_v4  ;;  %v2200_v50 = vunpack.c.l.bf16 %v1399_v58  ;;  %747 = vst [vmem:[%s2146_s8 + $0xd0] sm:$0xff] %v683_v17  ;;  %v2201_v42 = vunpack.c.l.bf16 %v1404_v57 }
  0x57   :  { %v420_v33 = vadd.f32 %v1475_v8, %v350_v49  ;;  %v685_v0 = vmax.f32 %v621_v12, 0.0  ;;  %v622_v46 = vadd.f32 %v1487_v16, %v552_v39  ;;  %748 = vst [vmem:[%s2146_s8 + $0xd8] sm:$0xff] %v684_v14  ;;  %v2202_v24 = vunpack.c.h.bf16 %v1399_v58  ;;  %v1064_v49 = vld [vmem:[%s2138_s0 + $0xa0] sm:$0xff]  }
  0x58   :  { %v351_v21 = vmul.f32 %v2200_v50, %v1446_v45  ;;  %v553_v1 = vadd.f32 %v489_v44, %v419_v32  ;;  %v491_v28 = vmul.f32 %v2201_v42, %v1452_v4  ;;  %v2203_v18 = vunpack.c.h.bf16 %v1404_v57  ;;  %v1095_v14 = vld [vmem:[%s2141_s1 + $0xa0] sm:$0xff]  }
  0x59   :  { %v554_v62 = vadd.f32 %v490_v20, %v420_v33  ;;  %v352_v13 = vmul.f32 %v2202_v24, %v1446_v45  ;;  %749 = vst [vmem:[%s2146_s8 + $0xe0] sm:$0xff] %v685_v0  ;;  %v686_v54 = vmax.f32 %v622_v46, 0.0  ;;  %v2204_v26 = vunpack.c.l.bf16 %v1416_v53  ;;  %v1065_v24 = vld [vmem:[%s2138_s0 + $0xa8] sm:$0xff]  }
  0x5a   :  { %v421_v11 = vadd.f32 %v1475_v8, %v351_v21  ;;  %v492_v19 = vmul.f32 %v2203_v18, %v1452_v4  ;;  %v623_v29 = vadd.f32 %v1487_v16, %v553_v1  ;;  %v493_v57 = vmul.f32 %v987_v40, %v1452_v4 }
  0x5b   :  { %v353_v58 = vmul.f32 %v2204_v26, %v1446_v45  ;;  %v624_v30 = vadd.f32 %v1487_v16, %v554_v62  ;;  %v422_v31 = vadd.f32 %v1475_v8, %v352_v13  ;;  %v2205_v9 = vunpack.c.h.bf16 %v1416_v53  ;;  %750 = vst [vmem:[%s2146_s8 + $0xe8] sm:$0xff] %v686_v54  ;;  %v1063_v53 = vld [vmem:[%s2138_s0 + $0x98] sm:$0xff]   ;;  %v1096_v54 = vld [vmem:[%s2141_s1 + $0xa8] sm:$0xff]  }
  0x5c   :  { %v555_v43 = vadd.f32 %v491_v28, %v421_v11  ;;  %v687_v55 = vmax.f32 %v623_v29, 0.0  ;;  %v494_v40 = vmul.f32 %v988_v63, %v1452_v4  ;;  %v991_v10 = vunpack.c.l.bf16 %v1093_v38 }
  0x5d   :  { %v354_v22 = vmul.f32 %v2205_v9, %v1446_v45  ;;  %v423_v23 = vadd.f32 %v1475_v8, %v353_v58  ;;  %v688_v5 = vmax.f32 %v624_v30, 0.0  ;;  %v556_v35 = vadd.f32 %v492_v19, %v422_v31 }
  0x5e   :  { %v625_v37 = vadd.f32 %v1487_v16, %v555_v43  ;;  %751 = vst [vmem:[%s2146_s8 + $0xf0] sm:$0xff] %v687_v55  ;;  %v355_v63 = vmul.f32 %v2206_v61, %v1446_v45  ;;  %v495_v36 = vmul.f32 %v991_v10, %v1452_v4  ;;  %v864_v7 = vunpack.c.h.bf16 %v1433_v47  ;;  %v1066_v10 = vld [vmem:[%s2138_s0 + $0xb0] sm:$0xff]  }
  0x5f   :  { %v424_v27 = vadd.f32 %v1475_v8, %v354_v22  ;;  %v557_v3 = vadd.f32 %v493_v57, %v423_v23  ;;  %752 = vst [vmem:[%s2146_s8 + $0xf8] sm:$0xff] %v688_v5  ;;  %v626_v52 = vadd.f32 %v1487_v16, %v556_v35  ;;  %v992_v60 = vunpack.c.h.bf16 %v1093_v38 }
  0x60   :  { %v689_v41 = vmax.f32 %v625_v37, 0.0  ;;  %v425_v48 = vadd.f32 %v1475_v8, %v355_v63  ;;  %v356_v34 = vmul.f32 %v864_v7, %v1446_v45  ;;  %v867_v47 = vunpack.c.l.bf16 %v1063_v53 }
  0x61   :  { %v558_v59 = vadd.f32 %v494_v40, %v424_v27  ;;  %v627_v15 = vadd.f32 %v1487_v16, %v557_v3  ;;  %v690_v56 = vmax.f32 %v626_v52, 0.0  ;;  %v496_v44 = vmul.f32 %v992_v60, %v1452_v4 }
  0x62   :  { %753 = vst [vmem:[%s2146_s8 + $0x100] sm:$0xff] %v689_v41  ;;  %v995_v6 = vunpack.c.l.bf16 %v1094_v51  ;;  %v559_v12 = vadd.f32 %v495_v36, %v425_v48  ;;  %v426_v39 = vadd.f32 %v1475_v8, %v356_v34  ;;  %v357_v32 = vmul.f32 %v867_v47, %v1446_v45  ;;  %v1067_v34 = vld [vmem:[%s2138_s0 + $0xb8] sm:$0xff]  }
  0x63   :  { %v628_v2 = vadd.f32 %v1487_v16, %v558_v59  ;;  %v691_v17 = vmax.f32 %v627_v15, 0.0  ;;  %754 = vst [vmem:[%s2146_s8 + $0x108] sm:$0xff] %v690_v56  ;;  %v868_v20 = vunpack.c.h.bf16 %v1063_v53  ;;  %v996_v50 = vunpack.c.h.bf16 %v1094_v51  ;;  %v1097_v53 = vld [vmem:[%s2141_s1 + $0xb0] sm:$0xff]  }
  0x64   :  { %v497_v25 = vmul.f32 %v995_v6, %v1452_v4  ;;  %v629_v21 = vadd.f32 %v1487_v16, %v559_v12  ;;  %v560_v0 = vadd.f32 %v496_v44, %v426_v39  ;;  %v427_v46 = vadd.f32 %v1475_v8, %v357_v32  ;;  %v1098_v6 = vld [vmem:[%s2141_s1 + $0xb8] sm:$0xff]  }
  0x65   :  { %v692_v33 = vmax.f32 %v628_v2, 0.0  ;;  %755 = vst [vmem:[%s2146_s8 + $0x110] sm:$0xff] %v691_v17  ;;  %v871_v1 = vunpack.c.l.bf16 %v1064_v49  ;;  %v358_v42 = vmul.f32 %v868_v20, %v1446_v45  ;;  %v498_v28 = vmul.f32 %v996_v50, %v1452_v4 }
  0x66   :  { %v999_v62 = vunpack.c.l.bf16 %v1095_v14  ;;  %v872_v11 = vunpack.c.h.bf16 %v1064_v49  ;;  %v693_v13 = vmax.f32 %v629_v21, 0.0  ;;  %v630_v18 = vadd.f32 %v1487_v16, %v560_v0 }
  0x67   :  { %756 = vst [vmem:[%s2146_s8 + $0x118] sm:$0xff] %v692_v33  ;;  %v561_v19 = vadd.f32 %v497_v25, %v427_v46  ;;  %v359_v38 = vmul.f32 %v871_v1, %v1446_v45  ;;  %v428_v29 = vadd.f32 %v1475_v8, %v358_v42  ;;  %v1000_v58 = vunpack.c.h.bf16 %v1095_v14  ;;  %v1068_v46 = vld [vmem:[%s2138_s0 + $0xc0] sm:$0xff]  }
  0x68   :  { %v499_v26 = vmul.f32 %v999_v62, %v1452_v4  ;;  %v360_v57 = vmul.f32 %v872_v11, %v1446_v45  ;;  %757 = vst [vmem:[%s2146_s8 + $0x120] sm:$0xff] %v693_v13  ;;  %v694_v30 = vmax.f32 %v630_v18, 0.0  ;;  %v875_v9 = vunpack.c.l.bf16 %v1065_v24  ;;  %v1099_v11 = vld [vmem:[%s2141_s1 + $0xc0] sm:$0xff]  }
  0x69   :  { %v631_v43 = vadd.f32 %v1487_v16, %v561_v19  ;;  %v429_v31 = vadd.f32 %v1475_v8, %v359_v38  ;;  %v562_v22 = vadd.f32 %v498_v28, %v428_v29  ;;  %v500_v23 = vmul.f32 %v1000_v58, %v1452_v4 }
  0x6a   :  { %v430_v55 = vadd.f32 %v1475_v8, %v360_v57  ;;  %v1003_v40 = vunpack.c.l.bf16 %v1096_v54  ;;  %758 = vst [vmem:[%s2146_s8 + $0x128] sm:$0xff] %v694_v30  ;;  %v361_v35 = vmul.f32 %v875_v9, %v1446_v45  ;;  %v876_v27 = vunpack.c.h.bf16 %v1065_v24 }
  0x6b   :  { %v695_v5 = vmax.f32 %v631_v43, 0.0  ;;  %v563_v37 = vadd.f32 %v499_v26, %v429_v31  ;;  %v632_v3 = vadd.f32 %v1487_v16, %v562_v22  ;;  %v1004_v36 = vunpack.c.h.bf16 %v1096_v54  ;;  %v1069_v31 = vld [vmem:[%s2138_s0 + $0xc8] sm:$0xff]  }
  0x6c   :  { %v564_v61 = vadd.f32 %v500_v23, %v430_v55  ;;  %v501_v63 = vmul.f32 %v1003_v40, %v1452_v4  ;;  %v431_v51 = vadd.f32 %v1475_v8, %v361_v35  ;;  %v362_v41 = vmul.f32 %v876_v27, %v1446_v45  ;;  %v1100_v40 = vld [vmem:[%s2141_s1 + $0xc8] sm:$0xff]  }
  0x6d   :  { %759 = vst [vmem:[%s2146_s8 + $0x130] sm:$0xff] %v695_v5  ;;  %v633_v7 = vadd.f32 %v1487_v16, %v563_v37  ;;  %v879_v52 = vunpack.c.l.bf16 %v1066_v10  ;;  %v696_v59 = vmax.f32 %v632_v3, 0.0  ;;  %v502_v15 = vmul.f32 %v1004_v36, %v1452_v4 }
  0x6e   :  { %v634_v60 = vadd.f32 %v1487_v16, %v564_v61  ;;  %v1007_v48 = vunpack.c.l.bf16 %v1097_v53  ;;  %v565_v56 = vadd.f32 %v501_v63, %v431_v51  ;;  %v432_v2 = vadd.f32 %v1475_v8, %v362_v41  ;;  %v1070_v41 = vld [vmem:[%s2138_s0 + $0xd0] sm:$0xff]  }
  0x6f   :  { %v697_v47 = vmax.f32 %v633_v7, 0.0  ;;  %v363_v44 = vmul.f32 %v879_v52, %v1446_v45  ;;  %760 = vst [vmem:[%s2146_s8 + $0x138] sm:$0xff] %v696_v59  ;;  %v880_v12 = vunpack.c.h.bf16 %v1066_v10  ;;  %v1008_v39 = vunpack.c.h.bf16 %v1097_v53 }
  0x70   :  { %v698_v49 = vmax.f32 %v634_v60, 0.0  ;;  %v503_v17 = vmul.f32 %v1007_v48, %v1452_v4  ;;  %v635_v32 = vadd.f32 %v1487_v16, %v565_v56  ;;  %v566_v14 = vadd.f32 %v502_v15, %v432_v2  ;;  %v1101_v48 = vld [vmem:[%s2141_s1 + $0xd0] sm:$0xff]  }
  0x71   :  { %761 = vst [vmem:[%s2146_s8 + $0x140] sm:$0xff] %v697_v47  ;;  %v433_v33 = vadd.f32 %v1475_v8, %v363_v44  ;;  %v883_v25 = vunpack.c.l.bf16 %v1067_v34  ;;  %v364_v20 = vmul.f32 %v880_v12, %v1446_v45  ;;  %v504_v50 = vmul.f32 %v1008_v39, %v1452_v4 }
  0x72   :  { %762 = vst [vmem:[%s2146_s8 + $0x148] sm:$0xff] %v698_v49  ;;  %v1011_v21 = vunpack.c.l.bf16 %v1098_v6  ;;  %v884_v0 = vunpack.c.h.bf16 %v1067_v34  ;;  %v699_v1 = vmax.f32 %v635_v32, 0.0  ;;  %v636_v42 = vadd.f32 %v1487_v16, %v566_v14 }
  0x73   :  { %v567_v28 = vadd.f32 %v503_v17, %v433_v33  ;;  %v365_v62 = vmul.f32 %v883_v25, %v1446_v45  ;;  %v434_v24 = vadd.f32 %v1475_v8, %v364_v20  ;;  %v1012_v18 = vunpack.c.h.bf16 %v1098_v6  ;;  %v1071_v33 = vld [vmem:[%s2138_s0 + $0xd8] sm:$0xff]  }
  0x74   :  { %v505_v13 = vmul.f32 %v1011_v21, %v1452_v4  ;;  %v366_v19 = vmul.f32 %v884_v0, %v1446_v45  ;;  %763 = vst [vmem:[%s2146_s8 + $0x150] sm:$0xff] %v699_v1  ;;  %v700_v38 = vmax.f32 %v636_v42, 0.0  ;;  %v887_v26 = vunpack.c.l.bf16 %v1068_v46  ;;  %v1102_v0 = vld [vmem:[%s2141_s1 + $0xd8] sm:$0xff]  }
  0x75   :  { %v637_v54 = vadd.f32 %v1487_v16, %v567_v28  ;;  %v435_v29 = vadd.f32 %v1475_v8, %v365_v62  ;;  %v568_v58 = vadd.f32 %v504_v50, %v434_v24  ;;  %v506_v30 = vmul.f32 %v1012_v18, %v1452_v4 }
  0x76   :  { %v436_v57 = vadd.f32 %v1475_v8, %v366_v19  ;;  %v1015_v43 = vunpack.c.l.bf16 %v1099_v11  ;;  %764 = vst [vmem:[%s2146_s8 + $0x158] sm:$0xff] %v700_v38  ;;  %v367_v55 = vmul.f32 %v887_v26, %v1446_v45  ;;  %v888_v23 = vunpack.c.h.bf16 %v1068_v46 }
  0x77   :  { %v701_v9 = vmax.f32 %v637_v54, 0.0  ;;  %v569_v22 = vadd.f32 %v505_v13, %v435_v29  ;;  %v638_v10 = vadd.f32 %v1487_v16, %v568_v58  ;;  %v1016_v35 = vunpack.c.h.bf16 %v1099_v11  ;;  %v1072_v29 = vld [vmem:[%s2138_s0 + $0xe0] sm:$0xff]  }
  0x78   :  { %v570_v5 = vadd.f32 %v506_v30, %v436_v57  ;;  %v507_v37 = vmul.f32 %v1015_v43, %v1452_v4  ;;  %v437_v53 = vadd.f32 %v1475_v8, %v367_v55  ;;  %v368_v3 = vmul.f32 %v888_v23, %v1446_v45  ;;  %v1103_v43 = vld [vmem:[%s2141_s1 + $0xe0] sm:$0xff]  }
  0x79   :  { %765 = vst [vmem:[%s2146_s8 + $0x160] sm:$0xff] %v701_v9  ;;  %v639_v27 = vadd.f32 %v1487_v16, %v569_v22  ;;  %v891_v61 = vunpack.c.l.bf16 %v1069_v31  ;;  %v702_v63 = vmax.f32 %v638_v10, 0.0  ;;  %v508_v7 = vmul.f32 %v1016_v35, %v1452_v4 }
  0x7a   :  { %v640_v36 = vadd.f32 %v1487_v16, %v570_v5  ;;  %v1019_v51 = vunpack.c.l.bf16 %v1100_v40  ;;  %v571_v59 = vadd.f32 %v507_v37, %v437_v53  ;;  %v438_v60 = vadd.f32 %v1475_v8, %v368_v3  ;;  %v1073_v3 = vld [vmem:[%s2138_s0 + $0xe8] sm:$0xff]  }
  0x7b   :  { %v703_v52 = vmax.f32 %v639_v27, 0.0  ;;  %v369_v15 = vmul.f32 %v891_v61, %v1446_v45  ;;  %766 = vst [vmem:[%s2146_s8 + $0x168] sm:$0xff] %v702_v63  ;;  %v892_v56 = vunpack.c.h.bf16 %v1069_v31  ;;  %v1020_v2 = vunpack.c.h.bf16 %v1100_v40 }
  0x7c   :  { %v704_v34 = vmax.f32 %v640_v36, 0.0  ;;  %v509_v47 = vmul.f32 %v1019_v51, %v1452_v4  ;;  %v641_v44 = vadd.f32 %v1487_v16, %v571_v59  ;;  %v572_v6 = vadd.f32 %v508_v7, %v438_v60  ;;  %v1104_v51 = vld [vmem:[%s2141_s1 + $0xe8] sm:$0xff]  }
  0x7d   :  { %767 = vst [vmem:[%s2146_s8 + $0x170] sm:$0xff] %v703_v52  ;;  %v439_v49 = vadd.f32 %v1475_v8, %v369_v15  ;;  %v895_v17 = vunpack.c.l.bf16 %v1070_v41  ;;  %v370_v12 = vmul.f32 %v892_v56, %v1446_v45  ;;  %v510_v39 = vmul.f32 %v1020_v2, %v1452_v4 }
  0x7e   :  { %768 = vst [vmem:[%s2146_s8 + $0x178] sm:$0xff] %v704_v34  ;;  %v1023_v32 = vunpack.c.l.bf16 %v1101_v48  ;;  %v896_v14 = vunpack.c.h.bf16 %v1070_v41  ;;  %v705_v25 = vmax.f32 %v641_v44, 0.0  ;;  %v642_v20 = vadd.f32 %v1487_v16, %v572_v6 }
  0x7f   :  { %v573_v50 = vadd.f32 %v509_v47, %v439_v49  ;;  %v371_v21 = vmul.f32 %v895_v17, %v1446_v45  ;;  %v440_v46 = vadd.f32 %v1475_v8, %v370_v12  ;;  %v1024_v42 = vunpack.c.h.bf16 %v1101_v48  ;;  %v1074_v49 = vld [vmem:[%s2138_s0 + $0xf0] sm:$0xff]  }
  0x80   :  { %v511_v1 = vmul.f32 %v1023_v32, %v1452_v4  ;;  %v372_v28 = vmul.f32 %v896_v14, %v1446_v45  ;;  %769 = vst [vmem:[%s2146_s8 + $0x180] sm:$0xff] %v705_v25  ;;  %v706_v62 = vmax.f32 %v642_v20, 0.0  ;;  %v899_v13 = vunpack.c.l.bf16 %v1071_v33  ;;  %v1105_v14 = vld [vmem:[%s2141_s1 + $0xf0] sm:$0xff]  }
  0x81   :  { %v643_v11 = vadd.f32 %v1487_v16, %v573_v50  ;;  %v441_v24 = vadd.f32 %v1475_v8, %v371_v21  ;;  %v574_v18 = vadd.f32 %v510_v39, %v440_v46  ;;  %v512_v38 = vmul.f32 %v1024_v42, %v1452_v4 }
  0x82   :  { %v442_v19 = vadd.f32 %v1475_v8, %v372_v28  ;;  %v1027_v54 = vunpack.c.l.bf16 %v1102_v0  ;;  %770 = vst [vmem:[%s2146_s8 + $0x188] sm:$0xff] %v706_v62  ;;  %v373_v57 = vmul.f32 %v899_v13, %v1446_v45  ;;  %v900_v30 = vunpack.c.h.bf16 %v1071_v33 }
  0x83   :  { %v707_v26 = vmax.f32 %v643_v11, 0.0  ;;  %v575_v58 = vadd.f32 %v511_v1, %v441_v24  ;;  %v644_v31 = vadd.f32 %v1487_v16, %v574_v18  ;;  %v1028_v55 = vunpack.c.h.bf16 %v1102_v0  ;;  %v1075_v24 = vld [vmem:[%s2138_s0 + $0xf8] sm:$0xff]  }
  0x84   :  { %v576_v9 = vadd.f32 %v512_v38, %v442_v19  ;;  %v513_v22 = vmul.f32 %v1027_v54, %v1452_v4  ;;  %v443_v40 = vadd.f32 %v1475_v8, %v373_v57  ;;  %v374_v10 = vmul.f32 %v900_v30, %v1446_v45  ;;  %v1106_v54 = vld [vmem:[%s2141_s1 + $0xf8] sm:$0xff]  }
  0x85   :  { %771 = vst [vmem:[%s2146_s8 + $0x190] sm:$0xff] %v707_v26  ;;  %v645_v23 = vadd.f32 %v1487_v16, %v575_v58  ;;  %v903_v5 = vunpack.c.l.bf16 %v1072_v29  ;;  %v708_v37 = vmax.f32 %v644_v31, 0.0  ;;  %v514_v27 = vmul.f32 %v1028_v55, %v1452_v4 }
  0x86   :  { %v646_v35 = vadd.f32 %v1487_v16, %v576_v9  ;;  %v1031_v53 = vunpack.c.l.bf16 %v1103_v43  ;;  %v577_v63 = vadd.f32 %v513_v22, %v443_v40  ;;  %v444_v36 = vadd.f32 %v1475_v8, %v374_v10 }
  0x87   :  { %v709_v61 = vmax.f32 %v645_v23, 0.0  ;;  %v375_v7 = vmul.f32 %v903_v5, %v1446_v45  ;;  %772 = vst [vmem:[%s2146_s8 + $0x198] sm:$0xff] %v708_v37  ;;  %v904_v59 = vunpack.c.h.bf16 %v1072_v29  ;;  %v1032_v60 = vunpack.c.h.bf16 %v1103_v43 }
  0x88   :  { %v710_v41 = vmax.f32 %v646_v35, 0.0  ;;  %v515_v52 = vmul.f32 %v1031_v53, %v1452_v4  ;;  %v647_v15 = vadd.f32 %v1487_v16, %v577_v63  ;;  %v578_v48 = vadd.f32 %v514_v27, %v444_v36 }
  0x89   :  { %773 = vst [vmem:[%s2146_s8 + $0x1a0] sm:$0xff] %v709_v61  ;;  %v445_v34 = vadd.f32 %v1475_v8, %v375_v7  ;;  %v907_v47 = vunpack.c.l.bf16 %v1073_v3  ;;  %v376_v56 = vmul.f32 %v904_v59, %v1446_v45  ;;  %v516_v2 = vmul.f32 %v1032_v60, %v1452_v4 }
  0x8a   :  { %774 = vst [vmem:[%s2146_s8 + $0x1a8] sm:$0xff] %v710_v41  ;;  %v1035_v44 = vunpack.c.l.bf16 %v1104_v51  ;;  %v908_v6 = vunpack.c.h.bf16 %v1073_v3  ;;  %v711_v17 = vmax.f32 %v647_v15, 0.0  ;;  %v648_v12 = vadd.f32 %v1487_v16, %v578_v48 }
  0x8b   :  { %v579_v39 = vadd.f32 %v515_v52, %v445_v34  ;;  %v377_v32 = vmul.f32 %v907_v47, %v1446_v45  ;;  %v446_v33 = vadd.f32 %v1475_v8, %v376_v56  ;;  %v1036_v20 = vunpack.c.h.bf16 %v1104_v51 }
  0x8c   :  { %v517_v25 = vmul.f32 %v1035_v44, %v1452_v4  ;;  %v378_v50 = vmul.f32 %v908_v6, %v1446_v45  ;;  %775 = vst [vmem:[%s2146_s8 + $0x1b0] sm:$0xff] %v711_v17  ;;  %v712_v21 = vmax.f32 %v648_v12, 0.0  ;;  %v911_v1 = vunpack.c.l.bf16 %v1074_v49 }
  0x8d   :  { %v649_v0 = vadd.f32 %v1487_v16, %v579_v39  ;;  %v447_v46 = vadd.f32 %v1475_v8, %v377_v32  ;;  %v580_v42 = vadd.f32 %v516_v2, %v446_v33  ;;  %v518_v62 = vmul.f32 %v1036_v20, %v1452_v4 }
  0x8e   :  { %v448_v28 = vadd.f32 %v1475_v8, %v378_v50  ;;  %v1039_v11 = vunpack.c.l.bf16 %v1105_v14  ;;  %776 = vst [vmem:[%s2146_s8 + $0x1b8] sm:$0xff] %v712_v21  ;;  %v379_v19 = vmul.f32 %v911_v1, %v1446_v45  ;;  %v912_v38 = vunpack.c.h.bf16 %v1074_v49 }
  0x8f   :  { %v713_v13 = vmax.f32 %v649_v0, 0.0  ;;  %v581_v18 = vadd.f32 %v517_v25, %v447_v46  ;;  %v650_v29 = vadd.f32 %v1487_v16, %v580_v42  ;;  %v1040_v57 = vunpack.c.h.bf16 %v1105_v14 }
  0x90   :  { %v582_v26 = vadd.f32 %v518_v62, %v448_v28  ;;  %v519_v58 = vmul.f32 %v1039_v11, %v1452_v4  ;;  %v449_v43 = vadd.f32 %v1475_v8, %v379_v19  ;;  %v380_v31 = vmul.f32 %v912_v38, %v1446_v45 }
  0x91   :  { %777 = vst [vmem:[%s2146_s8 + $0x1c0] sm:$0xff] %v713_v13  ;;  %v651_v30 = vadd.f32 %v1487_v16, %v581_v18  ;;  %v915_v9 = vunpack.c.l.bf16 %v1075_v24  ;;  %v714_v22 = vmax.f32 %v650_v29, 0.0  ;;  %v520_v23 = vmul.f32 %v1040_v57, %v1452_v4 }
  0x92   :  { %v652_v55 = vadd.f32 %v1487_v16, %v582_v26  ;;  %v1043_v40 = vunpack.c.l.bf16 %v1106_v54  ;;  %v583_v5 = vadd.f32 %v519_v58, %v449_v43  ;;  %v450_v37 = vadd.f32 %v1475_v8, %v380_v31 }
  0x93   :  { %v715_v10 = vmax.f32 %v651_v30, 0.0  ;;  %v381_v35 = vmul.f32 %v915_v9, %v1446_v45  ;;  %778 = vst [vmem:[%s2146_s8 + $0x1c8] sm:$0xff] %v714_v22  ;;  %v916_v3 = vunpack.c.h.bf16 %v1075_v24  ;;  %v1044_v61 = vunpack.c.h.bf16 %v1106_v54 }
  0x94   :  { %v716_v27 = vmax.f32 %v652_v55, 0.0  ;;  %v521_v53 = vmul.f32 %v1043_v40, %v1452_v4  ;;  %v653_v63 = vadd.f32 %v1487_v16, %v583_v5  ;;  %v584_v36 = vadd.f32 %v520_v23, %v450_v37 }
  0x95   :  { %779 = vst [vmem:[%s2146_s8 + $0x1d0] sm:$0xff] %v715_v10  ;;  %v451_v7 = vadd.f32 %v1475_v8, %v381_v35  ;;  %v382_v51 = vmul.f32 %v916_v3, %v1446_v45  ;;  %v522_v41 = vmul.f32 %v1044_v61, %v1452_v4 }
  0x96   :  { %780 = vst [vmem:[%s2146_s8 + $0x1d8] sm:$0xff] %v716_v27  ;;  %v717_v52 = vmax.f32 %v653_v63, 0.0  ;;  %v654_v59 = vadd.f32 %v1487_v16, %v584_v36 }
  0x97   :  { %v585_v60 = vadd.f32 %v521_v53, %v451_v7  ;;  %v452_v15 = vadd.f32 %v1475_v8, %v382_v51 }
  0x98   :  { %781 = vst [vmem:[%s2146_s8 + $0x1e0] sm:$0xff] %v717_v52  ;;  %v718_v48 = vmax.f32 %v654_v59, 0.0 }
  0x99   :  { %v655_v34 = vadd.f32 %v1487_v16, %v585_v60  ;;  %v586_v47 = vadd.f32 %v522_v41, %v452_v15 }
  0x9a   :  { %782 = vst [vmem:[%s2146_s8 + $0x1e8] sm:$0xff] %v718_v48 }
  0x9b   :  { %v719_v45 = vmax.f32 %v655_v34, 0.0  ;;  %v656_v4 = vadd.f32 %v1487_v16, %v586_v47 }
  0x9d   :  { %783 = vst [vmem:[%s2146_s8 + $0x1f0] sm:$0xff] %v719_v45  ;;  %v720_v8 = vmax.f32 %v656_v4, 0.0 }
  0x9f   :  { %784 = vst [vmem:[%s2146_s8 + $0x1f8] sm:$0xff] %v720_v8 }

// kernel: resblock_forward.3
= control target key start
LH: loop header
LB: loop body
LE: loop exit
PB: predicated region body
PF: predicated region fallthrough
CT: control target
= control target key end

     0   :  { %s6544_s27 = smov 0   ;;  %s8128_s0 = inlined_call_operand.vmem [shape: bf16[2,18,18,128], index: 0, kind: input, shape index: {}]   ;;  %s8129_s1 = inlined_call_operand.vmem [shape: bf16[3,384,128], index: 1, kind: input, shape index: {}]   ;;  %s8130_s2 = inlined_call_operand.vmem [shape: f32[1,128], index: 2, kind: input, shape index: {}]   ;;  %s8131_s3 = inlined_call_operand.vmem [shape: bf16[128,128], index: 3, kind: input, shape index: {}]   ;;  %s8132_s4 = inlined_call_operand.vmem [shape: f32[1,128], index: 4, kind: input, shape index: {}]   ;;  %s8133_s5 = inlined_call_operand.vmem [shape: bf16[2,16,16,128], index: 5, kind: output, shape index: {0}]   ;;  %s8134_s6 = inlined_call_operand.vmem [shape: bf16[2,16,16,128], index: 6, kind: output, shape index: {1}]   ;;  %s8135_s7 = inlined_call_operand.vmem [shape: f32[2,2,128], index: 7, kind: output, shape index: {2}]   ;;  %s8136_s8 = inlined_call_operand.vmem [shape: f32[2,2,128], index: 8, kind: output, shape index: {3}]  }
   0x1 LB: > { %s4686_s28 = sadd.s32 4294967295, %s6497_s27   ;;  %p4690_p0 = scmp.ge.s32.totalorder %s6497_s27, 1  ;;  %s6497_s27 = sphi %s6544_s27, %s19_s27  }
   0x2   : > { %p269_p1 = scmp.lt.s32.totalorder %s6497_s27, 3 }
   0x4   : > { %p270_p2 = pnand %p4690_p0, %p269_p1 }
   0x5   : > { %v6263_v0 = vld [vmem:[%s8129_s1 + $0x40] sm:$0xff] (!%p270_p2)   ;;  %v6266_v3 = vld [vmem:[%s8129_s1 + $0x48] sm:$0xff] (!%p270_p2)   ;;  %v6269_v6 = vld [vmem:[%s8129_s1 + $0x50] sm:$0xff] (!%p270_p2)   ;;  %p316_p3 = scmp.lt.s32.totalorder (!%p270_p2), %s4686_s28, 1  ;;  %vm805_vm0 = vcmask (!%p270_p2), 1046528   ;;  %vm3054_vm2 = vcmask (!%p270_p2), 1040384  }
   0x6   : > { %273 = sbr.rel (%p270_p2) target bundleno = 593 (0x251), region = 40  ;;  %v6264_v1 = vld [vmem:[%s8129_s1 + $0x80] sm:$0xff] (!%p270_p2)   ;;  %5470 = vmatprep.subr.bf16.mxu0 (!%p270_p2), %v6263_v0  ;;  %v6267_v4 = vld [vmem:[%s8129_s1 + $0x88] sm:$0xff] (!%p270_p2)   ;;  %v6270_v7 = vld [vmem:[%s8129_s1 + $0x90] sm:$0xff] (!%p270_p2)   ;;  %vm548_vm1 = vsmask.f32 (!%p270_p2), 7424 }
   0x7   : > { %v6265_v2 = vld [vmem:[%s8129_s1] sm:$0xff] (!%p270_p2)   ;;  %5902 = vmatprep.subr.bf16.mxu1 (!%p270_p2), %v6264_v1  ;;  %v6268_v5 = vld [vmem:[%s8129_s1 + $0x8] sm:$0xff] (!%p270_p2)   ;;  %v6271_v8 = vld [vmem:[%s8129_s1 + $0x10] sm:$0xff] (!%p270_p2)  }
   0x8   : > { %5471 = vmatpush3.bf16.msra.mxu0 (!%p270_p2), %v6265_v2  ;;  %5903 = vmatpush3.bf16.msra.mxu1 (!%p270_p2), %v6264_v1  ;;  %v6272_v9 = vld [vmem:[%s8129_s1 + $0x58] sm:$0xff] (!%p270_p2)   ;;  %v6275_v12 = vld [vmem:[%s8129_s1 + $0x60] sm:$0xff] (!%p270_p2)   ;;  %v6278_v15 = vld [vmem:[%s8129_s1 + $0x68] sm:$0xff] (!%p270_p2)  }
   0x9   : > { %5472 = vmatprep.subr.bf16.mxu0 (!%p270_p2), %v6266_v3  ;;  %5904 = vmatprep.subr.bf16.mxu1 (!%p270_p2), %v6267_v4  ;;  %v6273_v10 = vld [vmem:[%s8129_s1 + $0x98] sm:$0xff] (!%p270_p2)   ;;  %v6276_v13 = vld [vmem:[%s8129_s1 + $0xa0] sm:$0xff] (!%p270_p2)   ;;  %v6279_v16 = vld [vmem:[%s8129_s1 + $0xa8] sm:$0xff] (!%p270_p2)  }
   0xa   : > { %v6274_v11 = vld [vmem:[%s8129_s1 + $0x18] sm:$0xff] (!%p270_p2)   ;;  %v6277_v14 = vld [vmem:[%s8129_s1 + $0x20] sm:$0xff] (!%p270_p2)   ;;  %v6280_v17 = vld [vmem:[%s8129_s1 + $0x28] sm:$0xff] (!%p270_p2)  }
   0xb   : > { %v6281_v18 = vld [vmem:[%s8129_s1 + $0x70] sm:$0xff] (!%p270_p2)   ;;  %v6284_v21 = vld [vmem:[%s8129_s1 + $0x78] sm:$0xff] (!%p270_p2)   ;;  %v6293_v35 = vld [vmem:[%s8129_s1 + $0x100] sm:$0xff] (!%p270_p2)  }
   0xc   : > { %5473 = vmatpush3.bf16.msra.mxu0 (!%p270_p2), %v6268_v5  ;;  %5905 = vmatpush3.bf16.msra.mxu1 (!%p270_p2), %v6267_v4  ;;  %v6282_v19 = vld [vmem:[%s8129_s1 + $0xb0] sm:$0xff] (!%p270_p2)   ;;  %v6285_v24 = vld [vmem:[%s8129_s1 + $0xb8] sm:$0xff] (!%p270_p2)   ;;  %v6294_v44 = vld [vmem:[%s8131_s3] sm:$0xff] (!%p270_p2)  }
   0xd   : > { %5474 = vmatprep.subr.bf16.mxu0 %v6269_v6  ;;  %5906 = vmatprep.subr.bf16.mxu1 %v6270_v7  ;;  %s8138_s28 = smov (!%p316_p3, %s4686_s28), 1  ;;  %v6283_v20 = vld [vmem:[%s8129_s1 + $0x30] sm:$0xff]   ;;  %v6286_v27 = vld [vmem:[%s8129_s1 + $0x38] sm:$0xff]   ;;  %v6295_v51 = vld [vmem:[%s8129_s1 + $0xc0] sm:$0xff]  }
   0xe   : > { %s6254_s21 = smul.u32 216, %s8138_s28  ;;  %v6302_v58 = vld [vmem:[%s8129_s1 + $0x108] sm:$0xff]   ;;  %s5214_s18 = sshll.u32 %s8138_s28, 7 }
   0xf   : > { %v6303_v2 = vld [vmem:[%s8129_s1 + $0xc8] sm:$0xff]   ;;  %s4696_s22 = sshll.u32 %s8138_s28, 1  ;;  %s8026_s11 = scalar_lea.vmem %s8133_s5, %s5214_s18 }
  0x10   : > { %5475 = vmatpush3.bf16.msra.mxu0 %v6271_v8  ;;  %5907 = vmatpush3.bf16.msra.mxu1 %v6270_v7  ;;  %s6622_s10 = scalar_lea.vmem %s8128_s0, %s6254_s21  ;;  %s7862_s21 = scalar_lea.vmem %s8134_s6, %s5214_s18 }
  0x11   : > { %5476 = vmatprep.subr.bf16.mxu0 %v6272_v9  ;;  %5908 = vmatprep.subr.bf16.mxu1 %v6273_v10  ;;  %v340_v22 = vld [vmem:[%s6622_s10] sm:$0xf]  ;;  %v341_v23 = vld [vmem:[%s6622_s10 + $0x4] sm:$0xf]  ;;  %v342_v29 = vld [vmem:[%s6622_s10 + $0xc] sm:$0xf]  ;;  %s338_s25 = scalar_lea.vmem %s8136_s8, %s4696_s22  ;;  %s334_s14 = scalar_lea.vmem %s8135_s7, %s4696_s22 }
  0x12   : > { %v4698_v25 = vcombine.low %v340_v22, %v341_v23  ;;  %v6288_v26 = vld [vmem:[%s6622_s10 + $0x8] ss:$0 sps:$4 sm:$0x11]   ;;  %v388_v28 = vld [vmem:[%s6622_s10] sm:$0xe] }
  0x13   : > { %v343_v30 = vld [vmem:[%s6622_s10 + $0x10] sm:$0xf]  ;;  %v557_v33 = vshll.u32 %v6288_v26, 16  ;;  %v4730_v34 = vcombine.low %v388_v28, %v341_v23  ;;  %v807_v36 = vrot.slane %v6288_v26, 1  ;;  %v389_v37 = vld [vmem:[%s6622_s10 + $0xc] sm:$0xe] }
  0x14   : > { %5477 = vmatpush3.bf16.msra.mxu0 %v6274_v11  ;;  %5909 = vmatpush3.bf16.msra.mxu1 %v6273_v10  ;;  %v550_v31 = vshrl.u32 %v4698_v25, 16  ;;  %v552_v32 = vshll.u32 %v4698_v25, 16  ;;  %v6646_v38 = vcombine.low %v342_v29, %v343_v30  ;;  %v6291_v39 = vld [vmem:[%s6622_s10 + $0x14] ss:$0 sps:$4 sm:$0x11]   ;;  %v4731_v43 = vcombine.low %v389_v37, %v343_v30 }
  0x15   : > { %5478 = vmatprep.subr.bf16.mxu0 %v6275_v12  ;;  %5910 = vmatprep.subr.bf16.mxu1 %v6276_v13  ;;  %v559_v41 = vrot.slane %v557_v33, 1  ;;  %v806_v42 = vrot.slane %v4730_v34, 1  ;;  %v810_v45 = vrot.slane %v6291_v39, 1  ;;  %v569_v52 = vshll.u32 %v6291_v39, 16  ;;  %v344_v53 = vld [vmem:[%s6622_s10 + $0x18] sm:$0xf] }
  0x16   : > { %v554_v40 = vrot.slane %v552_v32, 1  ;;  %v562_v46 = vshrl.u32 %v6646_v38, 16  ;;  %v809_v49 = vrot.slane %v4731_v43, 1  ;;  %v564_v50 = vshll.u32 %v6646_v38, 16  ;;  %v345_v57 = vld [vmem:[%s6622_s10 + $0x1c] sm:$0xf] }
  0x17   : > { %v808_v48 = vsel %vm805_vm0, %v806_v42, %v807_v36  ;;  %v571_v59 = vrot.slane %v569_v52, 1  ;;  %v390_v60 = vld [vmem:[%s6622_s10 + $0x18] sm:$0xe]  ;;  %v6666_v61 = vcombine.low %v344_v53, %v345_v57  ;;  %v6297_v62 = vld [vmem:[%s6622_s10 + $0x20] ss:$0 sps:$4 sm:$0x11]  }
  0x18   : > { %5479 = vmatpush3.bf16.msra.mxu0 %v6277_v14  ;;  %5911 = vmatpush3.bf16.msra.mxu1 %v6276_v13  ;;  %v555_v47 = vor.u32 %v554_v40, %v550_v31  ;;  %v811_v55 = vsel %vm805_vm0, %v809_v49, %v810_v45  ;;  %v566_v56 = vrot.slane %v564_v50, 1  ;;  %v4732_v0 = vcombine.low %v390_v60, %v345_v57  ;;  %v347_v1 = vld [vmem:[%s6622_s10 + $0x28] sm:$0xf]  ;;  %v391_v4 = vld [vmem:[%s6622_s10 + $0x24] sm:$0xe]  ;;  %v6312_v37 = vld [vmem:[%s8129_s1 + $0xd0] sm:$0xff]  }
  0x19   : > { %5480 = vmatprep.subr.bf16.mxu0 %v6278_v15  ;;  %5912 = vmatprep.subr.bf16.mxu1 %v6279_v16  ;;  %v813_v3 = vrot.slane %v6297_v62, 1  ;;  %v6300_v5 = vld [vmem:[%s6622_s10 + $0x2c] ss:$0 sps:$4 sm:$0x11]   ;;  %v4733_v8 = vcombine.low %v391_v4, %v347_v1  ;;  %v574_v9 = vshrl.u32 %v6666_v61, 16  ;;  %v576_v11 = vshll.u32 %v6666_v61, 16 }
  0x1a   : > { %v560_v54 = vsel %vm548_vm1, %v555_v47, %v559_v41  ;;  %5918 = vmatprep.mubr.bf16.mxu1 %v808_v48  ;;  %v567_v63 = vor.u32 %v566_v56, %v562_v46  ;;  %v812_v7 = vrot.slane %v4732_v0, 1  ;;  %v816_v10 = vrot.slane %v6300_v5, 1  ;;  %v346_v13 = vld [vmem:[%s6622_s10 + $0x24] sm:$0xf]  ;;  %v6692_v26 = vld [vmem:[%s6622_s10 + $0x40] sm:$0xf] }
  0x1b   : > { %1094 = vmatprep.mubr.bf16.mxu0 %v560_v54  ;;  %v815_v14 = vrot.slane %v4733_v8, 1  ;;  %v581_v15 = vshll.u32 %v6297_v62, 16  ;;  %v6687_v22 = vld [vmem:[%s6622_s10 + $0x38] ss:$0 sps:$4 sm:$0x11]   ;;  %v6311_v32 = vld [vmem:[%s8131_s3 + $0x8] sm:$0xff]  }
  0x1c   : > { %5481 = vmatpush3.bf16.msra.mxu0 %v6280_v17  ;;  %5913 = vmatpush3.bf16.msra.mxu1 %v6279_v16  ;;  %v572_v6 = vsel %vm548_vm1, %v567_v63, %v571_v59  ;;  %v814_v12 = vsel %vm805_vm0, %v812_v7, %v813_v3  ;;  %v349_v16 = vld [vmem:[%s6622_s10 + $0x34] sm:$0xf]  ;;  %v578_v17 = vrot.slane %v576_v11, 1  ;;  %v819_v29 = vrot.slane %v6687_v22, 1  ;;  %v348_v41 = vld [vmem:[%s6622_s10 + $0x30] sm:$0xf] }
  0x1d   : > { %5482 = vmatprep.subr.bf16.mxu0 %v6281_v18  ;;  %5914 = vmatprep.subr.bf16.mxu1 %v6282_v19  ;;  %v392_v18 = vld [vmem:[%s6622_s10 + $0x30] sm:$0xe]  ;;  %v6698_v30 = vld [vmem:[%s6622_s10 + $0x44] ss:$0 sps:$4 sm:$0x11]   ;;  %v593_v40 = vshll.u32 %v6300_v5, 16 }
  0x1e   : > { %v4734_v23 = vcombine.low %v392_v18, %v349_v16  ;;  %v822_v36 = vrot.slane %v6698_v30, 1  ;;  %v6714_v42 = vld [vmem:[%s6622_s10 + $0x4c] sm:$0xf]  ;;  %v394_v46 = vld [vmem:[%s6622_s10 + $0x48] sm:$0xe]  ;;  %v6319_v50 = vld [vmem:[%s8129_s1 + $0x118] sm:$0xff]  }
  0x1f   : > { %v595_v45 = vrot.slane %v593_v40, 1  ;;  %v6719_v47 = vld [vmem:[%s6622_s10 + $0x50] ss:$0 sps:$4 sm:$0x11]   ;;  %v4736_v48 = vcombine.low %v394_v46, %v6714_v42  ;;  %v6723_v49 = vld [vmem:[%s6622_s10 + $0x58] sm:$0xf] }
  0x20   : > { %5483 = vmatpush3.bf16.msra.mxu0 %v6283_v20  ;;  %5915 = vmatpush3.bf16.msra.mxu1 %v6282_v19  ;;  %v6310_v19 = vld [vmem:[%s8129_s1 + $0x110] sm:$0xff]   ;;  %v817_v20 = vsel %vm805_vm0, %v815_v14, %v816_v10  ;;  %v818_v28 = vrot.slane %v4734_v23, 1  ;;  %v6734_v56 = vld [vmem:[%s6622_s10 + $0x5c] ss:$0 sps:$4 sm:$0x11]   ;;  %v605_v3 = vshll.u32 %v6687_v22, 16 }
  0x21   : > { %5484 = vmatprep.subr.bf16.mxu0 %v6284_v21  ;;  %5916 = vmatprep.subr.bf16.mxu1 %v6285_v24  ;;  %v583_v21 = vrot.slane %v581_v15, 1  ;;  %v395_v53 = vld [vmem:[%s6622_s10 + $0x54] sm:$0xe]  ;;  %v824_v54 = vrot.slane %v4736_v48, 1  ;;  %v350_v60 = vld [vmem:[%s6622_s10 + $0x3c] sm:$0xf] }
  0x22   : > { %v820_v34 = vsel %vm805_vm0, %v818_v28, %v819_v29  ;;  %v4737_v57 = vcombine.low %v395_v53, %v6723_v49  ;;  %v828_v63 = vrot.slane %v6734_v56, 1  ;;  %v6751_v4 = vld [vmem:[%s6622_s10 + $0x64] sm:$0xf]  ;;  %v396_v5 = vld [vmem:[%s6622_s10 + $0x60] sm:$0xe]  ;;  %v6328_v7 = vld [vmem:[%s8131_s3 + $0x10] sm:$0xff]  }
  0x23   : > { %v607_v10 = vrot.slane %v605_v3, 1  ;;  %v4738_v11 = vcombine.low %v396_v5, %v6751_v4  ;;  %v397_v15 = vld [vmem:[%s6622_s10 + $0x6c] sm:$0xe]  ;;  %v617_v29 = vshll.u32 %v6698_v30, 16  ;;  %v629_v53 = vshll.u32 %v6719_v47, 16 }
  0x24   : > { %5485 = vmatpush3.bf16.msra.mxu0 %v6286_v27  ;;  %5917 = vmatpush3.bf16.msra.mxu1 %v6285_v24  ;;  %v6689_v24 = vcombine.low %v346_v13, %v347_v1  ;;  %v393_v27 = vld [vmem:[%s6622_s10 + $0x3c] sm:$0xe]  ;;  %v827_v62 = vrot.slane %v4737_v57, 1  ;;  %v6327_v1 = vld [vmem:[%s8129_s1 + $0x120] sm:$0xff]   ;;  %v6766_v13 = vcombine.low %v350_v60, %v6692_v26  ;;  %v6337_v30 = vld [vmem:[%s8129_s1 + $0xe8] sm:$0xff]  }
  0x25   : > { %5606 = vmatprep.subr.bf16.mxu1 %v6293_v35  ;;  %5998 = vmatprep.subr.bf16.mxu0 %v6294_v44  ;;  %v4735_v31 = vcombine.low %v393_v27, %v6692_v26  ;;  %v400_v60 = vld [vmem:[%s6622_s10 + $0x90] sm:$0xe] }
  0x26   : > { %v588_v39 = vshll.u32 %v6689_v24, 16  ;;  %v829_v8 = vsel %vm805_vm0, %v827_v62, %v828_v63  ;;  %v610_v27 = vshrl.u32 %v6766_v13, 16  ;;  %v612_v28 = vshll.u32 %v6766_v13, 16 }
  0x27   : > { %1095 = vmatmul.mubr.bf16.vlgmr.msra.gmra.mrb[0].mxu0 %v4698_v25  ;;  %5919 = vmatmul.mubr.bf16.vlgmr.msra.gmra.mrb[0].mxu1 %v811_v55  ;;  %v579_v25 = vor.u32 %v578_v17, %v574_v9  ;;  %v821_v35 = vrot.slane %v4735_v31, 1  ;;  %v825_v55 = vrot.slane %v6719_v47, 1  ;;  %v352_v17 = vld [vmem:[%s6622_s10 + $0x48] sm:$0xf]  ;;  %v6789_v31 = vld [vmem:[%s6622_s10 + $0x7c] sm:$0xf] }
  0x28   : > { %5607 = vmatpush3.bf16.msra.mxu1 %v6295_v51  ;;  %5999 = vmatpush3.bf16.msra.mxu0 %v6294_v44  ;;  %v590_v44 = vrot.slane %v588_v39, 1  ;;  %v6728_v51 = vcombine.low %v348_v41, %v349_v16  ;;  %v6329_v16 = vld [vmem:[%s8129_s1 + $0xe0] sm:$0xff]   ;;  %v6804_v39 = vld [vmem:[%s6622_s10 + $0x88] sm:$0xf]  ;;  %v6344_v47 = vld [vmem:[%s8129_s1 + $0x130] sm:$0xff]  }
  0x29   : > { %5608 = vmatprep.subr.bf16.mxu1 %v6302_v58  ;;  %1102 = vmatprep.mubr.bf16.mxu0 %v572_v6  ;;  %v584_v33 = vsel %vm548_vm1, %v579_v25, %v583_v21  ;;  %v823_v43 = vsel %vm805_vm0, %v821_v35, %v822_v36  ;;  %v6320_v58 = vld [vmem:[%s8129_s1 + $0xd8] sm:$0xff]   ;;  %v6755_v6 = vld [vmem:[%s6622_s10 + $0x68] ss:$0 sps:$4 sm:$0x11]   ;;  %v619_v35 = vrot.slane %v617_v29, 1 }
  0x2a   : > { %5922 = vmatprep.mubr.bf16.mxu1 %v814_v12  ;;  %6000 = vmatprep.subr.bf16.mxu0 %v6311_v32  ;;  %v598_v0 = vshrl.u32 %v6728_v51, 16  ;;  %v6763_v12 = vld [vmem:[%s6622_s10 + $0x70] sm:$0xf]  ;;  %v831_v14 = vrot.slane %v6755_v6, 1  ;;  %v6353_v29 = vld [vmem:[%s8129_s1 + $0x138] sm:$0xff]  }
  0x2b   : > { %v4739_v21 = vcombine.low %v397_v15, %v6763_v12  ;;  %v6796_v36 = vld [vmem:[%s6622_s10 + $0x80] ss:$0 sps:$4 sm:$0x11]   ;;  %v6346_v15 = vld [vmem:[%s8129_s1 + $0xf0] sm:$0xff]  }
  0x2c   : > { %5609 = vmatpush3.bf16.msra.mxu1 %v6303_v2  ;;  %6001 = vmatpush3.bf16.msra.mxu0 %v6311_v32  ;;  %v600_v2 = vshll.u32 %v6728_v51, 16  ;;  %v398_v32 = vld [vmem:[%s6622_s10 + $0x78] sm:$0xe] }
  0x2d   : > { %5610 = vmatprep.subr.bf16.mxu1 %v6310_v19  ;;  %6002 = vmatprep.subr.bf16.mxu0 %v6328_v7  ;;  %v830_v19 = vrot.slane %v4738_v11, 1  ;;  %v833_v25 = vrot.slane %v4739_v21, 1  ;;  %v356_v11 = vld [vmem:[%s6622_s10 + $0x60] sm:$0xf]  ;;  %v6859_v21 = vld [vmem:[%s6622_s10 + $0xac] sm:$0xf] }
  0x2e   : > { %v602_v9 = vrot.slane %v600_v2, 1  ;;  %v401_v2 = vld [vmem:[%s6622_s10 + $0x9c] sm:$0xe] }
  0x2f   : > { %1103 = vmatmul.mubr.bf16.gmra.mrb[4].mxu0 %v6646_v38  ;;  %5923 = vmatmul.mubr.bf16.gmra.mrb[4].mxu1 %v817_v20  ;;  %v586_v38 = vshrl.u32 %v6689_v24, 16  ;;  %v6775_v20 = vld [vmem:[%s6622_s10 + $0x74] ss:$0 sps:$4 sm:$0x11]   ;;  %v832_v23 = vsel %vm805_vm0, %v830_v19, %v831_v14 }
  0x30   : > { %1110 = vmatprep.mubr.bf16.mxu0 %v584_v33  ;;  %5926 = vmatprep.mubr.bf16.mxu1 %v820_v34  ;;  %v603_v18 = vor.u32 %v602_v9, %v598_v0  ;;  %v834_v26 = vrot.slane %v6775_v20, 1  ;;  %v6793_v33 = vcombine.low %v352_v17, %v6714_v42  ;;  %v614_v34 = vrot.slane %v612_v28, 1  ;;  %v6868_v28 = vld [vmem:[%s6622_s10 + $0xb8] sm:$0xf] }
  0x31   : > { %5611 = vmatpush3.bf16.msra.mxu1 %v6312_v37  ;;  %v591_v52 = vor.u32 %v590_v44, %v586_v38  ;;  %6003 = vmatpush3.bf16.msra.mxu0 %v6328_v7  ;;  %v4740_v37 = vcombine.low %v398_v32, %v6789_v31  ;;  %v837_v42 = vrot.slane %v6796_v36, 1  ;;  %v6809_v44 = vld [vmem:[%s6622_s10 + $0x8c] ss:$0 sps:$4 sm:$0x11]  }
  0x32   : > { %5612 = vmatprep.subr.bf16.mxu1 %v6319_v50  ;;  %v608_v22 = vsel %vm548_vm1, %v603_v18, %v607_v10  ;;  %v835_v38 = vsel %vm805_vm0, %v833_v25, %v834_v26  ;;  %v615_v40 = vor.u32 %v614_v34, %v610_v27  ;;  %v622_v46 = vshrl.u32 %v6793_v33, 16  ;;  %v402_v25 = vld [vmem:[%s6622_s10 + $0xa8] sm:$0xe]  ;;  %v358_v26 = vld [vmem:[%s6622_s10 + $0x6c] sm:$0xf] }
  0x33   : > { %v596_v59 = vsel %vm548_vm1, %v591_v52, %v595_v45  ;;  %v836_v41 = vrot.slane %v4740_v37, 1  ;;  %v624_v52 = vshll.u32 %v6793_v33, 16  ;;  %v840_v57 = vrot.slane %v6809_v44, 1  ;;  %v6864_v27 = vld [vmem:[%s6622_s10 + $0xb0] ss:$0 sps:$4 sm:$0x11]  }
  0x34   : > { %v620_v48 = vsel %vm548_vm1, %v615_v40, %v619_v35  ;;  %v641_v18 = vshll.u32 %v6734_v56, 16  ;;  %v4744_v56 = vcombine.low %v402_v25, %v6859_v21  ;;  %v403_v34 = vld [vmem:[%s6622_s10 + $0xb4] sm:$0xe] }
  0x35   : > { %5613 = vmatpush3.bf16.msra.mxu1 %v6320_v58  ;;  %v838_v50 = vsel %vm805_vm0, %v836_v41, %v837_v42  ;;  %v6821_v58 = vld [vmem:[%s6622_s10 + $0x94] sm:$0xf]  ;;  %v4745_v40 = vcombine.low %v403_v34, %v6868_v28  ;;  %v6354_v41 = vld [vmem:[%s8129_s1 + $0xf8] sm:$0xff]  }
  0x36   : > { %5614 = vmatprep.subr.bf16.mxu1 %v6327_v1  ;;  %v4742_v62 = vcombine.low %v400_v60, %v6821_v58  ;;  %v6835_v1 = vld [vmem:[%s6622_s10 + $0xa0] sm:$0xf]  ;;  %v848_v37 = vrot.slane %v4744_v56, 1  ;;  %v6935_v56 = vld [vmem:[%s6622_s10 + $0x28] sm:$0xf] }
  0x37   : > { %1111 = vmatmul.mubr.bf16.gmra.mrb[8].mxu0 %v6666_v61  ;;  %5927 = vmatmul.mubr.bf16.gmra.mrb[8].mxu1 %v823_v43  ;;  %v826_v61 = vsel %vm805_vm0, %v824_v54, %v825_v55  ;;  %v399_v43 = vld [vmem:[%s6622_s10 + $0x84] sm:$0xe]  ;;  %v354_v54 = vld [vmem:[%s6622_s10 + $0x54] sm:$0xf]  ;;  %v4743_v9 = vcombine.low %v401_v2, %v6835_v1 }
  0x38   : > { %1118 = vmatprep.mubr.bf16.mxu0 %v596_v59  ;;  %5930 = vmatprep.mubr.bf16.mxu1 %v826_v61  ;;  %v4741_v45 = vcombine.low %v399_v43, %v6804_v39  ;;  %v631_v59 = vrot.slane %v629_v53, 1  ;;  %v6825_v61 = vld [vmem:[%s6622_s10 + $0x98] ss:$0 sps:$4 sm:$0x11]   ;;  %v6832_v63 = vcombine.low %v354_v54, %v6723_v49  ;;  %v842_v5 = vrot.slane %v4742_v62, 1 }
  0x39   : > { %5615 = vmatpush3.bf16.msra.mxu1 %v6329_v16  ;;  %v843_v7 = vrot.slane %v6825_v61, 1  ;;  %v6345_v49 = vld [vmem:[%s8131_s3 + $0x18] sm:$0xff]   ;;  %v845_v19 = vrot.slane %v4743_v9, 1  ;;  %v6898_v53 = vcombine.low %v358_v26, %v6763_v12  ;;  %v6358_v12 = vld [vmem:[%s8131_s3 + $0x20] sm:$0xff]  }
  0x3a   : > { %v839_v55 = vrot.slane %v4741_v45, 1  ;;  %6004 = vmatprep.subr.bf16.mxu0 %v6345_v49  ;;  %v634_v16 = vshrl.u32 %v6832_v63, 16  ;;  %v636_v17 = vshll.u32 %v6832_v63, 16  ;;  %v851_v45 = vrot.slane %v4745_v40, 1  ;;  %v4772_v9 = vld [vmem:[%s6622_s10 + $0x18] sm:$0xf] }
  0x3b   : > { %v844_v14 = vsel %vm805_vm0, %v842_v5, %v843_v7  ;;  %6005 = vmatpush3.bf16.msra.mxu0 %v6345_v49  ;;  %v660_v5 = vshll.u32 %v6898_v53, 16  ;;  %v665_v7 = vshll.u32 %v6775_v20, 16  ;;  %v4773_v49 = vld [vmem:[%s6622_s10 + $0x1c] sm:$0xf] }
  0x3c   : > { %v841_v3 = vsel %vm805_vm0, %v839_v55, %v840_v57  ;;  %v653_v55 = vshll.u32 %v6755_v6, 16  ;;  %v4771_v57 = vld [vmem:[%s6622_s10 + $0x10] sm:$0xf]  ;;  %6006 = vmatprep.subr.bf16.mxu0 %v6358_v12 }
  0x3e   : > { %v655_v62 = vrot.slane %v653_v55, 1 }
  0x3f   : > { %1119 = vmatmul.mubr.bf16.gmra.mrb[12].mxu0 %v6689_v24  ;;  %5931 = vmatmul.mubr.bf16.gmra.mrb[12].mxu1 %v829_v8  ;;  %v6336_v24 = vld [vmem:[%s8129_s1 + $0x128] sm:$0xff]   ;;  %v6841_v8 = vld [vmem:[%s6622_s10 + $0xa4] ss:$0 sps:$4 sm:$0x11]  }
  0x40   : > { %1126 = vmatprep.mubr.bf16.mxu0 %v608_v22  ;;  %5934 = vmatprep.mubr.bf16.mxu1 %v832_v23  ;;  %v638_v22 = vrot.slane %v636_v17, 1  ;;  %v643_v23 = vrot.slane %v641_v18, 1  ;;  %v6360_v17 = vld [vmem:[%s6622_s10 + $0x20] ss:$0 sps:$4 sm:$0x11]  }
  0x41   : > { %5616 = vmatprep.subr.bf16.mxu1 %v6336_v24  ;;  %v6874_v24 = vcombine.low %v356_v11, %v6751_v4  ;;  %v360_v4 = vld [vmem:[%s6622_s10 + $0x78] sm:$0xf]  ;;  %6007 = vmatpush3.bf16.msra.mxu0 %v6358_v12  ;;  %v658_v11 = vshrl.u32 %v6898_v53, 16  ;;  %v1645_v25 = vshll.u32 %v6360_v17, 16  ;;  %v364_v12 = vld [vmem:[%s6622_s10 + $0x90] sm:$0xf] }
  0x42   : > { %5617 = vmatpush3.bf16.msra.mxu1 %v6337_v30  ;;  %v639_v32 = vor.u32 %v638_v22, %v634_v16  ;;  %v849_v30 = vrot.slane %v6864_v27, 1  ;;  %v662_v16 = vrot.slane %v660_v5, 1  ;;  %v4774_v22 = vld [vmem:[%s6622_s10 + $0x24] sm:$0xf] }
  0x43   : > { %5618 = vmatprep.subr.bf16.mxu1 %v6344_v47  ;;  %v648_v54 = vshll.u32 %v6874_v24, 16  ;;  %v1647_v40 = vrot.slane %v1645_v25, 1 }
  0x44   : > { %v644_v42 = vsel %vm548_vm1, %v639_v32, %v643_v23  ;;  %v850_v43 = vsel %vm805_vm0, %v848_v37, %v849_v30  ;;  %v6364_v23 = vld [vmem:[%s8131_s3 + $0x28] sm:$0xff]   ;;  %v663_v32 = vor.u32 %v662_v16, %v658_v11 }
  0x45   : > { %v650_v60 = vrot.slane %v648_v54, 1  ;;  %v6944_v37 = vld [vmem:[%s6622_s10 + $0x2c] ss:$0 sps:$4 sm:$0x11]   ;;  %6008 = vmatprep.subr.bf16.mxu0 %v6364_v23  ;;  %v6960_v54 = vld [vmem:[%s6622_s10 + $0x34] sm:$0xf] }
  0x46   : > { %5619 = vmatpush3.bf16.msra.mxu1 %v6346_v15  ;;  %6009 = vmatpush3.bf16.msra.mxu0 %v6364_v23 }
  0x47   : > { %1127 = vmatmul.mubr.bf16.gmra.mrb[16].mxu0 %v6728_v51  ;;  %5935 = vmatmul.mubr.bf16.gmra.mrb[16].mxu1 %v835_v38  ;;  %v626_v51 = vrot.slane %v624_v52, 1  ;;  %v6880_v38 = vld [vmem:[%s6622_s10 + $0xbc] ss:$0 sps:$4 sm:$0x11]   ;;  %v6895_v52 = vld [vmem:[%s8129_s1 + $0x140] sm:$0xff]  }
  0x48   : > { %1134 = vmatprep.mubr.bf16.mxu0 %v620_v48  ;;  %5938 = vmatprep.mubr.bf16.mxu1 %v838_v50  ;;  %v646_v48 = vshrl.u32 %v6874_v24, 16  ;;  %v4770_v50 = vld [vmem:[%s6622_s10 + $0xc] sm:$0xf] }
  0x49   : > { %v627_v0 = vor.u32 %v626_v51, %v622_v46  ;;  %5620 = vmatprep.subr.bf16.mxu1 %v6353_v29  ;;  %v852_v46 = vrot.slane %v6880_v38, 1  ;;  %v6904_v51 = vcombine.low %v4770_v50, %v4771_v57  ;;  %v1657_v57 = vshll.u32 %v6944_v37, 16 }
  0x4a   : > { %5621 = vmatpush3.bf16.msra.mxu1 %v6354_v41  ;;  %v677_v41 = vshll.u32 %v6796_v36, 16 }
  0x4b   : > { %v632_v10 = vsel %vm548_vm1, %v627_v0, %v631_v59  ;;  %v6356_v59 = vld [vmem:[%s6622_s10 + $0x14] ss:$0 sps:$4 sm:$0x11]   ;;  %5950 = vmatprep.subr.bf16.mxu1 %v6895_v52  ;;  %v1626_v6 = vshrl.u32 %v6904_v51, 16  ;;  %v1628_v47 = vshll.u32 %v6904_v51, 16  ;;  %v853_v2 = vsel %vm805_vm0, %v851_v45, %v852_v46 }
  0x4c   : > { %v1633_v0 = vshll.u32 %v6356_v59, 16 }
  0x4f   : > { %1135 = vmatmul.mubr.bf16.gmra.mrb[20].mxu0 %v6766_v13  ;;  %5939 = vmatmul.mubr.bf16.gmra.mrb[20].mxu1 %v841_v3  ;;  %v846_v13 = vrot.slane %v6841_v8, 1  ;;  %v651_v3 = vor.u32 %v650_v60, %v646_v48 }
  0x50   : > { %1142 = vmatprep.mubr.bf16.mxu0 %v632_v10  ;;  %5942 = vmatprep.mubr.bf16.mxu1 %v844_v14  ;;  %v1635_v10 = vrot.slane %v1633_v0, 1  ;;  %v6922_v14 = vcombine.low %v4772_v9, %v4773_v49  ;;  %v689_v49 = vshll.u32 %v6809_v44, 16 }
  0x51   : > { %v847_v35 = vsel %vm805_vm0, %v845_v19, %v846_v13  ;;  %v656_v15 = vsel %vm548_vm1, %v651_v3, %v655_v62  ;;  %v667_v19 = vrot.slane %v665_v7, 1  ;;  %v679_v62 = vrot.slane %v677_v41, 1  ;;  %v6986_v3 = vld [vmem:[%s6622_s10 + $0x40] sm:$0xf] }
  0x52   : > { %v1638_v13 = vshrl.u32 %v6922_v14, 16  ;;  %v1640_v20 = vshll.u32 %v6922_v14, 16  ;;  %v1659_v7 = vrot.slane %v1657_v57, 1 }
  0x53   : > { %v668_v46 = vsel %vm548_vm1, %v663_v32, %v667_v19  ;;  %v6375_v19 = vld [vmem:[%s8129_s1 + $0x158] sm:$0xff]  }
  0x54   : > { %v1642_v34 = vrot.slane %v1640_v20, 1  ;;  %v691_v20 = vrot.slane %v689_v49, 1 }
  0x56   : > { %v1643_v30 = vor.u32 %v1642_v34, %v1638_v13  ;;  %v366_v13 = vld [vmem:[%s6622_s10 + $0x9c] sm:$0xf]  ;;  %v6381_v34 = vld [vmem:[%s8129_s1 + $0x160] sm:$0xff]  }
  0x57   : > { %1143 = vmatmul.mubr.bf16.gmra.mrb[24].mxu0 %v6793_v33  ;;  %5943 = vmatmul.mubr.bf16.gmra.mrb[24].mxu1 %v847_v35  ;;  %v6912_v33 = vcombine.low %v360_v4, %v6789_v31  ;;  %v1630_v31 = vrot.slane %v1628_v47, 1  ;;  %v6941_v35 = vcombine.low %v4774_v22, %v6935_v56  ;;  %v6369_v47 = vld [vmem:[%s8129_s1 + $0x150] sm:$0xff]  }
  0x58   : > { %1150 = vmatprep.mubr.bf16.mxu0 %v644_v42  ;;  %5946 = vmatprep.mubr.bf16.mxu1 %v850_v43  ;;  %v6370_v42 = vld [vmem:[%s8131_s3 + $0x30] sm:$0xff]   ;;  %v6972_v60 = vsel %vm548_vm1, %v1643_v30, %v1647_v40  ;;  %v7030_v30 = vcombine.low %v366_v13, %v6835_v1  ;;  %v701_v40 = vshll.u32 %v6825_v61, 16  ;;  %v368_v61 = vld [vmem:[%s6622_s10 + $0xa8] sm:$0xf] }
  0x59   : > { %v1631_v18 = vor.u32 %v1630_v31, %v1626_v6  ;;  %v672_v26 = vshll.u32 %v6912_v33, 16  ;;  %v1652_v4 = vshll.u32 %v6941_v35, 16  ;;  %v4776_v43 = vld [vmem:[%s6622_s10 + $0x30] sm:$0xf]  ;;  %v670_v48 = vshrl.u32 %v6912_v33, 16  ;;  %6010 = vmatprep.subr.bf16.mxu0 %v6370_v42  ;;  %v6382_v31 = vld [vmem:[%s8129_s1 + $0x1c0] sm:$0xff]  }
  0x5a   : > { %v1650_v36 = vshrl.u32 %v6941_v35, 16  ;;  %v6968_v59 = vcombine.low %v4776_v43, %v6960_v54  ;;  %6011 = vmatpush3.bf16.msra.mxu0 %v6370_v42  ;;  %v6977_v6 = vld [vmem:[%s6622_s10 + $0x38] ss:$0 sps:$4 sm:$0x11]   ;;  %v703_v1 = vrot.slane %v701_v40, 1 }
  0x5b   : > { %v6938_v29 = vsel %vm548_vm1, %v1631_v18, %v1635_v10  ;;  %v674_v50 = vrot.slane %v672_v26, 1  ;;  %v1654_v55 = vrot.slane %v1652_v4, 1  ;;  %v7019_v26 = vld [vmem:[%s6622_s10 + $0x44] ss:$0 sps:$4 sm:$0x11]  }
  0x5c   : > { %v1664_v9 = vshll.u32 %v6968_v59, 16  ;;  %v1662_v44 = vshrl.u32 %v6968_v59, 16  ;;  %v1681_v43 = vshll.u32 %v7019_v26, 16 }
  0x5d   : > { %v1655_v5 = vor.u32 %v1654_v55, %v1650_v36  ;;  %v708_v55 = vshll.u32 %v7030_v30, 16 }
  0x5e   : > { %v1666_v18 = vrot.slane %v1664_v9, 1 }
  0x5f   : > { %1151 = vmatmul.mubr.bf16.gmra.mrb[28].mxu0 %v6832_v63  ;;  %5947 = vmatmul.mubr.bf16.gmra.mrb[28].mxu1 %v853_v2  ;;  %v362_v63 = vld [vmem:[%s6622_s10 + $0x84] sm:$0xf]  ;;  %v4778_v2 = vld [vmem:[%s6622_s10 + $0x3c] sm:$0xf]  ;;  %v7007_v17 = vsel %vm548_vm1, %v1655_v5, %v1659_v7  ;;  %v710_v7 = vrot.slane %v708_v55, 1 }
  0x60   : > { %1158 = vmatprep.mubr.bf16.mxu0 %v656_v15  ;;  %2170 = vmatprep.mubr.bf16.mxu1 %v6938_v29  ;;  %v6955_v45 = vcombine.low %v362_v63, %v6804_v39  ;;  %v6363_v39 = vld [vmem:[%s8129_s1 + $0x148] sm:$0xff]   ;;  %v1669_v15 = vshll.u32 %v6977_v6, 16  ;;  %v7003_v16 = vcombine.low %v4778_v2, %v6986_v3  ;;  %v1667_v63 = vor.u32 %v1666_v18, %v1662_v44  ;;  %v7080_v18 = vld [vmem:[%s6622_s10 + $0x5c] ss:$0 sps:$4 sm:$0x11]  }
  0x61   : > { %v7060_v2 = vcombine.low %v368_v61, %v6859_v21  ;;  %v725_v44 = vshll.u32 %v6864_v27, 16  ;;  %v1705_v27 = vshll.u32 %v7080_v18, 16  ;;  %v7113_v55 = vld [vmem:[%s6622_s10 + $0x70] sm:$0xf] }
  0x62   : > { %v684_v0 = vshll.u32 %v6955_v45, 16  ;;  %v682_v10 = vshrl.u32 %v6955_v45, 16  ;;  %v1671_v25 = vrot.slane %v1669_v15, 1  ;;  %v1676_v32 = vshll.u32 %v7003_v16, 16 }
  0x63   : > { %v720_v15 = vshll.u32 %v7060_v2, 16 }
  0x64   : > { %v686_v11 = vrot.slane %v684_v0, 1  ;;  %v7057_v0 = vld [vmem:[%s6622_s10 + $0x58] sm:$0xf] }
  0x66   : > { %v687_v23 = vor.u32 %v686_v11, %v682_v10 }
  0x67   : > { %1159 = vmatmul.mubr.bf16.gmra.mrb[32].mxu0 %v6874_v24  ;;  %2171 = vmatmul.mubr.bf16.vlgmr.msra.gmra.mrb[32].mxu1 %v6904_v51  ;;  %v6376_v24 = vld [vmem:[%s8131_s3 + $0x38] sm:$0xff]   ;;  %v675_v51 = vor.u32 %v674_v50, %v670_v48  ;;  %v1674_v48 = vshrl.u32 %v7003_v16, 16  ;;  %v1678_v50 = vrot.slane %v1676_v32, 1  ;;  %v722_v32 = vrot.slane %v720_v15, 1 }
  0x68   : > { %5951 = vmatpush3.bf16.msra.mxu1 %v6895_v52  ;;  %1166 = vmatprep.mubr.bf16.mxu0 %v668_v46  ;;  %v6994_v52 = vcombine.low %v364_v12, %v6821_v58  ;;  %v692_v41 = vsel %vm548_vm1, %v687_v23, %v691_v20  ;;  %v7037_v46 = vsel %vm548_vm1, %v1667_v63, %v1671_v25  ;;  %v7049_v12 = vld [vmem:[%s6622_s10 + $0x50] ss:$0 sps:$4 sm:$0x11]   ;;  %v7085_v23 = vld [vmem:[%s6622_s10 + $0x64] sm:$0xf]  ;;  %v718_v25 = vshrl.u32 %v7060_v2, 16 }
  0x69   : > { %2178 = vmatprep.mubr.bf16.mxu1 %v6972_v60  ;;  %5952 = vmatprep.subr.bf16.mxu1 %v6363_v39  ;;  %v680_v58 = vsel %vm548_vm1, %v675_v51, %v679_v62  ;;  %v1679_v62 = vor.u32 %v1678_v50, %v1674_v48  ;;  %v713_v51 = vshll.u32 %v6841_v8, 16  ;;  %v1693_v10 = vshll.u32 %v7049_v12, 16  ;;  %v370_v8 = vld [vmem:[%s6622_s10 + $0xb4] sm:$0xf] }
  0x6a   : > { %6012 = vmatprep.subr.bf16.mxu0 %v6376_v24  ;;  %v696_v22 = vshll.u32 %v6994_v52, 16  ;;  %v694_v4 = vshrl.u32 %v6994_v52, 16  ;;  %v1707_v50 = vrot.slane %v1705_v27, 1  ;;  %v7163_v27 = vld [vmem:[%s8129_s1 + $0x200] sm:$0xff]  }
  0x6b   : > { %6013 = vmatpush3.bf16.msra.mxu0 %v6376_v24  ;;  %v706_v24 = vshrl.u32 %v7030_v30, 16  ;;  %v715_v11 = vrot.slane %v713_v51, 1  ;;  %v1695_v13 = vrot.slane %v1693_v10, 1  ;;  %v7127_v51 = vld [vmem:[%s6622_s10 + $0x74] ss:$0 sps:$4 sm:$0x11]  }
  0x6c   : > { %5953 = vmatpush3.bf16.msra.mxu1 %v6363_v39  ;;  %5766 = vmatprep.subr.bf16.mxu0 %v6382_v31  ;;  %v698_v42 = vrot.slane %v696_v22, 1  ;;  %v1683_v39 = vrot.slane %v1681_v43, 1  ;;  %v4784_v22 = vld [vmem:[%s6622_s10 + $0x60] sm:$0xf]  ;;  %v1729_v15 = vshll.u32 %v7127_v51, 16 }
  0x6d   : > { %5954 = vmatprep.subr.bf16.mxu1 %v6369_v47  ;;  %v7098_v40 = vcombine.low %v4784_v22, %v7085_v23  ;;  %v7108_v43 = vld [vmem:[%s6622_s10 + $0x68] ss:$0 sps:$4 sm:$0x11]   ;;  %v4790_v22 = vld [vmem:[%s6622_s10 + $0x84] sm:$0xf] }
  0x6e   : > { %v699_v57 = vor.u32 %v698_v42, %v694_v4  ;;  %v7067_v49 = vsel %vm548_vm1, %v1679_v62, %v1683_v39  ;;  %v723_v4 = vor.u32 %v722_v32, %v718_v25  ;;  %v1731_v32 = vrot.slane %v1729_v15, 1  ;;  %v6391_v15 = vld [vmem:[%s8129_s1 + $0x1d0] sm:$0xff]  }
  0x6f   : > { %1167 = vmatmul.mubr.bf16.gmra.mrb[36].mxu0 %v6898_v53  ;;  %2179 = vmatmul.mubr.bf16.gmra.mrb[36].mxu1 %v6922_v14  ;;  %v4780_v53 = vld [vmem:[%s6622_s10 + $0x48] sm:$0xf]  ;;  %v7027_v14 = vld [vmem:[%s6622_s10 + $0x4c] sm:$0xf]  ;;  %v1712_v61 = vshll.u32 %v7098_v40, 16  ;;  %v1710_v62 = vshrl.u32 %v7098_v40, 16 }
  0x70   : > { %1174 = vmatprep.mubr.bf16.mxu0 %v680_v58  ;;  %2186 = vmatprep.mubr.bf16.mxu1 %v7007_v17  ;;  %v7041_v36 = vcombine.low %v4780_v53, %v7027_v14  ;;  %v704_v5 = vsel %vm548_vm1, %v699_v57, %v703_v1  ;;  %v711_v58 = vor.u32 %v710_v7, %v706_v24  ;;  %v4786_v1 = vld [vmem:[%s6622_s10 + $0x6c] sm:$0xf]  ;;  %v7134_v7 = vld [vmem:[%s6622_s10 + $0x7c] sm:$0xf] }
  0x71   : > { %5955 = vmatpush3.bf16.msra.mxu1 %v6369_v47  ;;  %v7124_v24 = vcombine.low %v4786_v1, %v7113_v55 }
  0x72   : > { %5956 = vmatprep.subr.bf16.mxu1 %v6375_v19  ;;  %v1688_v47 = vshll.u32 %v7041_v36, 16  ;;  %v1686_v9 = vshrl.u32 %v7041_v36, 16 }
  0x74   : > { %v1690_v31 = vrot.slane %v1688_v47, 1 }
  0x75   : > { %5957 = vmatpush3.bf16.msra.mxu1 %v6375_v19 }
  0x76   : > { %5958 = vmatprep.subr.bf16.mxu1 %v6381_v34  ;;  %v1691_v19 = vor.u32 %v1690_v31, %v1686_v9  ;;  %v6408_v9 = vld [vmem:[%s8129_s1 + $0x178] sm:$0xff]  }
  0x77   : > { %1175 = vmatmul.mubr.bf16.gmra.mrb[40].mxu0 %v6912_v33  ;;  %2187 = vmatmul.mubr.bf16.gmra.mrb[40].mxu1 %v6941_v35  ;;  %v6390_v33 = vld [vmem:[%s8129_s1 + $0x168] sm:$0xff]   ;;  %v4782_v35 = vld [vmem:[%s6622_s10 + $0x54] sm:$0xf] }
  0x78   : > { %1182 = vmatprep.mubr.bf16.mxu0 %v692_v41  ;;  %2194 = vmatprep.mubr.bf16.mxu1 %v7037_v46  ;;  %v7071_v21 = vcombine.low %v4782_v35, %v7057_v0  ;;  %v727_v41 = vrot.slane %v725_v44, 1  ;;  %v1717_v35 = vshll.u32 %v7108_v43, 16 }
  0x79   : > { %5959 = vmatpush3.bf16.msra.mxu1 %v6381_v34  ;;  %v7094_v34 = vsel %vm548_vm1, %v1691_v19, %v1695_v13  ;;  %v7150_v13 = vld [vmem:[%s6622_s10 + $0x80] ss:$0 sps:$4 sm:$0x11]  }
  0x7a   : > { %5960 = vmatprep.subr.bf16.mxu1 %v6390_v33  ;;  %v1700_v20 = vshll.u32 %v7071_v21, 16  ;;  %v1698_v63 = vshrl.u32 %v7071_v21, 16  ;;  %v728_v57 = vsel %vm548_vm1, %v723_v4, %v727_v41  ;;  %v7175_v41 = vld [vmem:[%s6622_s10 + $0x8c] ss:$0 sps:$4 sm:$0x11]  }
  0x7b   : > { %v4820_v4 = vld [vmem:[%s6622_s10 + $0x24] sm:$0xe] }
  0x7c   : > { %v1702_v53 = vrot.slane %v1700_v20, 1 }
  0x7d   : > { %5961 = vmatpush3.bf16.msra.mxu1 %v6390_v33  ;;  %v1714_v33 = vrot.slane %v1712_v61, 1  ;;  %v1888_v61 = vrot.slane %v6944_v37, 1  ;;  %v6383_v37 = vld [vmem:[%s8129_s1 + $0x180] sm:$0xff]  }
  0x7e   : > { %v1703_v48 = vor.u32 %v1702_v53, %v1698_v63 }
  0x7f   : > { %1183 = vmatmul.mubr.bf16.gmra.mrb[44].mxu0 %v6955_v45  ;;  %2195 = vmatmul.mubr.bf16.gmra.mrb[44].mxu1 %v6968_v59  ;;  %v7088_v45 = vcombine.low %v370_v8, %v6868_v28  ;;  %v716_v59 = vsel %vm548_vm1, %v711_v58, %v715_v11  ;;  %v6399_v28 = vld [vmem:[%s8129_s1 + $0x170] sm:$0xff]   ;;  %v1715_v10 = vor.u32 %v1714_v33, %v1710_v62  ;;  %v1719_v8 = vrot.slane %v1717_v35, 1 }
  0x80   : > { %1190 = vmatprep.mubr.bf16.mxu0 %v704_v5  ;;  %2202 = vmatprep.mubr.bf16.mxu1 %v7067_v49  ;;  %v7120_v47 = vsel %vm548_vm1, %v1703_v48, %v1707_v50  ;;  %v4788_v5 = vld [vmem:[%s6622_s10 + $0x78] sm:$0xf]  ;;  %v1722_v11 = vshrl.u32 %v7124_v24, 16  ;;  %v4868_v50 = vcombine.low %v4820_v4, %v6935_v56  ;;  %v4822_v56 = vld [vmem:[%s6622_s10 + $0x3c] sm:$0xe] }
  0x81   : > { %v732_v42 = vshll.u32 %v7088_v45, 16  ;;  %5962 = vmatprep.subr.bf16.mxu1 %v6399_v28  ;;  %v7147_v44 = vsel %vm548_vm1, %v1715_v10, %v1719_v8  ;;  %v4870_v35 = vcombine.low %v4822_v56, %v6986_v3  ;;  %v6386_v10 = vld [vmem:[%s8129_s1 + $0x1c8] sm:$0xff]   ;;  %v4825_v4 = vld [vmem:[%s6622_s10 + $0x60] sm:$0xe] }
  0x82   : > { %5963 = vmatpush3.bf16.msra.mxu1 %v6399_v28 }
  0x83   : > { %v734_v39 = vrot.slane %v732_v42, 1  ;;  %5964 = vmatprep.subr.bf16.mxu1 %v6408_v9 }
  0x86   : > { %5965 = vmatpush3.bf16.msra.mxu1 %v6408_v9 }
  0x87   : > { %1191 = vmatmul.mubr.bf16.gmra.mrb[48].mxu0 %v6994_v52  ;;  %2203 = vmatmul.mubr.bf16.gmra.mrb[48].mxu1 %v7003_v16  ;;  %v730_v52 = vshrl.u32 %v7088_v45, 16  ;;  %v737_v16 = vshll.u32 %v6880_v38, 16 }
  0x88   : > { %1198 = vmatprep.mubr.bf16.mxu0 %v716_v59  ;;  %2210 = vmatprep.mubr.bf16.mxu1 %v7094_v34  ;;  %v7158_v59 = vld [vmem:[%s6622_s10 + $0x88] sm:$0xf] }
  0x89   : > { %v739_v38 = vrot.slane %v737_v16, 1  ;;  %v735_v31 = vor.u32 %v734_v39, %v730_v52  ;;  %6046 = vmatprep.subr.bf16.mxu1 %v7163_v27  ;;  %v4792_v52 = vld [vmem:[%s6622_s10 + $0x90] sm:$0xf]  ;;  %v7187_v16 = vld [vmem:[%s6622_s10 + $0x94] sm:$0xf]  ;;  %v1891_v39 = vrot.slane %v6977_v6, 1 }
  0x8a   : > { %v1753_v6 = vshll.u32 %v7175_v41, 16  ;;  %v7207_v9 = vcombine.low %v4792_v52, %v7187_v16 }
  0x8b   : > { %v740_v58 = vsel %vm548_vm1, %v735_v31, %v739_v38  ;;  %v1894_v38 = vrot.slane %v7019_v26, 1  ;;  %v4823_v31 = vld [vmem:[%s6622_s10 + $0x48] sm:$0xe]  ;;  %v1893_v26 = vrot.slane %v4870_v35, 1 }
  0x8c   : > { %v4871_v8 = vcombine.low %v4823_v31, %v7027_v14 }
  0x8e   : > { %v1896_v14 = vrot.slane %v4871_v8, 1  ;;  %v4829_v8 = vld [vmem:[%s6622_s10 + $0x90] sm:$0xe] }
  0x8f   : > { %1199 = vmatmul.mubr.bf16.gmra.mrb[52].mxu0 %v7030_v30  ;;  %2211 = vmatmul.mubr.bf16.gmra.mrb[52].mxu1 %v7041_v36  ;;  %v1724_v30 = vshll.u32 %v7124_v24, 16  ;;  %v7141_v36 = vcombine.low %v4788_v5, %v7134_v7 }
  0x90   : > { %1206 = vmatprep.mubr.bf16.mxu0 %v728_v57  ;;  %2218 = vmatprep.mubr.bf16.mxu1 %v7120_v47  ;;  %v1887_v57 = vrot.slane %v4868_v50, 1 }
  0x91   : > { %v1726_v19 = vrot.slane %v1724_v30, 1  ;;  %v1736_v20 = vshll.u32 %v7141_v36, 16  ;;  %v1734_v63 = vshrl.u32 %v7141_v36, 16  ;;  %v1897_v30 = vrot.slane %v7049_v12, 1  ;;  %v4824_v12 = vld [vmem:[%s6622_s10 + $0x54] sm:$0xe] }
  0x93   : > { %v1727_v25 = vor.u32 %v1726_v19, %v1722_v11  ;;  %v1738_v53 = vrot.slane %v1736_v20, 1  ;;  %v6387_v11 = vld [vmem:[%s8129_s1 + $0x188] sm:$0xff]   ;;  %v1760_v19 = vshll.u32 %v7207_v9, 16  ;;  %v4872_v20 = vcombine.low %v4824_v12, %v7057_v0 }
  0x94   : > { %v4873_v0 = vcombine.low %v4825_v4, %v7085_v23  ;;  %v6392_v23 = vld [vmem:[%s8129_s1 + $0x190] sm:$0xff]  }
  0x95   : > { %v7172_v28 = vsel %vm548_vm1, %v1727_v25, %v1731_v32  ;;  %v1739_v1 = vor.u32 %v1738_v53, %v1734_v63  ;;  %v4794_v32 = vld [vmem:[%s6622_s10 + $0x9c] sm:$0xf]  ;;  %v7243_v63 = vsel %vm805_vm0, %v1896_v14, %v1897_v30  ;;  %v1899_v53 = vrot.slane %v4872_v20, 1 }
  0x97   : > { %1207 = vmatmul.mubr.bf16.gmra.mrb[56].mxu0 %v7060_v2  ;;  %2219 = vmatmul.mubr.bf16.gmra.mrb[56].mxu1 %v7071_v21  ;;  %v1741_v2 = vshll.u32 %v7150_v13, 16  ;;  %v7167_v21 = vcombine.low %v4790_v22, %v7158_v59  ;;  %v1900_v22 = vrot.slane %v7080_v18, 1  ;;  %v1903_v18 = vrot.slane %v7108_v43, 1 }
  0x98   : > { %1214 = vmatprep.mubr.bf16.mxu0 %v740_v58  ;;  %2226 = vmatprep.mubr.bf16.mxu1 %v7147_v44  ;;  %v7227_v58 = vsel %vm805_vm0, %v1893_v26, %v1894_v38  ;;  %v1902_v43 = vrot.slane %v4873_v0, 1  ;;  %v4828_v38 = vld [vmem:[%s6622_s10 + $0x84] sm:$0xe]  ;;  %v6405_v0 = vld [vmem:[%s8129_s1 + $0x1a8] sm:$0xff]  }
  0x99   : > { %v1743_v42 = vrot.slane %v1741_v2, 1  ;;  %v1748_v48 = vshll.u32 %v7167_v21, 16  ;;  %v1746_v62 = vshrl.u32 %v7167_v21, 16  ;;  %v7240_v2 = vld [vmem:[%s6622_s10 + $0xa0] sm:$0xf]  ;;  %v4876_v31 = vcombine.low %v4828_v38, %v7158_v59 }
  0x9a   : > { %v7251_v50 = vcombine.low %v4794_v32, %v7240_v2  ;;  %v7275_v56 = vsel %vm805_vm0, %v1902_v43, %v1903_v18  ;;  %v6400_v26 = vld [vmem:[%s8129_s1 + $0x1e0] sm:$0xff]   ;;  %v6403_v32 = vld [vmem:[%s6622_s10 + $0xb0] ss:$0 sps:$4 sm:$0x11]   ;;  %v4798_v18 = vld [vmem:[%s6622_s10 + $0xb4] sm:$0xf] }
  0x9b   : > { %v7203_v5 = vsel %vm548_vm1, %v1739_v1, %v1743_v42  ;;  %v1758_v42 = vshrl.u32 %v7207_v9, 16  ;;  %v4826_v1 = vld [vmem:[%s6622_s10 + $0x6c] sm:$0xe]  ;;  %v4801_v38 = vld [vmem:[%s6622_s10 + $0xc4] sm:$0xf] }
  0x9f   : > { %1215 = vmatmul.mubr.bf16.gmra.mrb[60].mxu0 %v7088_v45  ;;  %2227 = vmatmul.mubr.bf16.gmra.mrb[60].mxu1 %v7098_v40  ;;  %v4821_v45 = vld [vmem:[%s6622_s10 + $0x30] sm:$0xe] }
  0xa0   : > { %2234 = vmatprep.mubr.bf16.mxu1 %v7172_v28  ;;  %6014 = vmatprep.mubr.bf16.mxu0 %v6938_v29  ;;  %v4869_v40 = vcombine.low %v4821_v45, %v6960_v54  ;;  %v7198_v29 = vsel %vm805_vm0, %v1887_v57, %v1888_v61  ;;  %v1750_v54 = vrot.slane %v1748_v48, 1  ;;  %v7254_v61 = vsel %vm805_vm0, %v1899_v53, %v1900_v22  ;;  %v4830_v22 = vld [vmem:[%s6622_s10 + $0x9c] sm:$0xe] }
  0xa1   : > { %v4874_v45 = vcombine.low %v4826_v1, %v7113_v55  ;;  %v1906_v57 = vrot.slane %v7127_v51, 1  ;;  %v4878_v4 = vcombine.low %v4830_v22, %v7240_v2  ;;  %v4998_v22 = vld [vmem:[%s6622_s10 + $0x28] sm:$0xf] }
  0xa2   : > { %v1890_v33 = vrot.slane %v4869_v40, 1  ;;  %v1751_v25 = vor.u32 %v1750_v54, %v1746_v62  ;;  %v6395_v40 = vld [vmem:[%s8129_s1 + $0x1d8] sm:$0xff]   ;;  %v4796_v54 = vld [vmem:[%s6622_s10 + $0xa8] sm:$0xf] }
  0xa3   : > { %v4827_v62 = vld [vmem:[%s6622_s10 + $0x78] sm:$0xe]  ;;  %v1905_v55 = vrot.slane %v4874_v45, 1  ;;  %v1917_v1 = vrot.slane %v4878_v4, 1  ;;  %v1921_v45 = vrot.slane %v6403_v32, 1 }
  0xa4   : > { %v7214_v3 = vsel %vm805_vm0, %v1890_v33, %v1891_v39  ;;  %v7269_v39 = vld [vmem:[%s6622_s10 + $0xa4] ss:$0 sps:$4 sm:$0x11]   ;;  %v4875_v51 = vcombine.low %v4827_v62, %v7134_v7  ;;  %v1789_v62 = vshll.u32 %v6403_v32, 16 }
  0xa5   : > { %v7289_v7 = vsel %vm805_vm0, %v1905_v55, %v1906_v57  ;;  %v6409_v57 = vld [vmem:[%s8129_s1 + $0x1f0] sm:$0xff]  }
  0xa7   : > { %2235 = vmatmul.mubr.bf16.gmra.mrb[64].mxu1 %v7124_v24  ;;  %6015 = vmatmul.mubr.bf16.vlgmr.msra.gmra.mrb[64].mxu0 %v6972_v60  ;;  %v1755_v60 = vrot.slane %v1753_v6, 1  ;;  %v7232_v24 = vld [vmem:[%s6622_s10 + $0x98] ss:$0 sps:$4 sm:$0x11]   ;;  %v4797_v6 = vld [vmem:[%s6622_s10 + $0xac] sm:$0xf] }
  0xa8   : > { %5767 = vmatpush3.bf16.msra.mxu0 %v6383_v37  ;;  %2242 = vmatprep.mubr.bf16.mxu1 %v7203_v5  ;;  %v1765_v48 = vshll.u32 %v7232_v24, 16  ;;  %v1909_v37 = vrot.slane %v7150_v13, 1  ;;  %v1908_v13 = vrot.slane %v4875_v51, 1  ;;  %v1915_v59 = vrot.slane %v7232_v24, 1 }
  0xa9   : > { %6018 = vmatprep.mubr.bf16.mxu0 %v7007_v17  ;;  %5768 = vmatprep.subr.bf16.mxu0 %v6386_v10  ;;  %v1762_v17 = vrot.slane %v1760_v19, 1  ;;  %v7258_v52 = vsel %vm548_vm1, %v1751_v25, %v1755_v60  ;;  %v1777_v10 = vshll.u32 %v7269_v39, 16  ;;  %v7304_v12 = vcombine.low %v4796_v54, %v4797_v6  ;;  %v6401_v19 = vld [vmem:[%s8129_s1 + $0x1a0] sm:$0xff]  }
  0xaa   : > { %v1767_v35 = vrot.slane %v1765_v48, 1  ;;  %v7299_v30 = vsel %vm805_vm0, %v1908_v13, %v1909_v37  ;;  %v4833_v54 = vld [vmem:[%s6622_s10 + $0xc0] sm:$0xe] }
  0xab   : > { %v1763_v33 = vor.u32 %v1762_v17, %v1758_v42  ;;  %v1779_v25 = vrot.slane %v1777_v10, 1  ;;  %v1782_v53 = vshrl.u32 %v7304_v12, 16  ;;  %v1918_v42 = vrot.slane %v7269_v39, 1  ;;  %v4799_v17 = vld [vmem:[%s6622_s10 + $0xb8] sm:$0xf] }
  0xac   : > { %5769 = vmatpush3.bf16.msra.mxu0 %v6387_v11  ;;  %v1911_v11 = vrot.slane %v4876_v31, 1  ;;  %v4832_v39 = vld [vmem:[%s6622_s10 + $0xb4] sm:$0xe]  ;;  %v4881_v31 = vcombine.low %v4833_v54, %v4801_v38  ;;  %v6413_v10 = vld [vmem:[%s8129_s1 + $0x1f8] sm:$0xff]   ;;  %v6487_v54 = vld [vmem:[%s6622_s10 + $0x10] sm:$0xf] }
  0xad   : > { %5770 = vmatprep.subr.bf16.mxu0 %v6391_v15  ;;  %v4877_v15 = vcombine.low %v4829_v8, %v7187_v16  ;;  %v7307_v60 = vsel %vm548_vm1, %v1763_v33, %v1767_v35  ;;  %v6404_v16 = vld [vmem:[%s8129_s1 + $0x1e8] sm:$0xff]   ;;  %v4880_v51 = vcombine.low %v4832_v39, %v4799_v17  ;;  %v4995_v39 = vld [vmem:[%s6622_s10 + $0x18] sm:$0xf] }
  0xaf   : > { %2243 = vmatmul.mubr.bf16.gmra.mrb[68].mxu1 %v7141_v36  ;;  %6019 = vmatmul.mubr.bf16.gmra.mrb[68].mxu0 %v7037_v46  ;;  %v6396_v36 = vld [vmem:[%s8129_s1 + $0x198] sm:$0xff]   ;;  %v1772_v46 = vshll.u32 %v7251_v50, 16  ;;  %v1914_v20 = vrot.slane %v4877_v15, 1  ;;  %v1923_v13 = vrot.slane %v4880_v51, 1 }
  0xb0   : > { %2250 = vmatprep.mubr.bf16.mxu1 %v7258_v52  ;;  %6022 = vmatprep.mubr.bf16.mxu0 %v7067_v49  ;;  %v1912_v49 = vrot.slane %v7175_v41, 1  ;;  %v1770_v41 = vshrl.u32 %v7251_v50, 16 }
  0xb1   : > { %5771 = vmatpush3.bf16.msra.mxu0 %v6392_v23  ;;  %v1774_v14 = vrot.slane %v1772_v46, 1  ;;  %v7331_v48 = vsel %vm805_vm0, %v1914_v20, %v1915_v59  ;;  %v7338_v23 = vld [vmem:[%s6622_s10 + $0xbc] ss:$0 sps:$4 sm:$0x11]   ;;  %v6410_v46 = vld [vmem:[%s8129_s1 + $0x1b0] sm:$0xff]  }
  0xb2   : > { %5772 = vmatprep.subr.bf16.mxu0 %v6395_v40  ;;  %v7316_v24 = vsel %vm805_vm0, %v1911_v11, %v1912_v49  ;;  %v7344_v40 = vld [vmem:[%s6622_s10 + $0xc8] ss:$0 sps:$4 sm:$0x11]   ;;  %v1924_v37 = vrot.slane %v7338_v23, 1  ;;  %v1926_v11 = vrot.slane %v4881_v31, 1 }
  0xb3   : > { %v1775_v2 = vor.u32 %v1774_v14, %v1770_v41  ;;  %v1927_v49 = vrot.slane %v7344_v40, 1  ;;  %v7373_v59 = vld [vmem:[%s6622_s10 + $0x20] ss:$0 sps:$4 sm:$0x11]  }
  0xb4   : > { %v7369_v8 = vsel %vm805_vm0, %v1923_v13, %v1924_v37  ;;  %v7376_v41 = vld [vmem:[%s6622_s10 + $0x2c] ss:$0 sps:$4 sm:$0x11]   ;;  %v4800_v20 = vld [vmem:[%s6622_s10 + $0xc0] sm:$0xf]  ;;  %v3523_v32 = vrot.slane %v7373_v59, 1 }
  0xb5   : > { %5773 = vmatpush3.bf16.msra.mxu0 %v6396_v36  ;;  %v1780_v33 = vsel %vm548_vm1, %v1775_v2, %v1779_v25  ;;  %v7352_v36 = vcombine.low %v4798_v18, %v4799_v17  ;;  %v7383_v14 = vsel %vm805_vm0, %v1926_v11, %v1927_v49  ;;  %v3526_v4 = vrot.slane %v7376_v41, 1 }
  0xb6   : > { %5774 = vmatprep.subr.bf16.mxu0 %v6400_v26  ;;  %v1791_v26 = vrot.slane %v1789_v62, 1  ;;  %v1801_v18 = vshll.u32 %v7338_v23, 16  ;;  %v4849_v2 = vcombine.low %v4800_v20, %v4801_v38  ;;  %v4997_v38 = vld [vmem:[%s6622_s10 + $0x24] sm:$0xf] }
  0xb7   : > { %2251 = vmatmul.mubr.bf16.gmra.mrb[72].mxu1 %v7167_v21  ;;  %6023 = vmatmul.mubr.bf16.gmra.mrb[72].mxu0 %v7094_v34  ;;  %v1784_v21 = vshll.u32 %v7304_v12, 16  ;;  %v4831_v34 = vld [vmem:[%s6622_s10 + $0xa8] sm:$0xe] }
  0xb8   : > { %2258 = vmatprep.mubr.bf16.mxu1 %v7307_v60  ;;  %6026 = vmatprep.mubr.bf16.mxu0 %v7120_v47  ;;  %v4879_v43 = vcombine.low %v4831_v34, %v4797_v6  ;;  %v7347_v47 = vsel %vm805_vm0, %v1917_v1, %v1918_v42  ;;  %v1806_v62 = vshrl.u32 %v4849_v2, 16 }
  0xb9   : > { %5775 = vmatpush3.bf16.msra.mxu0 %v6401_v19  ;;  %v1786_v35 = vrot.slane %v1784_v21, 1  ;;  %v5043_v19 = vld [vmem:[%s6622_s10 + $0x18] sm:$0xe] }
  0xba   : > { %5776 = vmatprep.subr.bf16.mxu0 %v6404_v16  ;;  %v1920_v55 = vrot.slane %v4879_v43, 1  ;;  %v5044_v16 = vld [vmem:[%s6622_s10 + $0x24] sm:$0xe] }
  0xbb   : > { %v1787_v15 = vor.u32 %v1786_v35, %v1782_v53  ;;  %v5092_v53 = vcombine.low %v5044_v16, %v4998_v22  ;;  %v4818_v35 = vld [vmem:[%s6622_s10 + $0xc] sm:$0xe]  ;;  %v7422_v16 = vld [vmem:[%s6622_s10 + $0x34] sm:$0xf] }
  0xbc   : > { %v7360_v6 = vsel %vm805_vm0, %v1920_v55, %v1921_v45  ;;  %v1803_v45 = vrot.slane %v1801_v18, 1  ;;  %v1813_v55 = vshll.u32 %v7344_v40, 16  ;;  %v4866_v13 = vcombine.low %v4818_v35, %v6487_v54  ;;  %v7434_v18 = vld [vmem:[%s6622_s10 + $0x38] ss:$0 sps:$4 sm:$0x11]  }
  0xbd   : > { %5777 = vmatpush3.bf16.msra.mxu0 %v6405_v0  ;;  %v1792_v42 = vsel %vm548_vm1, %v1787_v15, %v1791_v26  ;;  %v1794_v0 = vshrl.u32 %v7352_v36, 16  ;;  %v3525_v1 = vrot.slane %v5092_v53, 1  ;;  %v3286_v53 = vshll.u32 %v7376_v41, 16  ;;  %v6424_v41 = vld [vmem:[%s8129_s1 + $0x208] sm:$0xff]  }
  0xbe   : > { %5778 = vmatprep.subr.bf16.mxu0 %v6409_v57  ;;  %v1808_v57 = vshll.u32 %v4849_v2, 16  ;;  %v1815_v37 = vrot.slane %v1813_v55, 1  ;;  %v1881_v26 = vrot.slane %v4866_v13, 1  ;;  %v7457_v35 = vld [vmem:[%s6622_s10 + $0x44] ss:$0 sps:$4 sm:$0x11]  }
  0xbf   : > { %2259 = vmatmul.mubr.bf16.gmra.mrb[76].mxu1 %v7207_v9  ;;  %6027 = vmatmul.mubr.bf16.gmra.mrb[76].mxu0 %v7147_v44  ;;  %v1796_v9 = vshll.u32 %v7352_v36, 16  ;;  %v6414_v44 = vld [vmem:[%s8129_s1 + $0x1b8] sm:$0xff]   ;;  %v7401_v43 = vsel %vm805_vm0, %v3525_v1, %v3526_v4  ;;  %v3288_v1 = vrot.slane %v3286_v53, 1  ;;  %v7462_v54 = vld [vmem:[%s6622_s10 + $0x4c] sm:$0xf]  ;;  %v3310_v13 = vshll.u32 %v7457_v35, 16 }
  0xc0   : > { %2266 = vmatprep.mubr.bf16.mxu1 %v1780_v33  ;;  %6030 = vmatprep.mubr.bf16.mxu0 %v7172_v28  ;;  %v4996_v28 = vld [vmem:[%s6622_s10 + $0x1c] sm:$0xf]  ;;  %v7505_v53 = vld [vmem:[%s6622_s10 + $0x64] sm:$0xf] }
  0xc1   : > { %5779 = vmatpush3.bf16.msra.mxu0 %v6410_v46  ;;  %v5091_v25 = vcombine.low %v5043_v19, %v4996_v28  ;;  %v1798_v17 = vrot.slane %v1796_v9, 1  ;;  %v5059_v51 = vcombine.low %v4995_v39, %v4996_v28  ;;  %v4819_v9 = vld [vmem:[%s6622_s10 + $0x18] sm:$0xe]  ;;  %v4999_v19 = vld [vmem:[%s6622_s10 + $0x30] sm:$0xf] }
  0xc2   : > { %5780 = vmatprep.subr.bf16.mxu0 %v6413_v10 }
  0xc3   : > { %v3522_v21 = vrot.slane %v5091_v25, 1  ;;  %v1799_v23 = vor.u32 %v1798_v17, %v1794_v0  ;;  %v3269_v46 = vshll.u32 %v5059_v51, 16  ;;  %v3267_v40 = vshrl.u32 %v5059_v51, 16 }
  0xc5   : > { %5781 = vmatpush3.bf16.msra.mxu0 %v6414_v44  ;;  %v7398_v34 = vsel %vm805_vm0, %v3522_v21, %v3523_v32  ;;  %v3271_v49 = vrot.slane %v3269_v46, 1 }
  0xc7   : > { %2267 = vmatmul.mubr.bf16.gmra.mrb[80].mxu1 %v7251_v50  ;;  %6031 = vmatmul.mubr.bf16.gmra.mrb[80].mxu0 %v7203_v5  ;;  %v1804_v50 = vsel %vm548_vm1, %v1799_v23, %v1803_v45  ;;  %v1810_v5 = vrot.slane %v1808_v57, 1  ;;  %v3272_v11 = vor.u32 %v3271_v49, %v3267_v40  ;;  %v5001_v23 = vld [vmem:[%s6622_s10 + $0x3c] sm:$0xf]  ;;  %v7439_v45 = vld [vmem:[%s6622_s10 + $0x40] sm:$0xf] }
  0xc8   : > { %2274 = vmatprep.mubr.bf16.mxu1 %v1792_v42  ;;  %6034 = vmatprep.mubr.bf16.mxu0 %v7258_v52  ;;  %v6434_v40 = vld [vmem:[%s8129_s1 + $0x218] sm:$0xff]  }
  0xc9   : > { %v1811_v52 = vor.u32 %v1810_v5, %v1806_v62  ;;  %v3298_v62 = vshll.u32 %v7434_v18, 16 }
  0xcb   : > { %v1816_v31 = vsel %vm548_vm1, %v1811_v52, %v1815_v37  ;;  %v3300_v52 = vrot.slane %v3298_v62, 1  ;;  %v6429_v37 = vld [vmem:[%s8129_s1 + $0x210] sm:$0xff]   ;;  %v7527_v62 = vld [vmem:[%s6622_s10 + $0x68] ss:$0 sps:$4 sm:$0x11]  }
  0xcf   : > { %2275 = vmatmul.mubr.bf16.gmra.mrb[84].mxu1 %v7304_v12  ;;  %6035 = vmatmul.mubr.bf16.gmra.mrb[84].mxu0 %v7307_v60  ;;  %v3274_v12 = vshll.u32 %v7373_v59, 16  ;;  %v7414_v60 = vcombine.low %v4997_v38, %v4998_v22  ;;  %v6489_v59 = vld [vmem:[%s6622_s10 + $0x1c] sm:$0xf]  ;;  %v7428_v22 = vcombine.low %v4999_v19, %v7422_v16  ;;  %v5003_v38 = vld [vmem:[%s6622_s10 + $0x48] sm:$0xf] }
  0xd0   : > { %2282 = vmatprep.mubr.bf16.mxu1 %v1804_v50  ;;  %6038 = vmatprep.mubr.bf16.mxu0 %v1780_v33  ;;  %v6488_v33 = vld [vmem:[%s6622_s10 + $0x14] ss:$0 sps:$4 sm:$0x11]   ;;  %v4867_v20 = vcombine.low %v4819_v9, %v6489_v59  ;;  %v6444_v19 = vld [vmem:[%s8129_s1 + $0x228] sm:$0xff]  }
  0xd1   : > { %v1882_v10 = vrot.slane %v6488_v33, 1  ;;  %v3276_v15 = vrot.slane %v3274_v12, 1  ;;  %v3281_v44 = vshll.u32 %v7414_v60, 16  ;;  %v3279_v25 = vshrl.u32 %v7414_v60, 16 }
  0xd2   : > { %v1884_v4 = vrot.slane %v4867_v20, 1  ;;  %v3293_v17 = vshll.u32 %v7428_v22, 16  ;;  %v3312_v12 = vrot.slane %v3310_v13, 1  ;;  %v7477_v33 = vld [vmem:[%s6622_s10 + $0x50] ss:$0 sps:$4 sm:$0x11]  }
  0xd3   : > { %v3277_v28 = vsel %vm548_vm1, %v3272_v11, %v3276_v15  ;;  %v3283_v32 = vrot.slane %v3281_v44, 1  ;;  %v5005_v11 = vld [vmem:[%s6622_s10 + $0x54] sm:$0xf]  ;;  %v7485_v15 = vld [vmem:[%s6622_s10 + $0x58] sm:$0xf]  ;;  %v3322_v9 = vshll.u32 %v7477_v33, 16 }
  0xd4   : > { %v3295_v39 = vrot.slane %v3293_v17, 1  ;;  %v7491_v44 = vcombine.low %v5005_v11, %v7485_v15 }
  0xd5   : > { %v3284_v21 = vor.u32 %v3283_v32, %v3279_v25  ;;  %v3324_v20 = vrot.slane %v3322_v9, 1  ;;  %v5007_v32 = vld [vmem:[%s6622_s10 + $0x60] sm:$0xf] }
  0xd7   : > { %2283 = vmatmul.mubr.bf16.gmra.mrb[88].mxu1 %v7352_v36  ;;  %6039 = vmatmul.mubr.bf16.gmra.mrb[88].mxu0 %v1792_v42  ;;  %v1883_v36 = vsel %vm805_vm0, %v1881_v26, %v1882_v10  ;;  %v6490_v42 = vld [vmem:[%s6622_s10 + $0x20] ss:$0 sps:$4 sm:$0x11]   ;;  %v3289_v5 = vsel %vm548_vm1, %v3284_v21, %v3288_v1 }
  0xd8   : > { %2290 = vmatprep.mubr.bf16.mxu1 %v1816_v31  ;;  %6042 = vmatprep.mubr.bf16.mxu0 %v1804_v50  ;;  %v1885_v0 = vrot.slane %v6490_v42, 1  ;;  %v7448_v50 = vcombine.low %v5001_v23, %v7439_v45  ;;  %v6439_v26 = vld [vmem:[%s8129_s1 + $0x220] sm:$0xff]   ;;  %v3327_v42 = vshrl.u32 %v7491_v44, 16  ;;  %v7516_v23 = vcombine.low %v5007_v32, %v7505_v53 }
  0xda   : > { %v1886_v57 = vsel %vm805_vm0, %v1884_v4, %v1885_v0  ;;  %v3305_v46 = vshll.u32 %v7448_v50, 16 }
  0xdf   : > { %2291 = vmatmul.mubr.bf16.gmra.mrb[92].mxu1 %v4849_v2  ;;  %6043 = vmatmul.mubr.bf16.gmra.mrb[92].mxu0 %v1816_v31  ;;  %v3291_v2 = vshrl.u32 %v7428_v22, 16  ;;  %v7468_v31 = vcombine.low %v5003_v38, %v7462_v54 }
  0xe0   : > { %5966 = vmatprep.mubr.bf16.mxu1 %v1883_v36  ;;  %3811 = vmatprep.mubr.bf16.mxu0 %v3277_v28  ;;  %v7500_v36 = vld [vmem:[%s6622_s10 + $0x5c] ss:$0 sps:$4 sm:$0x11]   ;;  %v3329_v28 = vshll.u32 %v7491_v44, 16 }
  0xe1   : > { %v3296_v55 = vor.u32 %v3295_v39, %v3291_v2  ;;  %v3317_v10 = vshll.u32 %v7468_v31, 16  ;;  %v3334_v1 = vshll.u32 %v7500_v36, 16 }
  0xe2   : > { %v3331_v21 = vrot.slane %v3329_v28, 1 }
  0xe3   : > { %v3336_v39 = vrot.slane %v3334_v1, 1 }
  0xe4   : > { %v3332_v2 = vor.u32 %v3331_v21, %v3327_v42 }
  0xe7   : > { %5967 = vmatmul.mubr.bf16.vlgmr.msra.gmra.mrb[0].mxu1 %v1886_v57  ;;  %3812 = vmatmul.mubr.bf16.vlgmr.msra.gmra.mrb[96].mxu0 %v5059_v51  ;;  %v3307_v51 = vrot.slane %v3305_v46, 1 }
  0xe8   : > { %6047 = vmatpush3.bf16.msra.mxu1 %v7163_v27  ;;  %5970 = vmatprep.mubr.bf16.mxu1 %v7198_v29  ;;  %v3303_v27 = vshrl.u32 %v7448_v50, 16  ;;  %v3301_v29 = vsel %vm548_vm1, %v3296_v55, %v3300_v52  ;;  %v5009_v52 = vld [vmem:[%s6622_s10 + $0x6c] sm:$0xf] }
  0xe9   : > { %3819 = vmatprep.mubr.bf16.mxu0 %v3289_v5  ;;  %6048 = vmatprep.subr.bf16.mxu1 %v6424_v41  ;;  %v3341_v5 = vshll.u32 %v7516_v23, 16 }
  0xea   : > { %v3308_v49 = vor.u32 %v3307_v51, %v3303_v27  ;;  %v3337_v27 = vsel %vm548_vm1, %v3332_v2, %v3336_v39  ;;  %v3346_v51 = vshll.u32 %v7527_v62, 16 }
  0xec   : > { %6049 = vmatpush3.bf16.msra.mxu1 %v6424_v41  ;;  %v6454_v41 = vld [vmem:[%s8129_s1 + $0x238] sm:$0xff]  }
  0xed   : > { %6050 = vmatprep.subr.bf16.mxu1 %v6429_v37 }
  0xef   : > { %5971 = vmatmul.mubr.bf16.gmra.mrb[4].mxu1 %v7214_v3  ;;  %3820 = vmatmul.mubr.bf16.gmra.mrb[100].mxu0 %v7414_v60  ;;  %v3315_v3 = vshrl.u32 %v7468_v31, 16  ;;  %v3319_v60 = vrot.slane %v3317_v10, 1  ;;  %v7548_v10 = vld [vmem:[%s6622_s10 + $0x74] ss:$0 sps:$4 sm:$0x11]  }
  0xf0   : > { %5974 = vmatprep.mubr.bf16.mxu1 %v7227_v58  ;;  %3827 = vmatprep.mubr.bf16.mxu0 %v3301_v29  ;;  %v3313_v58 = vsel %vm548_vm1, %v3308_v49, %v3312_v12  ;;  %v3343_v29 = vrot.slane %v3341_v5, 1  ;;  %v3348_v12 = vrot.slane %v3346_v51, 1  ;;  %v7596_v51 = vld [vmem:[%s6622_s10 + $0x94] sm:$0xf] }
  0xf1   : > { %6051 = vmatpush3.bf16.msra.mxu1 %v6429_v37  ;;  %v3320_v59 = vor.u32 %v3319_v60, %v3315_v3  ;;  %v7532_v37 = vld [vmem:[%s6622_s10 + $0x70] sm:$0xf]  ;;  %v5011_v3 = vld [vmem:[%s6622_s10 + $0x78] sm:$0xf] }
  0xf2   : > { %6052 = vmatprep.subr.bf16.mxu1 %v6434_v40  ;;  %v7540_v13 = vcombine.low %v5009_v52, %v7532_v37  ;;  %v7590_v52 = vld [vmem:[%s6622_s10 + $0x8c] ss:$0 sps:$4 sm:$0x11]  }
  0xf3   : > { %v3325_v17 = vsel %vm548_vm1, %v3320_v59, %v3324_v20  ;;  %v3358_v20 = vshll.u32 %v7548_v10, 16 }
  0xf5   : > { %6053 = vmatpush3.bf16.msra.mxu1 %v6434_v40 }
  0xf6   : > { %6054 = vmatprep.subr.bf16.mxu1 %v6439_v26 }
  0xf7   : > { %5975 = vmatmul.mubr.bf16.gmra.mrb[8].mxu1 %v7243_v63  ;;  %3828 = vmatmul.mubr.bf16.gmra.mrb[104].mxu0 %v7428_v22  ;;  %v6449_v63 = vld [vmem:[%s8129_s1 + $0x230] sm:$0xff]  }
  0xf8   : > { %5978 = vmatprep.mubr.bf16.mxu1 %v7254_v61  ;;  %3835 = vmatprep.mubr.bf16.mxu0 %v3313_v58  ;;  %v7553_v58 = vld [vmem:[%s6622_s10 + $0x7c] sm:$0xf] }
  0xf9   : > { %6055 = vmatpush3.bf16.msra.mxu1 %v6439_v26  ;;  %v3353_v26 = vshll.u32 %v7540_v13, 16  ;;  %v7561_v28 = vcombine.low %v5011_v3, %v7553_v58 }
  0xfa   : > { %v5486_v25 = vpop.f32.mrb[0].mxu0  ;;  %6056 = vmatprep.subr.bf16.mxu1 %v6444_v19 }
  0xfb   : > { %v5487_v22 = vpop.f32.mrb[1].mxu0  ;;  %v3355_v59 = vrot.slane %v3353_v26, 1 }
  0xfc   : > { %v7510_v4 = vadd.f32 %v5487_v22, %v5486_v25  ;;  %v5489_v61 = vpop.f32.mrb[2].mxu0  ;;  %v7569_v22 = vld [vmem:[%s6622_s10 + $0x80] ss:$0 sps:$4 sm:$0x11]  }
  0xfd   : > { %v5490_v0 = vpop.f32.mrb[3].mxu0  ;;  %6057 = vmatpush3.bf16.msra.mxu1 %v6444_v19  ;;  %v3370_v39 = vshll.u32 %v7569_v22, 16 }
  0xfe   : > { %v7518_v57 = vadd.f32 %v5490_v0, %v5489_v61  ;;  %6058 = vmatprep.subr.bf16.mxu1 %v6449_v63  ;;  %v3365_v61 = vshll.u32 %v7561_v28, 16  ;;  %v5013_v0 = vld [vmem:[%s6622_s10 + $0x84] sm:$0xf] }
  0xff   : > { %5979 = vmatmul.mubr.bf16.gmra.mrb[12].mxu1 %v7275_v56  ;;  %3836 = vmatmul.mubr.bf16.gmra.mrb[108].mxu0 %v7448_v50 }
 0x100   : > { %5982 = vmatprep.mubr.bf16.mxu1 %v7289_v7  ;;  %3843 = vmatprep.mubr.bf16.mxu0 %v3325_v17  ;;  %v3339_v7 = vshrl.u32 %v7516_v23, 16  ;;  %v7574_v17 = vld [vmem:[%s6622_s10 + $0x88] sm:$0xf]  ;;  %v3367_v2 = vrot.slane %v3365_v61, 1 }
 0x101   : > { %6059 = vmatpush3.bf16.msra.mxu1 %v6449_v63  ;;  %v3360_v63 = vrot.slane %v3358_v20, 1  ;;  %v7582_v5 = vcombine.low %v5013_v0, %v7574_v17  ;;  %v5047_v61 = vld [vmem:[%s6622_s10 + $0x48] sm:$0xe]  ;;  %v5017_v0 = vld [vmem:[%s6622_s10 + $0x9c] sm:$0xf] }
 0x102   : > { %v5492_v55 = vpop.f32.mrb[4].mxu0  ;;  %6060 = vmatprep.subr.bf16.mxu1 %v6454_v41  ;;  %v3344_v49 = vor.u32 %v3343_v29, %v3339_v7  ;;  %v5015_v29 = vld [vmem:[%s6622_s10 + $0x90] sm:$0xf] }
 0x103   : > { %v5493_v46 = vpop.f32.mrb[5].mxu0  ;;  %v3377_v7 = vshll.u32 %v7582_v5, 16 }
 0x104   : > { %v7534_v38 = vadd.f32 %v5493_v46, %v5492_v55  ;;  %v5495_v56 = vpop.f32.mrb[6].mxu0  ;;  %v3349_v19 = vsel %vm548_vm1, %v3344_v49, %v3348_v12 }
 0x105   : > { %v5496_v50 = vpop.f32.mrb[7].mxu0  ;;  %6061 = vmatpush3.bf16.msra.mxu1 %v6454_v41  ;;  %v3379_v3 = vrot.slane %v3377_v7, 1  ;;  %v3532_v7 = vrot.slane %v7457_v35, 1 }
 0x106   : > { %v7542_v40 = vadd.f32 %v5496_v50, %v5495_v56  ;;  %v3372_v56 = vrot.slane %v3370_v39, 1  ;;  %v5045_v50 = vld [vmem:[%s6622_s10 + $0x30] sm:$0xe] }
 0x107   : > { %5983 = vmatmul.mubr.bf16.gmra.mrb[16].mxu1 %v7299_v30  ;;  %3844 = vmatmul.mubr.bf16.gmra.mrb[112].mxu0 %v7468_v31  ;;  %v3351_v31 = vshrl.u32 %v7540_v13, 16 }
 0x108   : > { %5986 = vmatprep.mubr.bf16.mxu1 %v7316_v24  ;;  %3851 = vmatprep.mubr.bf16.mxu0 %v3337_v27 }
 0x109   : > { %v3356_v32 = vor.u32 %v3355_v59, %v3351_v31  ;;  %v7615_v59 = vld [vmem:[%s6622_s10 + $0x98] ss:$0 sps:$4 sm:$0x11]  }
 0x10a   : > { %v5498_v11 = vpop.f32.mrb[8].mxu0 }
 0x10b   : > { %v5499_v60 = vpop.f32.mrb[9].mxu0  ;;  %v3361_v41 = vsel %vm548_vm1, %v3356_v32, %v3360_v63 }
 0x10c   : > { %v7555_v9 = vadd.f32 %v5499_v60, %v5498_v11  ;;  %v5501_v30 = vpop.f32.mrb[10].mxu0  ;;  %v5093_v60 = vcombine.low %v5045_v50, %v7422_v16  ;;  %v5048_v50 = vld [vmem:[%s6622_s10 + $0x54] sm:$0xe] }
 0x10d   : > { %v5502_v24 = vpop.f32.mrb[11].mxu0 }
 0x10e   : > { %v7563_v25 = vadd.f32 %v5502_v24, %v5501_v30  ;;  %v7605_v30 = vcombine.low %v5015_v29, %v7596_v51  ;;  %v3529_v24 = vrot.slane %v7434_v18, 1  ;;  %v3528_v32 = vrot.slane %v5093_v60, 1 }
 0x10f   : > { %5987 = vmatmul.mubr.bf16.gmra.mrb[20].mxu1 %v7331_v48  ;;  %3852 = vmatmul.mubr.bf16.gmra.mrb[116].mxu0 %v7491_v44  ;;  %v3363_v44 = vshrl.u32 %v7561_v28, 16  ;;  %v3535_v29 = vrot.slane %v7477_v33, 1  ;;  %v5096_v60 = vcombine.low %v5048_v50, %v7485_v15 }
 0x110   : > { %5990 = vmatprep.mubr.bf16.mxu1 %v7347_v47  ;;  %3859 = vmatprep.mubr.bf16.mxu0 %v3349_v19  ;;  %v5046_v19 = vld [vmem:[%s6622_s10 + $0x3c] sm:$0xe]  ;;  %v3389_v63 = vshll.u32 %v7605_v30, 16  ;;  %v3530_v39 = vsel %vm805_vm0, %v3528_v32, %v3529_v24 }
 0x111   : > { %v3368_v46 = vor.u32 %v3367_v2, %v3363_v44  ;;  %v3394_v44 = vshll.u32 %v7615_v59, 16 }
 0x112   : > { %v5504_v42 = vpop.f32.mrb[12].mxu0 }
 0x113   : > { %v5505_v21 = vpop.f32.mrb[13].mxu0  ;;  %v3373_v11 = vsel %vm548_vm1, %v3368_v46, %v3372_v56  ;;  %v3391_v46 = vrot.slane %v3389_v63, 1 }
 0x114   : > { %v7576_v1 = vadd.f32 %v5505_v21, %v5504_v42  ;;  %v5507_v48 = vpop.f32.mrb[14].mxu0  ;;  %v7621_v21 = vld [vmem:[%s6622_s10 + $0xa0] sm:$0xf] }
 0x115   : > { %v5508_v47 = vpop.f32.mrb[15].mxu0 }
 0x116   : > { %v7584_v55 = vadd.f32 %v5508_v47, %v5507_v48  ;;  %v3387_v48 = vshrl.u32 %v7605_v30, 16  ;;  %v5095_v47 = vcombine.low %v5047_v61, %v7462_v54 }
 0x117   : > { %5991 = vmatmul.mubr.bf16.gmra.mrb[24].mxu1 %v7360_v6  ;;  %3860 = vmatmul.mubr.bf16.gmra.mrb[120].mxu0 %v7516_v23  ;;  %v3382_v23 = vshll.u32 %v7590_v52, 16 }
 0x118   : > { %5994 = vmatprep.mubr.bf16.mxu1 %v7369_v8  ;;  %3867 = vmatprep.mubr.bf16.mxu0 %v3361_v41  ;;  %v3375_v8 = vshrl.u32 %v7582_v5, 16 }
 0x119   : > { %v3384_v20 = vrot.slane %v3382_v23, 1 }
 0x11a   : > { %v5510_v27 = vpop.f32.mrb[16].mxu0  ;;  %v3380_v16 = vor.u32 %v3379_v3, %v3375_v8  ;;  %v3396_v8 = vrot.slane %v3394_v44, 1  ;;  %v7648_v3 = vld [vmem:[%s6622_s10 + $0xac] sm:$0xf] }
 0x11b   : > { %v5511_v49 = vpop.f32.mrb[17].mxu0  ;;  %v7669_v44 = vld [vmem:[%s6622_s10 + $0xb0] ss:$0 sps:$4 sm:$0x11]  }
 0x11c   : > { %v7598_v12 = vadd.f32 %v5511_v49, %v5510_v27  ;;  %v5513_v6 = vpop.f32.mrb[18].mxu0  ;;  %v3385_v2 = vsel %vm548_vm1, %v3380_v16, %v3384_v20  ;;  %v3534_v27 = vrot.slane %v5095_v47, 1  ;;  %v7642_v49 = vld [vmem:[%s6622_s10 + $0xa4] ss:$0 sps:$4 sm:$0x11]  }
 0x11d   : > { %v5514_v26 = vpop.f32.mrb[19].mxu0  ;;  %v3406_v16 = vshll.u32 %v7642_v49, 16 }
 0x11e   : > { %v7607_v31 = vadd.f32 %v5514_v26, %v5513_v6  ;;  %v3392_v6 = vor.u32 %v3391_v46, %v3387_v48  ;;  %v5049_v26 = vld [vmem:[%s6622_s10 + $0x60] sm:$0xe]  ;;  %v3536_v33 = vsel %vm805_vm0, %v3534_v27, %v3535_v29  ;;  %v5050_v48 = vld [vmem:[%s6622_s10 + $0x6c] sm:$0xe] }
 0x11f   : > { %5995 = vmatmul.mubr.bf16.gmra.mrb[28].mxu1 %v7383_v14  ;;  %3868 = vmatmul.mubr.bf16.gmra.mrb[124].mxu0 %v7540_v13  ;;  %v5094_v13 = vcombine.low %v5046_v19, %v7439_v45  ;;  %v7632_v45 = vcombine.low %v5017_v0, %v7621_v21  ;;  %v5097_v20 = vcombine.low %v5049_v26, %v7505_v53  ;;  %v3538_v53 = vrot.slane %v7500_v36, 1 }
 0x120   : > { %3875 = vmatprep.mubr.bf16.mxu0 %v3373_v11  ;;  %6062 = vmatprep.mubr.bf16.mxu1 %v7398_v34  ;;  %v5019_v11 = vld [vmem:[%s6622_s10 + $0xa8] sm:$0xf]  ;;  %v3397_v63 = vsel %vm548_vm1, %v3392_v6, %v3396_v8  ;;  %v3418_v6 = vshll.u32 %v7669_v44, 16 }
 0x121   : > { %v3531_v54 = vrot.slane %v5094_v13, 1  ;;  %v3401_v23 = vshll.u32 %v7632_v45, 16  ;;  %v3399_v61 = vshrl.u32 %v7632_v45, 16  ;;  %v7660_v15 = vcombine.low %v5019_v11, %v7648_v3 }
 0x122   : > { %v5516_v42 = vpop.f32.mrb[20].mxu0  ;;  %v3541_v13 = vrot.slane %v7527_v62, 1  ;;  %v5098_v62 = vcombine.low %v5050_v48, %v7532_v37 }
 0x123   : > { %v5517_v14 = vpop.f32.mrb[21].mxu0  ;;  %v3533_v35 = vsel %vm805_vm0, %v3531_v54, %v3532_v7  ;;  %v7675_v54 = vld [vmem:[%s6622_s10 + $0xb8] sm:$0xf] }
 0x124   : > { %v7624_v34 = vadd.f32 %v5517_v14, %v5516_v42  ;;  %v5519_v18 = vpop.f32.mrb[22].mxu0  ;;  %v3403_v42 = vrot.slane %v3401_v23, 1  ;;  %v3537_v14 = vrot.slane %v5096_v60, 1  ;;  %v3547_v60 = vrot.slane %v7569_v22, 1 }
 0x125   : > { %v5520_v41 = vpop.f32.mrb[23].mxu0 }
 0x126   : > { %v7634_v56 = vadd.f32 %v5520_v41, %v5519_v18  ;;  %v3540_v18 = vrot.slane %v5097_v20, 1  ;;  %v3404_v47 = vor.u32 %v3403_v42, %v3399_v61  ;;  %v3408_v41 = vrot.slane %v3406_v16, 1  ;;  %v7696_v16 = vld [vmem:[%s6622_s10 + $0xbc] ss:$0 sps:$4 sm:$0x11]  }
 0x127   : > { %3876 = vmatmul.mubr.bf16.gmra.mrb[128].mxu0 %v7561_v28  ;;  %6063 = vmatmul.mubr.bf16.vlgmr.msra.gmra.mrb[0].mxu1 %v7401_v43  ;;  %v3539_v36 = vsel %vm805_vm0, %v3537_v14, %v3538_v53  ;;  %v5053_v20 = vld [vmem:[%s6622_s10 + $0x90] sm:$0xe]  ;;  %v5023_v14 = vld [vmem:[%s6622_s10 + $0xc0] sm:$0xf]  ;;  %v7702_v53 = vld [vmem:[%s6622_s10 + $0xc4] sm:$0xf] }
 0x128   : > { %3883 = vmatprep.mubr.bf16.mxu0 %v3385_v2  ;;  %6066 = vmatprep.mubr.bf16.mxu1 %v3530_v39  ;;  %v3413_v2 = vshll.u32 %v7660_v15, 16  ;;  %v5051_v39 = vld [vmem:[%s6622_s10 + $0x78] sm:$0xe]  ;;  %v3542_v29 = vsel %vm805_vm0, %v3540_v18, %v3541_v13  ;;  %v3409_v26 = vsel %vm548_vm1, %v3404_v47, %v3408_v41  ;;  %v5101_v48 = vcombine.low %v5053_v20, %v7596_v51 }
 0x129   : > { %v5099_v8 = vcombine.low %v5051_v39, %v7553_v58  ;;  %v3544_v58 = vrot.slane %v7548_v10, 1  ;;  %v7714_v51 = vcombine.low %v5023_v14, %v7702_v53 }
 0x12a   : > { %v5522_v28 = vpop.f32.mrb[24].mxu0  ;;  %v3415_v11 = vrot.slane %v3413_v2, 1 }
 0x12b   : > { %v5523_v43 = vpop.f32.mrb[25].mxu0 }
 0x12c   : > { %v7652_v24 = vadd.f32 %v5523_v43, %v5522_v28  ;;  %v5525_v19 = vpop.f32.mrb[26].mxu0  ;;  %v3411_v28 = vshrl.u32 %v7660_v15, 16 }
 0x12d   : > { %v5526_v32 = vpop.f32.mrb[27].mxu0 }
 0x12e   : > { %v7662_v0 = vadd.f32 %v5526_v32, %v5525_v19  ;;  %v5052_v19 = vld [vmem:[%s6622_s10 + $0x84] sm:$0xe]  ;;  %v3416_v32 = vor.u32 %v3415_v11, %v3411_v28  ;;  %v3552_v28 = vrot.slane %v5101_v48, 1  ;;  %v3553_v11 = vrot.slane %v7615_v59, 1 }
 0x12f   : > { %3884 = vmatmul.mubr.bf16.gmra.mrb[132].mxu0 %v7582_v5  ;;  %6067 = vmatmul.mubr.bf16.gmra.mrb[4].mxu1 %v3533_v35  ;;  %v5021_v5 = vld [vmem:[%s6622_s10 + $0xb4] sm:$0xf]  ;;  %v3543_v35 = vrot.slane %v5098_v62, 1  ;;  %v5100_v18 = vcombine.low %v5052_v19, %v7574_v17 }
 0x130   : > { %3891 = vmatprep.mubr.bf16.mxu0 %v3397_v63  ;;  %6070 = vmatprep.mubr.bf16.mxu1 %v3536_v33  ;;  %v7687_v37 = vcombine.low %v5021_v5, %v7675_v54  ;;  %v3546_v33 = vrot.slane %v5099_v8, 1  ;;  %v3420_v63 = vrot.slane %v3418_v6, 1  ;;  %v3430_v5 = vshll.u32 %v7696_v16, 16 }
 0x131   : > { %v3545_v22 = vsel %vm805_vm0, %v3543_v35, %v3544_v58  ;;  %v7729_v58 = vld [vmem:[%s6622_s10 + $0xc8] ss:$0 sps:$4 sm:$0x11]  }
 0x132   : > { %v5528_v46 = vpop.f32.mrb[28].mxu0  ;;  %v3425_v61 = vshll.u32 %v7687_v37, 16  ;;  %v3421_v62 = vsel %vm548_vm1, %v3416_v32, %v3420_v63  ;;  %v3432_v19 = vrot.slane %v3430_v5, 1  ;;  %v5025_v63 = vld [vmem:[%s6622_s10 + $0xcc] sm:$0xf] }
 0x133   : > { %v5529_v7 = vpop.f32.mrb[29].mxu0 }
 0x134   : > { %v7679_v50 = vadd.f32 %v5529_v7, %v5528_v46  ;;  %v5531_v27 = vpop.f32.mrb[30].mxu0  ;;  %v3548_v46 = vsel %vm805_vm0, %v3546_v33, %v3547_v60  ;;  %v3427_v17 = vrot.slane %v3425_v61, 1  ;;  %v5055_v33 = vld [vmem:[%s6622_s10 + $0xa8] sm:$0xe] }
 0x135   : > { %v5532_v23 = vpop.f32.mrb[31].mxu0  ;;  %v5103_v48 = vcombine.low %v5055_v33, %v7648_v3 }
 0x136   : > { %v7689_v43 = vadd.f32 %v5532_v23, %v5531_v27  ;;  %v3423_v27 = vshrl.u32 %v7687_v37, 16  ;;  %v3549_v23 = vrot.slane %v5100_v18, 1  ;;  %v3442_v18 = vshll.u32 %v7729_v58, 16 }
 0x137   : > { %3892 = vmatmul.mubr.bf16.gmra.mrb[136].mxu0 %v7605_v30  ;;  %6071 = vmatmul.mubr.bf16.gmra.mrb[8].mxu1 %v3539_v36 }
 0x138   : > { %3899 = vmatprep.mubr.bf16.mxu0 %v3409_v26  ;;  %6074 = vmatprep.mubr.bf16.mxu1 %v3542_v29  ;;  %v3550_v26 = vrot.slane %v7590_v52, 1  ;;  %v3428_v60 = vor.u32 %v3427_v17, %v3423_v27  ;;  %v7735_v52 = vld [vmem:[%s6622_s10 + $0xd0] sm:$0xf]  ;;  %v3556_v27 = vrot.slane %v7642_v49, 1  ;;  %v5056_v17 = vld [vmem:[%s6622_s10 + $0xb4] sm:$0xe] }
 0x13a   : > { %v5534_v30 = vpop.f32.mrb[32].mxu0  ;;  %v5622_v42 = vpop.f32.mrb[32].mxu1 }
 0x13b   : > { %v5535_v13 = vpop.f32.mrb[33].mxu0  ;;  %v5623_v10 = vpop.f32.mrb[33].mxu1 }
 0x13c   : > { %v7707_v47 = vadd.f32 %v5535_v13, %v5534_v30  ;;  %v5624_v41 = vadd.f32 %v5623_v10, %v5622_v42  ;;  %v5537_v2 = vpop.f32.mrb[34].mxu0  ;;  %v5625_v39 = vpop.f32.mrb[34].mxu1  ;;  %v3554_v30 = vsel %vm805_vm0, %v3552_v28, %v3553_v11  ;;  %v3444_v11 = vrot.slane %v3442_v18, 1 }
 0x13d   : > { %v5538_v7 = vpop.f32.mrb[35].mxu0  ;;  %v5626_v36 = vpop.f32.mrb[35].mxu1 }
 0x13e   : > { %v7717_v29 = vadd.f32 %v5624_v41, %v7510_v4  ;;  %v7719_v6 = vadd.f32 %v5538_v7, %v5537_v2  ;;  %v5627_v8 = vadd.f32 %v5626_v36, %v5625_v39  ;;  %v5054_v4 = vld [vmem:[%s6622_s10 + $0x9c] sm:$0xe]  ;;  %v3433_v39 = vsel %vm548_vm1, %v3428_v60, %v3432_v19  ;;  %v5057_v19 = vld [vmem:[%s6622_s10 + $0xc0] sm:$0xe] }
 0x13f   : > { %3900 = vmatmul.mubr.bf16.gmra.mrb[140].mxu0 %v7632_v45  ;;  %6075 = vmatmul.mubr.bf16.gmra.mrb[12].mxu1 %v3545_v22  ;;  %v3437_v45 = vshll.u32 %v7714_v51, 16  ;;  %v5102_v42 = vcombine.low %v5054_v4, %v7621_v21  ;;  %v7747_v21 = vcombine.low %v5025_v63, %v7735_v52 }
 0x140   : > { %v7725_v35 = vadd.f32 %v5627_v8, %v7518_v57  ;;  %3907 = vmatprep.mubr.bf16.mxu0 %v3421_v62  ;;  %6078 = vmatprep.mubr.bf16.mxu1 %v3548_v46  ;;  %v3551_v57 = vsel %vm805_vm0, %v3549_v23, %v3550_v26  ;;  %v3435_v46 = vshrl.u32 %v7714_v51, 16  ;;  %v3558_v23 = vrot.slane %v5103_v48, 1  ;;  %v7762_v26 = vld [vmem:[%s6622_s10 + $0xd4] ss:$0 sps:$4 sm:$0x11]  }
 0x141   : > { %v3439_v5 = vrot.slane %v3437_v45, 1  ;;  %v3555_v3 = vrot.slane %v5102_v42, 1 }
 0x142   : > { %v5540_v20 = vpop.f32.mrb[36].mxu0  ;;  %v5628_v32 = vpop.f32.mrb[36].mxu1 }
 0x143   : > { %v5541_v61 = vpop.f32.mrb[37].mxu0  ;;  %v5629_v59 = vpop.f32.mrb[37].mxu1  ;;  %v3440_v28 = vor.u32 %v3439_v5, %v3435_v46  ;;  %v3557_v33 = vsel %vm805_vm0, %v3555_v3, %v3556_v27 }
 0x144   : > { %v7740_v14 = vadd.f32 %v5541_v61, %v5540_v20  ;;  %v5630_v13 = vadd.f32 %v5629_v59, %v5628_v32  ;;  %v5543_v10 = vpop.f32.mrb[38].mxu0  ;;  %v5631_v22 = vpop.f32.mrb[38].mxu1  ;;  %v3454_v59 = vshll.u32 %v7762_v26, 16 }
 0x145   : > { %v5544_v41 = vpop.f32.mrb[39].mxu0  ;;  %v5632_v2 = vpop.f32.mrb[39].mxu1  ;;  %v3445_v42 = vsel %vm548_vm1, %v3440_v28, %v3444_v11 }
 0x146   : > { %v7750_v7 = vadd.f32 %v5630_v13, %v7534_v38  ;;  %v7752_v36 = vadd.f32 %v5544_v41, %v5543_v10  ;;  %v5633_v62 = vadd.f32 %v5632_v2, %v5631_v22  ;;  %v3559_v38 = vrot.slane %v7669_v44, 1 }
 0x147   : > { %3908 = vmatmul.mubr.bf16.gmra.mrb[144].mxu0 %v7660_v15  ;;  %6079 = vmatmul.mubr.bf16.gmra.mrb[16].mxu1 %v3551_v57  ;;  %v3449_v15 = vshll.u32 %v7747_v21, 16  ;;  %v3447_v13 = vshrl.u32 %v7747_v21, 16  ;;  %v5105_v22 = vcombine.low %v5057_v19, %v7702_v53  ;;  %v3456_v5 = vrot.slane %v3454_v59, 1 }
 0x148   : > { %v7758_v8 = vadd.f32 %v5633_v62, %v7542_v40  ;;  %3915 = vmatprep.mubr.bf16.mxu0 %v3433_v39  ;;  %6082 = vmatprep.mubr.bf16.mxu1 %v3554_v30  ;;  %v5104_v40 = vcombine.low %v5056_v17, %v7675_v54  ;;  %v3560_v61 = vsel %vm805_vm0, %v3558_v23, %v3559_v38  ;;  %v3562_v39 = vrot.slane %v7696_v16, 1  ;;  %v5058_v62 = vld [vmem:[%s6622_s10 + $0xcc] sm:$0xe] }
 0x149   : > { %v3451_v10 = vrot.slane %v3449_v15, 1  ;;  %v3564_v53 = vrot.slane %v5105_v22, 1  ;;  %v5106_v15 = vcombine.low %v5058_v62, %v7735_v52 }
 0x14a   : > { %v5546_v4 = vpop.f32.mrb[40].mxu0  ;;  %v5634_v60 = vpop.f32.mrb[40].mxu1  ;;  %v3561_v2 = vrot.slane %v5104_v40, 1  ;;  %v3568_v40 = vrot.slane %v7762_v26, 1 }
 0x14b   : > { %v5547_v45 = vpop.f32.mrb[41].mxu0  ;;  %v5635_v49 = vpop.f32.mrb[41].mxu1  ;;  %v3452_v46 = vor.u32 %v3451_v10, %v3447_v13  ;;  %v3567_v52 = vrot.slane %v5106_v15, 1 }
 0x14c   : > { %v7768_v20 = vadd.f32 %v5547_v45, %v5546_v4  ;;  %v5636_v32 = vadd.f32 %v5635_v49, %v5634_v60  ;;  %v5549_v63 = vpop.f32.mrb[42].mxu0  ;;  %v5637_v44 = vpop.f32.mrb[42].mxu1  ;;  %v3563_v11 = vsel %vm805_vm0, %v3561_v2, %v3562_v39 }
 0x14d   : > { %v5550_v57 = vpop.f32.mrb[43].mxu0  ;;  %v5638_v30 = vpop.f32.mrb[43].mxu1  ;;  %v3457_v60 = vsel %vm548_vm1, %v3452_v46, %v3456_v5 }
 0x14e   : > { %v7776_v54 = vadd.f32 %v5636_v32, %v7555_v9  ;;  %v7778_v18 = vadd.f32 %v5550_v57, %v5549_v63  ;;  %v5639_v48 = vadd.f32 %v5638_v30, %v5637_v44  ;;  %v3565_v9 = vrot.slane %v7729_v58, 1 }
 0x14f   : > { %3916 = vmatmul.mubr.bf16.gmra.mrb[148].mxu0 %v7687_v37  ;;  %6083 = vmatmul.mubr.bf16.gmra.mrb[20].mxu1 %v3557_v33 }
 0x150   : > { %v7782_v41 = vadd.f32 %v5639_v48, %v7563_v25  ;;  %3923 = vmatprep.mubr.bf16.mxu0 %v3445_v42  ;;  %6086 = vmatprep.mubr.bf16.mxu1 %v3560_v61  ;;  %v3566_v58 = vsel %vm805_vm0, %v3564_v53, %v3565_v9 }
 0x152   : > { %v5552_v3 = vpop.f32.mrb[44].mxu0  ;;  %v5640_v27 = vpop.f32.mrb[44].mxu1 }
 0x153   : > { %v5553_v17 = vpop.f32.mrb[45].mxu0  ;;  %v5641_v23 = vpop.f32.mrb[45].mxu1 }
 0x154   : > { %v7787_v37 = vadd.f32 %v5553_v17, %v5552_v3  ;;  %v5642_v38 = vadd.f32 %v5641_v23, %v5640_v27  ;;  %v5555_v25 = vpop.f32.mrb[46].mxu0  ;;  %v5643_v28 = vpop.f32.mrb[46].mxu1 }
 0x155   : > { %v5556_v16 = vpop.f32.mrb[47].mxu0  ;;  %v5644_v4 = vpop.f32.mrb[47].mxu1 }
 0x156   : > { %v7794_v19 = vadd.f32 %v5642_v38, %v7576_v1  ;;  %v7796_v45 = vadd.f32 %v5556_v16, %v5555_v25  ;;  %v5645_v49 = vadd.f32 %v5644_v4, %v5643_v28 }
 0x157   : > { %3924 = vmatmul.mubr.bf16.gmra.mrb[152].mxu0 %v7714_v51  ;;  %6087 = vmatmul.mubr.bf16.gmra.mrb[24].mxu1 %v3563_v11  ;;  %v3569_v51 = vsel %vm805_vm0, %v3567_v52, %v3568_v40 }
 0x158   : > { %v7800_v33 = vadd.f32 %v5645_v49, %v7584_v55  ;;  %3931 = vmatprep.mubr.bf16.mxu0 %v3457_v60  ;;  %6090 = vmatprep.mubr.bf16.mxu1 %v3566_v58 }
 0x15a   : > { %v5558_v32 = vpop.f32.mrb[48].mxu0  ;;  %v5646_v63 = vpop.f32.mrb[48].mxu1 }
 0x15b   : > { %v5559_v44 = vpop.f32.mrb[49].mxu0  ;;  %v5647_v61 = vpop.f32.mrb[49].mxu1 }
 0x15c   : > { %v7803_v1 = vadd.f32 %v5559_v44, %v5558_v32  ;;  %v5648_v59 = vadd.f32 %v5647_v61, %v5646_v63  ;;  %v5561_v57 = vpop.f32.mrb[50].mxu0  ;;  %v5649_v30 = vpop.f32.mrb[50].mxu1 }
 0x15d   : > { %v5562_v42 = vpop.f32.mrb[51].mxu0  ;;  %v5650_v13 = vpop.f32.mrb[51].mxu1 }
 0x15e   : > { %v7807_v55 = vadd.f32 %v5648_v59, %v7598_v12  ;;  %v7809_v10 = vadd.f32 %v5562_v42, %v5561_v57  ;;  %v5651_v22 = vadd.f32 %v5650_v13, %v5649_v30 }
 0x15f   : > { %3932 = vmatmul.mubr.bf16.gmra.mrb[156].mxu0 %v7747_v21  ;;  %6091 = vmatmul.mubr.bf16.gmra.mrb[28].mxu1 %v3569_v51 }
 0x160   : > { %v7813_v26 = vadd.f32 %v5651_v22, %v7607_v31 }
 0x162   : > { %v5564_v48 = vpop.f32.mrb[52].mxu0  ;;  %v5652_v2 = vpop.f32.mrb[52].mxu1 }
 0x163   : > { %v5565_v39 = vpop.f32.mrb[53].mxu0  ;;  %v5653_v46 = vpop.f32.mrb[53].mxu1 }
 0x164   : > { %v7815_v5 = vadd.f32 %v5565_v39, %v5564_v48  ;;  %v5654_v53 = vadd.f32 %v5653_v46, %v5652_v2  ;;  %v5567_v9 = vpop.f32.mrb[54].mxu0  ;;  %v5655_v62 = vpop.f32.mrb[54].mxu1  ;;  %v7848_v48 = vld [vmem:[%s8132_s4] ss:$0 sm:$0xff] }
 0x165   : > { %v5568_v12 = vpop.f32.mrb[55].mxu0  ;;  %v5656_v3 = vpop.f32.mrb[55].mxu1 }
 0x166   : > { %v7818_v27 = vadd.f32 %v5654_v53, %v7624_v34  ;;  %v7820_v17 = vadd.f32 %v5568_v12, %v5567_v9  ;;  %v5657_v21 = vadd.f32 %v5656_v3, %v5655_v62 }
 0x168   : > { %v7823_v31 = vadd.f32 %v5657_v21, %v7634_v56 }
 0x16a   : > { %v5570_v23 = vpop.f32.mrb[56].mxu0  ;;  %v5658_v38 = vpop.f32.mrb[56].mxu1 }
 0x16b   : > { %v5571_v25 = vpop.f32.mrb[57].mxu0  ;;  %v5659_v28 = vpop.f32.mrb[57].mxu1 }
 0x16c   : > { %v7825_v11 = vadd.f32 %v5571_v25, %v5570_v23  ;;  %v5660_v15 = vadd.f32 %v5659_v28, %v5658_v38  ;;  %v5573_v16 = vpop.f32.mrb[58].mxu0  ;;  %v5661_v4 = vpop.f32.mrb[58].mxu1 }
 0x16d   : > { %v5574_v60 = vpop.f32.mrb[59].mxu0  ;;  %v5662_v58 = vpop.f32.mrb[59].mxu1 }
 0x16e   : > { %v7828_v34 = vadd.f32 %v5660_v15, %v7652_v24  ;;  %v7830_v49 = vadd.f32 %v5574_v60, %v5573_v16  ;;  %v5663_v52 = vadd.f32 %v5662_v58, %v5661_v4 }
 0x170   : > { %v7833_v56 = vadd.f32 %v5663_v52, %v7662_v0 }
 0x172   : > { %v5576_v40 = vpop.f32.mrb[60].mxu0  ;;  %v5664_v32 = vpop.f32.mrb[60].mxu1 }
 0x173   : > { %v5577_v63 = vpop.f32.mrb[61].mxu0  ;;  %v5665_v44 = vpop.f32.mrb[61].mxu1 }
 0x174   : > { %v7835_v61 = vadd.f32 %v5577_v63, %v5576_v40  ;;  %v5666_v59 = vadd.f32 %v5665_v44, %v5664_v32  ;;  %v5579_v57 = vpop.f32.mrb[62].mxu0  ;;  %v5667_v30 = vpop.f32.mrb[62].mxu1 }
 0x175   : > { %v5580_v51 = vpop.f32.mrb[63].mxu0  ;;  %v5668_v42 = vpop.f32.mrb[63].mxu1 }
 0x176   : > { %v7838_v24 = vadd.f32 %v5666_v59, %v7679_v50  ;;  %v7840_v13 = vadd.f32 %v5580_v51, %v5579_v57  ;;  %v5669_v22 = vadd.f32 %v5668_v42, %v5667_v30 }
 0x178   : > { %v7843_v0 = vadd.f32 %v5669_v22, %v7689_v43 }
 0x17a   : > { %v5670_v2 = vpop.f32.mrb[64].mxu1  ;;  %v6016_v39 = vpop.f32.mrb[64].mxu0 }
 0x17b   : > { %v5671_v46 = vpop.f32.mrb[65].mxu1  ;;  %v2661_v53 = vpop.f32.mrb[65].mxu0  ;;  %v2670_v3 = vadd.f32 %v6016_v39, %v7848_v48 }
 0x17c   : > { %v5672_v9 = vadd.f32 %v5671_v46, %v5670_v2  ;;  %v2662_v50 = vadd.f32 %v7848_v48, %v2661_v53  ;;  %v5673_v62 = vpop.f32.mrb[66].mxu1  ;;  %v6017_v12 = vpop.f32.mrb[66].mxu0 }
 0x17d   : > { %v2673_v43 = vadd.f32 %v6017_v12, %v7848_v48  ;;  %v5674_v21 = vpop.f32.mrb[67].mxu1  ;;  %v2664_v23 = vpop.f32.mrb[67].mxu0  ;;  %v2987_v52 = vmul.f32 %v2670_v3, %v2670_v3 }
 0x17e   : > { %v7855_v38 = vadd.f32 %v5672_v9, %v7707_v47  ;;  %v5675_v25 = vadd.f32 %v5674_v21, %v5673_v62  ;;  %v2665_v28 = vadd.f32 %v7848_v48, %v2664_v23  ;;  %v2985_v15 = vmul.f32 %v2662_v50, %v2662_v50 }
 0x17f   : > { %v5288_v16 = vpack.c.bf16 %v2673_v43, %v2670_v3  ;;  %v2988_v59 = vmul.f32 %v2673_v43, %v2673_v43 }
 0x180   : > { %v7866_v4 = vadd.f32 %v5675_v25, %v7719_v6  ;;  %v5283_v60 = vpack.c.bf16 %v2665_v28, %v2662_v50  ;;  %v2948_v58 = vadd.f32 %v2665_v28, %v2662_v50  ;;  %v2986_v47 = vmul.f32 %v2665_v28, %v2665_v28 }
 0x181   : > { %5440 = vst [vmem:[%s7862_s21 + $0x8] sm:$0xff] %v5288_v16  }
 0x182   : > { %5284 = vst [vmem:[%s7862_s21] sm:$0xff] %v5283_v60   ;;  %v2949_v40 = vadd.f32 %v2948_v58, %v2670_v3  ;;  %v3017_v32 = vadd.f32 %v2986_v47, %v2985_v15  ;;  %v5676_v63 = vpop.f32.mrb[68].mxu1  ;;  %v6020_v44 = vpop.f32.mrb[68].mxu0 }
 0x183   : > { %v5677_v57 = vpop.f32.mrb[69].mxu1  ;;  %v2677_v30 = vpop.f32.mrb[69].mxu0  ;;  %v2686_v46 = vadd.f32 %v6020_v44, %v7848_v48 }
 0x184   : > { %v3018_v51 = vadd.f32 %v3017_v32, %v2987_v52  ;;  %v5678_v42 = vadd.f32 %v5677_v57, %v5676_v63  ;;  %v2678_v22 = vadd.f32 %v7848_v48, %v2677_v30  ;;  %v2950_v6 = vadd.f32 %v2949_v40, %v2673_v43  ;;  %v5679_v2 = vpop.f32.mrb[70].mxu1  ;;  %v6021_v39 = vpop.f32.mrb[70].mxu0 }
 0x185   : > { %v2689_v53 = vadd.f32 %v6021_v39, %v7848_v48  ;;  %v5680_v9 = vpop.f32.mrb[71].mxu1  ;;  %v2680_v50 = vpop.f32.mrb[71].mxu0 }
 0x186   : > { %v7874_v62 = vadd.f32 %v5678_v42, %v7740_v14  ;;  %v2951_v12 = vadd.f32 %v2950_v6, %v2678_v22  ;;  %v2989_v3 = vmul.f32 %v2678_v22, %v2678_v22  ;;  %v3019_v21 = vadd.f32 %v3018_v51, %v2988_v59 }
 0x187   : > { %v5298_v23 = vpack.c.bf16 %v2689_v53, %v2686_v46  ;;  %v5681_v25 = vadd.f32 %v5680_v9, %v5679_v2  ;;  %v2681_v28 = vadd.f32 %v7848_v48, %v2680_v50  ;;  %v2991_v14 = vmul.f32 %v2686_v46, %v2686_v46 }
 0x188   : > { %v3020_v43 = vadd.f32 %v3019_v21, %v2989_v3  ;;  %v2992_v59 = vmul.f32 %v2689_v53, %v2689_v53 }
 0x189   : > { %5442 = vst [vmem:[%s7862_s21 + $0x18] sm:$0xff] %v5298_v23   ;;  %v7879_v15 = vadd.f32 %v5681_v25, %v7752_v36  ;;  %v5293_v16 = vpack.c.bf16 %v2681_v28, %v2678_v22  ;;  %v2952_v60 = vadd.f32 %v2951_v12, %v2681_v28  ;;  %v2990_v58 = vmul.f32 %v2681_v28, %v2681_v28 }
 0x18a   : > { %v5682_v47 = vpop.f32.mrb[72].mxu1  ;;  %v6024_v52 = vpop.f32.mrb[72].mxu0 }
 0x18b   : > { %5441 = vst [vmem:[%s7862_s21 + $0x10] sm:$0xff] %v5293_v16   ;;  %v2953_v40 = vadd.f32 %v2952_v60, %v2686_v46  ;;  %v3021_v32 = vadd.f32 %v3020_v43, %v2990_v58  ;;  %v5683_v63 = vpop.f32.mrb[73].mxu1  ;;  %v2693_v44 = vpop.f32.mrb[73].mxu0  ;;  %v2702_v36 = vadd.f32 %v6024_v52, %v7848_v48 }
 0x18c   : > { %v5684_v57 = vadd.f32 %v5683_v63, %v5682_v47  ;;  %v2694_v30 = vadd.f32 %v7848_v48, %v2693_v44  ;;  %v5685_v51 = vpop.f32.mrb[74].mxu1  ;;  %v6025_v42 = vpop.f32.mrb[74].mxu0 }
 0x18d   : > { %v3022_v6 = vadd.f32 %v3021_v32, %v2991_v14  ;;  %v2954_v22 = vadd.f32 %v2953_v40, %v2689_v53  ;;  %v2705_v2 = vadd.f32 %v6025_v42, %v7848_v48  ;;  %v5686_v39 = vpop.f32.mrb[75].mxu1  ;;  %v2696_v9 = vpop.f32.mrb[75].mxu0 }
 0x18e   : > { %v7886_v46 = vadd.f32 %v5684_v57, %v7768_v20  ;;  %v2993_v50 = vmul.f32 %v2694_v30, %v2694_v30  ;;  %v5687_v12 = vadd.f32 %v5686_v39, %v5685_v51  ;;  %v2697_v3 = vadd.f32 %v7848_v48, %v2696_v9 }
 0x18f   : > { %v2955_v21 = vadd.f32 %v2954_v22, %v2694_v30  ;;  %v3023_v23 = vadd.f32 %v3022_v6, %v2992_v59  ;;  %v5308_v25 = vpack.c.bf16 %v2705_v2, %v2702_v36  ;;  %v2995_v20 = vmul.f32 %v2702_v36, %v2702_v36 }
 0x190   : > { %v7890_v28 = vadd.f32 %v5687_v12, %v7778_v18  ;;  %v5303_v43 = vpack.c.bf16 %v2697_v3, %v2694_v30  ;;  %v2994_v53 = vmul.f32 %v2697_v3, %v2697_v3  ;;  %v2996_v63 = vmul.f32 %v2705_v2, %v2705_v2 }
 0x191   : > { %v3024_v16 = vadd.f32 %v3023_v23, %v2993_v50  ;;  %5444 = vst [vmem:[%s7862_s21 + $0x28] sm:$0xff] %v5308_v25   ;;  %v2956_v60 = vadd.f32 %v2955_v21, %v2697_v3 }
 0x192   : > { %5443 = vst [vmem:[%s7862_s21 + $0x20] sm:$0xff] %v5303_v43   ;;  %v5688_v58 = vpop.f32.mrb[76].mxu1  ;;  %v6028_v47 = vpop.f32.mrb[76].mxu0 }
 0x193   : > { %v2957_v52 = vadd.f32 %v2956_v60, %v2702_v36  ;;  %v3025_v14 = vadd.f32 %v3024_v16, %v2994_v53  ;;  %v5689_v40 = vpop.f32.mrb[77].mxu1  ;;  %v2709_v32 = vpop.f32.mrb[77].mxu0  ;;  %v2718_v30 = vadd.f32 %v6028_v47, %v7848_v48 }
 0x194   : > { %v5690_v44 = vadd.f32 %v5689_v40, %v5688_v58  ;;  %v2710_v59 = vadd.f32 %v7848_v48, %v2709_v32  ;;  %v5691_v57 = vpop.f32.mrb[78].mxu1  ;;  %v6029_v18 = vpop.f32.mrb[78].mxu0 }
 0x195   : > { %v3026_v51 = vadd.f32 %v3025_v14, %v2995_v20  ;;  %v2958_v42 = vadd.f32 %v2957_v52, %v2705_v2  ;;  %v2721_v6 = vadd.f32 %v6029_v18, %v7848_v48  ;;  %v5692_v22 = vpop.f32.mrb[79].mxu1  ;;  %v2712_v39 = vpop.f32.mrb[79].mxu0 }
 0x196   : > { %v7898_v36 = vadd.f32 %v5690_v44, %v7787_v37  ;;  %v2997_v9 = vmul.f32 %v2710_v59, %v2710_v59  ;;  %v5693_v50 = vadd.f32 %v5692_v22, %v5691_v57  ;;  %v2713_v12 = vadd.f32 %v7848_v48, %v2712_v39 }
 0x197   : > { %v2959_v3 = vadd.f32 %v2958_v42, %v2710_v59  ;;  %v3027_v21 = vadd.f32 %v3026_v51, %v2996_v63  ;;  %v5318_v23 = vpack.c.bf16 %v2721_v6, %v2718_v30  ;;  %v2999_v37 = vmul.f32 %v2718_v30, %v2718_v30 }
 0x198   : > { %v7902_v25 = vadd.f32 %v5693_v50, %v7796_v45  ;;  %v5313_v43 = vpack.c.bf16 %v2713_v12, %v2710_v59  ;;  %v2998_v2 = vmul.f32 %v2713_v12, %v2713_v12  ;;  %v3000_v40 = vmul.f32 %v2721_v6, %v2721_v6 }
 0x199   : > { %v3028_v53 = vadd.f32 %v3027_v21, %v2997_v9  ;;  %5446 = vst [vmem:[%s7862_s21 + $0x38] sm:$0xff] %v5318_v23   ;;  %v2960_v16 = vadd.f32 %v2959_v3, %v2713_v12 }
 0x19a   : > { %5445 = vst [vmem:[%s7862_s21 + $0x30] sm:$0xff] %v5313_v43   ;;  %v5694_v60 = vpop.f32.mrb[80].mxu1  ;;  %v6032_v58 = vpop.f32.mrb[80].mxu0 }
 0x19b   : > { %v2961_v47 = vadd.f32 %v2960_v16, %v2718_v30  ;;  %v3029_v20 = vadd.f32 %v3028_v53, %v2998_v2  ;;  %v5695_v52 = vpop.f32.mrb[81].mxu1  ;;  %v2725_v14 = vpop.f32.mrb[81].mxu0  ;;  %v2734_v59 = vadd.f32 %v6032_v58, %v7848_v48 }
 0x19c   : > { %v5696_v32 = vadd.f32 %v5695_v52, %v5694_v60  ;;  %v2726_v63 = vadd.f32 %v7848_v48, %v2725_v14  ;;  %v5697_v44 = vpop.f32.mrb[82].mxu1  ;;  %v6033_v45 = vpop.f32.mrb[82].mxu0 }
 0x19d   : > { %v3030_v57 = vadd.f32 %v3029_v20, %v2999_v37  ;;  %v2962_v18 = vadd.f32 %v2961_v47, %v2721_v6  ;;  %v2737_v51 = vadd.f32 %v6033_v45, %v7848_v48  ;;  %v5698_v42 = vpop.f32.mrb[83].mxu1  ;;  %v2728_v22 = vpop.f32.mrb[83].mxu0 }
 0x19e   : > { %v7910_v30 = vadd.f32 %v5696_v32, %v7803_v1  ;;  %v3001_v39 = vmul.f32 %v2726_v63, %v2726_v63  ;;  %v5699_v9 = vadd.f32 %v5698_v42, %v5697_v44  ;;  %v2729_v50 = vadd.f32 %v7848_v48, %v2728_v22 }
 0x19f   : > { %v2963_v12 = vadd.f32 %v2962_v18, %v2726_v63  ;;  %v3031_v3 = vadd.f32 %v3030_v57, %v3000_v40  ;;  %v5328_v21 = vpack.c.bf16 %v2737_v51, %v2734_v59  ;;  %v3003_v1 = vmul.f32 %v2734_v59, %v2734_v59 }
 0x1a0   : > { %v7914_v23 = vadd.f32 %v5699_v9, %v7809_v10  ;;  %v5323_v43 = vpack.c.bf16 %v2729_v50, %v2726_v63  ;;  %v3002_v6 = vmul.f32 %v2729_v50, %v2729_v50  ;;  %v3004_v52 = vmul.f32 %v2737_v51, %v2737_v51 }
 0x1a1   : > { %v3032_v2 = vadd.f32 %v3031_v3, %v3001_v39  ;;  %5448 = vst [vmem:[%s7862_s21 + $0x48] sm:$0xff] %v5328_v21   ;;  %v2964_v53 = vadd.f32 %v2963_v12, %v2729_v50 }
 0x1a2   : > { %5447 = vst [vmem:[%s7862_s21 + $0x40] sm:$0xff] %v5323_v43   ;;  %v5700_v16 = vpop.f32.mrb[84].mxu1  ;;  %v6036_v60 = vpop.f32.mrb[84].mxu0 }
 0x1a3   : > { %v2965_v58 = vadd.f32 %v2964_v53, %v2734_v59  ;;  %v3033_v37 = vadd.f32 %v3032_v2, %v3002_v6  ;;  %v5701_v47 = vpop.f32.mrb[85].mxu1  ;;  %v2741_v20 = vpop.f32.mrb[85].mxu0  ;;  %v2750_v63 = vadd.f32 %v6036_v60, %v7848_v48 }
 0x1a4   : > { %v5702_v14 = vadd.f32 %v5701_v47, %v5700_v16  ;;  %v2742_v40 = vadd.f32 %v7848_v48, %v2741_v20  ;;  %v5703_v32 = vpop.f32.mrb[86].mxu1  ;;  %v6037_v10 = vpop.f32.mrb[86].mxu0 }
 0x1a5   : > { %v3034_v44 = vadd.f32 %v3033_v37, %v3003_v1  ;;  %v2966_v45 = vadd.f32 %v2965_v58, %v2737_v51  ;;  %v2753_v57 = vadd.f32 %v6037_v10, %v7848_v48  ;;  %v5704_v18 = vpop.f32.mrb[87].mxu1  ;;  %v2744_v42 = vpop.f32.mrb[87].mxu0 }
 0x1a6   : > { %v7922_v59 = vadd.f32 %v5702_v14, %v7815_v5  ;;  %v3005_v22 = vmul.f32 %v2742_v40, %v2742_v40  ;;  %v5705_v39 = vadd.f32 %v5704_v18, %v5703_v32  ;;  %v2745_v9 = vadd.f32 %v7848_v48, %v2744_v42 }
 0x1a7   : > { %v2967_v50 = vadd.f32 %v2966_v45, %v2742_v40  ;;  %v3035_v12 = vadd.f32 %v3034_v44, %v3004_v52  ;;  %v5338_v3 = vpack.c.bf16 %v2753_v57, %v2750_v63  ;;  %v3007_v5 = vmul.f32 %v2750_v63, %v2750_v63 }
 0x1a8   : > { %v7926_v21 = vadd.f32 %v5705_v39, %v7820_v17  ;;  %v5333_v43 = vpack.c.bf16 %v2745_v9, %v2742_v40  ;;  %v3006_v51 = vmul.f32 %v2745_v9, %v2745_v9  ;;  %v3008_v47 = vmul.f32 %v2753_v57, %v2753_v57 }
 0x1a9   : > { %v3036_v6 = vadd.f32 %v3035_v12, %v3005_v22  ;;  %5450 = vst [vmem:[%s7862_s21 + $0x58] sm:$0xff] %v5338_v3   ;;  %v2968_v2 = vadd.f32 %v2967_v50, %v2745_v9 }
 0x1aa   : > { %5449 = vst [vmem:[%s7862_s21 + $0x50] sm:$0xff] %v5333_v43   ;;  %v5706_v53 = vpop.f32.mrb[88].mxu1  ;;  %v6040_v16 = vpop.f32.mrb[88].mxu0 }
 0x1ab   : > { %v2969_v60 = vadd.f32 %v2968_v2, %v2750_v63  ;;  %v3037_v1 = vadd.f32 %v3036_v6, %v3006_v51  ;;  %v5707_v58 = vpop.f32.mrb[89].mxu1  ;;  %v2757_v37 = vpop.f32.mrb[89].mxu0  ;;  %v2766_v40 = vadd.f32 %v6040_v16, %v7848_v48 }
 0x1ac   : > { %v5708_v20 = vadd.f32 %v5707_v58, %v5706_v53  ;;  %v2758_v52 = vadd.f32 %v7848_v48, %v2757_v37  ;;  %v5709_v14 = vpop.f32.mrb[90].mxu1  ;;  %v6041_v17 = vpop.f32.mrb[90].mxu0 }
 0x1ad   : > { %v3038_v32 = vadd.f32 %v3037_v1, %v3007_v5  ;;  %v2970_v10 = vadd.f32 %v2969_v60, %v2753_v57  ;;  %v2769_v44 = vadd.f32 %v6041_v17, %v7848_v48  ;;  %v5710_v45 = vpop.f32.mrb[91].mxu1  ;;  %v2760_v18 = vpop.f32.mrb[91].mxu0 }
 0x1ae   : > { %v7934_v63 = vadd.f32 %v5708_v20, %v7825_v11  ;;  %v3009_v42 = vmul.f32 %v2758_v52, %v2758_v52  ;;  %v5711_v22 = vadd.f32 %v5710_v45, %v5709_v14  ;;  %v2761_v39 = vadd.f32 %v7848_v48, %v2760_v18 }
 0x1af   : > { %v2971_v9 = vadd.f32 %v2970_v10, %v2758_v52  ;;  %v3039_v50 = vadd.f32 %v3038_v32, %v3008_v47  ;;  %v5348_v12 = vpack.c.bf16 %v2769_v44, %v2766_v40  ;;  %v3011_v11 = vmul.f32 %v2766_v40, %v2766_v40 }
 0x1b0   : > { %v7938_v3 = vadd.f32 %v5711_v22, %v7830_v49  ;;  %v5343_v43 = vpack.c.bf16 %v2761_v39, %v2758_v52  ;;  %v3010_v57 = vmul.f32 %v2761_v39, %v2761_v39  ;;  %v3012_v58 = vmul.f32 %v2769_v44, %v2769_v44 }
 0x1b1   : > { %v3040_v51 = vadd.f32 %v3039_v50, %v3009_v42  ;;  %5452 = vst [vmem:[%s7862_s21 + $0x68] sm:$0xff] %v5348_v12   ;;  %v2972_v6 = vadd.f32 %v2971_v9, %v2761_v39 }
 0x1b2   : > { %5451 = vst [vmem:[%s7862_s21 + $0x60] sm:$0xff] %v5343_v43   ;;  %v5712_v2 = vpop.f32.mrb[92].mxu1  ;;  %v6044_v53 = vpop.f32.mrb[92].mxu0 }
 0x1b3   : > { %v2973_v16 = vadd.f32 %v2972_v6, %v2766_v40  ;;  %v3041_v5 = vadd.f32 %v3040_v51, %v3010_v57  ;;  %v5713_v60 = vpop.f32.mrb[93].mxu1  ;;  %v2773_v1 = vpop.f32.mrb[93].mxu0  ;;  %v2782_v52 = vadd.f32 %v6044_v53, %v7848_v48 }
 0x1b4   : > { %v5714_v37 = vadd.f32 %v5713_v60, %v5712_v2  ;;  %v2774_v47 = vadd.f32 %v7848_v48, %v2773_v1  ;;  %v5715_v20 = vpop.f32.mrb[94].mxu1  ;;  %v6045_v49 = vpop.f32.mrb[94].mxu0 }
 0x1b5   : > { %v3042_v14 = vadd.f32 %v3041_v5, %v3011_v11  ;;  %v2974_v17 = vadd.f32 %v2973_v16, %v2769_v44  ;;  %v2785_v32 = vadd.f32 %v6045_v49, %v7848_v48  ;;  %v5716_v10 = vpop.f32.mrb[95].mxu1  ;;  %v2776_v45 = vpop.f32.mrb[95].mxu0  ;;  %v3015_v2 = vmul.f32 %v2782_v52, %v2782_v52 }
 0x1b6   : > { %v7946_v40 = vadd.f32 %v5714_v37, %v7835_v61  ;;  %v3013_v18 = vmul.f32 %v2774_v47, %v2774_v47  ;;  %v5717_v42 = vadd.f32 %v5716_v10, %v5715_v20  ;;  %v2777_v22 = vadd.f32 %v7848_v48, %v2776_v45 }
 0x1b7   : > { %v2975_v39 = vadd.f32 %v2974_v17, %v2774_v47  ;;  %v3043_v9 = vadd.f32 %v3042_v14, %v3012_v58  ;;  %v5358_v50 = vpack.c.bf16 %v2785_v32, %v2782_v52  ;;  %v3016_v48 = vmul.f32 %v2785_v32, %v2785_v32 }
 0x1b8   : > { %v7950_v12 = vadd.f32 %v5717_v42, %v7840_v13  ;;  %v5353_v43 = vpack.c.bf16 %v2777_v22, %v2774_v47  ;;  %v3014_v44 = vmul.f32 %v2777_v22, %v2777_v22 }
 0x1b9   : > { %v3044_v57 = vadd.f32 %v3043_v9, %v3013_v18  ;;  %5454 = vst [vmem:[%s7862_s21 + $0x78] sm:$0xff] %v5358_v50   ;;  %v2976_v51 = vadd.f32 %v2975_v39, %v2777_v22 }
 0x1ba   : > { %5453 = vst [vmem:[%s7862_s21 + $0x70] sm:$0xff] %v5353_v43   ;;  %v5782_v6 = vpop.f32.mrb[96].mxu0 }
 0x1bb   : > { %v2977_v61 = vadd.f32 %v2976_v51, %v2782_v52  ;;  %v3045_v53 = vadd.f32 %v3044_v57, %v3014_v44  ;;  %v5783_v11 = vpop.f32.mrb[97].mxu0 }
 0x1bc   : > { %v5784_v16 = vadd.f32 %v5783_v11, %v5782_v6  ;;  %v5785_v5 = vpop.f32.mrb[98].mxu0 }
 0x1bd   : > { %v2978_v60 = vadd.f32 %v2977_v61, %v2785_v32  ;;  %v3046_v1 = vadd.f32 %v3045_v53, %v3015_v2  ;;  %v5786_v58 = vpop.f32.mrb[99].mxu0 }
 0x1be   : > { %v5787_v37 = vadd.f32 %v5786_v58, %v5785_v5  ;;  %v7955_v13 = vadd.f32 %v7717_v29, %v5784_v16 }
 0x1bf   : > { %v2979_v47 = vrot.slane %v2978_v60, 4  ;;  %v3047_v20 = vadd.f32 %v3046_v1, %v3016_v48 }
 0x1c0   : > { %v7958_v49 = vadd.f32 %v7725_v35, %v5787_v37 }
 0x1c1   : > { %v2980_v14 = vadd.f32 %v2979_v47, %v2978_v60  ;;  %v3048_v52 = vrot.slane %v3047_v20, 4 }
 0x1c2   : > { %v5788_v17 = vpop.f32.mrb[100].mxu0 }
 0x1c3   : > { %v2981_v10 = vrot.slane %v2980_v14, 2  ;;  %v3049_v45 = vadd.f32 %v3048_v52, %v3047_v20  ;;  %v5789_v18 = vpop.f32.mrb[101].mxu0 }
 0x1c4   : > { %v5790_v32 = vadd.f32 %v5789_v18, %v5788_v17  ;;  %v5791_v42 = vpop.f32.mrb[102].mxu0 }
 0x1c5   : > { %v2982_v22 = vadd.f32 %v2981_v10, %v2980_v14  ;;  %v3050_v39 = vrot.slane %v3049_v45, 2  ;;  %v5792_v9 = vpop.f32.mrb[103].mxu0 }
 0x1c6   : > { %v5793_v29 = vadd.f32 %v5792_v9, %v5791_v42  ;;  %v6095_v50 = vadd.f32 %v7750_v7, %v5790_v32 }
 0x1c7   : > { %v2983_v43 = vrot.slane %v2982_v22, 1  ;;  %v3051_v44 = vadd.f32 %v3050_v39, %v3049_v45 }
 0x1c8   : > { %v7963_v35 = vadd.f32 %v7758_v8, %v5793_v29 }
 0x1c9   : > { %v3052_v57 = vrot.slane %v3051_v44, 1  ;;  %v2984_v6 = vadd.f32 %v2983_v43, %v2982_v22 }
 0x1ca   : > { %v5794_v51 = vpop.f32.mrb[104].mxu0 }
 0x1cb   : > { %v3053_v2 = vadd.f32 %v3052_v57, %v3051_v44  ;;  %v5795_v61 = vpop.f32.mrb[105].mxu0 }
 0x1cc   : > { %v5796_v53 = vadd.f32 %v5795_v61, %v5794_v51  ;;  %v5797_v11 = vpop.f32.mrb[106].mxu0 }
 0x1cd   : > { %v3055_v7 = vsel %vm3054_vm2, %v2984_v6, %v3053_v2  ;;  %v5798_v16 = vpop.f32.mrb[107].mxu0 }
 0x1ce   : > { %3056 = vst [vmem:[%s338_s25] sm:$0x3] %v3055_v7  ;;  %v5799_v5 = vadd.f32 %v5798_v16, %v5797_v11  ;;  %v7972_v8 = vadd.f32 %v7776_v54, %v5796_v53 }
 0x1d0   : > { %v7975_v48 = vadd.f32 %v7782_v41, %v5799_v5 }
 0x1d2   : > { %v5800_v60 = vpop.f32.mrb[108].mxu0 }
 0x1d3   : > { %v5801_v1 = vpop.f32.mrb[109].mxu0 }
 0x1d4   : > { %v5802_v58 = vadd.f32 %v5801_v1, %v5800_v60  ;;  %v5803_v37 = vpop.f32.mrb[110].mxu0 }
 0x1d5   : > { %v5804_v47 = vpop.f32.mrb[111].mxu0 }
 0x1d6   : > { %v5805_v20 = vadd.f32 %v5804_v47, %v5803_v37  ;;  %v7978_v14 = vadd.f32 %v7794_v19, %v5802_v58 }
 0x1d8   : > { %v7981_v52 = vadd.f32 %v7800_v33, %v5805_v20 }
 0x1da   : > { %v5806_v17 = vpop.f32.mrb[112].mxu0 }
 0x1db   : > { %v5807_v10 = vpop.f32.mrb[113].mxu0 }
 0x1dc   : > { %v5808_v45 = vadd.f32 %v5807_v10, %v5806_v17  ;;  %v5809_v54 = vpop.f32.mrb[114].mxu0 }
 0x1dd   : > { %v5810_v18 = vpop.f32.mrb[115].mxu0 }
 0x1de   : > { %v5811_v32 = vadd.f32 %v5810_v18, %v5809_v54  ;;  %v7984_v41 = vadd.f32 %v7807_v55, %v5808_v45 }
 0x1e0   : > { %v7987_v42 = vadd.f32 %v7813_v26, %v5811_v32 }
 0x1e2   : > { %v5812_v22 = vpop.f32.mrb[116].mxu0 }
 0x1e3   : > { %v5813_v39 = vpop.f32.mrb[117].mxu0 }
 0x1e4   : > { %v5814_v9 = vadd.f32 %v5813_v39, %v5812_v22  ;;  %v5815_v19 = vpop.f32.mrb[118].mxu0 }
 0x1e5   : > { %v5816_v29 = vpop.f32.mrb[119].mxu0 }
 0x1e6   : > { %v5817_v43 = vadd.f32 %v5816_v29, %v5815_v19  ;;  %v7990_v33 = vadd.f32 %v7818_v27, %v5814_v9 }
 0x1e8   : > { %v7993_v44 = vadd.f32 %v7823_v31, %v5817_v43 }
 0x1ea   : > { %v5818_v57 = vpop.f32.mrb[120].mxu0 }
 0x1eb   : > { %v5819_v51 = vpop.f32.mrb[121].mxu0 }
 0x1ec   : > { %v5820_v6 = vadd.f32 %v5819_v51, %v5818_v57  ;;  %v5821_v55 = vpop.f32.mrb[122].mxu0 }
 0x1ed   : > { %v5822_v2 = vpop.f32.mrb[123].mxu0 }
 0x1ee   : > { %v5823_v61 = vadd.f32 %v5822_v2, %v5821_v55  ;;  %v7996_v26 = vadd.f32 %v7828_v34, %v5820_v6  ;;  %v8010_v34 = vld [vmem:[%s8130_s2] ss:$0 sm:$0xff] }
 0x1f0   : > { %v7999_v53 = vadd.f32 %v7833_v56, %v5823_v61 }
 0x1f2   : > { %v5824_v11 = vpop.f32.mrb[124].mxu0 }
 0x1f3   : > { %v5825_v7 = vpop.f32.mrb[125].mxu0 }
 0x1f4   : > { %v5826_v16 = vadd.f32 %v5825_v7, %v5824_v11  ;;  %v5827_v27 = vpop.f32.mrb[126].mxu0 }
 0x1f5   : > { %v5828_v5 = vpop.f32.mrb[127].mxu0 }
 0x1f6   : > { %v5829_v60 = vadd.f32 %v5828_v5, %v5827_v27  ;;  %v8002_v31 = vadd.f32 %v7838_v24, %v5826_v16 }
 0x1f8   : > { %v8005_v1 = vadd.f32 %v7843_v0, %v5829_v60 }
 0x1fa   : > { %v5830_v58 = vpop.f32.mrb[128].mxu0  ;;  %v6064_v37 = vpop.f32.mrb[0].mxu1 }
 0x1fb   : > { %v6096_v47 = vadd.f32 %v6095_v50, %v6064_v37  ;;  %v5831_v56 = vpop.f32.mrb[129].mxu0  ;;  %v3974_v20 = vpop.f32.mrb[1].mxu1 }
 0x1fc   : > { %v5832_v17 = vadd.f32 %v5831_v56, %v5830_v58  ;;  %v6099_v10 = vadd.f32 %v7955_v13, %v3974_v20  ;;  %v5833_v45 = vpop.f32.mrb[130].mxu0  ;;  %v6065_v24 = vpop.f32.mrb[2].mxu1 }
 0x1fd   : > { %v6102_v54 = vadd.f32 %v7963_v35, %v6065_v24  ;;  %v5834_v0 = vpop.f32.mrb[131].mxu0  ;;  %v3977_v18 = vpop.f32.mrb[3].mxu1  ;;  %v4238_v9 = vadd.f32 %v6096_v47, %v8010_v34 }
 0x1fe   : > { %v4236_v32 = vadd.f32 %v6099_v10, %v8010_v34  ;;  %v5835_v50 = vadd.f32 %v5834_v0, %v5833_v45  ;;  %v6105_v22 = vadd.f32 %v7958_v49, %v3977_v18  ;;  %v8017_v39 = vadd.f32 %v7855_v38, %v5832_v17 }
 0x1ff   : > { %v4239_v19 = vadd.f32 %v6102_v54, %v8010_v34  ;;  %v4467_v55 = vmul.f32 %v4238_v9, %v4238_v9 }
 0x200   : > { %v4237_v13 = vadd.f32 %v6105_v22, %v8010_v34  ;;  %v8030_v35 = vadd.f32 %v7866_v4, %v5835_v50  ;;  %v4465_v38 = vmul.f32 %v4236_v32, %v4236_v32 }
 0x201   : > { %v5368_v49 = vpack.c.bf16 %v4239_v19, %v4238_v9  ;;  %v4468_v58 = vmul.f32 %v4239_v19, %v4239_v19 }
 0x202   : > { %v5363_v29 = vpack.c.bf16 %v4237_v13, %v4236_v32  ;;  %v4428_v43 = vadd.f32 %v4237_v13, %v4236_v32  ;;  %v4466_v57 = vmul.f32 %v4237_v13, %v4237_v13  ;;  %v5836_v51 = vpop.f32.mrb[132].mxu0  ;;  %v6068_v6 = vpop.f32.mrb[4].mxu1 }
 0x203   : > { %5455 = vst [vmem:[%s8026_s11 + $0x8] sm:$0xff] %v5368_v49   ;;  %v6108_v2 = vadd.f32 %v7978_v14, %v6068_v6  ;;  %v5837_v61 = vpop.f32.mrb[133].mxu0  ;;  %v3990_v11 = vpop.f32.mrb[5].mxu1 }
 0x204   : > { %5364 = vst [vmem:[%s8026_s11] sm:$0xff] %v5363_v29   ;;  %v4429_v7 = vadd.f32 %v4428_v43, %v4238_v9  ;;  %v4497_v16 = vadd.f32 %v4466_v57, %v4465_v38  ;;  %v5838_v27 = vadd.f32 %v5837_v61, %v5836_v51  ;;  %v6111_v4 = vadd.f32 %v7972_v8, %v3990_v11  ;;  %v5839_v5 = vpop.f32.mrb[134].mxu0  ;;  %v6069_v60 = vpop.f32.mrb[6].mxu1 }
 0x205   : > { %v6114_v37 = vadd.f32 %v7981_v52, %v6069_v60  ;;  %v5840_v47 = vpop.f32.mrb[135].mxu0  ;;  %v3993_v56 = vpop.f32.mrb[7].mxu1  ;;  %v4242_v45 = vadd.f32 %v6108_v2, %v8010_v34 }
 0x206   : > { %v4498_v20 = vadd.f32 %v4497_v16, %v4467_v55  ;;  %v4240_v17 = vadd.f32 %v6111_v4, %v8010_v34  ;;  %v4430_v14 = vadd.f32 %v4429_v7, %v4239_v19  ;;  %v5841_v10 = vadd.f32 %v5840_v47, %v5839_v5 }
 0x207   : > { %v4243_v24 = vadd.f32 %v6114_v37, %v8010_v34  ;;  %v6117_v54 = vadd.f32 %v7975_v48, %v3993_v56  ;;  %v8042_v8 = vadd.f32 %v7874_v62, %v5838_v27  ;;  %v4471_v57 = vmul.f32 %v4242_v45, %v4242_v45 }
 0x208   : > { %v4431_v0 = vadd.f32 %v4430_v14, %v4240_v17  ;;  %v4469_v18 = vmul.f32 %v4240_v17, %v4240_v17  ;;  %v4499_v52 = vadd.f32 %v4498_v20, %v4468_v58  ;;  %v8045_v32 = vadd.f32 %v7879_v15, %v5841_v10 }
 0x209   : > { %v5378_v50 = vpack.c.bf16 %v4243_v24, %v4242_v45  ;;  %v4241_v22 = vadd.f32 %v6117_v54, %v8010_v34  ;;  %v4472_v2 = vmul.f32 %v4243_v24, %v4243_v24 }
 0x20a   : > { %v4500_v9 = vadd.f32 %v4499_v52, %v4469_v18  ;;  %v5842_v19 = vpop.f32.mrb[136].mxu0  ;;  %v6072_v13 = vpop.f32.mrb[8].mxu1 }
 0x20b   : > { %5457 = vst [vmem:[%s8026_s11 + $0x18] sm:$0xff] %v5378_v50   ;;  %v5373_v49 = vpack.c.bf16 %v4241_v22, %v4240_v17  ;;  %v4432_v38 = vadd.f32 %v4431_v0, %v4241_v22  ;;  %v4470_v48 = vmul.f32 %v4241_v22, %v4241_v22  ;;  %v6120_v62 = vadd.f32 %v7990_v33, %v6072_v13  ;;  %v5843_v29 = vpop.f32.mrb[137].mxu0  ;;  %v4006_v43 = vpop.f32.mrb[9].mxu1 }
 0x20c   : > { %v5844_v51 = vadd.f32 %v5843_v29, %v5842_v19  ;;  %v6123_v15 = vadd.f32 %v7984_v41, %v4006_v43  ;;  %v5845_v6 = vpop.f32.mrb[138].mxu0  ;;  %v6073_v55 = vpop.f32.mrb[10].mxu1 }
 0x20d   : > { %5456 = vst [vmem:[%s8026_s11 + $0x10] sm:$0xff] %v5373_v49   ;;  %v4433_v61 = vadd.f32 %v4432_v38, %v4242_v45  ;;  %v4501_v11 = vadd.f32 %v4500_v9, %v4470_v48  ;;  %v6126_v7 = vadd.f32 %v7993_v44, %v6073_v55  ;;  %v5846_v16 = vpop.f32.mrb[139].mxu0  ;;  %v4009_v27 = vpop.f32.mrb[11].mxu1  ;;  %v4246_v58 = vadd.f32 %v6120_v62, %v8010_v34 }
 0x20e   : > { %v4244_v4 = vadd.f32 %v6123_v15, %v8010_v34  ;;  %v5847_v5 = vadd.f32 %v5846_v16, %v5845_v6  ;;  %v6129_v33 = vadd.f32 %v7987_v42, %v4009_v27  ;;  %v8056_v60 = vadd.f32 %v7886_v46, %v5844_v51 }
 0x20f   : > { %v4502_v41 = vadd.f32 %v4501_v11, %v4471_v57  ;;  %v4434_v37 = vadd.f32 %v4433_v61, %v4243_v24  ;;  %v4247_v47 = vadd.f32 %v6126_v7, %v8010_v34  ;;  %v4475_v22 = vmul.f32 %v4246_v58, %v4246_v58 }
 0x210   : > { %v4473_v56 = vmul.f32 %v4244_v4, %v4244_v4  ;;  %v4245_v44 = vadd.f32 %v6129_v33, %v8010_v34  ;;  %v8062_v20 = vadd.f32 %v7890_v28, %v5847_v5 }
 0x211   : > { %v4435_v17 = vadd.f32 %v4434_v37, %v4244_v4  ;;  %v4503_v14 = vadd.f32 %v4502_v41, %v4472_v2  ;;  %v5388_v42 = vpack.c.bf16 %v4247_v47, %v4246_v58  ;;  %v4476_v49 = vmul.f32 %v4247_v47, %v4247_v47 }
 0x212   : > { %v5383_v10 = vpack.c.bf16 %v4245_v44, %v4244_v4  ;;  %v4474_v46 = vmul.f32 %v4245_v44, %v4245_v44  ;;  %v5848_v45 = vpop.f32.mrb[140].mxu0  ;;  %v6076_v54 = vpop.f32.mrb[12].mxu1 }
 0x213   : > { %v4504_v0 = vadd.f32 %v4503_v14, %v4473_v56  ;;  %5459 = vst [vmem:[%s8026_s11 + $0x28] sm:$0xff] %v5388_v42   ;;  %v4436_v18 = vadd.f32 %v4435_v17, %v4245_v44  ;;  %v6132_v24 = vadd.f32 %v8002_v31, %v6076_v54  ;;  %v5849_v52 = vpop.f32.mrb[141].mxu0  ;;  %v4022_v50 = vpop.f32.mrb[13].mxu1 }
 0x214   : > { %5458 = vst [vmem:[%s8026_s11 + $0x20] sm:$0xff] %v5383_v10   ;;  %v5850_v9 = vadd.f32 %v5849_v52, %v5848_v45  ;;  %v6135_v28 = vadd.f32 %v7996_v26, %v4022_v50  ;;  %v5851_v19 = vpop.f32.mrb[142].mxu0  ;;  %v6077_v13 = vpop.f32.mrb[14].mxu1 }
 0x215   : > { %v4437_v38 = vadd.f32 %v4436_v18, %v4246_v58  ;;  %v4505_v48 = vadd.f32 %v4504_v0, %v4474_v46  ;;  %v6138_v62 = vadd.f32 %v8005_v1, %v6077_v13  ;;  %v5852_v29 = vpop.f32.mrb[143].mxu0  ;;  %v4025_v43 = vpop.f32.mrb[15].mxu1  ;;  %v4250_v26 = vadd.f32 %v6132_v24, %v8010_v34 }
 0x216   : > { %v4248_v57 = vadd.f32 %v6135_v28, %v8010_v34  ;;  %v5853_v51 = vadd.f32 %v5852_v29, %v5851_v19  ;;  %v6141_v31 = vadd.f32 %v7999_v53, %v4025_v43  ;;  %v6155_v15 = vadd.f32 %v7898_v36, %v5850_v9 }
 0x217   : > { %v4506_v6 = vadd.f32 %v4505_v48, %v4475_v22  ;;  %v4438_v55 = vadd.f32 %v4437_v38, %v4247_v47  ;;  %v4251_v2 = vadd.f32 %v6138_v62, %v8010_v34  ;;  %v4479_v56 = vmul.f32 %v4250_v26, %v4250_v26 }
 0x218   : > { %v4477_v61 = vmul.f32 %v4248_v57, %v4248_v57  ;;  %v4249_v11 = vadd.f32 %v6141_v31, %v8010_v34  ;;  %v6161_v1 = vadd.f32 %v7902_v25, %v5853_v51 }
 0x219   : > { %v4439_v7 = vadd.f32 %v4438_v55, %v4248_v57  ;;  %v4507_v16 = vadd.f32 %v4506_v6, %v4476_v49  ;;  %v5398_v27 = vpack.c.bf16 %v4251_v2, %v4250_v26  ;;  %v4480_v42 = vmul.f32 %v4251_v2, %v4251_v2 }
 0x21a   : > { %v5393_v4 = vpack.c.bf16 %v4249_v11, %v4248_v57  ;;  %v4478_v53 = vmul.f32 %v4249_v11, %v4249_v11  ;;  %v5854_v5 = vpop.f32.mrb[144].mxu0  ;;  %v6080_v36 = vpop.f32.mrb[16].mxu1 }
 0x21b   : > { %v4508_v33 = vadd.f32 %v4507_v16, %v4477_v61  ;;  %5461 = vst [vmem:[%s8026_s11 + $0x38] sm:$0xff] %v5398_v27   ;;  %v4440_v41 = vadd.f32 %v4439_v7, %v4249_v11  ;;  %v6144_v58 = vadd.f32 %v8042_v8, %v6080_v36  ;;  %v5855_v37 = vpop.f32.mrb[145].mxu0  ;;  %v4038_v47 = vpop.f32.mrb[17].mxu1 }
 0x21c   : > { %5460 = vst [vmem:[%s8026_s11 + $0x30] sm:$0xff] %v5393_v4   ;;  %v5856_v44 = vadd.f32 %v5855_v37, %v5854_v5  ;;  %v6147_v17 = vadd.f32 %v8017_v39, %v4038_v47  ;;  %v5857_v25 = vpop.f32.mrb[146].mxu0  ;;  %v6081_v14 = vpop.f32.mrb[18].mxu1 }
 0x21d   : > { %v4441_v10 = vadd.f32 %v4440_v41, %v4250_v26  ;;  %v4509_v46 = vadd.f32 %v4508_v33, %v4478_v53  ;;  %v6150_v45 = vadd.f32 %v8045_v32, %v6081_v14  ;;  %v5858_v54 = vpop.f32.mrb[147].mxu0  ;;  %v4041_v0 = vpop.f32.mrb[19].mxu1  ;;  %v4254_v39 = vadd.f32 %v6144_v58, %v8010_v34 }
 0x21e   : > { %v4252_v18 = vadd.f32 %v6147_v17, %v8010_v34  ;;  %v5859_v24 = vadd.f32 %v5858_v54, %v5857_v25  ;;  %v6153_v8 = vadd.f32 %v8030_v35, %v4041_v0  ;;  %v6170_v52 = vadd.f32 %v7910_v30, %v5856_v44 }
 0x21f   : > { %v4510_v50 = vadd.f32 %v4509_v46, %v4479_v56  ;;  %v4442_v22 = vadd.f32 %v4441_v10, %v4251_v2  ;;  %v4255_v9 = vadd.f32 %v6150_v45, %v8010_v34  ;;  %v4483_v6 = vmul.f32 %v4254_v39, %v4254_v39 }
 0x220   : > { %v4481_v28 = vmul.f32 %v4252_v18, %v4252_v18  ;;  %v4253_v19 = vadd.f32 %v6153_v8, %v8010_v34  ;;  %v8088_v32 = vadd.f32 %v7914_v23, %v5859_v24 }
 0x221   : > { %v4443_v13 = vadd.f32 %v4442_v22, %v4252_v18  ;;  %v4511_v49 = vadd.f32 %v4510_v50, %v4480_v42  ;;  %v5408_v38 = vpack.c.bf16 %v4255_v9, %v4254_v39  ;;  %v4484_v61 = vmul.f32 %v4255_v9, %v4255_v9 }
 0x222   : > { %v5403_v35 = vpack.c.bf16 %v4253_v19, %v4252_v18  ;;  %v4482_v48 = vmul.f32 %v4253_v19, %v4253_v19  ;;  %v5860_v30 = vpop.f32.mrb[148].mxu0  ;;  %v6084_v62 = vpop.f32.mrb[20].mxu1 }
 0x223   : > { %v4512_v29 = vadd.f32 %v4511_v49, %v4481_v28  ;;  %5463 = vst [vmem:[%s8026_s11 + $0x48] sm:$0xff] %v5408_v38   ;;  %v4444_v43 = vadd.f32 %v4443_v13, %v4253_v19  ;;  %v6156_v57 = vadd.f32 %v6155_v15, %v6084_v62  ;;  %v5861_v51 = vpop.f32.mrb[149].mxu0  ;;  %v4054_v31 = vpop.f32.mrb[21].mxu1 }
 0x224   : > { %5462 = vst [vmem:[%s8026_s11 + $0x40] sm:$0xff] %v5403_v35   ;;  %v5862_v26 = vadd.f32 %v5861_v51, %v5860_v30  ;;  %v6159_v55 = vadd.f32 %v8056_v60, %v4054_v31  ;;  %v5863_v23 = vpop.f32.mrb[150].mxu0  ;;  %v6085_v2 = vpop.f32.mrb[22].mxu1 }
 0x225   : > { %v4445_v11 = vadd.f32 %v4444_v43, %v4254_v39  ;;  %v4513_v7 = vadd.f32 %v4512_v29, %v4482_v48  ;;  %v6162_v16 = vadd.f32 %v6161_v1, %v6085_v2  ;;  %v5864_v27 = vpop.f32.mrb[151].mxu0  ;;  %v4057_v4 = vpop.f32.mrb[23].mxu1  ;;  %v4258_v41 = vadd.f32 %v6156_v57, %v8010_v34 }
 0x226   : > { %v4256_v53 = vadd.f32 %v6159_v55, %v8010_v34  ;;  %v5865_v5 = vadd.f32 %v5864_v27, %v5863_v23  ;;  %v6165_v15 = vadd.f32 %v8062_v20, %v4057_v4  ;;  %v6167_v36 = vadd.f32 %v7922_v59, %v5862_v26 }
 0x227   : > { %v4514_v33 = vadd.f32 %v4513_v7, %v4483_v6  ;;  %v4446_v60 = vadd.f32 %v4445_v11, %v4255_v9  ;;  %v4259_v58 = vadd.f32 %v6162_v16, %v8010_v34  ;;  %v4487_v0 = vmul.f32 %v4258_v41, %v4258_v41 }
 0x228   : > { %v4485_v37 = vmul.f32 %v4256_v53, %v4256_v53  ;;  %v4257_v47 = vadd.f32 %v6165_v15, %v8010_v34  ;;  %v6173_v1 = vadd.f32 %v7926_v21, %v5865_v5 }
 0x229   : > { %v4447_v56 = vadd.f32 %v4446_v60, %v4256_v53  ;;  %v4515_v44 = vadd.f32 %v4514_v33, %v4484_v61  ;;  %v5418_v17 = vpack.c.bf16 %v4259_v58, %v4258_v41  ;;  %v4488_v21 = vmul.f32 %v4259_v58, %v4259_v58 }
 0x22a   : > { %v5413_v25 = vpack.c.bf16 %v4257_v47, %v4256_v53  ;;  %v4486_v20 = vmul.f32 %v4257_v47, %v4257_v47  ;;  %v5866_v14 = vpop.f32.mrb[152].mxu0  ;;  %v6088_v59 = vpop.f32.mrb[24].mxu1 }
 0x22b   : > { %v4516_v42 = vadd.f32 %v4515_v44, %v4485_v37  ;;  %5465 = vst [vmem:[%s8026_s11 + $0x58] sm:$0xff] %v5418_v17   ;;  %v4448_v10 = vadd.f32 %v4447_v56, %v4257_v47  ;;  %v6168_v46 = vadd.f32 %v6167_v36, %v6088_v59  ;;  %v5867_v45 = vpop.f32.mrb[153].mxu0  ;;  %v4070_v54 = vpop.f32.mrb[25].mxu1 }
 0x22c   : > { %5464 = vst [vmem:[%s8026_s11 + $0x50] sm:$0xff] %v5413_v25   ;;  %v5868_v18 = vadd.f32 %v5867_v45, %v5866_v14  ;;  %v6171_v24 = vadd.f32 %v6170_v52, %v4070_v54  ;;  %v5869_v8 = vpop.f32.mrb[154].mxu0  ;;  %v6089_v50 = vpop.f32.mrb[26].mxu1 }
 0x22d   : > { %v4449_v39 = vadd.f32 %v4448_v10, %v4258_v41  ;;  %v4517_v22 = vadd.f32 %v4516_v42, %v4486_v20  ;;  %v6174_v9 = vadd.f32 %v6173_v1, %v6089_v50  ;;  %v5870_v28 = vpop.f32.mrb[155].mxu0  ;;  %v4073_v19 = vpop.f32.mrb[27].mxu1  ;;  %v4262_v30 = vadd.f32 %v6168_v46, %v8010_v34 }
 0x22e   : > { %v4260_v13 = vadd.f32 %v6171_v24, %v8010_v34  ;;  %v5871_v49 = vadd.f32 %v5870_v28, %v5869_v8  ;;  %v6177_v38 = vadd.f32 %v8088_v32, %v4073_v19  ;;  %v6182_v35 = vadd.f32 %v7934_v63, %v5868_v18 }
 0x22f   : > { %v4518_v48 = vadd.f32 %v4517_v22, %v4487_v0  ;;  %v4450_v52 = vadd.f32 %v4449_v39, %v4259_v58  ;;  %v4263_v62 = vadd.f32 %v6174_v9, %v8010_v34  ;;  %v4491_v53 = vmul.f32 %v4262_v30, %v4262_v30 }
 0x230   : > { %v4489_v29 = vmul.f32 %v4260_v13, %v4260_v13  ;;  %v4261_v43 = vadd.f32 %v6177_v38, %v8010_v34  ;;  %v6188_v57 = vadd.f32 %v7938_v3, %v5871_v49 }
 0x231   : > { %v4451_v51 = vadd.f32 %v4450_v52, %v4260_v13  ;;  %v4519_v31 = vadd.f32 %v4518_v48, %v4488_v21  ;;  %v5428_v6 = vpack.c.bf16 %v4263_v62, %v4262_v30  ;;  %v4492_v37 = vmul.f32 %v4263_v62, %v4263_v62 }
 0x232   : > { %v5423_v26 = vpack.c.bf16 %v4261_v43, %v4260_v13  ;;  %v4490_v32 = vmul.f32 %v4261_v43, %v4261_v43  ;;  %v5872_v55 = vpop.f32.mrb[156].mxu0  ;;  %v6092_v63 = vpop.f32.mrb[28].mxu1 }
 0x233   : > { %v4520_v23 = vadd.f32 %v4519_v31, %v4489_v29  ;;  %5467 = vst [vmem:[%s8026_s11 + $0x68] sm:$0xff] %v5428_v6   ;;  %v4452_v2 = vadd.f32 %v4451_v51, %v4261_v43  ;;  %v5873_v61 = vpop.f32.mrb[157].mxu0  ;;  %v4086_v11 = vpop.f32.mrb[29].mxu1 }
 0x234   : > { %5466 = vst [vmem:[%s8026_s11 + $0x60] sm:$0xff] %v5423_v26   ;;  %v5874_v7 = vadd.f32 %v5873_v61, %v5872_v55  ;;  %v6183_v16 = vadd.f32 %v6182_v35, %v4086_v11  ;;  %v5875_v27 = vpop.f32.mrb[158].mxu0  ;;  %v6093_v4 = vpop.f32.mrb[30].mxu1 }
 0x235   : > { %v4453_v5 = vadd.f32 %v4452_v2, %v4262_v30  ;;  %v4521_v3 = vadd.f32 %v4520_v23, %v4490_v32  ;;  %v5876_v15 = vpop.f32.mrb[159].mxu0  ;;  %v4089_v36 = vpop.f32.mrb[31].mxu1 }
 0x236   : > { %v6179_v33 = vadd.f32 %v7946_v40, %v5874_v7  ;;  %v4264_v41 = vadd.f32 %v6183_v16, %v8010_v34  ;;  %v5877_v60 = vadd.f32 %v5876_v15, %v5875_v27  ;;  %v6189_v58 = vadd.f32 %v6188_v57, %v4089_v36 }
 0x237   : > { %v4522_v47 = vadd.f32 %v4521_v3, %v4491_v53  ;;  %v4454_v1 = vadd.f32 %v4453_v5, %v4263_v62 }
 0x238   : > { %v6180_v56 = vadd.f32 %v6179_v33, %v6092_v63  ;;  %v4493_v44 = vmul.f32 %v4264_v41, %v4264_v41  ;;  %v6185_v17 = vadd.f32 %v7950_v12, %v5877_v60  ;;  %v4265_v25 = vadd.f32 %v6189_v58, %v8010_v34 }
 0x239   : > { %v4455_v20 = vadd.f32 %v4454_v1, %v4264_v41  ;;  %v4523_v14 = vadd.f32 %v4522_v47, %v4492_v37 }
 0x23a   : > { %v4266_v59 = vadd.f32 %v6180_v56, %v8010_v34  ;;  %v6186_v40 = vadd.f32 %v6185_v17, %v6093_v4  ;;  %v5433_v42 = vpack.c.bf16 %v4265_v25, %v4264_v41  ;;  %v4494_v10 = vmul.f32 %v4265_v25, %v4265_v25 }
 0x23b   : > { %v4524_v46 = vadd.f32 %v4523_v14, %v4493_v44  ;;  %v4456_v45 = vadd.f32 %v4455_v20, %v4265_v25 }
 0x23c   : > { %v4495_v54 = vmul.f32 %v4266_v59, %v4266_v59  ;;  %v4267_v0 = vadd.f32 %v6186_v40, %v8010_v34  ;;  %5468 = vst [vmem:[%s8026_s11 + $0x70] sm:$0xff] %v5433_v42  }
 0x23d   : > { %v4457_v18 = vadd.f32 %v4456_v45, %v4266_v59  ;;  %v4525_v24 = vadd.f32 %v4524_v46, %v4494_v10 }
 0x23e   : > { %v5438_v8 = vpack.c.bf16 %v4267_v0, %v4266_v59  ;;  %v4496_v12 = vmul.f32 %v4267_v0, %v4267_v0 }
 0x23f   : > { %v4458_v50 = vadd.f32 %v4457_v18, %v4267_v0  ;;  %v4526_v21 = vadd.f32 %v4525_v24, %v4495_v54 }
 0x240   : > { %5469 = vst [vmem:[%s8026_s11 + $0x78] sm:$0xff] %v5438_v8  }
 0x241   : > { %v4459_v39 = vrot.slane %v4458_v50, 4  ;;  %v4527_v22 = vadd.f32 %v4526_v21, %v4496_v12 }
 0x243   : > { %v4460_v9 = vadd.f32 %v4459_v39, %v4458_v50  ;;  %v4528_v28 = vrot.slane %v4527_v22, 4 }
 0x245   : > { %v4461_v19 = vrot.slane %v4460_v9, 2  ;;  %v4529_v13 = vadd.f32 %v4528_v28, %v4527_v22 }
 0x247   : > { %v4462_v49 = vadd.f32 %v4461_v19, %v4460_v9  ;;  %v4530_v38 = vrot.slane %v4529_v13, 2 }
 0x249   : > { %v4463_v35 = vrot.slane %v4462_v49, 1  ;;  %v4531_v48 = vadd.f32 %v4530_v38, %v4529_v13 }
 0x24b   : > { %v4532_v34 = vrot.slane %v4531_v48, 1  ;;  %v4464_v30 = vadd.f32 %v4463_v35, %v4462_v49 }
 0x24d   : > { %v4533_v52 = vadd.f32 %v4532_v34, %v4531_v48 }
 0x24f   : > { %v4534_v62 = vsel %vm3054_vm2, %v4464_v30, %v4533_v52 }
 0x250   : > { %4535 = vst [vmem:[%s334_s14] sm:$0x3] %v4534_v62 }
 0x251 PF: > { %s19_s27 = sadd.s32 1, %s6497_s27  }
 0x252   : > { %p16_p4 = scmp.ge.s32.totalorder %s19_s27, 4  }
 0x254   :  { %18 = sbr.rel (!%p16_p4) target bundleno = 1 (0x1), region = 110 }

// kernel: resblock_forward.4
= control target key start
LH: loop header
LB: loop body
LE: loop exit
PB: predicated region body
PF: predicated region fallthrough
CT: control target
= control target key end

     0   :  { %s6574_s24 = smov 0   ;;  %s8093_s0 = inlined_call_operand.vmem [shape: bf16[2,16,16,128], index: 0, kind: input, shape index: {}]   ;;  %s8094_s1 = inlined_call_operand.vmem [shape: f32[2,128], index: 1, kind: input, shape index: {}]   ;;  %s8095_s2 = inlined_call_operand.vmem [shape: f32[1,128], index: 2, kind: input, shape index: {}]   ;;  %s8096_s3 = inlined_call_operand.vmem [shape: f32[1,128], index: 3, kind: input, shape index: {}]   ;;  %s8097_s4 = inlined_call_operand.vmem [shape: bf16[3,384,128], index: 4, kind: input, shape index: {}]   ;;  %s8098_s5 = inlined_call_operand.vmem [shape: f32[1,128], index: 5, kind: input, shape index: {}]   ;;  %s8099_s6 = inlined_call_operand.vmem [shape: bf16[2,16,16,128], index: 6, kind: output, shape index: {0}]   ;;  %s8100_s7 = inlined_call_operand.vmem [shape: f32[2,2,128], index: 7, kind: output, shape index: {1}]  }
   0x1 LB: > { %s4911_s25 = sadd.s32 4294967295, %s6531_s24   ;;  %p4915_p0 = scmp.ge.s32.totalorder %s6531_s24, 1  ;;  %s6531_s24 = sphi %s6574_s24, %s18_s24  }
   0x2   : > { %p240_p1 = scmp.lt.s32.totalorder %s6531_s24, 3 }
   0x4   : > { %p241_p2 = pnand %p4915_p0, %p240_p1 }
   0x6   : > { %244 = sbr.rel (%p241_p2) target bundleno = 651 (0x28b), region = 44 }
   0xd   : > { %v6277_v0 = vld [vmem:[%s8097_s4 + $0x40] sm:$0xff]   ;;  %v6533_v2 = vmov 0   ;;  %v6280_v4 = vld [vmem:[%s8097_s4 + $0x48] sm:$0xff]   ;;  %v6283_v7 = vld [vmem:[%s8097_s4 + $0x50] sm:$0xff]   ;;  %vm500_vm0 = vcmask 1040384   ;;  %p6690_p3 = scmp.lt.s32.totalorder %s4911_s25, 1  ;;  %v370_v54 = vlaneseq }
   0xe   : > { %v6278_v1 = vld [vmem:[%s8097_s4] sm:$0xff]   ;;  %493 = vst [vmem:[#allocation2] sm:$0xf] %v6533_v2  ;;  %494 = vst [vmem:[#allocation2 + $0x4] sm:$0xf] %v6533_v2  ;;  %5540 = vmatprep.subr.bf16.mxu0 %v6277_v0  ;;  %v6281_v5 = vld [vmem:[%s8097_s4 + $0x8] sm:$0xff]  }
   0xf   : > { %495 = vst [vmem:[#allocation2 + $0x8] sm:$0x1] %v6533_v2  ;;  %497 = vst [vmem:[#allocation2 + $0xcc] sm:$0xf] %v6533_v2  ;;  %v6591_v3 = vld [vmem:[%s8097_s4 + $0x80] sm:$0xff]   ;;  %5541 = vmatpush3.bf16.msra.mxu0 %v6278_v1  ;;  %v6604_v6 = vld [vmem:[%s8097_s4 + $0x88] sm:$0xff]  }
  0x10   : > { %498 = vst [vmem:[#allocation2 + $0xd0] sm:$0xf] %v6533_v2  ;;  %499 = vst [vmem:[#allocation2 + $0xd4] sm:$0x1] %v6533_v2  ;;  %6092 = vmatprep.subr.bf16.mxu1 %v6591_v3  ;;  %5542 = vmatprep.subr.bf16.mxu0 %v6280_v4  ;;  %v6284_v8 = vld [vmem:[%s8097_s4 + $0x10] sm:$0xff]   ;;  %v6286_v10 = vld [vmem:[%s8097_s4 + $0x58] sm:$0xff]  }
  0x11   : > { %6100 = vmatpush3.bf16.msra.mxu1 %v6591_v3  ;;  %v6616_v9 = vld [vmem:[%s8097_s4 + $0x90] sm:$0xff]   ;;  %v6287_v11 = vld [vmem:[%s8097_s4 + $0x18] sm:$0xff]   ;;  %v6289_v13 = vld [vmem:[%s8097_s4 + $0x60] sm:$0xff]   ;;  %vm501_vm1 = vsmask.f32 256  ;;  %s8117_s25 = smov (!%p6690_p3, %s4911_s25), 1 }
  0x12   : > { %6093 = vmatprep.subr.bf16.mxu1 %v6604_v6  ;;  %v6629_v12 = vld [vmem:[%s8097_s4 + $0x98] sm:$0xff]   ;;  %v6639_v14 = vld [vmem:[%s8097_s4 + $0xa0] sm:$0xff]   ;;  %v6292_v16 = vld [vmem:[%s8097_s4 + $0x68] sm:$0xff]   ;;  %vm557_vm2 = vsmask.f32 7938  ;;  %s5300_s16 = sshll.u32 %s8117_s25, 7 }
  0x13   : > { %5543 = vmatpush3.bf16.msra.mxu0 %v6281_v5  ;;  %v6290_v15 = vld [vmem:[%s8097_s4 + $0x20] sm:$0xff]   ;;  %v6652_v17 = vld [vmem:[%s8097_s4 + $0xa8] sm:$0xff]   ;;  %v6295_v19 = vld [vmem:[%s8097_s4 + $0x70] sm:$0xff]   ;;  %vm1338_vm5 = vsmask.f32 7424  ;;  %s6746_s19 = scalar_lea.vmem %s8093_s0, %s5300_s16  ;;  %v6748_v1 = vshrl.u32 %v370_v54, 7  ;;  %s8003_s26 = scalar_lea.vmem %s8099_s6, %s5300_s16 }
  0x14   : > { %5544 = vmatprep.subr.bf16.mxu0 %v6283_v7  ;;  %v6293_v18 = vld [vmem:[%s8097_s4 + $0x28] sm:$0xff]   ;;  %v6296_v20 = vld [vmem:[%s8097_s4 + $0x30] sm:$0xff]   ;;  %v6298_v23 = vld [vmem:[%s8097_s4 + $0x78] sm:$0xff]   ;;  %vm1016_vm6 = vcmask 1043456   ;;  %vm693_vm7 = vsmask.f32 4368 }
  0x15   : > { %6101 = vmatpush3.bf16.msra.mxu1 %v6604_v6  ;;  %v6668_v21 = vld [vmem:[%s8097_s4 + $0xb0] sm:$0xff]   ;;  %v503_v22 = vld [vmem:[#allocation2] sm:$0x1]  ;;  %vm6675_vm3 = vmand %vm500_vm0, %vm501_vm1  ;;  %vm1595_vm10 = vcmask 1046528   ;;  %s4920_s16 = sshll.u32 %s8117_s25, 1 }
  0x16   : > { %6094 = vmatprep.subr.bf16.mxu1 %v6616_v9  ;;  %v559_v25 = vld [vmem:[#allocation2 + $0x8] sm:$0x1]  ;;  %v504_v26 = vsel %vm6675_vm3, 0, %v503_v22  ;;  %vm6684_vm4 = vmand %vm500_vm0, %vm557_vm2  ;;  %v6700_v29 = vld [vmem:[%s8097_s4 + $0xb8] sm:$0xff]   ;;  %s289_s29 = scalar_lea.vmem %s8100_s7, %s4920_s16 }
  0x17   : > { %5545 = vmatpush3.bf16.msra.mxu0 %v6284_v8  ;;  %505 = vst [vmem:[#allocation2] sm:$0x1] %v504_v26  ;;  %v560_v28 = vsel %vm6684_vm4, 0, %v559_v25  ;;  %v291_v30 = vld [vmem:[%s8094_s1] sm:$0x1]  ;;  %v6299_v32 = vld [vmem:[%s8097_s4 + $0x38] sm:$0xff]   ;;  %vm6842_vm8 = vmand %vm1016_vm6, %vm557_vm2 }
  0x18   : > { %5546 = vmatprep.subr.bf16.mxu0 %v6286_v10  ;;  %v293_v31 = vld [vmem:[%s8094_s1 + $0x1] sm:$0x1]  ;;  %561 = vst [vmem:[#allocation2 + $0x8] sm:$0x1] %v560_v28  ;;  %v6711_v33 = vmul.f32 0.001953125, %v291_v30  ;;  %v5516_v7 = vld [vmem:[%s6746_s19 + $0x38] sm:$0xff]   ;;  %vm6848_vm9 = vmor %vm501_vm1, %vm693_vm7 }
  0x19   : > { %6102 = vmatpush3.bf16.msra.mxu1 %v6616_v9  ;;  %v294_v34 = vmul.f32 0.001953125, %v293_v31  ;;  %v527_v35 = vld [vmem:[#allocation2 + $0x60] sm:$0x1]  ;;  %v583_v36 = vld [vmem:[#allocation2 + $0x68] sm:$0x1]  ;;  %v5396_v25 = vunpack.c.l.bf16 %v5516_v7  ;;  %v5519_v26 = vld [vmem:[%s6746_s19 + $0x50] sm:$0xff]  }
  0x1a   : > { %6095 = vmatprep.subr.bf16.mxu1 %v6629_v12  ;;  %v295_v37 = vmul.f32 %v6711_v33, %v6711_v33  ;;  %v528_v38 = vsel %vm6675_vm3, 0, %v527_v35  ;;  %v1131_v39 = vld [vmem:[#allocation2 + $0x4] sm:$0xf]  ;;  %v584_v40 = vsel %vm6684_vm4, 0, %v583_v36  ;;  %v530_v42 = vld [vmem:[#allocation2 + $0x6c] sm:$0x1] }
  0x1b   : > { %5547 = vmatpush3.bf16.msra.mxu0 %v6287_v11  ;;  %529 = vst [vmem:[#allocation2 + $0x60] sm:$0x1] %v528_v38  ;;  %v6306_v41 = vld [vmem:[%s8097_s4 + $0x100] sm:$0xff]   ;;  %585 = vst [vmem:[#allocation2 + $0x68] sm:$0x1] %v584_v40  ;;  %v531_v44 = vsel %vm6675_vm3, 0, %v530_v42 }
  0x1c   : > { %5548 = vmatprep.subr.bf16.mxu0 %v6289_v13  ;;  %v296_v43 = vsub.f32 %v294_v34, %v295_v37  ;;  %v586_v45 = vld [vmem:[#allocation2 + $0x74] sm:$0x1]  ;;  %532 = vst [vmem:[#allocation2 + $0x6c] sm:$0x1] %v531_v44  ;;  %v506_v49 = vld [vmem:[#allocation2 + $0xc] sm:$0x1]  ;;  %v5397_v34 = vunpack.c.h.bf16 %v5516_v7  ;;  %v5408_v44 = vunpack.c.l.bf16 %v5519_v26 }
  0x1d   : > { %6103 = vmatpush3.bf16.msra.mxu1 %v6629_v12  ;;  %v587_v46 = vsel %vm6684_vm4, 0, %v586_v45  ;;  %v507_v52 = vsel %vm6675_vm3, 0, %v506_v49  ;;  %v562_v55 = vld [vmem:[#allocation2 + $0x14] sm:$0x1]  ;;  %v533_v62 = vld [vmem:[#allocation2 + $0x78] sm:$0x1]  ;;  %v5409_v45 = vunpack.c.h.bf16 %v5519_v26 }
  0x1e   : > { %6096 = vmatprep.subr.bf16.mxu1 %v6639_v14  ;;  %v1130_v47 = vld [vmem:[#allocation2] sm:$0xf]  ;;  %v297_v48 = vmax.f32 %v296_v43, 0.0  ;;  %588 = vst [vmem:[#allocation2 + $0x74] sm:$0x1] %v587_v46  ;;  %v563_v59 = vsel %vm6684_vm4, 0, %v562_v55 }
  0x1f   : > { %5549 = vmatpush3.bf16.msra.mxu0 %v6290_v15  ;;  %v4953_v50 = vcombine.low %v1130_v47, %v1131_v39  ;;  %v6301_v51 = vld [vmem:[#allocation2 + $0x8] ss:$0 sps:$4 sm:$0x11]   ;;  %508 = vst [vmem:[#allocation2 + $0xc] sm:$0x1] %v507_v52  ;;  %v534_v2 = vsel %vm6675_vm3, 0, %v533_v62 }
  0x20   : > { %5550 = vmatprep.subr.bf16.mxu0 %v6292_v16  ;;  %v299_v53 = vadd.f32 1e-05, %v297_v48  ;;  %v1347_v58 = vshll.u32 %v6301_v51, 16  ;;  %564 = vst [vmem:[#allocation2 + $0x14] sm:$0x1] %v563_v59  ;;  %v372_v16 = vsub.s32 0, %v6748_v1 }
  0x21   : > { %6104 = vmatpush3.bf16.msra.mxu1 %v6639_v14  ;;  %v1340_v56 = vshrl.u32 %v4953_v50, 16  ;;  %v1342_v57 = vshll.u32 %v4953_v50, 16  ;;  %v589_v63 = vld [vmem:[#allocation2 + $0x80] sm:$0x1]  ;;  %535 = vst [vmem:[#allocation2 + $0x78] sm:$0x1] %v534_v2 }
  0x22   : > { %6097 = vmatprep.subr.bf16.mxu1 %v6652_v17  ;;  %6493 = vrsqrt.f32 %v299_v53  ;;  %v1349_v61 = vrot.slane %v1347_v58, 1  ;;  %v590_v4 = vsel %vm6684_vm4, 0, %v589_v63  ;;  %v536_v8 = vld [vmem:[#allocation2 + $0x84] sm:$0x1]  ;;  %v592_v10 = vld [vmem:[#allocation2 + $0x8c] sm:$0x1] }
  0x23   : > { %5551 = vmatpush3.bf16.msra.mxu0 %v6293_v18  ;;  %v1344_v60 = vrot.slane %v1342_v57, 1  ;;  %591 = vst [vmem:[#allocation2 + $0x80] sm:$0x1] %v590_v4  ;;  %v298_v11 = vld [vmem:[%s8095_s2] sm:$0x1]  ;;  %v537_v13 = vsel %vm6675_vm3, 0, %v536_v8 }
  0x24   : > { %5552 = vmatprep.subr.bf16.mxu0 %v6295_v19  ;;  %v593_v15 = vsel %vm6684_vm4, 0, %v592_v10  ;;  %v5517_v18 = vld [vmem:[%s6746_s19 + $0x40] sm:$0xff]   ;;  %538 = vst [vmem:[#allocation2 + $0x84] sm:$0x1] %v537_v13  ;;  %v509_v22 = vld [vmem:[#allocation2 + $0x18] sm:$0x1] }
  0x25   : > { %6105 = vmatpush3.bf16.msra.mxu1 %v6652_v17  ;;  %v1345_v0 = vor.u32 %v1344_v60, %v1340_v56  ;;  %v5367_v19 = vld [vmem:[%s6746_s19] sm:$0xff]   ;;  %594 = vst [vmem:[#allocation2 + $0x8c] sm:$0x1] %v593_v15  ;;  %v5510_v28 = vld [vmem:[%s6746_s19 + $0x8] sm:$0xff]   ;;  %v510_v30 = vsel %vm6675_vm3, 0, %v509_v22  ;;  %v5400_v35 = vunpack.c.l.bf16 %v5517_v18  ;;  %v5401_v36 = vunpack.c.h.bf16 %v5517_v18  ;;  %v5520_v42 = vld [vmem:[%s6746_s19 + $0x58] sm:$0xff]  }
  0x26   : > { %6098 = vmatprep.subr.bf16.mxu1 %v6668_v21  ;;  %v5368_v37 = vunpack.c.l.bf16 %v5367_v19  ;;  %511 = vst [vmem:[#allocation2 + $0x18] sm:$0x1] %v510_v30  ;;  %v302_v38 = vld [vmem:[%s8096_s3] sm:$0x1]  ;;  %v5369_v39 = vunpack.c.h.bf16 %v5367_v19  ;;  %v539_v43 = vld [vmem:[#allocation2 + $0x90] sm:$0x1]  ;;  %v5372_v46 = vunpack.c.l.bf16 %v5510_v28  ;;  %v5373_v51 = vunpack.c.h.bf16 %v5510_v28 }
  0x27   : > { %5553 = vmatpush3.bf16.msra.mxu0 %v6296_v20  ;;  %v1350_v5 = vsel %vm1338_vm5, %v1345_v0, %v1349_v61  ;;  %v5518_v20 = vld [vmem:[%s6746_s19 + $0x48] sm:$0xff]   ;;  %v540_v47 = vsel %vm6675_vm3, 0, %v539_v43  ;;  %v595_v48 = vld [vmem:[#allocation2 + $0x98] sm:$0x1]  ;;  %v6788_v53 = vld [vmem:[%s6746_s19 + $0x60] sm:$0xff]   ;;  %v5412_v55 = vunpack.c.l.bf16 %v5520_v42  ;;  %v5413_v56 = vunpack.c.h.bf16 %v5520_v42 }
  0x28   : > { %5554 = vmatprep.subr.bf16.mxu0 %v6298_v23  ;;  %1884 = vmatprep.mubr.bf16.mxu0 %v1350_v5  ;;  %v565_v23 = vld [vmem:[#allocation2 + $0x20] sm:$0x1]  ;;  %v5404_v40 = vunpack.c.l.bf16 %v5518_v20  ;;  %541 = vst [vmem:[#allocation2 + $0x90] sm:$0x1] %v540_v47  ;;  %v596_v52 = vsel %vm6684_vm4, 0, %v595_v48  ;;  %v5416_v57 = vunpack.c.l.bf16 %v6788_v53  ;;  %v6420_v24 = vld [vmem:[%s8097_s4 + $0x1b8] sm:$0xff]  }
  0x29   : > { %6106 = vmatpush3.bf16.msra.mxu1 %v6668_v21  ;;  %v566_v31 = vsel %vm6684_vm4, 0, %v565_v23  ;;  %v542_v54 = vld [vmem:[#allocation2 + $0x9c] sm:$0x1]  ;;  %597 = vst [vmem:[#allocation2 + $0x98] sm:$0x1] %v596_v52 }
  0x2a   : > { %6099 = vmatprep.subr.bf16.mxu1 %v6700_v29  ;;  %567 = vst [vmem:[#allocation2 + $0x20] sm:$0x1] %v566_v31 }
  0x2b   : > { %5555 = vmatpush3.bf16.msra.mxu0 %v6299_v32 }
  0x2c   : > { %5948 = vmatprep.subr.bf16.mxu0 %v6591_v3  ;;  %v6494_v32 = vpop.eup %6493 }
  0x2d   : > { %6107 = vmatpush3.bf16.msra.mxu1 %v6700_v29 }
  0x2e   : > { %5676 = vmatprep.subr.bf16.mxu1 %v6306_v41  ;;  %1885 = vmatmul.mubr.bf16.vlgmr.msra.gmra.mrb[0].mxu0 %v4953_v50  ;;  %v5405_v41 = vunpack.c.h.bf16 %v5518_v20 }
  0x2f   : > { %5949 = vmatpush3.bf16.msra.mxu0 %v6591_v3  ;;  %v301_v3 = vmul.f32 %v6494_v32, %v298_v11 }
  0x30   : > { %5950 = vmatprep.subr.bf16.mxu0 %v6604_v6 }
  0x31   : > { %v303_v49 = vmul.f32 %v301_v3, %v6711_v33  ;;  %v6783_v50 = vrot.slane %v301_v3, %v372_v16 }
  0x33   : > { %5951 = vmatpush3.bf16.msra.mxu0 %v6604_v6  ;;  %v543_v6 = vsel %vm6675_vm3, 0, %v542_v54  ;;  %v304_v33 = vsub.f32 %v302_v38, %v303_v49  ;;  %v389_v58 = vmul.f32 %v5396_v25, %v6783_v50  ;;  %v390_v59 = vmul.f32 %v5397_v34, %v6783_v50 }
  0x34   : > { %5952 = vmatprep.subr.bf16.mxu0 %v6616_v9  ;;  %v391_v60 = vmul.f32 %v5400_v35, %v6783_v50  ;;  %544 = vst [vmem:[#allocation2 + $0x9c] sm:$0x1] %v543_v6  ;;  %v392_v61 = vmul.f32 %v5401_v36, %v6783_v50  ;;  %v375_v62 = vmul.f32 %v5368_v37, %v6783_v50 }
  0x35   : > { %v376_v63 = vmul.f32 %v5369_v39, %v6783_v50  ;;  %v393_v0 = vmul.f32 %v5404_v40, %v6783_v50  ;;  %v6802_v1 = vrot.slane %v304_v33, %v372_v16  ;;  %v394_v2 = vmul.f32 %v5405_v41, %v6783_v50 }
  0x36   : > { %v6806_v4 = vmul.f32 %v5408_v44, %v6783_v50  ;;  %v6809_v5 = vmul.f32 %v5409_v45, %v6783_v50  ;;  %v6813_v7 = vmul.f32 %v5372_v46, %v6783_v50  ;;  %v6816_v8 = vmul.f32 %v5373_v51, %v6783_v50  ;;  %v1067_v45 = vld [vmem:[#allocation2 + $0x60] sm:$0xf] }
  0x37   : > { %5953 = vmatpush3.bf16.msra.mxu0 %v6616_v9  ;;  %v6819_v9 = vmul.f32 %v5412_v55, %v6783_v50  ;;  %v6822_v10 = vmul.f32 %v5413_v56, %v6783_v50  ;;  %v427_v11 = vadd.f32 %v6802_v1, %v389_v58  ;;  %v428_v13 = vadd.f32 %v6802_v1, %v390_v59  ;;  %v1074_v59 = vld [vmem:[#allocation2 + $0x6c] sm:$0xf] }
  0x38   : > { %5954 = vmatprep.subr.bf16.mxu0 %v6629_v12  ;;  %v429_v15 = vadd.f32 %v6802_v1, %v391_v60  ;;  %v430_v16 = vadd.f32 %v6802_v1, %v392_v61  ;;  %v413_v18 = vadd.f32 %v6802_v1, %v375_v62  ;;  %v414_v19 = vadd.f32 %v6802_v1, %v376_v63 }
  0x39   : > { %v431_v20 = vadd.f32 %v6802_v1, %v393_v0  ;;  %v432_v22 = vadd.f32 %v6802_v1, %v394_v2  ;;  %v459_v23 = vmax.f32 %v427_v11, 0.0  ;;  %v460_v25 = vmax.f32 %v428_v13, 0.0  ;;  %v1078_v11 = vld [vmem:[#allocation2 + $0x74] sm:$0x1] }
  0x3a   : > { %v461_v26 = vmax.f32 %v429_v15, 0.0  ;;  %v462_v28 = vmax.f32 %v430_v16, 0.0  ;;  %v445_v30 = vmax.f32 %v413_v18, 0.0  ;;  %v446_v31 = vmax.f32 %v414_v19, 0.0  ;;  %v1018_v19 = vld [vmem:[#allocation2 + $0xc] sm:$0xf] }
  0x3b   : > { %5955 = vmatpush3.bf16.msra.mxu0 %v6629_v12  ;;  %v463_v32 = vmax.f32 %v431_v20, 0.0  ;;  %v464_v34 = vmax.f32 %v432_v22, 0.0  ;;  %v5316_v35 = vpack.c.bf16 %v459_v23, %v459_v23  ;;  %v5317_v36 = vpack.c.bf16 %v460_v25, %v460_v25 }
  0x3c   : > { %5956 = vmatprep.subr.bf16.mxu0 %v6639_v14  ;;  %v5318_v37 = vpack.c.bf16 %v461_v26, %v461_v26  ;;  %v5319_v3 = vpack.c.bf16 %v462_v28, %v462_v28  ;;  %v5302_v38 = vpack.c.bf16 %v445_v30, %v445_v30  ;;  %v5303_v39 = vpack.c.bf16 %v446_v31, %v446_v31 }
  0x3d   : > { %v6834_v40 = vpack.c.bf16 %v463_v32, %v463_v32  ;;  %v6836_v41 = vpack.c.bf16 %v464_v34, %v464_v34  ;;  %v815_v12 = vshrl.u32 %v5316_v35, 16  ;;  %v818_v42 = vshll.u32 %v5316_v35, 16  ;;  %v1022_v34 = vld [vmem:[#allocation2 + $0x14] sm:$0x1] }
  0x3e   : > { %v823_v43 = vshrl.u32 %v5317_v36, 16  ;;  %v826_v44 = vshll.u32 %v5317_v36, 16  ;;  %v832_v46 = vshrl.u32 %v5318_v37, 16  ;;  %v835_v47 = vshll.u32 %v5318_v37, 16 }
  0x3f   : > { %5957 = vmatpush3.bf16.msra.mxu0 %v6639_v14  ;;  %v840_v48 = vshrl.u32 %v5319_v3, 16  ;;  %v843_v49 = vshll.u32 %v5319_v3, 16  ;;  %v817_v51 = vrot.slane %v815_v12, 7  ;;  %v1071_v14 = vld [vmem:[#allocation2 + $0x68] sm:$0x1]  ;;  %v696_v55 = vshrl.u32 %v5302_v38, 16 }
  0x40   : > { %5958 = vmatprep.subr.bf16.mxu0 %v6652_v17  ;;  %v825_v52 = vrot.slane %v823_v43, 7  ;;  %v699_v56 = vshll.u32 %v5302_v38, 16  ;;  %v834_v33 = vrot.slane %v832_v46, 7  ;;  %v704_v60 = vshrl.u32 %v5303_v39, 16 }
  0x41   : > { %v842_v58 = vrot.slane %v840_v48, 7  ;;  %v707_v61 = vshll.u32 %v5303_v39, 16  ;;  %v820_v62 = vor.u32 %v818_v42, %v817_v51  ;;  %v821_v63 = vrot.slane %v817_v51, 4  ;;  %v1081_v42 = vld [vmem:[#allocation2 + $0x78] sm:$0xf] }
  0x42   : > { %v828_v0 = vor.u32 %v826_v44, %v825_v52  ;;  %v830_v2 = vrot.slane %v825_v52, 4  ;;  %v837_v13 = vor.u32 %v835_v47, %v834_v33  ;;  %v838_v15 = vrot.slane %v834_v33, 4  ;;  %v1085_v48 = vld [vmem:[#allocation2 + $0x80] sm:$0x1] }
  0x43   : > { %5959 = vmatpush3.bf16.msra.mxu0 %v6652_v17  ;;  %v845_v16 = vor.u32 %v843_v49, %v842_v58  ;;  %v847_v18 = vrot.slane %v842_v58, 4  ;;  %v1068_v22 = vsel %vm6842_vm8, %v820_v62, %v1067_v45  ;;  %v698_v23 = vrot.slane %v696_v55, 7 }
  0x44   : > { %5960 = vmatprep.subr.bf16.mxu0 %v6668_v21  ;;  %v829_v20 = vsel %vm6848_vm9, %v821_v63, %v828_v0  ;;  %v1072_v17 = vsel %vm6675_vm3, %v830_v2, %v1071_v14  ;;  %1069 = vst [vmem:[#allocation2 + $0x60] sm:$0xf] %v1068_v22  ;;  %v1075_v26 = vsel %vm6842_vm8, %v837_v13, %v1074_v59  ;;  %v706_v30 = vrot.slane %v704_v60, 7 }
  0x45   : > { %1070 = vst [vmem:[#allocation2 + $0x64] sm:$0xf] %v829_v20  ;;  %1073 = vst [vmem:[#allocation2 + $0x68] sm:$0x1] %v1072_v17  ;;  %v846_v25 = vsel %vm6848_vm9, %v838_v15, %v845_v16  ;;  %v1079_v28 = vsel %vm6675_vm3, %v847_v18, %v1078_v11  ;;  %v701_v31 = vor.u32 %v699_v56, %v698_v23  ;;  %v702_v32 = vrot.slane %v698_v23, 4 }
  0x46   : > { %1076 = vst [vmem:[#allocation2 + $0x6c] sm:$0xf] %v1075_v26  ;;  %1077 = vst [vmem:[#allocation2 + $0x70] sm:$0xf] %v846_v25  ;;  %v849_v35 = vshrl.u32 %v6834_v40, 16  ;;  %v852_v36 = vshll.u32 %v6834_v40, 16  ;;  %v709_v37 = vor.u32 %v707_v61, %v706_v30  ;;  %v433_v43 = vadd.f32 %v6802_v1, %v6806_v4 }
  0x47   : > { %5961 = vmatpush3.bf16.msra.mxu0 %v6668_v21  ;;  %1080 = vst [vmem:[#allocation2 + $0x74] sm:$0x1] %v1079_v28  ;;  %v711_v3 = vrot.slane %v706_v30, 4  ;;  %v857_v38 = vshrl.u32 %v6836_v41, 16  ;;  %v860_v39 = vshll.u32 %v6836_v41, 16  ;;  %v1019_v21 = vsel %vm6842_vm8, %v701_v31, %v1018_v19  ;;  %v6313_v28 = vld [vmem:[%s8097_s4 + $0x108] sm:$0xff]  }
  0x48   : > { %5962 = vmatprep.subr.bf16.mxu0 %v6700_v29  ;;  %v851_v12 = vrot.slane %v849_v35, 7  ;;  %v434_v44 = vadd.f32 %v6802_v1, %v6809_v5  ;;  %v710_v40 = vsel %vm6848_vm9, %v702_v32, %v709_v37  ;;  %1020 = vst [vmem:[#allocation2 + $0xc] sm:$0xf] %v1019_v21  ;;  %v415_v41 = vadd.f32 %v6802_v1, %v6813_v7  ;;  %v1088_v21 = vld [vmem:[#allocation2 + $0x84] sm:$0xf] }
  0x49   : > { %v1023_v45 = vsel %vm6675_vm3, %v711_v3, %v1022_v34  ;;  %v859_v46 = vrot.slane %v857_v38, 7  ;;  %1021 = vst [vmem:[#allocation2 + $0x10] sm:$0xf] %v710_v40  ;;  %v465_v49 = vmax.f32 %v433_v43, 0.0  ;;  %v416_v14 = vadd.f32 %v6802_v1, %v6816_v8  ;;  %v6919_v3 = vld [vmem:[%s6746_s19 + $0x10] sm:$0xff]  }
  0x4a   : > { %1024 = vst [vmem:[#allocation2 + $0x14] sm:$0x1] %v1023_v45  ;;  %v854_v47 = vor.u32 %v852_v36, %v851_v12  ;;  %v855_v4 = vrot.slane %v851_v12, 4  ;;  %v466_v5 = vmax.f32 %v434_v44, 0.0  ;;  %v447_v55 = vmax.f32 %v415_v41, 0.0 }
  0x4b   : > { %5963 = vmatpush3.bf16.msra.mxu0 %v6700_v29  ;;  %v862_v51 = vor.u32 %v860_v39, %v859_v46  ;;  %v864_v52 = vrot.slane %v859_v46, 4  ;;  %v5322_v7 = vpack.c.bf16 %v465_v49, %v465_v49  ;;  %v5417_v29 = vunpack.c.h.bf16 %v6788_v53  ;;  %v1186_v58 = vld [vmem:[#allocation2 + $0x60] sm:$0xe]  ;;  %v1092_v46 = vld [vmem:[#allocation2 + $0x8c] sm:$0x1] }
  0x4c   : > { %v1147_v56 = vld [vmem:[#allocation2 + $0x64] sm:$0xf]  ;;  %v1082_v33 = vsel %vm6842_vm8, %v854_v47, %v1081_v42  ;;  %v6304_v59 = vld [vmem:[#allocation2 + $0x68] ss:$0 sps:$4 sm:$0x11]   ;;  %v5323_v62 = vpack.c.bf16 %v466_v5, %v466_v5  ;;  %v448_v63 = vmax.f32 %v416_v14, 0.0  ;;  %v6896_v2 = vadd.f32 %v6802_v1, %v6819_v9 }
  0x4d   : > { %v863_v60 = vsel %vm6848_vm9, %v855_v4, %v862_v51  ;;  %1083 = vst [vmem:[#allocation2 + $0x78] sm:$0xf] %v1082_v33  ;;  %v1086_v61 = vsel %vm6675_vm3, %v864_v52, %v1085_v48  ;;  %v4993_v8 = vcombine.low %v1186_v58, %v1147_v56  ;;  %v1149_v0 = vld [vmem:[#allocation2 + $0x70] sm:$0xf]  ;;  %v399_v11 = vmul.f32 %v5416_v57, %v6783_v50  ;;  %v1187_v15 = vld [vmem:[#allocation2 + $0x6c] sm:$0xe] }
  0x4e   : > { %1084 = vst [vmem:[#allocation2 + $0x7c] sm:$0xf] %v863_v60  ;;  %1087 = vst [vmem:[#allocation2 + $0x80] sm:$0x1] %v1086_v61  ;;  %v1621_v13 = vrot.slane %v6304_v59, 1  ;;  %v5304_v18 = vpack.c.bf16 %v447_v55, %v447_v55  ;;  %v6901_v19 = vpack.c.bf16 %v448_v63, %v448_v63  ;;  %v6905_v20 = vadd.f32 %v6802_v1, %v6822_v10  ;;  %v6310_v9 = vld [vmem:[%s8097_s4 + $0xc0] sm:$0xff]  }
  0x4f   : > { %v6308_v16 = vld [vmem:[#allocation2 + $0x74] ss:$0 sps:$4 sm:$0x11]   ;;  %v1620_v22 = vrot.slane %v4993_v8, 1  ;;  %v4994_v17 = vcombine.low %v1187_v15, %v1149_v0  ;;  %v1132_v23 = vld [vmem:[#allocation2 + $0xc] sm:$0xf]  ;;  %v400_v10 = vmul.f32 %v5417_v29, %v6783_v50  ;;  %v6915_v31 = vadd.f32 %v6802_v1, %v399_v11 }
  0x50   : > { %v866_v53 = vshrl.u32 %v5322_v7, 16  ;;  %v869_v57 = vshll.u32 %v5322_v7, 16  ;;  %v1624_v25 = vrot.slane %v6308_v16, 1  ;;  %v1133_v26 = vld [vmem:[#allocation2 + $0x10] sm:$0xf]  ;;  %v874_v30 = vshrl.u32 %v5323_v62, 16 }
  0x51   : > { %v1622_v32 = vsel %vm1595_vm10, %v1620_v22, %v1621_v13  ;;  %v1623_v34 = vrot.slane %v4994_v17, 1  ;;  %v4954_v35 = vcombine.low %v1132_v23, %v1133_v26  ;;  %v6312_v36 = vld [vmem:[#allocation2 + $0x14] ss:$0 sps:$4 sm:$0x11]   ;;  %v877_v39 = vshll.u32 %v5323_v62, 16  ;;  %v6314_v14 = vld [vmem:[%s8097_s4 + $0xc8] sm:$0xff]  }
  0x52   : > { %v868_v37 = vrot.slane %v866_v53, 7  ;;  %5980 = vmatprep.mubr.bf16.mxu1 %v1622_v32  ;;  %v876_v38 = vrot.slane %v874_v30, 7  ;;  %v713_v12 = vshrl.u32 %v5304_v18, 16  ;;  %v716_v42 = vshll.u32 %v5304_v18, 16  ;;  %v1025_v60 = vld [vmem:[#allocation2 + $0x18] sm:$0xf] }
  0x53   : > { %v1625_v43 = vsel %vm1595_vm10, %v1623_v34, %v1624_v25  ;;  %v1352_v44 = vshrl.u32 %v4954_v35, 16  ;;  %v1354_v40 = vshll.u32 %v4954_v35, 16  ;;  %v1359_v45 = vshll.u32 %v6312_v36, 16  ;;  %v6318_v8 = vld [vmem:[%s8097_s4 + $0x110] sm:$0xff]   ;;  %v598_v22 = vld [vmem:[#allocation2 + $0xa4] sm:$0x1] }
  0x54   : > { %5981 = vmatmul.mubr.bf16.vlgmr.msra.gmra.mrb[0].mxu1 %v1625_v43  ;;  %v1188_v47 = vld [vmem:[#allocation2 + $0x78] sm:$0xe]  ;;  %v871_v4 = vor.u32 %v869_v57, %v868_v37  ;;  %v879_v48 = vor.u32 %v877_v39, %v876_v38  ;;  %v438_v49 = vadd.f32 %v6802_v1, %v400_v10  ;;  %v5376_v5 = vunpack.c.l.bf16 %v6919_v3  ;;  %v6322_v15 = vld [vmem:[%s8097_s4 + $0xd0] sm:$0xff]   ;;  %v1029_v25 = vld [vmem:[#allocation2 + $0x20] sm:$0x1] }
  0x55   : > { %v1151_v41 = vld [vmem:[#allocation2 + $0x7c] sm:$0xf]  ;;  %5677 = vmatpush3.bf16.msra.mxu1 %v6310_v9  ;;  %v1356_v51 = vrot.slane %v1354_v40, 1  ;;  %v1361_v52 = vrot.slane %v1359_v45, 1  ;;  %v5377_v33 = vunpack.c.h.bf16 %v6919_v3  ;;  %v872_v7 = vrot.slane %v868_v37, 4  ;;  %v6330_v40 = vld [vmem:[%s8097_s4 + $0x120] sm:$0xff]  }
  0x56   : > { %v6316_v55 = vld [vmem:[#allocation2 + $0x80] ss:$0 sps:$4 sm:$0x11]   ;;  %v4995_v56 = vcombine.low %v1188_v47, %v1151_v41  ;;  %5678 = vmatprep.subr.bf16.mxu1 %v6313_v28  ;;  %v881_v29 = vrot.slane %v876_v38, 4  ;;  %v1089_v58 = vsel %vm6842_vm8, %v871_v4, %v1088_v21  ;;  %v715_v59 = vrot.slane %v713_v12, 7  ;;  %v6325_v26 = vld [vmem:[%s8097_s4 + $0x118] sm:$0xff]  }
  0x57   : > { %v1357_v61 = vor.u32 %v1356_v51, %v1352_v44  ;;  %v1627_v63 = vrot.slane %v6316_v55, 1  ;;  %1090 = vst [vmem:[#allocation2 + $0x84] sm:$0xf] %v1089_v58  ;;  %v721_v0 = vshrl.u32 %v6901_v19, 16  ;;  %v880_v11 = vsel %vm6848_vm9, %v872_v7, %v879_v48  ;;  %v6964_v12 = vld [vmem:[%s6746_s19 + $0x68] sm:$0xff]   ;;  %v6334_v58 = vld [vmem:[%s8097_s4 + $0xe0] sm:$0xff]  }
  0x58   : > { %v1626_v62 = vrot.slane %v4995_v56, 1  ;;  %v1093_v13 = vsel %vm6675_vm3, %v881_v29, %v1092_v46  ;;  %v718_v16 = vor.u32 %v716_v42, %v715_v59  ;;  %v719_v18 = vrot.slane %v715_v59, 4  ;;  %1091 = vst [vmem:[#allocation2 + $0x88] sm:$0xf] %v880_v11  ;;  %v1095_v47 = vld [vmem:[#allocation2 + $0x90] sm:$0xf] }
  0x59   : > { %v1362_v17 = vsel %vm1338_vm5, %v1357_v61, %v1361_v52  ;;  %5679 = vmatpush3.bf16.msra.mxu1 %v6314_v14  ;;  %1094 = vst [vmem:[#allocation2 + $0x8c] sm:$0x1] %v1093_v13  ;;  %v723_v23 = vrot.slane %v721_v0, 7  ;;  %v724_v53 = vshll.u32 %v6901_v19, 16  ;;  %v467_v28 = vmax.f32 %v6896_v2, 0.0  ;;  %v6337_v13 = vld [vmem:[%s8097_s4 + $0x128] sm:$0xff]  }
  0x5a   : > { %v1628_v9 = vsel %vm1595_vm10, %v1626_v62, %v1627_v63  ;;  %1892 = vmatprep.mubr.bf16.mxu0 %v1362_v17  ;;  %v1026_v57 = vsel %vm6842_vm8, %v718_v16, %v1025_v60  ;;  %v468_v30 = vmax.f32 %v6905_v20, 0.0  ;;  %v469_v10 = vmax.f32 %v6915_v31, 0.0  ;;  %5680 = vmatprep.subr.bf16.mxu1 %v6318_v8  ;;  %v1099_v51 = vld [vmem:[#allocation2 + $0x98] sm:$0x1]  ;;  %v1102_v8 = vld [vmem:[#allocation2 + $0x9c] sm:$0xf] }
  0x5b   : > { %5984 = vmatprep.mubr.bf16.mxu1 %v1628_v9  ;;  %1893 = vmatmul.mubr.bf16.gmra.mrb[4].mxu0 %v4954_v35  ;;  %v726_v32 = vor.u32 %v724_v53, %v723_v23  ;;  %v728_v19 = vrot.slane %v723_v23, 4  ;;  %1027 = vst [vmem:[#allocation2 + $0x18] sm:$0xf] %v1026_v57  ;;  %v470_v34 = vmax.f32 %v438_v49, 0.0  ;;  %v599_v36 = vsel %vm6684_vm4, 0, %v598_v22  ;;  %v6326_v35 = vld [vmem:[%s8097_s4 + $0xd8] sm:$0xff]  }
  0x5c   : > { %v5324_v37 = vpack.c.bf16 %v467_v28, %v467_v28  ;;  %v5325_v3 = vpack.c.bf16 %v468_v30, %v468_v30  ;;  %600 = vst [vmem:[#allocation2 + $0xa4] sm:$0x1] %v599_v36  ;;  %v5326_v38 = vpack.c.bf16 %v469_v10, %v469_v10  ;;  %v379_v2 = vmul.f32 %v5376_v5, %v6783_v50  ;;  %v512_v0 = vld [vmem:[#allocation2 + $0x24] sm:$0x1]  ;;  %v568_v11 = vld [vmem:[#allocation2 + $0x2c] sm:$0x1] }
  0x5d   : > { %5681 = vmatpush3.bf16.msra.mxu1 %v6322_v15  ;;  %v727_v20 = vsel %vm6848_vm9, %v719_v18, %v726_v32  ;;  %v1030_v31 = vsel %vm6675_vm3, %v728_v19, %v1029_v25  ;;  %v5327_v39 = vpack.c.bf16 %v470_v34, %v470_v34  ;;  %v380_v21 = vmul.f32 %v5377_v33, %v6783_v50  ;;  %v6338_v34 = vld [vmem:[%s8097_s4 + $0xe8] sm:$0xff]  }
  0x5e   : > { %v1189_v42 = vld [vmem:[#allocation2 + $0x84] sm:$0xe]  ;;  %1028 = vst [vmem:[#allocation2 + $0x1c] sm:$0xf] %v727_v20  ;;  %1031 = vst [vmem:[#allocation2 + $0x20] sm:$0x1] %v1030_v31  ;;  %5682 = vmatprep.subr.bf16.mxu1 %v6325_v26  ;;  %v6970_v45 = vadd.f32 %v6802_v1, %v379_v2  ;;  %v5420_v55 = vunpack.c.l.bf16 %v6964_v12  ;;  %v5421_v59 = vunpack.c.h.bf16 %v6964_v12 }
  0x5f   : > { %v883_v43 = vshrl.u32 %v5324_v37, 16  ;;  %v886_v44 = vshll.u32 %v5324_v37, 16  ;;  %v891_v46 = vshrl.u32 %v5325_v3, 16  ;;  %v894_v41 = vshll.u32 %v5325_v3, 16  ;;  %v1153_v49 = vld [vmem:[#allocation2 + $0x88] sm:$0xf] }
  0x60   : > { %v900_v4 = vshrl.u32 %v5326_v38, 16  ;;  %v903_v48 = vshll.u32 %v5326_v38, 16  ;;  %v908_v52 = vshrl.u32 %v5327_v39, 16  ;;  %v418_v14 = vadd.f32 %v6802_v1, %v380_v21  ;;  %v6320_v56 = vld [vmem:[#allocation2 + $0x8c] ss:$0 sps:$4 sm:$0x11]  }
  0x61   : > { %v885_v5 = vrot.slane %v883_v43, 7  ;;  %v4996_v33 = vcombine.low %v1189_v42, %v1153_v49  ;;  %5683 = vmatpush3.bf16.msra.mxu1 %v6326_v35  ;;  %v893_v7 = vrot.slane %v891_v46, 7  ;;  %v911_v63 = vshll.u32 %v5327_v39, 16  ;;  %v545_v26 = vld [vmem:[#allocation2 + $0xa8] sm:$0x1]  ;;  %v6342_v20 = vld [vmem:[%s8097_s4 + $0x130] sm:$0xff]  }
  0x62   : > { %v902_v29 = vrot.slane %v900_v4, 7  ;;  %5684 = vmatprep.subr.bf16.mxu1 %v6330_v40  ;;  %v910_v62 = vrot.slane %v908_v52, 7  ;;  %v1630_v16 = vrot.slane %v6320_v56, 1  ;;  %v1134_v18 = vld [vmem:[#allocation2 + $0x18] sm:$0xf]  ;;  %v449_v2 = vmax.f32 %v6970_v45, 0.0 }
  0x63   : > { %v888_v60 = vor.u32 %v886_v44, %v885_v5  ;;  %v889_v61 = vrot.slane %v885_v5, 4  ;;  %v1629_v15 = vrot.slane %v4996_v33, 1  ;;  %v896_v22 = vor.u32 %v894_v41, %v893_v7  ;;  %v1106_v25 = vld [vmem:[#allocation2 + $0xa4] sm:$0x1]  ;;  %v601_v40 = vld [vmem:[#allocation2 + $0xb0] sm:$0x1] }
  0x64   : > { %v898_v17 = vrot.slane %v893_v7, 4  ;;  %v905_v23 = vor.u32 %v903_v48, %v902_v29  ;;  %v906_v53 = vrot.slane %v902_v29, 4  ;;  %v913_v57 = vor.u32 %v911_v63, %v910_v62  ;;  %v5523_v4 = vld [vmem:[%s6746_s19 + $0x70] sm:$0xff]  }
  0x65   : > { %v1096_v9 = vsel %vm6842_vm8, %v888_v60, %v1095_v47  ;;  %v1631_v28 = vsel %vm1595_vm10, %v1629_v15, %v1630_v16  ;;  %v1135_v30 = vld [vmem:[#allocation2 + $0x1c] sm:$0xf]  ;;  %v897_v10 = vsel %vm6848_vm9, %v889_v61, %v896_v22  ;;  %v915_v19 = vrot.slane %v910_v62, 4  ;;  %5685 = vmatpush3.bf16.msra.mxu1 %v6334_v58  ;;  %v6324_v37 = vld [vmem:[#allocation2 + $0x20] ss:$0 sps:$4 sm:$0x11]  }
  0x66   : > { %1097 = vst [vmem:[#allocation2 + $0x90] sm:$0xf] %v1096_v9  ;;  %v1100_v32 = vsel %vm6675_vm3, %v898_v17, %v1099_v51  ;;  %5985 = vmatmul.mubr.bf16.gmra.mrb[4].mxu1 %v1631_v28  ;;  %v6991_v36 = vcombine.low %v1134_v18, %v1135_v30  ;;  %1098 = vst [vmem:[#allocation2 + $0x94] sm:$0xf] %v897_v10  ;;  %v914_v3 = vsel %vm6848_vm9, %v906_v53, %v913_v57  ;;  %v6346_v48 = vld [vmem:[%s8097_s4 + $0xf0] sm:$0xff]   ;;  %v7024_v61 = vld [vmem:[%s6746_s19 + $0x18] sm:$0xff]  }
  0x67   : > { %1101 = vst [vmem:[#allocation2 + $0x98] sm:$0x1] %v1100_v32  ;;  %v1103_v38 = vsel %vm6842_vm8, %v905_v23, %v1102_v8  ;;  %5686 = vmatprep.subr.bf16.mxu1 %v6337_v13  ;;  %1105 = vst [vmem:[#allocation2 + $0xa0] sm:$0xf] %v914_v3  ;;  %v1107_v31 = vsel %vm6675_vm3, %v915_v19, %v1106_v25  ;;  %v450_v35 = vmax.f32 %v418_v14, 0.0  ;;  %v513_v39 = vsel %vm6675_vm3, 0, %v512_v0 }
  0x68   : > { %1104 = vst [vmem:[#allocation2 + $0x9c] sm:$0xf] %v1103_v38  ;;  %v569_v21 = vsel %vm6684_vm4, 0, %v568_v11  ;;  %v1364_v12 = vshrl.u32 %v6991_v36, 16  ;;  %v1366_v42 = vshll.u32 %v6991_v36, 16  ;;  %v1371_v43 = vshll.u32 %v6324_v37, 16 }
  0x69   : > { %1108 = vst [vmem:[#allocation2 + $0xa4] sm:$0x1] %v1107_v31  ;;  %514 = vst [vmem:[#allocation2 + $0x24] sm:$0x1] %v513_v39  ;;  %v5306_v44 = vpack.c.bf16 %v449_v2, %v449_v2  ;;  %v5307_v45 = vpack.c.bf16 %v450_v35, %v450_v35  ;;  %5687 = vmatpush3.bf16.msra.mxu1 %v6338_v34  ;;  %v401_v46 = vmul.f32 %v5420_v55, %v6783_v50  ;;  %v6349_v14 = vld [vmem:[%s8097_s4 + $0x138] sm:$0xff]   ;;  %v7034_v17 = vld [vmem:[%s8097_s4 + $0x140] sm:$0xff]  }
  0x6a   : > { %570 = vst [vmem:[#allocation2 + $0x2c] sm:$0x1] %v569_v21  ;;  %v402_v41 = vmul.f32 %v5421_v59, %v6783_v50  ;;  %v546_v47 = vsel %vm6675_vm3, 0, %v545_v26  ;;  %v1368_v49 = vrot.slane %v1366_v42, 1  ;;  %v1373_v5 = vrot.slane %v1371_v43, 1  ;;  %5688 = vmatprep.subr.bf16.mxu1 %v6342_v20  ;;  %v6350_v62 = vld [vmem:[%s8097_s4 + $0xf8] sm:$0xff]  }
  0x6b   : > { %v730_v51 = vshrl.u32 %v5306_v44, 16  ;;  %v733_v52 = vshll.u32 %v5306_v44, 16  ;;  %547 = vst [vmem:[#allocation2 + $0xa8] sm:$0x1] %v546_v47  ;;  %v738_v55 = vshrl.u32 %v5307_v45, 16  ;;  %v741_v56 = vshll.u32 %v5307_v45, 16 }
  0x6c   : > { %v439_v33 = vadd.f32 %v6802_v1, %v401_v46  ;;  %v1369_v7 = vor.u32 %v1368_v49, %v1364_v12  ;;  %v602_v59 = vsel %vm6684_vm4, 0, %v601_v40  ;;  %v5424_v60 = vunpack.c.l.bf16 %v5523_v4  ;;  %v548_v21 = vld [vmem:[#allocation2 + $0xb4] sm:$0x1]  ;;  %v604_v12 = vld [vmem:[#allocation2 + $0xbc] sm:$0x1] }
  0x6d   : > { %v1190_v29 = vld [vmem:[#allocation2 + $0x90] sm:$0xe]  ;;  %v732_v58 = vrot.slane %v730_v51, 7  ;;  %v1155_v63 = vld [vmem:[#allocation2 + $0x94] sm:$0xf]  ;;  %v740_v8 = vrot.slane %v738_v55, 7  ;;  %v5425_v11 = vunpack.c.h.bf16 %v5523_v4  ;;  %5689 = vmatpush3.bf16.msra.mxu1 %v6346_v48  ;;  %v440_v22 = vadd.f32 %v6802_v1, %v402_v41 }
  0x6e   : > { %v471_v0 = vmax.f32 %v439_v33, 0.0  ;;  %603 = vst [vmem:[#allocation2 + $0xb0] sm:$0x1] %v602_v59  ;;  %v1374_v13 = vsel %vm1338_vm5, %v1369_v7, %v1373_v5  ;;  %v6328_v15 = vld [vmem:[#allocation2 + $0x98] ss:$0 sps:$4 sm:$0x11]   ;;  %v4997_v16 = vcombine.low %v1190_v29, %v1155_v63  ;;  %5690 = vmatprep.subr.bf16.mxu1 %v6349_v14  ;;  %v403_v25 = vmul.f32 %v5424_v60, %v6783_v50 }
  0x6f   : > { %v735_v18 = vor.u32 %v733_v52, %v732_v58  ;;  %1900 = vmatprep.mubr.bf16.mxu0 %v1374_v13  ;;  %v1157_v9 = vld [vmem:[#allocation2 + $0xa0] sm:$0xf]  ;;  %v1191_v23 = vld [vmem:[#allocation2 + $0x9c] sm:$0xe]  ;;  %v743_v53 = vor.u32 %v741_v56, %v740_v8  ;;  %v404_v26 = vmul.f32 %v5425_v11, %v6783_v50  ;;  %v1633_v30 = vrot.slane %v6328_v15, 1 }
  0x70   : > { %v5328_v57 = vpack.c.bf16 %v471_v0, %v471_v0  ;;  %1901 = vmatmul.mubr.bf16.gmra.mrb[8].mxu0 %v6991_v36  ;;  %v1632_v28 = vrot.slane %v4997_v16, 1  ;;  %v6332_v10 = vld [vmem:[#allocation2 + $0xa4] ss:$0 sps:$4 sm:$0x11]   ;;  %v4998_v32 = vcombine.low %v1191_v23, %v1157_v9  ;;  %v5380_v19 = vunpack.c.l.bf16 %v7024_v61  ;;  %v515_v51 = vld [vmem:[#allocation2 + $0x30] sm:$0x1] }
  0x71   : > { %v736_v34 = vrot.slane %v732_v58, 4  ;;  %v745_v37 = vrot.slane %v740_v8, 4  ;;  %v1032_v3 = vld [vmem:[#allocation2 + $0x24] sm:$0xf]  ;;  %v1036_v38 = vld [vmem:[#allocation2 + $0x2c] sm:$0x1]  ;;  %v441_v2 = vadd.f32 %v6802_v1, %v403_v25  ;;  %v442_v20 = vadd.f32 %v6802_v1, %v404_v26  ;;  %5691 = vmatpush3.bf16.msra.mxu1 %v6350_v62 }
  0x72   : > { %v1634_v31 = vsel %vm1595_vm10, %v1632_v28, %v1633_v30  ;;  %v1635_v35 = vrot.slane %v4998_v32, 1  ;;  %v1636_v39 = vrot.slane %v6332_v10, 1  ;;  %v1033_v36 = vsel %vm6842_vm8, %v735_v18, %v1032_v3  ;;  %5996 = vmatprep.subr.bf16.mxu1 %v7034_v17  ;;  %v1109_v52 = vld [vmem:[#allocation2 + $0xa8] sm:$0xf]  ;;  %v571_v7 = vld [vmem:[#allocation2 + $0x38] sm:$0x1] }
  0x73   : > { %5988 = vmatprep.mubr.bf16.mxu1 %v1634_v31  ;;  %v744_v42 = vsel %vm6848_vm9, %v736_v34, %v743_v53  ;;  %1034 = vst [vmem:[#allocation2 + $0x24] sm:$0xf] %v1033_v36  ;;  %v1037_v43 = vsel %vm6675_vm3, %v745_v37, %v1036_v38  ;;  %v472_v44 = vmax.f32 %v440_v22, 0.0  ;;  %v917_v40 = vshrl.u32 %v5328_v57, 16  ;;  %v2206_v32 = vld [vmem:[#allocation2 + $0xc] sm:$0xf] }
  0x74   : > { %v1637_v45 = vsel %vm1595_vm10, %v1635_v35, %v1636_v39  ;;  %1035 = vst [vmem:[#allocation2 + $0x28] sm:$0xf] %v744_v42  ;;  %1038 = vst [vmem:[#allocation2 + $0x2c] sm:$0x1] %v1037_v43  ;;  %v920_v46 = vshll.u32 %v5328_v57, 16  ;;  %v473_v41 = vmax.f32 %v441_v2, 0.0  ;;  %v5381_v56 = vunpack.c.h.bf16 %v7024_v61 }
  0x75   : > { %v474_v47 = vmax.f32 %v442_v20, 0.0  ;;  %5989 = vmatmul.mubr.bf16.gmra.mrb[8].mxu1 %v1637_v45  ;;  %v5329_v4 = vpack.c.bf16 %v472_v44, %v472_v44  ;;  %v919_v48 = vrot.slane %v917_v40, 7  ;;  %v549_v49 = vsel %vm6675_vm3, 0, %v548_v21  ;;  %v1113_v15 = vld [vmem:[#allocation2 + $0xb0] sm:$0x1]  ;;  %v5513_v40 = vld [vmem:[%s6746_s19 + $0x20] sm:$0xff]  }
  0x76   : > { %v605_v5 = vsel %vm6684_vm4, 0, %v604_v12  ;;  %550 = vst [vmem:[#allocation2 + $0xb4] sm:$0x1] %v549_v49  ;;  %v5330_v14 = vpack.c.bf16 %v473_v41, %v473_v41  ;;  %v381_v33 = vmul.f32 %v5380_v19, %v6783_v50  ;;  %v382_v16 = vmul.f32 %v5381_v56, %v6783_v50  ;;  %v6352_v57 = vld [vmem:[#allocation2 + $0x14] ss:$0 sps:$4 sm:$0x11]  }
  0x77   : > { %606 = vst [vmem:[#allocation2 + $0xbc] sm:$0x1] %v605_v5  ;;  %v5331_v55 = vpack.c.bf16 %v474_v47, %v474_v47  ;;  %v922_v29 = vor.u32 %v920_v46, %v919_v48  ;;  %v923_v58 = vrot.slane %v919_v48, 4  ;;  %v925_v59 = vshrl.u32 %v5329_v4, 16  ;;  %v2207_v2 = vld [vmem:[#allocation2 + $0x10] sm:$0xf] }
  0x78   : > { %v928_v60 = vshll.u32 %v5329_v4, 16  ;;  %v934_v62 = vshrl.u32 %v5330_v14, 16  ;;  %v937_v63 = vshll.u32 %v5330_v14, 16  ;;  %v419_v61 = vadd.f32 %v6802_v1, %v381_v33  ;;  %v2208_v56 = vld [vmem:[#allocation2 + $0x18] sm:$0xf] }
  0x79   : > { %v942_v8 = vshrl.u32 %v5331_v55, 16  ;;  %v945_v0 = vshll.u32 %v5331_v55, 16  ;;  %v927_v11 = vrot.slane %v925_v59, 7  ;;  %v1110_v13 = vsel %vm6842_vm8, %v922_v29, %v1109_v52  ;;  %v2209_v59 = vld [vmem:[#allocation2 + $0x1c] sm:$0xf] }
  0x7a   : > { %v1136_v18 = vld [vmem:[#allocation2 + $0x24] sm:$0xf]  ;;  %1111 = vst [vmem:[#allocation2 + $0xa8] sm:$0xf] %v1110_v13  ;;  %v936_v22 = vrot.slane %v934_v62, 7  ;;  %v516_v23 = vsel %vm6675_vm3, 0, %v515_v51  ;;  %v420_v30 = vadd.f32 %v6802_v1, %v382_v16  ;;  %v7077_v49 = vcombine.low %v2206_v32, %v2207_v2 }
  0x7b   : > { %v944_v9 = vrot.slane %v942_v8, 7  ;;  %v572_v53 = vsel %vm6684_vm4, 0, %v571_v7  ;;  %v1137_v25 = vld [vmem:[#allocation2 + $0x28] sm:$0xf]  ;;  %v930_v26 = vor.u32 %v928_v60, %v927_v11  ;;  %v932_v28 = vrot.slane %v927_v11, 4 }
  0x7c   : > { %v451_v10 = vmax.f32 %v419_v61, 0.0  ;;  %517 = vst [vmem:[#allocation2 + $0x30] sm:$0x1] %v516_v23  ;;  %573 = vst [vmem:[#allocation2 + $0x38] sm:$0x1] %v572_v53  ;;  %v4956_v19 = vcombine.low %v1136_v18, %v1137_v25  ;;  %v939_v37 = vor.u32 %v937_v63, %v936_v22  ;;  %v940_v3 = vrot.slane %v936_v22, 4 }
  0x7d   : > { %v6336_v34 = vld [vmem:[#allocation2 + $0x2c] ss:$0 sps:$4 sm:$0x11]   ;;  %v947_v38 = vor.u32 %v945_v0, %v944_v9  ;;  %v931_v20 = vsel %vm6848_vm9, %v923_v58, %v930_v26  ;;  %v1114_v31 = vsel %vm6675_vm3, %v932_v28, %v1113_v15  ;;  %v949_v35 = vrot.slane %v944_v9, 4  ;;  %v1116_v39 = vld [vmem:[#allocation2 + $0xb4] sm:$0xf] }
  0x7e   : > { %v1120_v36 = vld [vmem:[#allocation2 + $0xbc] sm:$0x1]  ;;  %v452_v21 = vmax.f32 %v420_v30, 0.0  ;;  %v1376_v12 = vshrl.u32 %v4956_v19, 16  ;;  %v1378_v42 = vshll.u32 %v4956_v19, 16  ;;  %v1383_v43 = vshll.u32 %v6336_v34, 16 }
  0x7f   : > { %1112 = vst [vmem:[#allocation2 + $0xac] sm:$0xf] %v931_v20  ;;  %1115 = vst [vmem:[#allocation2 + $0xb0] sm:$0x1] %v1114_v31  ;;  %v948_v44 = vsel %vm6848_vm9, %v940_v3, %v947_v38  ;;  %v1117_v45 = vsel %vm6842_vm8, %v939_v37, %v1116_v39  ;;  %v1121_v46 = vsel %vm6675_vm3, %v949_v35, %v1120_v36  ;;  %v2422_v5 = vshll.u32 %v6352_v57, 16  ;;  %v7082_v11 = vld [vmem:[%s6746_s19 + $0x28] sm:$0xff]  }
  0x80   : > { %1119 = vst [vmem:[#allocation2 + $0xb8] sm:$0xf] %v948_v44  ;;  %v5308_v41 = vpack.c.bf16 %v451_v10, %v451_v10  ;;  %v5309_v47 = vpack.c.bf16 %v452_v21, %v452_v21  ;;  %v1380_v4 = vrot.slane %v1378_v42, 1  ;;  %v1385_v48 = vrot.slane %v1383_v43, 1  ;;  %1118 = vst [vmem:[#allocation2 + $0xb4] sm:$0xf] %v1117_v45 }
  0x81   : > { %1122 = vst [vmem:[#allocation2 + $0xbc] sm:$0x1] %v1121_v46  ;;  %v5384_v14 = vunpack.c.l.bf16 %v5513_v40  ;;  %v5385_v55 = vunpack.c.h.bf16 %v5513_v40  ;;  %v1192_v7 = vld [vmem:[#allocation2 + $0xa8] sm:$0xe]  ;;  %v2415_v63 = vshrl.u32 %v7077_v49, 16  ;;  %v2417_v8 = vshll.u32 %v7077_v49, 16 }
  0x82   : > { %v747_v51 = vshrl.u32 %v5308_v41, 16  ;;  %v750_v52 = vshll.u32 %v5308_v41, 16  ;;  %v1381_v33 = vor.u32 %v1380_v4, %v1376_v12  ;;  %v755_v29 = vshrl.u32 %v5309_v47, 16  ;;  %v6389_v22 = vld [vmem:[%s8097_s4 + $0x1c0] sm:$0xff]   ;;  %v518_v32 = vld [vmem:[#allocation2 + $0x3c] sm:$0x1] }
  0x83   : > { %v758_v58 = vshll.u32 %v5309_v47, 16  ;;  %v1039_v62 = vld [vmem:[#allocation2 + $0x30] sm:$0xf]  ;;  %v2424_v0 = vrot.slane %v2422_v5, 1  ;;  %v1043_v16 = vld [vmem:[#allocation2 + $0x38] sm:$0x1]  ;;  %v383_v61 = vmul.f32 %v5384_v14, %v6783_v50  ;;  %v384_v18 = vmul.f32 %v5385_v55, %v6783_v50  ;;  %5812 = vmatprep.subr.bf16.mxu0 %v6389_v22 }
  0x84   : > { %v749_v60 = vrot.slane %v747_v51, 7  ;;  %v1386_v13 = vsel %vm1338_vm5, %v1381_v33, %v1385_v48  ;;  %v757_v15 = vrot.slane %v755_v29, 7  ;;  %v2419_v57 = vrot.slane %v2417_v8, 1  ;;  %v6357_v37 = vld [vmem:[#allocation2 + $0x20] ss:$0 sps:$4 sm:$0x11]  }
  0x85   : > { %1908 = vmatprep.mubr.bf16.mxu0 %v1386_v13  ;;  %v7097_v34 = vcombine.low %v2208_v56, %v2209_v59  ;;  %v422_v20 = vadd.f32 %v6802_v1, %v384_v18  ;;  %v574_v31 = vld [vmem:[#allocation2 + $0x44] sm:$0x1]  ;;  %v5388_v12 = vunpack.c.l.bf16 %v7082_v11  ;;  %v519_v4 = vsel %vm6675_vm3, 0, %v518_v32 }
  0x86   : > { %v7090_v9 = vld [vmem:[#allocation2 + $0xac] sm:$0xf]  ;;  %v752_v23 = vor.u32 %v750_v52, %v749_v60  ;;  %v753_v53 = vrot.slane %v749_v60, 4  ;;  %1909 = vmatmul.mubr.bf16.gmra.mrb[12].mxu0 %v4956_v19  ;;  %v7092_v25 = vld [vmem:[#allocation2 + $0xb0] ss:$0 sps:$4 sm:$0x11]   ;;  %v760_v30 = vor.u32 %v758_v58, %v757_v15  ;;  %v2420_v2 = vor.u32 %v2419_v57, %v2415_v63 }
  0x87   : > { %v4999_v26 = vcombine.low %v1192_v7, %v7090_v9  ;;  %v7095_v28 = vld [vmem:[#allocation2 + $0xb8] sm:$0xf]  ;;  %v762_v10 = vrot.slane %v757_v15, 4  ;;  %v1193_v3 = vld [vmem:[#allocation2 + $0xb4] sm:$0xe]  ;;  %v421_v19 = vadd.f32 %v6802_v1, %v383_v61  ;;  %v1639_v39 = vrot.slane %v7092_v25, 1 }
  0x88   : > { %v1040_v38 = vsel %vm6842_vm8, %v752_v23, %v1039_v62  ;;  %v7104_v36 = vld [vmem:[#allocation2 + $0xbc] ss:$0 sps:$4 sm:$0x11]   ;;  %v5000_v21 = vcombine.low %v1193_v3, %v7095_v28  ;;  %v761_v42 = vsel %vm6848_vm9, %v753_v53, %v760_v30  ;;  %v2425_v44 = vsel %vm1338_vm5, %v2420_v2, %v2424_v0  ;;  %v521_v52 = vld [vmem:[#allocation2 + $0x48] sm:$0x1]  ;;  %v7129_v53 = vld [vmem:[%s6746_s19 + $0x30] sm:$0xff]  }
  0x89   : > { %v1638_v35 = vrot.slane %v4999_v26, 1  ;;  %1041 = vst [vmem:[#allocation2 + $0x30] sm:$0xf] %v1040_v38  ;;  %v1044_v43 = vsel %vm6675_vm3, %v762_v10, %v1043_v16  ;;  %v453_v40 = vmax.f32 %v421_v19, 0.0  ;;  %v1642_v41 = vrot.slane %v7104_v36, 1 }
  0x8a   : > { %v1641_v46 = vrot.slane %v5000_v21, 1  ;;  %1042 = vst [vmem:[#allocation2 + $0x34] sm:$0xf] %v761_v42  ;;  %1045 = vst [vmem:[#allocation2 + $0x38] sm:$0x1] %v1044_v43  ;;  %v454_v47 = vmax.f32 %v422_v20, 0.0  ;;  %v5389_v59 = vunpack.c.h.bf16 %v7082_v11  ;;  %v385_v60 = vmul.f32 %v5388_v12, %v6783_v50 }
  0x8b   : > { %v1640_v45 = vsel %vm1595_vm10, %v1638_v35, %v1639_v39  ;;  %v575_v48 = vsel %vm6684_vm4, 0, %v574_v31  ;;  %v5310_v5 = vpack.c.bf16 %v453_v40, %v453_v40  ;;  %v2427_v51 = vshrl.u32 %v7097_v34, 16  ;;  %520 = vst [vmem:[#allocation2 + $0x3c] sm:$0x1] %v519_v4  ;;  %v577_v7 = vld [vmem:[#allocation2 + $0x50] sm:$0x1] }
  0x8c   : > { %5992 = vmatprep.mubr.bf16.mxu1 %v1640_v45  ;;  %v1643_v14 = vsel %vm1595_vm10, %v1641_v46, %v1642_v41  ;;  %576 = vst [vmem:[#allocation2 + $0x44] sm:$0x1] %v575_v48  ;;  %v5311_v55 = vpack.c.bf16 %v454_v47, %v454_v47  ;;  %v2429_v56 = vshll.u32 %v7097_v34, 16  ;;  %v2434_v33 = vshll.u32 %v6357_v37, 16  ;;  %v2210_v62 = vld [vmem:[#allocation2 + $0x24] sm:$0xf] }
  0x8d   : > { %5993 = vmatmul.mubr.bf16.gmra.mrb[12].mxu1 %v1643_v14  ;;  %v764_v29 = vshrl.u32 %v5310_v5, 16  ;;  %v767_v58 = vshll.u32 %v5310_v5, 16  ;;  %v2211_v63 = vld [vmem:[#allocation2 + $0x28] sm:$0xf]  ;;  %v386_v18 = vmul.f32 %v5389_v59, %v6783_v50  ;;  %v423_v22 = vadd.f32 %v6802_v1, %v385_v60  ;;  %v7158_v14 = vld [vmem:[%s8097_s4 + $0x150] sm:$0xff]  }
  0x8e   : > { %2959 = vmatprep.mubr.bf16.mxu1 %v2425_v44  ;;  %v772_v8 = vshrl.u32 %v5311_v55, 16  ;;  %v775_v0 = vshll.u32 %v5311_v55, 16  ;;  %v2431_v13 = vrot.slane %v2429_v56, 1  ;;  %v2436_v15 = vrot.slane %v2434_v33, 1  ;;  %v6362_v21 = vld [vmem:[%s8097_s4 + $0x148] sm:$0xff]  }
  0x8f   : > { %v766_v61 = vrot.slane %v764_v29, 7  ;;  %v522_v23 = vsel %vm6675_vm3, 0, %v521_v52  ;;  %v578_v26 = vsel %vm6684_vm4, 0, %v577_v7  ;;  %v7133_v30 = vcombine.low %v2210_v62, %v2211_v63  ;;  %v6361_v2 = vld [vmem:[#allocation2 + $0x2c] ss:$0 sps:$4 sm:$0x11]  }
  0x90   : > { %v1138_v16 = vld [vmem:[#allocation2 + $0x30] sm:$0xf]  ;;  %v774_v11 = vrot.slane %v772_v8, 7  ;;  %v2432_v57 = vor.u32 %v2431_v13, %v2427_v51  ;;  %523 = vst [vmem:[#allocation2 + $0x48] sm:$0x1] %v522_v23  ;;  %v424_v3 = vadd.f32 %v6802_v1, %v386_v18  ;;  %v455_v38 = vmax.f32 %v423_v22, 0.0 }
  0x91   : > { %v7135_v10 = vld [vmem:[#allocation2 + $0x34] sm:$0xf]  ;;  %v769_v32 = vor.u32 %v767_v58, %v766_v61  ;;  %v770_v37 = vrot.slane %v766_v61, 4  ;;  %579 = vst [vmem:[#allocation2 + $0x50] sm:$0x1] %v578_v26  ;;  %v2439_v40 = vshrl.u32 %v7133_v30, 16  ;;  %v5392_v45 = vunpack.c.l.bf16 %v7129_v53 }
  0x92   : > { %v4957_v19 = vcombine.low %v1138_v16, %v7135_v10  ;;  %v7139_v20 = vld [vmem:[#allocation2 + $0x38] ss:$0 sps:$4 sm:$0x11]   ;;  %v777_v31 = vor.u32 %v775_v0, %v774_v11  ;;  %v779_v35 = vrot.slane %v774_v11, 4  ;;  %v2437_v39 = vsel %vm1338_vm5, %v2432_v57, %v2436_v15  ;;  %v1046_v12 = vld [vmem:[#allocation2 + $0x3c] sm:$0xf] }
  0x93   : > { %v1050_v42 = vld [vmem:[#allocation2 + $0x44] sm:$0x1]  ;;  %v456_v43 = vmax.f32 %v424_v3, 0.0  ;;  %v5312_v44 = vpack.c.bf16 %v455_v38, %v455_v38  ;;  %v1395_v47 = vshll.u32 %v7139_v20, 16  ;;  %v1047_v48 = vsel %vm6842_vm8, %v769_v32, %v1046_v12  ;;  %v524_v7 = vld [vmem:[#allocation2 + $0x54] sm:$0x1] }
  0x94   : > { %v1388_v46 = vshrl.u32 %v4957_v19, 16  ;;  %v1390_v41 = vshll.u32 %v4957_v19, 16  ;;  %v778_v4 = vsel %vm6848_vm9, %v770_v37, %v777_v31  ;;  %v1051_v5 = vsel %vm6675_vm3, %v779_v35, %v1050_v42  ;;  %1048 = vst [vmem:[#allocation2 + $0x3c] sm:$0xf] %v1047_v48  ;;  %v580_v62 = vld [vmem:[#allocation2 + $0x5c] sm:$0x1] }
  0x95   : > { %2960 = vmatmul.mubr.bf16.vlgmr.msra.gmra.mrb[16].mxu1 %v7077_v49  ;;  %1049 = vst [vmem:[#allocation2 + $0x40] sm:$0xf] %v778_v4  ;;  %v5313_v51 = vpack.c.bf16 %v456_v43, %v456_v43  ;;  %v781_v52 = vshrl.u32 %v5312_v44, 16  ;;  %v1397_v56 = vrot.slane %v1395_v47, 1  ;;  %1052 = vst [vmem:[#allocation2 + $0x44] sm:$0x1] %v1051_v5  ;;  %v5393_v13 = vunpack.c.h.bf16 %v7129_v53 }
  0x96   : > { %v1392_v55 = vrot.slane %v1390_v41, 1  ;;  %5997 = vmatpush3.bf16.msra.mxu1 %v7034_v17  ;;  %2967 = vmatprep.mubr.bf16.mxu1 %v2437_v39  ;;  %v784_v49 = vshll.u32 %v5312_v44, 16  ;;  %v2441_v33 = vshll.u32 %v7133_v30, 16  ;;  %v2446_v60 = vshll.u32 %v6361_v2, 16  ;;  %v2212_v15 = vld [vmem:[#allocation2 + $0x30] sm:$0xf] }
  0x97   : > { %v783_v29 = vrot.slane %v781_v52, 7  ;;  %v789_v58 = vshrl.u32 %v5313_v51, 16  ;;  %v792_v59 = vshll.u32 %v5313_v51, 16  ;;  %5998 = vmatprep.subr.bf16.mxu1 %v6362_v21  ;;  %v1053_v8 = vld [vmem:[#allocation2 + $0x48] sm:$0xf]  ;;  %v387_v17 = vmul.f32 %v5392_v45, %v6783_v50  ;;  %v6374_v57 = vld [vmem:[%s8097_s4 + $0x158] sm:$0xff]  }
  0x98   : > { %v1393_v63 = vor.u32 %v1392_v55, %v1388_v46  ;;  %v2443_v0 = vrot.slane %v2441_v33, 1  ;;  %v2213_v16 = vld [vmem:[#allocation2 + $0x34] sm:$0xf]  ;;  %v2448_v23 = vrot.slane %v2446_v60, 1  ;;  %v1057_v32 = vld [vmem:[#allocation2 + $0x50] sm:$0x1]  ;;  %v388_v53 = vmul.f32 %v5393_v13, %v6783_v50 }
  0x99   : > { %v786_v61 = vor.u32 %v784_v49, %v783_v29  ;;  %v787_v18 = vrot.slane %v783_v29, 4  ;;  %v791_v22 = vrot.slane %v789_v58, 7  ;;  %v6366_v11 = vld [vmem:[#allocation2 + $0x38] ss:$0 sps:$4 sm:$0x11]   ;;  %v425_v3 = vadd.f32 %v6802_v1, %v387_v17  ;;  %v6379_v52 = vld [vmem:[%s8097_s4 + $0x160] sm:$0xff]  }
  0x9a   : > { %v1398_v26 = vsel %vm1338_vm5, %v1393_v63, %v1397_v56  ;;  %v2444_v37 = vor.u32 %v2443_v0, %v2439_v40  ;;  %5999 = vmatpush3.bf16.msra.mxu1 %v6362_v21  ;;  %v525_v35 = vsel %vm6675_vm3, 0, %v524_v7  ;;  %v426_v12 = vadd.f32 %v6802_v1, %v388_v53  ;;  %v1146_v60 = vld [vmem:[#allocation2 + $0x60] sm:$0xf] }
  0x9b   : > { %1916 = vmatprep.mubr.bf16.mxu0 %v1398_v26  ;;  %v794_v38 = vor.u32 %v792_v59, %v791_v22  ;;  %v796_v2 = vrot.slane %v791_v22, 4  ;;  %v1054_v31 = vsel %vm6842_vm8, %v786_v61, %v1053_v8  ;;  %6000 = vmatprep.subr.bf16.mxu1 %v7158_v14  ;;  %v457_v42 = vmax.f32 %v425_v3, 0.0  ;;  %526 = vst [vmem:[#allocation2 + $0x54] sm:$0x1] %v525_v35  ;;  %v1140_v44 = vld [vmem:[#allocation2 + $0x3c] sm:$0xf] }
  0x9c   : > { %1917 = vmatmul.mubr.bf16.gmra.mrb[16].mxu0 %v4957_v19  ;;  %v7175_v39 = vld [vmem:[#allocation2 + $0x40] sm:$0xf]  ;;  %1055 = vst [vmem:[#allocation2 + $0x48] sm:$0xf] %v1054_v31  ;;  %v2449_v21 = vsel %vm1338_vm5, %v2444_v37, %v2448_v23  ;;  %v581_v43 = vsel %vm6684_vm4, 0, %v580_v62  ;;  %v7186_v45 = vcombine.low %v2212_v15, %v2213_v16  ;;  %v2458_v46 = vshll.u32 %v6366_v11, 16 }
  0x9d   : > { %2968 = vmatmul.mubr.bf16.gmra.mrb[20].mxu1 %v7097_v34  ;;  %v795_v40 = vsel %vm6848_vm9, %v787_v18, %v794_v38  ;;  %v1058_v19 = vsel %vm6675_vm3, %v796_v2, %v1057_v32  ;;  %582 = vst [vmem:[#allocation2 + $0x5c] sm:$0x1] %v581_v43  ;;  %v4958_v41 = vcombine.low %v1140_v44, %v7175_v39  ;;  %v7189_v47 = vld [vmem:[#allocation2 + $0x44] ss:$0 sps:$4 sm:$0x11]   ;;  %v458_v4 = vmax.f32 %v426_v12, 0.0 }
  0x9e   : > { %1056 = vst [vmem:[#allocation2 + $0x4c] sm:$0xf] %v795_v40  ;;  %1059 = vst [vmem:[#allocation2 + $0x50] sm:$0x1] %v1058_v19  ;;  %2975 = vmatprep.mubr.bf16.mxu1 %v2449_v21  ;;  %v5314_v48 = vpack.c.bf16 %v457_v42, %v457_v42  ;;  %6001 = vmatpush3.bf16.msra.mxu1 %v7158_v14  ;;  %v2451_v34 = vshrl.u32 %v7186_v45, 16  ;;  %v2453_v5 = vshll.u32 %v7186_v45, 16 }
  0x9f   : > { %v7194_v51 = vld [vmem:[#allocation2 + $0x40] sm:$0xf]  ;;  %6002 = vmatprep.subr.bf16.mxu1 %v6374_v57  ;;  %v1400_v55 = vshrl.u32 %v4958_v41, 16  ;;  %v1402_v56 = vshll.u32 %v4958_v41, 16  ;;  %v1407_v49 = vshll.u32 %v7189_v47, 16  ;;  %v5315_v33 = vpack.c.bf16 %v458_v4, %v458_v4  ;;  %v6384_v61 = vld [vmem:[%s8097_s4 + $0x168] sm:$0xff]  }
  0xa0   : > { %v798_v7 = vshrl.u32 %v5314_v48, 16  ;;  %v801_v29 = vshll.u32 %v5314_v48, 16  ;;  %v2455_v58 = vrot.slane %v2453_v5, 1  ;;  %v2460_v14 = vrot.slane %v2458_v46, 1  ;;  %v2214_v59 = vld [vmem:[#allocation2 + $0x3c] sm:$0xf] }
  0xa1   : > { %v1404_v62 = vrot.slane %v1402_v56, 1  ;;  %v1409_v63 = vrot.slane %v1407_v49, 1  ;;  %v806_v8 = vshrl.u32 %v5315_v33, 16  ;;  %v809_v0 = vshll.u32 %v5315_v33, 16  ;;  %v6393_v3 = vld [vmem:[%s8097_s4 + $0x170] sm:$0xff]  }
  0xa2   : > { %6003 = vmatpush3.bf16.msra.mxu1 %v6374_v57  ;;  %v800_v17 = vrot.slane %v798_v7, 7  ;;  %v1060_v15 = vld [vmem:[#allocation2 + $0x54] sm:$0xf]  ;;  %v2456_v16 = vor.u32 %v2455_v58, %v2451_v34  ;;  %v7204_v11 = vcombine.low %v2214_v59, %v7194_v51  ;;  %v7206_v26 = vld [vmem:[#allocation2 + $0x44] ss:$0 sps:$4 sm:$0x11]  }
  0xa3   : > { %v1142_v13 = vld [vmem:[#allocation2 + $0x48] sm:$0xf]  ;;  %6004 = vmatprep.subr.bf16.mxu1 %v6379_v52  ;;  %v1405_v18 = vor.u32 %v1404_v62, %v1400_v55  ;;  %v808_v22 = vrot.slane %v806_v8, 7  ;;  %v2470_v56 = vshll.u32 %v7206_v26, 16  ;;  %v1148_v62 = vld [vmem:[#allocation2 + $0x6c] sm:$0xf] }
  0xa4   : > { %v1064_v23 = vld [vmem:[#allocation2 + $0x5c] sm:$0x1]  ;;  %v803_v57 = vor.u32 %v801_v29, %v800_v17  ;;  %v804_v37 = vrot.slane %v800_v17, 4  ;;  %v2461_v53 = vsel %vm1338_vm5, %v2456_v16, %v2460_v14  ;;  %v2216_v12 = vld [vmem:[#allocation2 + $0x48] sm:$0xf]  ;;  %v2463_v44 = vshrl.u32 %v7204_v11, 16 }
  0xa5   : > { %v7208_v32 = vld [vmem:[#allocation2 + $0x4c] sm:$0xf]  ;;  %2976 = vmatmul.mubr.bf16.gmra.mrb[24].mxu1 %v7133_v30  ;;  %v1410_v38 = vsel %vm1338_vm5, %v1405_v18, %v1409_v63  ;;  %v7217_v31 = vld [vmem:[#allocation2 + $0x50] ss:$0 sps:$4 sm:$0x11]   ;;  %v811_v35 = vor.u32 %v809_v0, %v808_v22  ;;  %v813_v21 = vrot.slane %v808_v22, 4 }
  0xa6   : > { %v4959_v2 = vcombine.low %v1142_v13, %v7208_v32  ;;  %2983 = vmatprep.mubr.bf16.mxu1 %v2461_v53  ;;  %6005 = vmatpush3.bf16.msra.mxu1 %v6379_v52  ;;  %v6495_v30 = vld [vmem:[#allocation2 + $0x64] sm:$0xf]  ;;  %v1061_v43 = vsel %vm6842_vm8, %v803_v57, %v1060_v15  ;;  %v2465_v40 = vshll.u32 %v7204_v11, 16  ;;  %v7225_v19 = vld [vmem:[#allocation2 + $0x4c] sm:$0xf]  ;;  %v1419_v48 = vshll.u32 %v7217_v31, 16 }
  0xa7   : > { %v7219_v42 = vcombine.low %v1146_v60, %v6495_v30  ;;  %1924 = vmatprep.mubr.bf16.mxu0 %v1410_v38  ;;  %6006 = vmatprep.subr.bf16.mxu1 %v6384_v61  ;;  %v812_v34 = vsel %vm6848_vm9, %v804_v37, %v811_v35  ;;  %1062 = vst [vmem:[#allocation2 + $0x54] sm:$0xf] %v1061_v43  ;;  %v7230_v5 = vld [vmem:[#allocation2 + $0x50] ss:$0 sps:$4 sm:$0x11]   ;;  %v2472_v7 = vrot.slane %v2470_v56, 1 }
  0xa8   : > { %1925 = vmatmul.mubr.bf16.gmra.mrb[20].mxu0 %v4958_v41  ;;  %v1412_v46 = vshrl.u32 %v4959_v2, 16  ;;  %v1414_v4 = vshll.u32 %v4959_v2, 16  ;;  %1063 = vst [vmem:[#allocation2 + $0x58] sm:$0xf] %v812_v34  ;;  %v1065_v52 = vsel %vm6675_vm3, %v813_v21, %v1064_v23  ;;  %v2467_v55 = vrot.slane %v2465_v40, 1  ;;  %v6410_v14 = vld [vmem:[%s8097_s4 + $0x178] sm:$0xff]  }
  0xa9   : > { %v1421_v33 = vrot.slane %v1419_v48, 1  ;;  %1066 = vst [vmem:[#allocation2 + $0x5c] sm:$0x1] %v1065_v52  ;;  %v7236_v29 = vcombine.low %v2216_v12, %v7225_v19  ;;  %v2482_v58 = vshll.u32 %v7230_v5, 16  ;;  %v1438_v60 = vshll.u32 %v7219_v42, 16 }
  0xaa   : > { %v1416_v49 = vrot.slane %v1414_v4, 1  ;;  %6007 = vmatpush3.bf16.msra.mxu1 %v6384_v61  ;;  %v2468_v41 = vor.u32 %v2467_v55, %v2463_v44  ;;  %v2220_v17 = vld [vmem:[#allocation2 + $0x60] sm:$0xf]  ;;  %v2221_v15 = vld [vmem:[#allocation2 + $0x64] sm:$0xf]  ;;  %v1436_v37 = vshrl.u32 %v7219_v42, 16 }
  0xab   : > { %6008 = vmatprep.subr.bf16.mxu1 %v6393_v3  ;;  %v2475_v8 = vshrl.u32 %v7236_v29, 16  ;;  %v2477_v0 = vshll.u32 %v7236_v29, 16  ;;  %v2484_v18 = vrot.slane %v2482_v58, 1  ;;  %v6496_v23 = vld [vmem:[#allocation2 + $0x70] sm:$0xf]  ;;  %v1440_v53 = vrot.slane %v1438_v60, 1 }
  0xac   : > { %v1417_v59 = vor.u32 %v1416_v49, %v1412_v46  ;;  %v2473_v63 = vsel %vm1338_vm5, %v2468_v41, %v2472_v7  ;;  %v6497_v21 = vld [vmem:[#allocation2 + $0x68] ss:$0 sps:$4 sm:$0x11]   ;;  %v1150_v40 = vld [vmem:[#allocation2 + $0x78] sm:$0xf]  ;;  %v2683_v54 = vrot.slane %v7206_v26, 1 }
  0xad   : > { %2984 = vmatmul.mubr.bf16.gmra.mrb[28].mxu1 %v7186_v45  ;;  %v2479_v61 = vrot.slane %v2477_v0, 1  ;;  %v7248_v45 = vcombine.low %v1148_v62, %v6496_v23  ;;  %v1443_v12 = vshll.u32 %v6497_v21, 16  ;;  %v1441_v52 = vor.u32 %v1440_v53, %v1436_v37  ;;  %v2222_v62 = vld [vmem:[#allocation2 + $0x6c] sm:$0xf]  ;;  %v7273_v0 = vld [vmem:[#allocation2 + $0x70] sm:$0xf] }
  0xae   : > { %v1422_v13 = vsel %vm1338_vm5, %v1417_v59, %v1421_v33  ;;  %2991 = vmatprep.mubr.bf16.mxu1 %v2473_v63  ;;  %6009 = vmatpush3.bf16.msra.mxu1 %v6393_v3  ;;  %v1144_v16 = vld [vmem:[#allocation2 + $0x54] sm:$0xf]  ;;  %v6376_v33 = vld [vmem:[#allocation2 + $0x68] ss:$0 sps:$4 sm:$0x11]  }
  0xaf   : > { %1932 = vmatprep.mubr.bf16.mxu0 %v1422_v13  ;;  %v2218_v22 = vld [vmem:[#allocation2 + $0x54] sm:$0xf]  ;;  %6010 = vmatprep.subr.bf16.mxu1 %v6410_v14  ;;  %v7250_v57 = vld [vmem:[#allocation2 + $0x58] sm:$0xf]  ;;  %v2480_v30 = vor.u32 %v2479_v61, %v2475_v8  ;;  %v1445_v58 = vrot.slane %v1443_v12, 1 }
  0xb0   : > { %1933 = vmatmul.mubr.bf16.gmra.mrb[24].mxu0 %v4959_v2  ;;  %v7253_v38 = vld [vmem:[#allocation2 + $0x58] sm:$0xf]  ;;  %v4960_v35 = vcombine.low %v1144_v16, %v7250_v57  ;;  %v7256_v3 = vld [vmem:[#allocation2 + $0x5c] ss:$0 sps:$4 sm:$0x11]   ;;  %v7263_v2 = vcombine.low %v2220_v17, %v2221_v15  ;;  %v1448_v16 = vshrl.u32 %v7248_v45, 16 }
  0xb1   : > { %v7259_v43 = vcombine.low %v2218_v22, %v7253_v38  ;;  %v7261_v44 = vld [vmem:[#allocation2 + $0x5c] ss:$0 sps:$4 sm:$0x11]   ;;  %v1431_v48 = vshll.u32 %v7256_v3, 16  ;;  %v2485_v34 = vsel %vm1338_vm5, %v2480_v30, %v2484_v18  ;;  %v1158_v15 = vld [vmem:[#allocation2 + $0xa8] sm:$0xf]  ;;  %v1446_v22 = vsel %vm1338_vm5, %v1441_v52, %v1445_v58 }
  0xb2   : > { %6011 = vmatpush3.bf16.msra.mxu1 %v6410_v14  ;;  %v1424_v46 = vshrl.u32 %v4960_v35, 16  ;;  %v1426_v4 = vshll.u32 %v4960_v35, 16  ;;  %v2494_v49 = vshll.u32 %v7261_v44, 16  ;;  %v1450_v14 = vshll.u32 %v7248_v45, 16  ;;  %v6498_v13 = vld [vmem:[#allocation2 + $0x7c] sm:$0xf] }
  0xb3   : > { %v2487_v55 = vshrl.u32 %v7259_v43, 16  ;;  %v2489_v56 = vshll.u32 %v7259_v43, 16  ;;  %v1433_v7 = vrot.slane %v1431_v48, 1  ;;  %v2501_v60 = vshll.u32 %v7263_v2, 16  ;;  %v1160_v48 = vld [vmem:[#allocation2 + $0xb4] sm:$0xf] }
  0xb4   : > { %v1428_v41 = vrot.slane %v1426_v4, 1  ;;  %v2496_v8 = vrot.slane %v2494_v49, 1  ;;  %v7275_v17 = vcombine.low %v1150_v40, %v6498_v13  ;;  %v1452_v23 = vrot.slane %v1450_v14, 1  ;;  %v6499_v37 = vld [vmem:[#allocation2 + $0x74] ss:$0 sps:$4 sm:$0x11]  }
  0xb5   : > { %2992 = vmatmul.mubr.bf16.gmra.mrb[32].mxu1 %v7204_v11  ;;  %v2491_v59 = vrot.slane %v2489_v56, 1  ;;  %v7281_v11 = vld [vmem:[%s8097_s4 + $0x200] sm:$0xff]   ;;  %v1455_v53 = vshll.u32 %v6499_v37, 16  ;;  %v2499_v21 = vshrl.u32 %v7263_v2, 16  ;;  %v2503_v12 = vrot.slane %v2501_v60, 1 }
  0xb6   : > { %2999 = vmatprep.mubr.bf16.mxu1 %v2485_v34  ;;  %v1429_v63 = vor.u32 %v1428_v41, %v1424_v46  ;;  %v2506_v30 = vshll.u32 %v6376_v33, 16  ;;  %v7287_v40 = vcombine.low %v2222_v62, %v7273_v0  ;;  %6044 = vmatprep.subr.bf16.mxu1 %v7281_v11  ;;  %v1152_v46 = vld [vmem:[#allocation2 + $0x84] sm:$0xf]  ;;  %v7291_v4 = vcombine.low %v1158_v15, %v7090_v9  ;;  %v2224_v33 = vld [vmem:[#allocation2 + $0x78] sm:$0xf] }
  0xb7   : > { %v2492_v61 = vor.u32 %v2491_v59, %v2487_v55  ;;  %v1462_v52 = vshll.u32 %v7275_v17, 16  ;;  %v7295_v55 = vld [vmem:[#allocation2 + $0x74] ss:$0 sps:$4 sm:$0x11]   ;;  %v1453_v56 = vor.u32 %v1452_v23, %v1448_v16  ;;  %v1457_v49 = vrot.slane %v1455_v53, 1 }
  0xb8   : > { %v1434_v18 = vsel %vm1338_vm5, %v1429_v63, %v1433_v7  ;;  %v2504_v41 = vor.u32 %v2503_v12, %v2499_v21  ;;  %v2508_v7 = vrot.slane %v2506_v30, 1  ;;  %v2513_v9 = vshll.u32 %v7287_v40, 16  ;;  %v7299_v58 = vld [vmem:[#allocation2 + $0x7c] sm:$0xf]  ;;  %v1154_v21 = vld [vmem:[#allocation2 + $0x90] sm:$0xf] }
  0xb9   : > { %1940 = vmatprep.mubr.bf16.mxu0 %v1434_v18  ;;  %v2497_v34 = vsel %vm1338_vm5, %v2492_v61, %v2496_v8  ;;  %v7304_v59 = vcombine.low %v1160_v48, %v7095_v28  ;;  %v1508_v60 = vshrl.u32 %v7291_v4, 16  ;;  %v1510_v62 = vshll.u32 %v7291_v4, 16  ;;  %v6501_v8 = vld [vmem:[#allocation2 + $0x80] ss:$0 sps:$4 sm:$0x11]  }
  0xba   : > { %1941 = vmatmul.mubr.bf16.gmra.mrb[28].mxu0 %v4960_v35  ;;  %v6500_v35 = vld [vmem:[#allocation2 + $0x88] sm:$0xf]  ;;  %v1464_v63 = vrot.slane %v1462_v52, 1  ;;  %v1467_v13 = vshll.u32 %v6501_v8, 16  ;;  %v1515_v15 = vshll.u32 %v7092_v25, 16  ;;  %v1458_v16 = vsel %vm1338_vm5, %v1453_v56, %v1457_v49 }
  0xbb   : > { %1948 = vmatprep.mubr.bf16.mxu0 %v1446_v22  ;;  %v7301_v14 = vcombine.low %v1152_v46, %v6500_v35  ;;  %v2511_v61 = vshrl.u32 %v7287_v40, 16  ;;  %v7313_v18 = vcombine.low %v2224_v33, %v7299_v58  ;;  %v1512_v28 = vrot.slane %v1510_v62, 1  ;;  %v7322_v52 = vld [vmem:[#allocation2 + $0x80] ss:$0 sps:$4 sm:$0x11]  }
  0xbc   : > { %v2509_v22 = vsel %vm1338_vm5, %v2504_v41, %v2508_v7  ;;  %v2515_v23 = vrot.slane %v2513_v9, 1  ;;  %v2518_v37 = vshll.u32 %v7295_v55, 16  ;;  %v1517_v53 = vrot.slane %v1515_v15, 1  ;;  %v6502_v7 = vld [vmem:[#allocation2 + $0x94] sm:$0xf] }
  0xbd   : > { %3000 = vmatmul.mubr.bf16.gmra.mrb[36].mxu1 %v7236_v29  ;;  %v1460_v29 = vshrl.u32 %v7275_v17, 16  ;;  %v1513_v12 = vor.u32 %v1512_v28, %v1508_v60  ;;  %v1520_v25 = vshrl.u32 %v7304_v59, 16  ;;  %v1522_v30 = vshll.u32 %v7304_v59, 16  ;;  %v7331_v35 = vld [vmem:[#allocation2 + $0x88] sm:$0xf] }
  0xbe   : > { %3007 = vmatprep.mubr.bf16.mxu1 %v2497_v34  ;;  %v1527_v46 = vshll.u32 %v7104_v36, 16  ;;  %v1469_v48 = vrot.slane %v1467_v13, 1  ;;  %v1474_v34 = vshll.u32 %v7301_v14, 16  ;;  %v7328_v9 = vcombine.low %v1154_v21, %v6502_v7  ;;  %v1183_v21 = vld [vmem:[#allocation2 + $0x3c] sm:$0xe] }
  0xbf   : > { %v1465_v56 = vor.u32 %v1464_v63, %v1460_v29  ;;  %v7326_v49 = vsel %vm1338_vm5, %v1513_v12, %v1517_v53  ;;  %v1524_v33 = vrot.slane %v1522_v30, 1  ;;  %v2525_v36 = vshll.u32 %v7313_v18, 16  ;;  %v6503_v63 = vld [vmem:[#allocation2 + $0x8c] ss:$0 sps:$4 sm:$0x11]  }
  0xc0   : > { %v1529_v41 = vrot.slane %v1527_v46, 1  ;;  %v2516_v60 = vor.u32 %v2515_v23, %v2511_v61  ;;  %v2520_v62 = vrot.slane %v2518_v37, 1  ;;  %v1472_v29 = vshrl.u32 %v7301_v14, 16  ;;  %v1156_v12 = vld [vmem:[#allocation2 + $0x9c] sm:$0xf] }
  0xc1   : > { %v1525_v8 = vor.u32 %v1524_v33, %v1520_v25  ;;  %v1479_v13 = vshll.u32 %v6503_v63, 16  ;;  %v1470_v15 = vsel %vm1338_vm5, %v1465_v56, %v1469_v48  ;;  %v1486_v53 = vshll.u32 %v7328_v9, 16  ;;  %v6504_v25 = vld [vmem:[#allocation2 + $0x98] ss:$0 sps:$4 sm:$0x11]  }
  0xc2   : > { %1949 = vmatmul.mubr.bf16.gmra.mrb[32].mxu0 %v7219_v42  ;;  %v2226_v42 = vld [vmem:[#allocation2 + $0x84] sm:$0xf]  ;;  %v2523_v61 = vshrl.u32 %v7313_v18, 16  ;;  %v2527_v23 = vrot.slane %v2525_v36, 1  ;;  %v2530_v37 = vshll.u32 %v7322_v52, 16  ;;  %v1491_v30 = vshll.u32 %v6504_v25, 16 }
  0xc3   : > { %1956 = vmatprep.mubr.bf16.mxu0 %v1458_v16  ;;  %v7336_v16 = vcombine.low %v2226_v42, %v7331_v35  ;;  %v7339_v28 = vsel %vm1338_vm5, %v1525_v8, %v1529_v41  ;;  %v2521_v46 = vsel %vm1338_vm5, %v2516_v60, %v2520_v62  ;;  %v7346_v56 = vld [vmem:[#allocation2 + $0x8c] ss:$0 sps:$4 sm:$0x11]   ;;  %v2228_v42 = vld [vmem:[#allocation2 + $0x90] sm:$0xf]  ;;  %v1484_v41 = vshrl.u32 %v7328_v9, 16 }
  0xc4   : > { %v7351_v7 = vld [vmem:[#allocation2 + $0x94] sm:$0xf]  ;;  %v4990_v36 = vcombine.low %v1183_v21, %v7175_v39  ;;  %v1488_v60 = vrot.slane %v1486_v53, 1  ;;  %v2528_v62 = vor.u32 %v2527_v23, %v2523_v61  ;;  %v2532_v8 = vrot.slane %v2530_v37, 1  ;;  %v551_v21 = vld [vmem:[#allocation2 + $0xc0] sm:$0x1] }
  0xc5   : > { %3008 = vmatmul.mubr.bf16.gmra.mrb[40].mxu1 %v7259_v43  ;;  %v1476_v43 = vrot.slane %v1474_v34, 1  ;;  %v1481_v34 = vrot.slane %v1479_v13, 1  ;;  %v1493_v63 = vrot.slane %v1491_v30, 1  ;;  %v7362_v39 = vcombine.low %v2228_v42, %v7351_v7  ;;  %v1185_v53 = vld [vmem:[#allocation2 + $0x54] sm:$0xe] }
  0xc6   : > { %3015 = vmatprep.mubr.bf16.mxu1 %v2509_v22  ;;  %v1182_v22 = vld [vmem:[#allocation2 + $0x30] sm:$0xe]  ;;  %v1611_v13 = vrot.slane %v4990_v36, 1  ;;  %v2535_v30 = vshrl.u32 %v7336_v16, 16  ;;  %v2262_v26 = vld [vmem:[#allocation2 + $0x6c] sm:$0xe] }
  0xc7   : > { %v1477_v48 = vor.u32 %v1476_v43, %v1472_v29  ;;  %v4989_v33 = vcombine.low %v1182_v22, %v7135_v10  ;;  %v2537_v29 = vshll.u32 %v7336_v16, 16  ;;  %v1184_v43 = vld [vmem:[#allocation2 + $0x48] sm:$0xe]  ;;  %v6505_v22 = vld [vmem:[#allocation2 + $0xa0] sm:$0xf] }
  0xc8   : > { %v7358_v25 = vcombine.low %v1156_v12, %v6505_v22  ;;  %v4991_v37 = vcombine.low %v1184_v43, %v7208_v32  ;;  %v2533_v12 = vsel %vm1338_vm5, %v2528_v62, %v2532_v8  ;;  %v1489_v32 = vor.u32 %v1488_v60, %v1484_v41  ;;  %v7388_v41 = vld [vmem:[#allocation2 + $0x98] ss:$0 sps:$4 sm:$0x11]   ;;  %v2230_v60 = vld [vmem:[#allocation2 + $0x9c] sm:$0xf] }
  0xc9   : > { %v1608_v10 = vrot.slane %v4989_v33, 1  ;;  %v4992_v33 = vcombine.low %v1185_v53, %v7250_v57  ;;  %v552_v62 = vsel %vm6675_vm3, 0, %v551_v21  ;;  %v6506_v21 = vld [vmem:[#allocation2 + $0xa4] ss:$0 sps:$4 sm:$0x11]  }
  0xca   : > { %1957 = vmatmul.mubr.bf16.gmra.mrb[36].mxu0 %v7248_v45  ;;  %v1609_v45 = vrot.slane %v7139_v20, 1  ;;  %v1482_v20 = vsel %vm1338_vm5, %v1477_v48, %v1481_v34  ;;  %v2542_v48 = vshll.u32 %v7346_v56, 16  ;;  %v607_v34 = vld [vmem:[#allocation2 + $0xc8] sm:$0x1]  ;;  %v1614_v42 = vrot.slane %v4991_v37, 1 }
  0xcb   : > { %1964 = vmatprep.mubr.bf16.mxu0 %v1470_v15  ;;  %v5524_v15 = vld [vmem:[%s6746_s19 + $0x78] sm:$0xff]   ;;  %553 = vst [vmem:[#allocation2 + $0xc0] sm:$0x1] %v552_v62  ;;  %v608_v57 = vsel %vm6684_vm4, 0, %v607_v34  ;;  %v1494_v37 = vsel %vm1338_vm5, %v1489_v32, %v1493_v63 }
  0xcc   : > { %v7365_v61 = vsel %vm1595_vm10, %v1608_v10, %v1609_v45  ;;  %v1618_v45 = vrot.slane %v7256_v3, 1  ;;  %v5428_v36 = vunpack.c.l.bf16 %v5524_v15  ;;  %v5429_v43 = vunpack.c.h.bf16 %v5524_v15  ;;  %609 = vst [vmem:[#allocation2 + $0xc8] sm:$0x1] %v608_v57  ;;  %v7408_v63 = vld [vmem:[#allocation2 + $0xa4] ss:$0 sps:$4 sm:$0x11]  }
  0xcd   : > { %3016 = vmatmul.mubr.bf16.gmra.mrb[44].mxu1 %v7263_v2  ;;  %v1612_v2 = vrot.slane %v7189_v47, 1  ;;  %v1615_v47 = vrot.slane %v7217_v31, 1  ;;  %v1498_v31 = vshll.u32 %v7358_v25, 16 }
  0xce   : > { %3023 = vmatprep.mubr.bf16.mxu1 %v2521_v46  ;;  %v2539_v46 = vrot.slane %v2537_v29, 1  ;;  %v405_v29 = vmul.f32 %v5428_v36, %v6783_v50  ;;  %v406_v10 = vmul.f32 %v5429_v43, %v6783_v50  ;;  %v1503_v50 = vshll.u32 %v6506_v21, 16 }
  0xcf   : > { %v7368_v23 = vsel %vm1595_vm10, %v1611_v13, %v1612_v2  ;;  %v7383_v8 = vsel %vm1595_vm10, %v1614_v42, %v1615_v47  ;;  %v2544_v13 = vrot.slane %v2542_v48, 1  ;;  %v7392_v2 = vld [vmem:[#allocation2 + $0xa0] sm:$0xf]  ;;  %v1500_v47 = vrot.slane %v1498_v31, 1 }
  0xd0   : > { %v2540_v3 = vor.u32 %v2539_v46, %v2535_v30  ;;  %v443_v22 = vadd.f32 %v6802_v1, %v405_v29  ;;  %v444_v53 = vadd.f32 %v6802_v1, %v406_v10  ;;  %v2547_v30 = vshrl.u32 %v7362_v39, 16 }
  0xd1   : > { %v7403_v46 = vcombine.low %v2230_v60, %v7392_v2  ;;  %v1505_v32 = vrot.slane %v1503_v50, 1  ;;  %v7412_v60 = vld [vmem:[#allocation2 + $0xac] sm:$0xf] }
  0xd2   : > { %1965 = vmatmul.mubr.bf16.gmra.mrb[40].mxu0 %v7275_v17  ;;  %v1617_v17 = vrot.slane %v4992_v33, 1  ;;  %v476_v48 = vmax.f32 %v444_v53, 0.0  ;;  %v2545_v34 = vsel %vm1338_vm5, %v2540_v3, %v2544_v13  ;;  %v2554_v33 = vshll.u32 %v7388_v41, 16 }
  0xd3   : > { %1972 = vmatprep.mubr.bf16.mxu0 %v1482_v20  ;;  %v1496_v20 = vshrl.u32 %v7358_v25, 16  ;;  %v2561_v62 = vshll.u32 %v7403_v46, 16  ;;  %v2566_v13 = vshll.u32 %v7408_v63, 16  ;;  %v2559_v53 = vshrl.u32 %v7403_v46, 16  ;;  %v1127_v21 = vld [vmem:[#allocation2 + $0xc8] sm:$0x1] }
  0xd4   : > { %v7395_v15 = vsel %vm1595_vm10, %v1617_v17, %v1618_v45  ;;  %v5333_v45 = vpack.c.bf16 %v476_v48, %v476_v48  ;;  %v2556_v3 = vrot.slane %v2554_v33, 1 }
  0xd5   : > { %3024 = vmatmul.mubr.bf16.gmra.mrb[48].mxu1 %v7287_v40  ;;  %v2549_v40 = vshll.u32 %v7362_v39, 16  ;;  %v1501_v36 = vor.u32 %v1500_v47, %v1496_v20  ;;  %v2258_v20 = vld [vmem:[#allocation2 + $0x3c] sm:$0xe]  ;;  %v2563_v50 = vrot.slane %v2561_v62, 1  ;;  %v2686_v62 = vrot.slane %v7230_v5, 1 }
  0xd6   : > { %3031 = vmatprep.mubr.bf16.mxu1 %v2533_v12  ;;  %v475_v12 = vmax.f32 %v443_v22, 0.0  ;;  %v959_v17 = vshrl.u32 %v5333_v45, 16  ;;  %v962_v29 = vshll.u32 %v5333_v45, 16  ;;  %v1123_v22 = vld [vmem:[#allocation2 + $0xc0] sm:$0xf] }
  0xd7   : > { %v2551_v42 = vrot.slane %v2549_v40, 1  ;;  %v2564_v6 = vor.u32 %v2563_v50, %v2559_v53  ;;  %v5065_v53 = vcombine.low %v2262_v26, %v7273_v0  ;;  %v7461_v50 = vld [vmem:[#allocation2 + $0xbc] ss:$0 sps:$4 sm:$0x11]  }
  0xd8   : > { %v5332_v1 = vpack.c.bf16 %v475_v12, %v475_v12  ;;  %v961_v40 = vrot.slane %v959_v17, 7  ;;  %v7435_v17 = vld [vmem:[#allocation2 + $0xb8] sm:$0xf] }
  0xd9   : > { %v2552_v57 = vor.u32 %v2551_v42, %v2547_v30  ;;  %v2259_v30 = vld [vmem:[#allocation2 + $0x48] sm:$0xe] }
  0xda   : > { %1973 = vmatmul.mubr.bf16.gmra.mrb[44].mxu0 %v7301_v14  ;;  %v951_v31 = vshrl.u32 %v5332_v1, 16  ;;  %v954_v43 = vshll.u32 %v5332_v1, 16  ;;  %v2232_v14 = vld [vmem:[#allocation2 + $0xa8] sm:$0xf]  ;;  %v964_v12 = vor.u32 %v962_v29, %v961_v40  ;;  %v966_v48 = vrot.slane %v961_v40, 4 }
  0xdb   : > { %1980 = vmatprep.mubr.bf16.mxu0 %v1494_v37  ;;  %v7420_v42 = vcombine.low %v2232_v14, %v7412_v60  ;;  %v7424_v1 = vld [vmem:[#allocation2 + $0xb0] ss:$0 sps:$4 sm:$0x11]   ;;  %v2568_v14 = vrot.slane %v2566_v13, 1  ;;  %v2263_v40 = vld [vmem:[#allocation2 + $0x78] sm:$0xe] }
  0xdc   : > { %v953_v10 = vrot.slane %v951_v31, 7  ;;  %v2234_v31 = vld [vmem:[#allocation2 + $0xb4] sm:$0xf] }
  0xdd   : > { %3032 = vmatmul.mubr.bf16.gmra.mrb[52].mxu1 %v7313_v18  ;;  %v1506_v18 = vsel %vm1338_vm5, %v1501_v36, %v1505_v32  ;;  %v1128_v36 = vsel %vm6675_vm3, %v966_v48, %v1127_v21  ;;  %v2260_v32 = vld [vmem:[#allocation2 + $0x54] sm:$0xe]  ;;  %v2569_v13 = vsel %vm1338_vm5, %v2564_v6, %v2568_v14  ;;  %v1178_v21 = vld [vmem:[#allocation2] sm:$0xe] }
  0xde   : > { %3039 = vmatprep.mubr.bf16.mxu1 %v2545_v34  ;;  %v956_v37 = vor.u32 %v954_v43, %v953_v10  ;;  %v957_v47 = vrot.slane %v953_v10, 4  ;;  %v2557_v34 = vsel %vm1338_vm5, %v2552_v57, %v2556_v3  ;;  %1129 = vst [vmem:[#allocation2 + $0xc8] sm:$0x1] %v1128_v36  ;;  %v5062_v43 = vcombine.low %v2259_v30, %v7225_v19  ;;  %v6508_v6 = vld [vmem:[#allocation2 + $0x8] ss:$0 sps:$4 sm:$0x11]  }
  0xdf   : > { %v2689_v3 = vrot.slane %v7261_v44, 1  ;;  %v2590_v36 = vshll.u32 %v7461_v50, 16  ;;  %v1597_v14 = vrot.slane %v6508_v6, 1 }
  0xe0   : > { %v1124_v33 = vsel %vm6842_vm8, %v956_v37, %v1123_v22  ;;  %v965_v45 = vsel %vm6848_vm9, %v957_v47, %v964_v12  ;;  %v2685_v57 = vrot.slane %v5062_v43, 1  ;;  %v2571_v22 = vshrl.u32 %v7420_v42, 16 }
  0xe1   : > { %1125 = vst [vmem:[#allocation2 + $0xc0] sm:$0xf] %v1124_v33  ;;  %1126 = vst [vmem:[#allocation2 + $0xc4] sm:$0xf] %v965_v45  ;;  %v2695_v37 = vrot.slane %v7295_v55, 1  ;;  %v5066_v47 = vcombine.low %v2263_v40, %v7299_v58  ;;  %v2694_v12 = vrot.slane %v5065_v53, 1 }
  0xe2   : > { %1981 = vmatmul.mubr.bf16.gmra.mrb[48].mxu0 %v7328_v9  ;;  %v5061_v9 = vcombine.low %v2258_v20, %v7194_v51  ;;  %v2573_v51 = vshll.u32 %v7420_v42, 16  ;;  %v7444_v19 = vsel %vm1595_vm10, %v2685_v57, %v2686_v62  ;;  %v2578_v20 = vshll.u32 %v7424_v1, 16  ;;  %v6507_v58 = vld [vmem:[#allocation2 + $0x4] sm:$0xf]  ;;  %v1180_v57 = vld [vmem:[#allocation2 + $0x18] sm:$0xe] }
  0xe3   : > { %1988 = vmatprep.mubr.bf16.mxu0 %v1506_v18  ;;  %v7450_v18 = vcombine.low %v2234_v31, %v7435_v17  ;;  %v2697_v30 = vrot.slane %v5066_v47, 1  ;;  %v4985_v45 = vcombine.low %v1178_v21, %v6507_v58  ;;  %v2268_v40 = vld [vmem:[#allocation2 + $0xb4] sm:$0xe] }
  0xe4   : > { %v2682_v29 = vrot.slane %v5061_v9, 1  ;;  %v2266_v9 = vld [vmem:[#allocation2 + $0x9c] sm:$0xe]  ;;  %v5071_v21 = vcombine.low %v2268_v40, %v7435_v17 }
  0xe5   : > { %3040 = vmatmul.mubr.bf16.gmra.mrb[56].mxu1 %v7336_v16  ;;  %v5063_v16 = vcombine.low %v2260_v32, %v7253_v38  ;;  %v2575_v38 = vrot.slane %v2573_v51, 1  ;;  %v2585_v48 = vshll.u32 %v7450_v18, 16  ;;  %v2583_v32 = vshrl.u32 %v7450_v18, 16  ;;  %v2267_v51 = vld [vmem:[#allocation2 + $0xa8] sm:$0xe] }
  0xe6   : > { %3047 = vmatprep.mubr.bf16.mxu1 %v2557_v34  ;;  %v7441_v10 = vsel %vm1595_vm10, %v2682_v29, %v2683_v54  ;;  %v2698_v34 = vrot.slane %v7322_v52, 1  ;;  %v1179_v52 = vld [vmem:[#allocation2 + $0xc] sm:$0xe]  ;;  %v1596_v62 = vrot.slane %v4985_v45, 1  ;;  %v5069_v29 = vcombine.low %v2266_v9, %v7392_v2 }
  0xe7   : > { %v2688_v5 = vrot.slane %v5063_v16, 1  ;;  %v2576_v0 = vor.u32 %v2575_v38, %v2571_v22  ;;  %v2587_v31 = vrot.slane %v2585_v48, 1  ;;  %v2592_v16 = vrot.slane %v2590_v36, 1  ;;  %v6511_v45 = vld [vmem:[#allocation2 + $0x14] ss:$0 sps:$4 sm:$0x11]  }
  0xe8   : > { %v2236_v33 = vld [vmem:[#allocation2 + $0xc0] sm:$0xf]  ;;  %v2237_v55 = vld [vmem:[#allocation2 + $0xc4] sm:$0xf]  ;;  %v2710_v22 = vrot.slane %v7424_v1, 1  ;;  %v1598_v2 = vsel %vm1595_vm10, %v1596_v62, %v1597_v14  ;;  %v1600_v17 = vrot.slane %v6511_v45, 1 }
  0xe9   : > { %v7454_v44 = vsel %vm1595_vm10, %v2688_v5, %v2689_v3  ;;  %v7473_v54 = vcombine.low %v2236_v33, %v2237_v55  ;;  %v2707_v3 = vrot.slane %v7408_v63, 1  ;;  %v2588_v26 = vor.u32 %v2587_v31, %v2583_v32  ;;  %v1181_v32 = vld [vmem:[#allocation2 + $0x24] sm:$0xe] }
  0xea   : > { %1989 = vmatmul.mubr.bf16.gmra.mrb[52].mxu0 %v7358_v25  ;;  %v2580_v25 = vrot.slane %v2578_v20, 1  ;;  %v6509_v20 = vld [vmem:[#allocation2 + $0x10] sm:$0xf] }
  0xeb   : > { %1996 = vmatprep.mubr.bf16.mxu0 %v7326_v49  ;;  %v7466_v49 = vsel %vm1595_vm10, %v2694_v12, %v2695_v37  ;;  %v2597_v5 = vshll.u32 %v7473_v54, 16  ;;  %v4986_v38 = vcombine.low %v1179_v52, %v6509_v20  ;;  %v2269_v37 = vld [vmem:[#allocation2 + $0xc0] sm:$0xe]  ;;  %v2713_v12 = vrot.slane %v7461_v50, 1 }
  0xec   : > { %v2581_v43 = vsel %vm1338_vm5, %v2576_v0, %v2580_v25  ;;  %v2593_v25 = vsel %vm1338_vm5, %v2588_v26, %v2592_v16  ;;  %v5072_v0 = vcombine.low %v2269_v37, %v2237_v55  ;;  %v6512_v50 = vld [vmem:[#allocation2 + $0x20] ss:$0 sps:$4 sm:$0x11]   ;;  %v6394_v26 = vld [vmem:[%s8097_s4 + $0x1c8] sm:$0xff]   ;;  %v3346_v37 = vld [vmem:[#allocation2 + $0x18] sm:$0xf] }
  0xed   : > { %3048 = vmatmul.mubr.bf16.gmra.mrb[60].mxu1 %v7362_v39  ;;  %v7469_v39 = vsel %vm1595_vm10, %v2697_v30, %v2698_v34  ;;  %v2599_v1 = vrot.slane %v2597_v5, 1  ;;  %v2712_v34 = vrot.slane %v5071_v21, 1  ;;  %v1599_v58 = vrot.slane %v4986_v38, 1  ;;  %v6515_v38 = vld [vmem:[#allocation2 + $0x2c] ss:$0 sps:$4 sm:$0x11]  }
  0xee   : > { %3055 = vmatprep.mubr.bf16.mxu1 %v2569_v13  ;;  %v2706_v13 = vrot.slane %v5069_v29, 1  ;;  %v1603_v9 = vrot.slane %v6512_v50, 1  ;;  %v6390_v29 = vld [vmem:[%s8097_s4 + $0x180] sm:$0xff]   ;;  %v6403_v50 = vld [vmem:[%s8097_s4 + $0x198] sm:$0xff]  }
  0xef   : > { %v7498_v31 = vsel %vm1595_vm10, %v2712_v34, %v2713_v12  ;;  %v1601_v14 = vsel %vm1595_vm10, %v1599_v58, %v1600_v17  ;;  %v6516_v12 = vld [vmem:[#allocation2 + $0x14] ss:$0 sps:$4 sm:$0x11]   ;;  %v2256_v34 = vld [vmem:[#allocation2 + $0x24] sm:$0xe] }
  0xf0   : > { %v7486_v63 = vsel %vm1595_vm10, %v2706_v13, %v2707_v3  ;;  %v6518_v17 = vld [vmem:[#allocation2 + $0x28] sm:$0xf] }
  0xf2   : > { %1997 = vmatmul.mubr.bf16.gmra.mrb[56].mxu0 %v7291_v4  ;;  %v6418_v4 = vld [vmem:[#allocation2 + $0xc8] ss:$0 sps:$4 sm:$0x11]  }
  0xf3   : > { %2004 = vmatprep.mubr.bf16.mxu0 %v7339_v28  ;;  %v5070_v28 = vcombine.low %v2267_v51, %v7412_v60  ;;  %v2595_v60 = vshrl.u32 %v7473_v54, 16  ;;  %v2602_v48 = vshll.u32 %v6418_v4, 16  ;;  %v2716_v33 = vrot.slane %v6418_v4, 1  ;;  %v6513_v51 = vld [vmem:[#allocation2 + $0x28] sm:$0xf] }
  0xf5   : > { %3056 = vmatmul.mubr.bf16.gmra.mrb[64].mxu1 %v7403_v46  ;;  %v6510_v46 = vld [vmem:[#allocation2 + $0x1c] sm:$0xf]  ;;  %v2709_v47 = vrot.slane %v5070_v28, 1  ;;  %v2604_v62 = vrot.slane %v2602_v48, 1  ;;  %v6514_v28 = vld [vmem:[#allocation2 + $0x10] sm:$0xf] }
  0xf6   : > { %3063 = vmatprep.mubr.bf16.mxu1 %v2581_v43  ;;  %v4987_v53 = vcombine.low %v1180_v57, %v6510_v46  ;;  %v2600_v43 = vor.u32 %v2599_v1, %v2595_v60  ;;  %v2254_v57 = vld [vmem:[#allocation2 + $0xc] sm:$0xe]  ;;  %v1606_v46 = vrot.slane %v6515_v38, 1  ;;  %v2255_v60 = vld [vmem:[#allocation2 + $0x18] sm:$0xe]  ;;  %v6399_v48 = vld [vmem:[%s8097_s4 + $0x190] sm:$0xff]  }
  0xf7   : > { %v7494_v30 = vsel %vm1595_vm10, %v2709_v47, %v2710_v22  ;;  %v5057_v22 = vcombine.low %v2254_v57, %v6514_v28  ;;  %v7523_v47 = vld [vmem:[#allocation2 + $0x1c] sm:$0xf]  ;;  %v6407_v57 = vld [vmem:[%s8097_s4 + $0x1a0] sm:$0xff]   ;;  %v6521_v28 = vld [vmem:[#allocation2 + $0x34] sm:$0xf] }
  0xf8   : > { %v1602_v36 = vrot.slane %v4987_v53, 1  ;;  %v2605_v13 = vsel %vm1338_vm5, %v2600_v43, %v2604_v62  ;;  %v6398_v53 = vld [vmem:[%s8097_s4 + $0x1d0] sm:$0xff]   ;;  %v7547_v43 = vld [vmem:[#allocation2 + $0x28] sm:$0xf] }
  0xf9   : > { %v2670_v21 = vrot.slane %v5057_v22, 1  ;;  %v6412_v38 = vld [vmem:[%s8097_s4 + $0x1a8] sm:$0xff]  }
  0xfa   : > { %2005 = vmatmul.mubr.bf16.gmra.mrb[60].mxu0 %v7304_v59  ;;  %v2715_v59 = vrot.slane %v5072_v0, 1  ;;  %v1604_v4 = vsel %vm1595_vm10, %v1602_v36, %v1603_v9  ;;  %v7533_v0 = vcombine.low %v3346_v37, %v7523_v47  ;;  %v5059_v36 = vcombine.low %v2256_v34, %v6518_v17  ;;  %v7540_v9 = vld [vmem:[#allocation2 + $0x20] ss:$0 sps:$4 sm:$0x11]   ;;  %v610_v34 = vld [vmem:[#allocation2 + $0xd4] sm:$0x1] }
  0xfb   : > { %5964 = vmatprep.mubr.bf16.mxu0 %v1598_v2  ;;  %v6395_v2 = vld [vmem:[%s8097_s4 + $0x188] sm:$0xff]   ;;  %v6419_v17 = vld [vmem:[%s8097_s4 + $0x1f8] sm:$0xff]  }
  0xfc   : > { %v7501_v6 = vsel %vm1595_vm10, %v2715_v59, %v2716_v33  ;;  %v6517_v33 = vld [vmem:[#allocation2 + $0x1c] sm:$0xf]  ;;  %v3557_v59 = vshll.u32 %v7533_v0, 16 }
  0xfd   : > { %3064 = vmatmul.mubr.bf16.gmra.mrb[68].mxu1 %v7420_v42  ;;  %v4988_v42 = vcombine.low %v1181_v32, %v6513_v51  ;;  %v5058_v58 = vcombine.low %v2255_v60, %v6517_v33  ;;  %v6406_v32 = vld [vmem:[%s8097_s4 + $0x1e0] sm:$0xff]   ;;  %v6416_v33 = vld [vmem:[%s8097_s4 + $0x1b0] sm:$0xff]  }
  0xfe   : > { %3071 = vmatprep.mubr.bf16.mxu1 %v2593_v25  ;;  %v2671_v25 = vrot.slane %v6516_v12, 1  ;;  %v3350_v12 = vld [vmem:[#allocation2 + $0x30] sm:$0xf] }
  0xff   : > { %v1605_v20 = vrot.slane %v4988_v42, 1  ;;  %v2673_v62 = vrot.slane %v5058_v58, 1  ;;  %v2257_v42 = vld [vmem:[#allocation2 + $0x30] sm:$0xe] }
 0x100   : > { %v2672_v45 = vsel %vm1595_vm10, %v2670_v21, %v2671_v25  ;;  %v5060_v22 = vcombine.low %v2257_v42, %v6521_v28  ;;  %v7576_v25 = vld [vmem:[#allocation2 + $0x34] sm:$0xf]  ;;  %v6444_v42 = vld [vmem:[%s8097_s4 + $0x220] sm:$0xff]   ;;  %v6449_v28 = vld [vmem:[%s8097_s4 + $0x228] sm:$0xff]  }
 0x101   : > { %v5556_v52 = vpop.f32.mrb[0].mxu0  ;;  %v1607_v1 = vsel %vm1595_vm10, %v1605_v20, %v1606_v46  ;;  %v6429_v20 = vld [vmem:[%s8097_s4 + $0x208] sm:$0xff]  }
 0x102   : > { %v5557_v55 = vpop.f32.mrb[1].mxu0  ;;  %5965 = vmatmul.mubr.bf16.vlgmr.msra.gmra.mrb[64].mxu0 %v1601_v14  ;;  %v7570_v46 = vld [vmem:[#allocation2 + $0x2c] ss:$0 sps:$4 sm:$0x11]   ;;  %v2679_v60 = vrot.slane %v5060_v22, 1 }
 0x103   : > { %v7507_v16 = vadd.f32 %v5557_v55, %v5556_v52  ;;  %v5559_v3 = vpop.f32.mrb[2].mxu0  ;;  %5813 = vmatpush3.bf16.msra.mxu0 %v6390_v29  ;;  %5968 = vmatprep.mubr.bf16.mxu0 %v1604_v4  ;;  %v3348_v52 = vld [vmem:[#allocation2 + $0x24] sm:$0xf]  ;;  %v6519_v55 = vld [vmem:[#allocation2 + $0x20] ss:$0 sps:$4 sm:$0x11]  }
 0x104   : > { %v5560_v5 = vpop.f32.mrb[3].mxu0  ;;  %5814 = vmatprep.subr.bf16.mxu0 %v6394_v26  ;;  %v2674_v14 = vrot.slane %v6519_v55, 1  ;;  %v2676_v29 = vrot.slane %v5059_v36, 1  ;;  %v3555_v26 = vshrl.u32 %v7533_v0, 16  ;;  %v3559_v4 = vrot.slane %v3557_v59, 1 }
 0x105   : > { %v7513_v40 = vadd.f32 %v5560_v5, %v5559_v3  ;;  %3072 = vmatmul.mubr.bf16.gmra.mrb[72].mxu1 %v7450_v18  ;;  %v6402_v18 = vld [vmem:[%s8097_s4 + $0x1d8] sm:$0xff]   ;;  %v6411_v3 = vld [vmem:[%s8097_s4 + $0x1e8] sm:$0xff]   ;;  %v3562_v5 = vshll.u32 %v7540_v9, 16  ;;  %v611_v59 = vsel %vm6684_vm4, 0, %v610_v34 }
 0x106   : > { %3079 = vmatprep.mubr.bf16.mxu1 %v2605_v13  ;;  %v2675_v13 = vsel %vm1595_vm10, %v2673_v62, %v2674_v14  ;;  %v3560_v37 = vor.u32 %v3559_v4, %v3555_v26  ;;  %612 = vst [vmem:[#allocation2 + $0xd4] sm:$0x1] %v611_v59  ;;  %v6439_v62 = vld [vmem:[%s8097_s4 + $0x218] sm:$0xff]   ;;  %v7625_v22 = vld [vmem:[#allocation2 + $0x44] ss:$0 sps:$4 sm:$0x11]  }
 0x107   : > { %5815 = vmatpush3.bf16.msra.mxu0 %v6395_v2  ;;  %v3564_v21 = vrot.slane %v3562_v5, 1  ;;  %v7606_v14 = vld [vmem:[#allocation2 + $0x38] ss:$0 sps:$4 sm:$0x11]   ;;  %v6523_v5 = vld [vmem:[#allocation2 + $0x64] sm:$0xf] }
 0x108   : > { %5816 = vmatprep.subr.bf16.mxu0 %v6398_v53  ;;  %v3586_v4 = vshll.u32 %v7606_v14, 16  ;;  %v2701_v59 = vrot.slane %v7346_v56, 1 }
 0x109   : > { %v3565_v36 = vsel %vm1338_vm5, %v3560_v37, %v3564_v21  ;;  %v7630_v21 = vld [vmem:[#allocation2 + $0x4c] sm:$0xf] }
 0x10a   : > { %5969 = vmatmul.mubr.bf16.gmra.mrb[68].mxu0 %v1607_v1 }
 0x10b   : > { %5817 = vmatpush3.bf16.msra.mxu0 %v6399_v48  ;;  %5972 = vmatprep.mubr.bf16.mxu0 %v7365_v61  ;;  %v6520_v61 = vld [vmem:[#allocation2 + $0x2c] ss:$0 sps:$4 sm:$0x11]  }
 0x10c   : > { %5818 = vmatprep.subr.bf16.mxu0 %v6402_v18  ;;  %v2677_v51 = vrot.slane %v6520_v61, 1  ;;  %v554_v48 = vld [vmem:[#allocation2 + $0xcc] sm:$0x1]  ;;  %v6434_v18 = vld [vmem:[%s8097_s4 + $0x210] sm:$0xff]   ;;  %v7610_v61 = vld [vmem:[#allocation2 + $0x40] sm:$0xf] }
 0x10d   : > { %3080 = vmatmul.mubr.bf16.gmra.mrb[76].mxu1 %v7473_v54  ;;  %v7553_v54 = vcombine.low %v3348_v52, %v7547_v43 }
 0x10e   : > { %6012 = vmatprep.mubr.bf16.mxu1 %v2672_v45  ;;  %v2678_v2 = vsel %vm1595_vm10, %v2676_v29, %v2677_v51  ;;  %v2261_v51 = vld [vmem:[#allocation2 + $0x60] sm:$0xe] }
 0x10f   : > { %5819 = vmatpush3.bf16.msra.mxu0 %v6403_v50  ;;  %v3569_v53 = vshll.u32 %v7553_v54, 16  ;;  %v3567_v58 = vshrl.u32 %v7553_v54, 16  ;;  %v7592_v50 = vcombine.low %v3350_v12, %v7576_v25  ;;  %v6454_v12 = vld [vmem:[%s8097_s4 + $0x230] sm:$0xff]  }
 0x110   : > { %5820 = vmatprep.subr.bf16.mxu0 %v6406_v32  ;;  %v555_v32 = vsel %vm6675_vm3, 0, %v554_v48 }
 0x111   : > { %v3571_v45 = vrot.slane %v3569_v53, 1  ;;  %556 = vst [vmem:[#allocation2 + $0xcc] sm:$0x1] %v555_v32  ;;  %v3581_v29 = vshll.u32 %v7592_v50, 16  ;;  %v7651_v32 = vld [vmem:[#allocation2 + $0x58] sm:$0xf] }
 0x112   : > { %5973 = vmatmul.mubr.bf16.gmra.mrb[72].mxu0 %v7368_v23  ;;  %v6415_v23 = vld [vmem:[%s8097_s4 + $0x1f0] sm:$0xff]  }
 0x113   : > { %5821 = vmatpush3.bf16.msra.mxu0 %v6407_v57  ;;  %5976 = vmatprep.mubr.bf16.mxu0 %v7383_v8  ;;  %v6522_v8 = vld [vmem:[#allocation2 + $0x38] ss:$0 sps:$4 sm:$0x11]   ;;  %v3572_v27 = vor.u32 %v3571_v45, %v3567_v58  ;;  %v3583_v26 = vrot.slane %v3581_v29, 1 }
 0x114   : > { %5822 = vmatprep.subr.bf16.mxu0 %v6411_v3  ;;  %v2680_v1 = vrot.slane %v6522_v8, 1  ;;  %v3579_v3 = vshrl.u32 %v7592_v50, 16  ;;  %v2264_v8 = vld [vmem:[#allocation2 + $0x84] sm:$0xe] }
 0x115   : > { %6013 = vmatmul.mubr.bf16.vlgmr.msra.gmra.mrb[80].mxu1 %v2675_v13  ;;  %v5064_v13 = vcombine.low %v2261_v51, %v6523_v5  ;;  %v7647_v58 = vld [vmem:[#allocation2 + $0x50] ss:$0 sps:$4 sm:$0x11]  }
 0x116   : > { %6045 = vmatpush3.bf16.msra.mxu1 %v7281_v11  ;;  %6016 = vmatprep.mubr.bf16.mxu1 %v2678_v2  ;;  %v3574_v11 = vshll.u32 %v7570_v46, 16  ;;  %v2681_v52 = vsel %vm1595_vm10, %v2679_v60, %v2680_v1  ;;  %v3584_v2 = vor.u32 %v3583_v26, %v3579_v3  ;;  %v3598_v60 = vshll.u32 %v7625_v22, 16  ;;  %v7667_v26 = vld [vmem:[#allocation2 + $0x5c] ss:$0 sps:$4 sm:$0x11]  }
 0x117   : > { %6046 = vmatprep.subr.bf16.mxu1 %v6429_v20  ;;  %5823 = vmatpush3.bf16.msra.mxu0 %v6412_v38  ;;  %v2691_v53 = vrot.slane %v5064_v13, 1 }
 0x118   : > { %5824 = vmatprep.subr.bf16.mxu0 %v6415_v23  ;;  %v3576_v55 = vrot.slane %v3574_v11, 1  ;;  %v6524_v23 = vld [vmem:[#allocation2 + $0x68] ss:$0 sps:$4 sm:$0x11]   ;;  %v3600_v11 = vrot.slane %v3598_v60, 1 }
 0x119   : > { %v2692_v37 = vrot.slane %v6524_v23, 1 }
 0x11a   : > { %6047 = vmatpush3.bf16.msra.mxu1 %v6429_v20  ;;  %5977 = vmatmul.mubr.bf16.gmra.mrb[76].mxu0 %v7395_v15  ;;  %v3352_v15 = vld [vmem:[#allocation2 + $0x3c] sm:$0xf]  ;;  %v3577_v57 = vsel %vm1338_vm5, %v3572_v27, %v3576_v55  ;;  %v3588_v20 = vrot.slane %v3586_v4, 1 }
 0x11b   : > { %6048 = vmatprep.subr.bf16.mxu1 %v6434_v18  ;;  %5825 = vmatpush3.bf16.msra.mxu0 %v6416_v33  ;;  %v2693_v34 = vsel %vm1595_vm10, %v2691_v53, %v2692_v37  ;;  %v6459_v33 = vld [vmem:[%s8097_s4 + $0x238] sm:$0xff]  }
 0x11c   : > { %4099 = vmatprep.mubr.bf16.mxu0 %v3565_v36  ;;  %5826 = vmatprep.subr.bf16.mxu0 %v6419_v17  ;;  %v3356_v36 = vld [vmem:[#allocation2 + $0x54] sm:$0xf] }
 0x11d   : > { %6017 = vmatmul.mubr.bf16.gmra.mrb[84].mxu1 %v2681_v52  ;;  %v2265_v52 = vld [vmem:[#allocation2 + $0x90] sm:$0xe]  ;;  %v7660_v51 = vcombine.low %v3356_v36, %v7651_v32 }
 0x11e   : > { %6020 = vmatprep.mubr.bf16.mxu1 %v7441_v10  ;;  %6049 = vmatpush3.bf16.msra.mxu1 %v6434_v18  ;;  %v7619_v10 = vcombine.low %v3352_v15, %v7610_v61  ;;  %v5067_v18 = vcombine.low %v2264_v8, %v7331_v35  ;;  %v3360_v8 = vld [vmem:[#allocation2 + $0x6c] sm:$0xf] }
 0x11f   : > { %6050 = vmatprep.subr.bf16.mxu1 %v6439_v62  ;;  %5827 = vmatpush3.bf16.msra.mxu0 %v6420_v24  ;;  %v3610_v24 = vshll.u32 %v7647_v58, 16  ;;  %v3617_v13 = vshll.u32 %v7660_v51, 16  ;;  %v3615_v53 = vshrl.u32 %v7660_v51, 16 }
 0x120   : > { %v3593_v38 = vshll.u32 %v7619_v10, 16  ;;  %v3591_v1 = vshrl.u32 %v7619_v10, 16 }
 0x121   : > { %v3612_v5 = vrot.slane %v3610_v24, 1  ;;  %v3619_v23 = vrot.slane %v3617_v13, 1  ;;  %v7718_v13 = vld [vmem:[#allocation2 + $0x80] ss:$0 sps:$4 sm:$0x11]  }
 0x122   : > { %6051 = vmatpush3.bf16.msra.mxu1 %v6439_v62  ;;  %4100 = vmatmul.mubr.bf16.vlgmr.msra.gmra.mrb[80].mxu0 %v7533_v0  ;;  %v3354_v0 = vld [vmem:[#allocation2 + $0x48] sm:$0xf] }
 0x123   : > { %6052 = vmatprep.subr.bf16.mxu1 %v6444_v42  ;;  %4107 = vmatprep.mubr.bf16.mxu0 %v3577_v57  ;;  %v7639_v48 = vcombine.low %v3354_v0, %v7630_v21  ;;  %v5068_v57 = vcombine.low %v2265_v52, %v7351_v7  ;;  %v2704_v7 = vrot.slane %v7388_v41, 1  ;;  %v7682_v0 = vld [vmem:[#allocation2 + $0x68] ss:$0 sps:$4 sm:$0x11]   ;;  %v3620_v41 = vor.u32 %v3619_v23, %v3615_v53 }
 0x124   : > { %v7723_v53 = vld [vmem:[#allocation2 + $0x88] sm:$0xf]  ;;  %v3817_v23 = vrot.slane %v7606_v14, 1 }
 0x125   : > { %6021 = vmatmul.mubr.bf16.gmra.mrb[88].mxu1 %v7444_v19  ;;  %v3589_v19 = vsel %vm1338_vm5, %v3584_v2, %v3588_v20  ;;  %v3605_v17 = vshll.u32 %v7639_v48, 16  ;;  %v3358_v2 = vld [vmem:[#allocation2 + $0x60] sm:$0xf]  ;;  %v7672_v20 = vld [vmem:[#allocation2 + $0x64] sm:$0xf] }
 0x126   : > { %6024 = vmatprep.mubr.bf16.mxu1 %v7454_v44  ;;  %6053 = vmatpush3.bf16.msra.mxu1 %v6444_v42  ;;  %v3595_v44 = vrot.slane %v3593_v38, 1  ;;  %v7678_v37 = vcombine.low %v3358_v2, %v7672_v20 }
 0x127   : > { %6054 = vmatprep.subr.bf16.mxu1 %v6449_v28  ;;  %v3607_v15 = vrot.slane %v3605_v17, 1 }
 0x128   : > { %v3596_v45 = vor.u32 %v3595_v44, %v3591_v1  ;;  %v3629_v60 = vshll.u32 %v7678_v37, 16  ;;  %v3634_v1 = vshll.u32 %v7682_v0, 16  ;;  %v3394_v44 = vld [vmem:[#allocation2 + $0x18] sm:$0xe] }
 0x12a   : > { %6055 = vmatpush3.bf16.msra.mxu1 %v6449_v28  ;;  %4108 = vmatmul.mubr.bf16.gmra.mrb[84].mxu0 %v7553_v54  ;;  %v2700_v54 = vrot.slane %v5067_v18, 1  ;;  %v3601_v29 = vsel %vm1338_vm5, %v3596_v45, %v3600_v11  ;;  %v2703_v28 = vrot.slane %v5068_v57, 1  ;;  %v3631_v18 = vrot.slane %v3629_v60, 1 }
 0x12b   : > { %6056 = vmatprep.subr.bf16.mxu1 %v6454_v12  ;;  %4115 = vmatprep.mubr.bf16.mxu0 %v3589_v19  ;;  %v7686_v19 = vld [vmem:[#allocation2 + $0x70] sm:$0xf]  ;;  %v5177_v45 = vcombine.low %v3394_v44, %v7523_v47 }
 0x12c   : > { %v2702_v3 = vsel %vm1595_vm10, %v2700_v54, %v2701_v59 }
 0x12d   : > { %6025 = vmatmul.mubr.bf16.gmra.mrb[92].mxu1 %v2693_v34  ;;  %v3810_v24 = vrot.slane %v5177_v45, 1 }
 0x12e   : > { %6028 = vmatprep.mubr.bf16.mxu1 %v7466_v49  ;;  %6057 = vmatpush3.bf16.msra.mxu1 %v6454_v12  ;;  %v5562_v35 = vpop.f32.mrb[4].mxu0  ;;  %v3603_v49 = vshrl.u32 %v7639_v48, 16 }
 0x12f   : > { %6058 = vmatprep.subr.bf16.mxu1 %v6459_v33  ;;  %v5563_v62 = vpop.f32.mrb[5].mxu0 }
 0x130   : > { %v7655_v27 = vadd.f32 %v5563_v62, %v5562_v35  ;;  %v5565_v55 = vpop.f32.mrb[6].mxu0  ;;  %v3608_v4 = vor.u32 %v3607_v15, %v3603_v49  ;;  %v3636_v35 = vrot.slane %v3634_v1, 1  ;;  %v3362_v62 = vld [vmem:[#allocation2 + $0x78] sm:$0xf] }
 0x131   : > { %v5566_v42 = vpop.f32.mrb[7].mxu0 }
 0x132   : > { %6059 = vmatpush3.bf16.msra.mxu1 %v6459_v33  ;;  %v7663_v56 = vadd.f32 %v5566_v42, %v5565_v55  ;;  %4116 = vmatmul.mubr.bf16.gmra.mrb[88].mxu0 %v7592_v50  ;;  %v3622_v50 = vshll.u32 %v7667_v26, 16  ;;  %v3613_v38 = vsel %vm1338_vm5, %v3608_v4, %v3612_v5  ;;  %v7692_v33 = vcombine.low %v3360_v8, %v7686_v19 }
 0x133   : > { %4123 = vmatprep.mubr.bf16.mxu0 %v3601_v29  ;;  %v3811_v55 = vrot.slane %v7540_v9, 1  ;;  %v3395_v29 = vld [vmem:[#allocation2 + $0x24] sm:$0xe] }
 0x134   : > { %v3624_v12 = vrot.slane %v3622_v50, 1  ;;  %v3641_v54 = vshll.u32 %v7692_v33, 16  ;;  %v3639_v57 = vshrl.u32 %v7692_v33, 16  ;;  %v5178_v4 = vcombine.low %v3395_v29, %v7547_v43  ;;  %v3364_v43 = vld [vmem:[#allocation2 + $0x84] sm:$0xf] }
 0x135   : > { %6029 = vmatmul.mubr.bf16.gmra.mrb[0].mxu1 %v7469_v39  ;;  %v2705_v39 = vsel %vm1595_vm10, %v2703_v28, %v2704_v7  ;;  %v3812_v9 = vsel %vm1595_vm10, %v3810_v24, %v3811_v55  ;;  %v7730_v8 = vcombine.low %v3364_v43, %v7723_v53 }
 0x136   : > { %6032 = vmatprep.mubr.bf16.mxu1 %v2702_v3  ;;  %v3625_v34 = vsel %vm1338_vm5, %v3620_v41, %v3624_v12  ;;  %v3643_v3 = vrot.slane %v3641_v54, 1  ;;  %v3813_v50 = vrot.slane %v5178_v4, 1  ;;  %v3398_v41 = vld [vmem:[#allocation2 + $0x48] sm:$0xe]  ;;  %v3399_v54 = vld [vmem:[#allocation2 + $0x54] sm:$0xe] }
 0x137   : > { %v5181_v44 = vcombine.low %v3398_v41, %v7630_v21  ;;  %v3665_v45 = vshll.u32 %v7730_v8, 16 }
 0x138   : > { %v3644_v28 = vor.u32 %v3643_v3, %v3639_v57 }
 0x139   : > { %v3667_v24 = vrot.slane %v3665_v45, 1 }
 0x13a   : > { %4124 = vmatmul.mubr.bf16.gmra.mrb[92].mxu0 %v7619_v10  ;;  %v3627_v10 = vshrl.u32 %v7678_v37, 16 }
 0x13b   : > { %4131 = vmatprep.mubr.bf16.mxu0 %v3613_v38  ;;  %v3814_v38 = vrot.slane %v7570_v46, 1 }
 0x13c   : > { %v3632_v36 = vor.u32 %v3631_v18, %v3627_v10 }
 0x13d   : > { %6033 = vmatmul.mubr.bf16.gmra.mrb[4].mxu1 %v2705_v39  ;;  %v3658_v39 = vshll.u32 %v7718_v13, 16  ;;  %v3815_v46 = vsel %vm1595_vm10, %v3813_v50, %v3814_v38  ;;  %v3368_v50 = vld [vmem:[#allocation2 + $0x9c] sm:$0xf]  ;;  %v7763_v38 = vld [vmem:[#allocation2 + $0xa0] sm:$0xf] }
 0x13e   : > { %6036 = vmatprep.mubr.bf16.mxu1 %v7486_v63  ;;  %v7696_v63 = vld [vmem:[#allocation2 + $0x74] ss:$0 sps:$4 sm:$0x11]   ;;  %v3637_v42 = vsel %vm1338_vm5, %v3632_v36, %v3636_v35  ;;  %v3366_v36 = vld [vmem:[#allocation2 + $0x90] sm:$0xf]  ;;  %v3823_v35 = vrot.slane %v7647_v58, 1 }
 0x13f   : > { %v3646_v15 = vshll.u32 %v7696_v63, 16  ;;  %v3660_v18 = vrot.slane %v3658_v39, 1  ;;  %v3832_v45 = vrot.slane %v7696_v63, 1 }
 0x141   : > { %v3648_v7 = vrot.slane %v3646_v15, 1 }
 0x142   : > { %4132 = vmatmul.mubr.bf16.gmra.mrb[96].mxu0 %v7639_v48  ;;  %v7703_v48 = vld [vmem:[#allocation2 + $0x7c] sm:$0xf] }
 0x143   : > { %v5568_v11 = vpop.f32.mrb[8].mxu0  ;;  %4139 = vmatprep.mubr.bf16.mxu0 %v3625_v34  ;;  %v3649_v12 = vsel %vm1338_vm5, %v3644_v28, %v3648_v7  ;;  %v7737_v34 = vld [vmem:[#allocation2 + $0x8c] ss:$0 sps:$4 sm:$0x11]  }
 0x144   : > { %v5569_v17 = vpop.f32.mrb[9].mxu0  ;;  %v3670_v21 = vshll.u32 %v7737_v34, 16 }
 0x145   : > { %6037 = vmatmul.mubr.bf16.gmra.mrb[8].mxu1 %v7494_v30  ;;  %v7700_v59 = vadd.f32 %v5569_v17, %v5568_v11  ;;  %v5571_v52 = vpop.f32.mrb[10].mxu0  ;;  %v3396_v30 = vld [vmem:[#allocation2 + $0x30] sm:$0xe]  ;;  %v3820_v17 = vrot.slane %v7625_v22, 1 }
 0x146   : > { %6040 = vmatprep.mubr.bf16.mxu1 %v7498_v31  ;;  %v5572_v47 = vpop.f32.mrb[11].mxu0  ;;  %v7712_v31 = vcombine.low %v3362_v62, %v7703_v48  ;;  %v5179_v5 = vcombine.low %v3396_v30, %v7576_v25  ;;  %v3397_v25 = vld [vmem:[#allocation2 + $0x3c] sm:$0xe]  ;;  %v5182_v30 = vcombine.low %v3399_v54, %v7651_v32  ;;  %v3672_v28 = vrot.slane %v3670_v21, 1 }
 0x147   : > { %v7706_v49 = vadd.f32 %v5572_v47, %v5571_v52  ;;  %v5180_v1 = vcombine.low %v3397_v25, %v7610_v61  ;;  %v7741_v61 = vld [vmem:[#allocation2 + $0x94] sm:$0xf]  ;;  %v3400_v52 = vld [vmem:[#allocation2 + $0x60] sm:$0xe]  ;;  %v3663_v47 = vshrl.u32 %v7730_v8, 16 }
 0x148   : > { %v3653_v2 = vshll.u32 %v7712_v31, 16  ;;  %v7748_v29 = vcombine.low %v3366_v36, %v7741_v61  ;;  %v5183_v3 = vcombine.low %v3400_v52, %v7672_v20  ;;  %v3829_v20 = vrot.slane %v7682_v0, 1  ;;  %v3402_v25 = vld [vmem:[#allocation2 + $0x78] sm:$0xe]  ;;  %v3403_v36 = vld [vmem:[#allocation2 + $0x84] sm:$0xe] }
 0x149   : > { %v3819_v11 = vrot.slane %v5180_v1, 1  ;;  %v7777_v1 = vld [vmem:[#allocation2 + $0xa4] ss:$0 sps:$4 sm:$0x11]  }
 0x14a   : > { %4140 = vmatmul.mubr.bf16.gmra.mrb[100].mxu0 %v7660_v51  ;;  %v3816_v51 = vrot.slane %v5179_v5, 1  ;;  %v3655_v60 = vrot.slane %v3653_v2, 1  ;;  %v3668_v5 = vor.u32 %v3667_v24, %v3663_v47  ;;  %v3677_v32 = vshll.u32 %v7748_v29, 16 }
 0x14b   : > { %4147 = vmatprep.mubr.bf16.mxu0 %v3637_v42  ;;  %v3821_v22 = vsel %vm1595_vm10, %v3819_v11, %v3820_v17  ;;  %v3826_v2 = vrot.slane %v7667_v26, 1  ;;  %v3828_v43 = vrot.slane %v5183_v3, 1  ;;  %v3675_v41 = vshrl.u32 %v7748_v29, 16  ;;  %v3370_v11 = vld [vmem:[#allocation2 + $0xa8] sm:$0xf] }
 0x14c   : > { %v3818_v14 = vsel %vm1595_vm10, %v3816_v51, %v3817_v23  ;;  %v3401_v51 = vld [vmem:[#allocation2 + $0x6c] sm:$0xe]  ;;  %v3673_v39 = vsel %vm1338_vm5, %v3668_v5, %v3672_v28  ;;  %v3835_v17 = vrot.slane %v7718_v13, 1  ;;  %v5186_v13 = vcombine.low %v3403_v36, %v7723_v53 }
 0x14d   : > { %6041 = vmatmul.mubr.bf16.gmra.mrb[12].mxu1 %v7501_v6  ;;  %v3651_v6 = vshrl.u32 %v7712_v31, 16  ;;  %v3830_v0 = vsel %vm1595_vm10, %v3828_v43, %v3829_v20  ;;  %v3838_v53 = vrot.slane %v7737_v34, 1 }
 0x14e   : > { %6060 = vmatprep.mubr.bf16.mxu1 %v3812_v9  ;;  %v7757_v9 = vld [vmem:[#allocation2 + $0x98] ss:$0 sps:$4 sm:$0x11]   ;;  %v3837_v28 = vrot.slane %v5186_v13, 1 }
 0x14f   : > { %v3656_v10 = vor.u32 %v3655_v60, %v3651_v6  ;;  %v3682_v23 = vshll.u32 %v7757_v9, 16  ;;  %v7770_v6 = vcombine.low %v3368_v50, %v7763_v38  ;;  %v5184_v60 = vcombine.low %v3401_v51, %v7686_v19  ;;  %v7781_v19 = vld [vmem:[#allocation2 + $0xac] sm:$0xf]  ;;  %v3405_v50 = vld [vmem:[#allocation2 + $0x9c] sm:$0xe] }
 0x150   : > { %v7788_v47 = vcombine.low %v3370_v11, %v7781_v19 }
 0x151   : > { %v3661_v62 = vsel %vm1338_vm5, %v3656_v10, %v3660_v18  ;;  %v3689_v10 = vshll.u32 %v7770_v6, 16  ;;  %v3831_v18 = vrot.slane %v5184_v60, 1  ;;  %v3687_v21 = vshrl.u32 %v7770_v6, 16 }
 0x152   : > { %4148 = vmatmul.mubr.bf16.gmra.mrb[104].mxu0 %v7678_v37  ;;  %v3822_v37 = vrot.slane %v5181_v44, 1  ;;  %v3684_v44 = vrot.slane %v3682_v23, 1  ;;  %v3701_v5 = vshll.u32 %v7788_v47, 16  ;;  %v3699_v51 = vshrl.u32 %v7788_v47, 16 }
 0x153   : > { %4155 = vmatprep.mubr.bf16.mxu0 %v3649_v12  ;;  %v3679_v12 = vrot.slane %v3677_v32, 1  ;;  %v3691_v52 = vrot.slane %v3689_v10, 1  ;;  %v7803_v32 = vld [vmem:[#allocation2 + $0xb8] sm:$0xf] }
 0x154   : > { %v3824_v57 = vsel %vm1595_vm10, %v3822_v37, %v3823_v35  ;;  %v3694_v37 = vshll.u32 %v7777_v1, 16  ;;  %v3404_v35 = vld [vmem:[#allocation2 + $0x90] sm:$0xe] }
 0x155   : > { %6061 = vmatmul.mubr.bf16.vlgmr.msra.gmra.mrb[80].mxu1 %v3815_v46  ;;  %v5185_v46 = vcombine.low %v3402_v25, %v7703_v48  ;;  %v3692_v3 = vor.u32 %v3691_v52, %v3687_v21  ;;  %v3406_v25 = vld [vmem:[#allocation2 + $0xa8] sm:$0xe] }
 0x156   : > { %6064 = vmatprep.mubr.bf16.mxu1 %v3818_v14  ;;  %v3680_v14 = vor.u32 %v3679_v12, %v3675_v41  ;;  %v3703_v12 = vrot.slane %v3701_v5, 1  ;;  %v5189_v11 = vcombine.low %v3406_v25, %v7781_v19  ;;  %v3377_v25 = vld [vmem:[#allocation2 + $0xd0] sm:$0xf] }
 0x158   : > { %v3685_v54 = vsel %vm1338_vm5, %v3680_v14, %v3684_v44  ;;  %v3839_v14 = vsel %vm1595_vm10, %v3837_v28, %v3838_v53  ;;  %v5188_v44 = vcombine.low %v3405_v50, %v7763_v38  ;;  %v3704_v36 = vor.u32 %v3703_v12, %v3699_v51  ;;  %v6486_v50 = vld [vmem:[#allocation2 + $0xc8] ss:$0 sps:$4 sm:$0x11]   ;;  %v3376_v12 = vld [vmem:[#allocation2 + $0xcc] sm:$0xf] }
 0x159   : > { %v5574_v55 = vpop.f32.mrb[12].mxu0  ;;  %v3846_v21 = vrot.slane %v5189_v11, 1 }
 0x15a   : > { %v5575_v15 = vpop.f32.mrb[13].mxu0  ;;  %4156 = vmatmul.mubr.bf16.gmra.mrb[108].mxu0 %v7692_v33  ;;  %v3825_v33 = vrot.slane %v5182_v30, 1  ;;  %v5187_v30 = vcombine.low %v3404_v35, %v7741_v61  ;;  %v3841_v61 = vrot.slane %v7757_v9, 1  ;;  %v3843_v38 = vrot.slane %v5188_v44, 1  ;;  %v3374_v35 = vld [vmem:[#allocation2 + $0xc0] sm:$0xf] }
 0x15b   : > { %v7753_v58 = vadd.f32 %v5575_v15, %v5574_v55  ;;  %v5577_v42 = vpop.f32.mrb[14].mxu0  ;;  %4163 = vmatprep.mubr.bf16.mxu0 %v3661_v62  ;;  %v3833_v55 = vsel %vm1595_vm10, %v3831_v18, %v3832_v45 }
 0x15c   : > { %v5578_v4 = vpop.f32.mrb[15].mxu0  ;;  %v3827_v26 = vsel %vm1595_vm10, %v3825_v33, %v3826_v2  ;;  %v3840_v2 = vrot.slane %v5187_v30, 1 }
 0x15d   : > { %6065 = vmatmul.mubr.bf16.gmra.mrb[84].mxu1 %v3821_v22  ;;  %v7759_v7 = vadd.f32 %v5578_v4, %v5577_v42  ;;  %v3696_v4 = vrot.slane %v3694_v37, 1 }
 0x15e   : > { %6068 = vmatprep.mubr.bf16.mxu1 %v3824_v57  ;;  %v7799_v57 = vld [vmem:[#allocation2 + $0xb0] ss:$0 sps:$4 sm:$0x11]   ;;  %v3842_v45 = vsel %vm1595_vm10, %v3840_v2, %v3841_v61 }
 0x15f   : > { %v3706_v23 = vshll.u32 %v7799_v57, 16  ;;  %v3697_v34 = vsel %vm1338_vm5, %v3692_v3, %v3696_v4  ;;  %v3847_v52 = vrot.slane %v7799_v57, 1 }
 0x162   : > { %4164 = vmatmul.mubr.bf16.gmra.mrb[112].mxu0 %v7712_v31  ;;  %v3834_v31 = vrot.slane %v5185_v46, 1 }
 0x163   : > { %4171 = vmatprep.mubr.bf16.mxu0 %v3673_v39 }
 0x164   : > { %v3836_v15 = vsel %vm1595_vm10, %v3834_v31, %v3835_v17  ;;  %v6482_v17 = vld [vmem:[#allocation2 + $0xbc] ss:$0 sps:$4 sm:$0x11]  }
 0x165   : > { %6069 = vmatmul.mubr.bf16.gmra.mrb[88].mxu1 %v3827_v26 }
 0x166   : > { %6072 = vmatprep.mubr.bf16.mxu1 %v3830_v0 }
 0x168   : > { %v5692_v48 = vpop.f32.mrb[16].mxu1 }
 0x169   : > { %v5693_v62 = vpop.f32.mrb[17].mxu1 }
 0x16a   : > { %v7790_v63 = vadd.f32 %v5693_v62, %v5692_v48  ;;  %v5695_v24 = vpop.f32.mrb[18].mxu1  ;;  %4172 = vmatmul.mubr.bf16.gmra.mrb[116].mxu0 %v7730_v8  ;;  %v3372_v8 = vld [vmem:[#allocation2 + $0xb4] sm:$0xf]  ;;  %v3708_v48 = vrot.slane %v3706_v23, 1 }
 0x16b   : > { %v5696_v22 = vpop.f32.mrb[19].mxu1  ;;  %4179 = vmatprep.mubr.bf16.mxu0 %v3685_v54  ;;  %v7812_v60 = vcombine.low %v3372_v8, %v7803_v32  ;;  %v3375_v54 = vld [vmem:[#allocation2 + $0xc4] sm:$0xf]  ;;  %v3407_v62 = vld [vmem:[#allocation2 + $0xb4] sm:$0xe]  ;;  %v3848_v8 = vsel %vm1595_vm10, %v3846_v21, %v3847_v52 }
 0x16c   : > { %v7797_v42 = vadd.f32 %v5696_v22, %v5695_v24  ;;  %v3718_v24 = vshll.u32 %v6482_v17, 16  ;;  %v3709_v13 = vsel %vm1338_vm5, %v3704_v36, %v3708_v48  ;;  %v7830_v3 = vcombine.low %v3374_v35, %v3375_v54 }
 0x16d   : > { %6073 = vmatmul.mubr.bf16.gmra.mrb[92].mxu1 %v3833_v55  ;;  %v3713_v37 = vshll.u32 %v7812_v60, 16  ;;  %v3408_v55 = vld [vmem:[#allocation2 + $0xc0] sm:$0xe]  ;;  %v3711_v22 = vshrl.u32 %v7812_v60, 16  ;;  %v5190_v28 = vcombine.low %v3407_v62, %v7803_v32 }
 0x16e   : > { %6076 = vmatprep.mubr.bf16.mxu1 %v3836_v15  ;;  %v3720_v23 = vrot.slane %v3718_v24, 1  ;;  %v3725_v32 = vshll.u32 %v7830_v3, 16  ;;  %v3723_v11 = vshrl.u32 %v7830_v3, 16  ;;  %v6490_v24 = vld [vmem:[#allocation2 + $0xd4] ss:$0 sps:$4 sm:$0x11]  }
 0x16f   : > { %v5580_v33 = vpop.f32.mrb[16].mxu0  ;;  %v3715_v15 = vrot.slane %v3713_v37, 1  ;;  %v7847_v37 = vcombine.low %v3376_v12, %v3377_v25 }
 0x170   : > { %v5581_v43 = vpop.f32.mrb[17].mxu0  ;;  %v5698_v20 = vpop.f32.mrb[20].mxu1  ;;  %v3727_v36 = vrot.slane %v3725_v32, 1 }
 0x171   : > { %v7808_v39 = vadd.f32 %v5581_v43, %v5580_v33  ;;  %v5583_v41 = vpop.f32.mrb[18].mxu0  ;;  %v5699_v26 = vpop.f32.mrb[21].mxu1  ;;  %v5191_v33 = vcombine.low %v3408_v55, %v3375_v54  ;;  %v3716_v51 = vor.u32 %v3715_v15, %v3711_v22 }
 0x172   : > { %v5584_v0 = vpop.f32.mrb[19].mxu0  ;;  %v7814_v9 = vadd.f32 %v5699_v26, %v5698_v20  ;;  %v5701_v46 = vpop.f32.mrb[22].mxu1  ;;  %4180 = vmatmul.mubr.bf16.gmra.mrb[120].mxu0 %v7748_v29  ;;  %v3844_v29 = vrot.slane %v7777_v1, 1  ;;  %v3728_v22 = vor.u32 %v3727_v36, %v3723_v11 }
 0x173   : > { %v7819_v10 = vadd.f32 %v5584_v0, %v5583_v41  ;;  %v5702_v18 = vpop.f32.mrb[23].mxu1  ;;  %4187 = vmatprep.mubr.bf16.mxu0 %v3697_v34  ;;  %v3849_v41 = vrot.slane %v5190_v28, 1  ;;  %v3850_v34 = vrot.slane %v6482_v17, 1  ;;  %v3852_v0 = vrot.slane %v5191_v33, 1 }
 0x174   : > { %v7823_v31 = vadd.f32 %v5702_v18, %v5701_v46  ;;  %v3845_v5 = vsel %vm1595_vm10, %v3843_v38, %v3844_v29  ;;  %v3853_v46 = vrot.slane %v6486_v50, 1  ;;  %v3730_v18 = vshll.u32 %v6486_v50, 16 }
 0x175   : > { %6077 = vmatmul.mubr.bf16.gmra.mrb[0].mxu1 %v3839_v14  ;;  %v3409_v14 = vld [vmem:[#allocation2 + $0xcc] sm:$0xe]  ;;  %v3851_v17 = vsel %vm1595_vm10, %v3849_v41, %v3850_v34 }
 0x176   : > { %6080 = vmatprep.mubr.bf16.mxu1 %v3842_v45  ;;  %v3721_v45 = vsel %vm1338_vm5, %v3716_v51, %v3720_v23  ;;  %v5192_v35 = vcombine.low %v3409_v14, %v3377_v25  ;;  %v3854_v52 = vsel %vm1595_vm10, %v3852_v0, %v3853_v46  ;;  %v3732_v15 = vrot.slane %v3730_v18, 1 }
 0x178   : > { %v5704_v19 = vpop.f32.mrb[24].mxu1 }
 0x179   : > { %v5705_v30 = vpop.f32.mrb[25].mxu1 }
 0x17a   : > { %v7832_v4 = vadd.f32 %v5705_v30, %v5704_v19  ;;  %v5707_v1 = vpop.f32.mrb[26].mxu1  ;;  %4188 = vmatmul.mubr.bf16.gmra.mrb[124].mxu0 %v7770_v6  ;;  %v3737_v30 = vshll.u32 %v7847_v37, 16 }
 0x17b   : > { %v5586_v57 = vpop.f32.mrb[20].mxu0  ;;  %v5708_v53 = vpop.f32.mrb[27].mxu1  ;;  %4195 = vmatprep.mubr.bf16.mxu0 %v3709_v13 }
 0x17c   : > { %v5587_v2 = vpop.f32.mrb[21].mxu0  ;;  %v7838_v61 = vadd.f32 %v5708_v53, %v5707_v1  ;;  %v3733_v53 = vsel %vm1338_vm5, %v3728_v22, %v3732_v15  ;;  %v3739_v33 = vrot.slane %v3737_v30, 1 }
 0x17d   : > { %v7840_v43 = vadd.f32 %v5587_v2, %v5586_v57  ;;  %v5589_v20 = vpop.f32.mrb[22].mxu0  ;;  %6081 = vmatmul.mubr.bf16.gmra.mrb[4].mxu1 %v3845_v5  ;;  %v3856_v5 = vrot.slane %v6490_v24, 1  ;;  %v3742_v2 = vshll.u32 %v6490_v24, 16 }
 0x17e   : > { %v5590_v6 = vpop.f32.mrb[23].mxu0  ;;  %6084 = vmatprep.mubr.bf16.mxu1 %v3848_v8  ;;  %v3735_v8 = vshrl.u32 %v7847_v37, 16 }
 0x17f   : > { %v7843_v26 = vadd.f32 %v5590_v6, %v5589_v20  ;;  %v3744_v41 = vrot.slane %v3742_v2, 1 }
 0x180   : > { %v5710_v44 = vpop.f32.mrb[28].mxu1  ;;  %v3740_v6 = vor.u32 %v3739_v33, %v3735_v8 }
 0x181   : > { %v5711_v48 = vpop.f32.mrb[29].mxu1 }
 0x182   : > { %v7849_v38 = vadd.f32 %v5711_v48, %v5710_v44  ;;  %v5713_v29 = vpop.f32.mrb[30].mxu1  ;;  %4196 = vmatmul.mubr.bf16.gmra.mrb[128].mxu0 %v7788_v47  ;;  %v3855_v47 = vrot.slane %v5192_v35, 1  ;;  %v3745_v18 = vsel %vm1338_vm5, %v3740_v6, %v3744_v41 }
 0x183   : > { %v5592_v54 = vpop.f32.mrb[24].mxu0  ;;  %v5714_v21 = vpop.f32.mrb[31].mxu1  ;;  %4203 = vmatprep.mubr.bf16.mxu0 %v3721_v45 }
 0x184   : > { %v5593_v62 = vpop.f32.mrb[25].mxu0  ;;  %v7854_v19 = vadd.f32 %v5714_v21, %v5713_v29  ;;  %v3857_v23 = vsel %vm1595_vm10, %v3855_v47, %v3856_v5 }
 0x185   : > { %v7856_v55 = vadd.f32 %v5593_v62, %v5592_v54  ;;  %v5595_v13 = vpop.f32.mrb[26].mxu0  ;;  %6085 = vmatmul.mubr.bf16.gmra.mrb[8].mxu1 %v3851_v17 }
 0x186   : > { %v5596_v1 = vpop.f32.mrb[27].mxu0  ;;  %6088 = vmatprep.mubr.bf16.mxu1 %v3854_v52 }
 0x187   : > { %v7859_v28 = vadd.f32 %v5596_v1, %v5595_v13 }
 0x188   : > { %v5716_v57 = vpop.f32.mrb[32].mxu1 }
 0x189   : > { %v5717_v50 = vpop.f32.mrb[33].mxu1 }
 0x18a   : > { %v7863_v20 = vadd.f32 %v5717_v50, %v5716_v57  ;;  %v5719_v51 = vpop.f32.mrb[34].mxu1  ;;  %4204 = vmatmul.mubr.bf16.gmra.mrb[132].mxu0 %v7812_v60 }
 0x18b   : > { %v5720_v32 = vpop.f32.mrb[35].mxu1  ;;  %4211 = vmatprep.mubr.bf16.mxu0 %v3733_v53 }
 0x18c   : > { %v7867_v25 = vadd.f32 %v5720_v32, %v5719_v51 }
 0x18d   : > { %6089 = vmatmul.mubr.bf16.gmra.mrb[12].mxu1 %v3857_v23  ;;  %v5598_v34 = vpop.f32.mrb[28].mxu0 }
 0x18e   : > { %v5599_v12 = vpop.f32.mrb[29].mxu0 }
 0x18f   : > { %v7869_v0 = vadd.f32 %v5599_v12, %v5598_v34  ;;  %v5601_v46 = vpop.f32.mrb[30].mxu0 }
 0x190   : > { %v5722_v14 = vpop.f32.mrb[36].mxu1  ;;  %v5602_v44 = vpop.f32.mrb[31].mxu0 }
 0x191   : > { %v5723_v45 = vpop.f32.mrb[37].mxu1  ;;  %v7872_v11 = vadd.f32 %v5602_v44, %v5601_v46 }
 0x192   : > { %v7874_v60 = vadd.f32 %v5723_v45, %v5722_v14  ;;  %v5725_v36 = vpop.f32.mrb[38].mxu1  ;;  %4212 = vmatmul.mubr.bf16.gmra.mrb[136].mxu0 %v7830_v3 }
 0x193   : > { %v5726_v48 = vpop.f32.mrb[39].mxu1  ;;  %4219 = vmatprep.mubr.bf16.mxu0 %v3745_v18 }
 0x194   : > { %v7877_v29 = vadd.f32 %v5726_v48, %v5725_v36 }
 0x195   : > { %v5604_v17 = vpop.f32.mrb[32].mxu0 }
 0x196   : > { %v5605_v35 = vpop.f32.mrb[33].mxu0 }
 0x197   : > { %v5606_v54 = vadd.f32 %v5605_v35, %v5604_v17  ;;  %v5607_v21 = vpop.f32.mrb[34].mxu0 }
 0x198   : > { %v5728_v52 = vpop.f32.mrb[40].mxu1  ;;  %v5608_v62 = vpop.f32.mrb[35].mxu0 }
 0x199   : > { %v5729_v24 = vpop.f32.mrb[41].mxu1  ;;  %v5609_v13 = vadd.f32 %v5608_v62, %v5607_v21 }
 0x19a   : > { %v7879_v22 = vadd.f32 %v5729_v24, %v5728_v52  ;;  %v5731_v15 = vpop.f32.mrb[42].mxu1  ;;  %4220 = vmatmul.mubr.bf16.gmra.mrb[140].mxu0 %v7847_v37 }
 0x19b   : > { %v5732_v30 = vpop.f32.mrb[43].mxu1 }
 0x19c   : > { %v7882_v1 = vadd.f32 %v5732_v30, %v5731_v15 }
 0x19d   : > { %v5610_v3 = vpop.f32.mrb[36].mxu0 }
 0x19e   : > { %v5611_v47 = vpop.f32.mrb[37].mxu0 }
 0x19f   : > { %v5612_v5 = vadd.f32 %v5611_v47, %v5610_v3  ;;  %v5613_v57 = vpop.f32.mrb[38].mxu0 }
 0x1a0   : > { %v5734_v53 = vpop.f32.mrb[44].mxu1  ;;  %v5614_v8 = vpop.f32.mrb[39].mxu0 }
 0x1a1   : > { %v5735_v33 = vpop.f32.mrb[45].mxu1  ;;  %v5615_v2 = vadd.f32 %v5614_v8, %v5613_v57 }
 0x1a2   : > { %v7884_v50 = vadd.f32 %v5735_v33, %v5734_v53  ;;  %v5737_v51 = vpop.f32.mrb[46].mxu1 }
 0x1a3   : > { %v5738_v23 = vpop.f32.mrb[47].mxu1 }
 0x1a4   : > { %v7886_v32 = vadd.f32 %v5738_v23, %v5737_v51 }
 0x1a5   : > { %v5616_v6 = vpop.f32.mrb[40].mxu0 }
 0x1a6   : > { %v5617_v41 = vpop.f32.mrb[41].mxu0 }
 0x1a7   : > { %v5618_v37 = vadd.f32 %v5617_v41, %v5616_v6  ;;  %v5619_v34 = vpop.f32.mrb[42].mxu0 }
 0x1a8   : > { %v5740_v12 = vpop.f32.mrb[48].mxu1  ;;  %v5620_v46 = vpop.f32.mrb[43].mxu0 }
 0x1a9   : > { %v5741_v14 = vpop.f32.mrb[49].mxu1  ;;  %v5621_v44 = vadd.f32 %v5620_v46, %v5619_v34 }
 0x1aa   : > { %v5742_v18 = vadd.f32 %v5741_v14, %v5740_v12  ;;  %v5743_v45 = vpop.f32.mrb[50].mxu1 }
 0x1ab   : > { %v5744_v36 = vpop.f32.mrb[51].mxu1 }
 0x1ac   : > { %v7888_v48 = vadd.f32 %v5742_v18, %v5606_v54  ;;  %v5745_v17 = vadd.f32 %v5744_v36, %v5743_v45 }
 0x1ad   : > { %v5622_v35 = vpop.f32.mrb[44].mxu0 }
 0x1ae   : > { %v7890_v21 = vadd.f32 %v5745_v17, %v5609_v13  ;;  %v5623_v52 = vpop.f32.mrb[45].mxu0 }
 0x1af   : > { %v5624_v62 = vadd.f32 %v5623_v52, %v5622_v35  ;;  %v5625_v24 = vpop.f32.mrb[46].mxu0 }
 0x1b0   : > { %v5746_v15 = vpop.f32.mrb[52].mxu1  ;;  %v5626_v30 = vpop.f32.mrb[47].mxu0 }
 0x1b1   : > { %v5747_v3 = vpop.f32.mrb[53].mxu1  ;;  %v5627_v47 = vadd.f32 %v5626_v30, %v5625_v24 }
 0x1b2   : > { %v5748_v57 = vadd.f32 %v5747_v3, %v5746_v15  ;;  %v5749_v53 = vpop.f32.mrb[54].mxu1 }
 0x1b3   : > { %v5750_v8 = vpop.f32.mrb[55].mxu1 }
 0x1b4   : > { %v7892_v33 = vadd.f32 %v5748_v57, %v5612_v5  ;;  %v5751_v51 = vadd.f32 %v5750_v8, %v5749_v53 }
 0x1b5   : > { %v5628_v23 = vpop.f32.mrb[48].mxu0 }
 0x1b6   : > { %v7894_v54 = vadd.f32 %v5751_v51, %v5615_v2  ;;  %v5629_v6 = vpop.f32.mrb[49].mxu0 }
 0x1b7   : > { %v5630_v41 = vadd.f32 %v5629_v6, %v5628_v23  ;;  %v5631_v13 = vpop.f32.mrb[50].mxu0 }
 0x1b8   : > { %v5752_v34 = vpop.f32.mrb[56].mxu1  ;;  %v5632_v12 = vpop.f32.mrb[51].mxu0 }
 0x1b9   : > { %v5753_v46 = vpop.f32.mrb[57].mxu1  ;;  %v5633_v14 = vadd.f32 %v5632_v12, %v5631_v13 }
 0x1ba   : > { %v5754_v18 = vadd.f32 %v5753_v46, %v5752_v34  ;;  %v5755_v45 = vpop.f32.mrb[58].mxu1 }
 0x1bb   : > { %v5756_v36 = vpop.f32.mrb[59].mxu1 }
 0x1bc   : > { %v7896_v17 = vadd.f32 %v5754_v18, %v5618_v37  ;;  %v5757_v35 = vadd.f32 %v5756_v36, %v5755_v45 }
 0x1bd   : > { %v5634_v52 = vpop.f32.mrb[52].mxu0 }
 0x1be   : > { %v7898_v5 = vadd.f32 %v5757_v35, %v5621_v44  ;;  %v5635_v24 = vpop.f32.mrb[53].mxu0 }
 0x1bf   : > { %v5636_v15 = vadd.f32 %v5635_v24, %v5634_v52  ;;  %v5637_v2 = vpop.f32.mrb[54].mxu0 }
 0x1c0   : > { %8110 = vst [vmem:[#allocation4_spill] sm:$0xff] %v7898_v5  ;;  %v5758_v30 = vpop.f32.mrb[60].mxu1  ;;  %v5638_v3 = vpop.f32.mrb[55].mxu0 }
 0x1c1   : > { %v5759_v57 = vpop.f32.mrb[61].mxu1  ;;  %v5639_v53 = vadd.f32 %v5638_v3, %v5637_v2 }
 0x1c2   : > { %v5760_v8 = vadd.f32 %v5759_v57, %v5758_v30  ;;  %v5761_v51 = vpop.f32.mrb[62].mxu1 }
 0x1c3   : > { %v5762_v23 = vpop.f32.mrb[63].mxu1 }
 0x1c4   : > { %v7900_v6 = vadd.f32 %v5760_v8, %v5624_v62  ;;  %v5763_v13 = vadd.f32 %v5762_v23, %v5761_v51 }
 0x1c5   : > { %v5640_v34 = vpop.f32.mrb[56].mxu0 }
 0x1c6   : > { %8111 = vst [vmem:[#allocation5_spill] sm:$0xff] %v7900_v6  ;;  %v7902_v37 = vadd.f32 %v5763_v13, %v5627_v47  ;;  %v5641_v12 = vpop.f32.mrb[57].mxu0 }
 0x1c7   : > { %v5642_v46 = vadd.f32 %v5641_v12, %v5640_v34  ;;  %v5643_v44 = vpop.f32.mrb[58].mxu0 }
 0x1c8   : > { %8112 = vst [vmem:[#allocation6_spill] sm:$0xff] %v7902_v37  ;;  %v5764_v18 = vpop.f32.mrb[64].mxu1  ;;  %v5644_v45 = vpop.f32.mrb[59].mxu0 }
 0x1c9   : > { %v5765_v36 = vpop.f32.mrb[65].mxu1  ;;  %v5645_v35 = vadd.f32 %v5644_v45, %v5643_v44 }
 0x1ca   : > { %v5766_v52 = vadd.f32 %v5765_v36, %v5764_v18  ;;  %v5767_v24 = vpop.f32.mrb[66].mxu1 }
 0x1cb   : > { %v5768_v5 = vpop.f32.mrb[67].mxu1 }
 0x1cc   : > { %v7904_v2 = vadd.f32 %v5766_v52, %v5630_v41  ;;  %v5769_v30 = vadd.f32 %v5768_v5, %v5767_v24 }
 0x1cd   : > { %v5646_v3 = vpop.f32.mrb[60].mxu0 }
 0x1ce   : > { %v7906_v62 = vadd.f32 %v5769_v30, %v5633_v14  ;;  %v5647_v57 = vpop.f32.mrb[61].mxu0 }
 0x1cf   : > { %v5648_v8 = vadd.f32 %v5647_v57, %v5646_v3  ;;  %v5649_v47 = vpop.f32.mrb[62].mxu0 }
 0x1d0   : > { %v5770_v51 = vpop.f32.mrb[68].mxu1  ;;  %v5650_v23 = vpop.f32.mrb[63].mxu0 }
 0x1d1   : > { %v5771_v13 = vpop.f32.mrb[69].mxu1  ;;  %v5651_v34 = vadd.f32 %v5650_v23, %v5649_v47 }
 0x1d2   : > { %v5772_v12 = vadd.f32 %v5771_v13, %v5770_v51  ;;  %v5773_v37 = vpop.f32.mrb[70].mxu1 }
 0x1d3   : > { %v5774_v6 = vpop.f32.mrb[71].mxu1 }
 0x1d4   : > { %v7908_v44 = vadd.f32 %v5772_v12, %v5636_v15  ;;  %v5775_v18 = vadd.f32 %v5774_v6, %v5773_v37 }
 0x1d5   : > { %v5966_v45 = vpop.f32.mrb[64].mxu0 }
 0x1d6   : > { %v7910_v41 = vadd.f32 %v5775_v18, %v5639_v53  ;;  %v2056_v5 = vadd.f32 %v5966_v45, %v7655_v27  ;;  %v2047_v14 = vpop.f32.mrb[65].mxu0 }
 0x1d7   : > { %v2048_v36 = vadd.f32 %v7507_v16, %v2047_v14  ;;  %v5967_v52 = vpop.f32.mrb[66].mxu0 }
 0x1d8   : > { %v5776_v24 = vpop.f32.mrb[72].mxu1  ;;  %v7915_v30 = vadd.f32 %v7814_v9, %v2056_v5  ;;  %v2059_v3 = vadd.f32 %v5967_v52, %v7663_v56  ;;  %v2050_v57 = vpop.f32.mrb[67].mxu0 }
 0x1d9   : > { %v5777_v47 = vpop.f32.mrb[73].mxu1  ;;  %v6113_v15 = vadd.f32 %v7790_v63, %v2048_v36  ;;  %v2051_v6 = vadd.f32 %v7513_v40, %v2050_v57 }
 0x1da   : > { %v5778_v53 = vadd.f32 %v5777_v47, %v5776_v24  ;;  %v5779_v37 = vpop.f32.mrb[74].mxu1  ;;  %v7921_v27 = vadd.f32 %v7823_v31, %v2059_v3 }
 0x1db   : > { %v5780_v51 = vpop.f32.mrb[75].mxu1  ;;  %v6121_v16 = vadd.f32 %v7797_v42, %v2051_v6 }
 0x1dc   : > { %v7924_v23 = vadd.f32 %v5778_v53, %v5642_v46  ;;  %v5781_v9 = vadd.f32 %v5780_v51, %v5779_v37 }
 0x1dd   : > { %v5970_v13 = vpop.f32.mrb[68].mxu0 }
 0x1de   : > { %v7926_v12 = vadd.f32 %v5781_v9, %v5645_v35  ;;  %v2072_v56 = vadd.f32 %v5970_v13, %v7753_v58  ;;  %v2063_v18 = vpop.f32.mrb[69].mxu0 }
 0x1df   : > { %v2064_v63 = vadd.f32 %v7700_v59, %v2063_v18  ;;  %v5971_v40 = vpop.f32.mrb[70].mxu0 }
 0x1e0   : > { %v5782_v45 = vpop.f32.mrb[76].mxu1  ;;  %v7931_v5 = vadd.f32 %v7849_v38, %v2072_v56  ;;  %v2075_v31 = vadd.f32 %v5971_v40, %v7759_v7  ;;  %v2066_v14 = vpop.f32.mrb[71].mxu0 }
 0x1e1   : > { %v5783_v42 = vpop.f32.mrb[77].mxu1  ;;  %v6129_v46 = vadd.f32 %v7832_v4, %v2064_v63  ;;  %v2067_v36 = vadd.f32 %v7706_v49, %v2066_v14 }
 0x1e2   : > { %v5784_v35 = vadd.f32 %v5783_v42, %v5782_v45  ;;  %v5785_v52 = vpop.f32.mrb[78].mxu1  ;;  %v6133_v58 = vadd.f32 %v7854_v19, %v2075_v31 }
 0x1e3   : > { %v5786_v24 = vpop.f32.mrb[79].mxu1  ;;  %v6137_v59 = vadd.f32 %v7838_v61, %v2067_v36 }
 0x1e4   : > { %v7938_v3 = vadd.f32 %v5784_v35, %v5648_v8  ;;  %v5787_v57 = vadd.f32 %v5786_v24, %v5785_v52 }
 0x1e5   : > { %v5974_v38 = vpop.f32.mrb[72].mxu0 }
 0x1e6   : > { %v7940_v47 = vadd.f32 %v5787_v57, %v5651_v34  ;;  %v2088_v7 = vadd.f32 %v5974_v38, %v7840_v43  ;;  %v2079_v6 = vpop.f32.mrb[73].mxu0 }
 0x1e7   : > { %v2080_v4 = vadd.f32 %v7808_v39, %v2079_v6  ;;  %v5975_v53 = vpop.f32.mrb[74].mxu0 }
 0x1e8   : > { %v7945_v49 = vadd.f32 %v7874_v60, %v2088_v7  ;;  %v2091_v19 = vadd.f32 %v5975_v53, %v7843_v26  ;;  %v2082_v37 = vpop.f32.mrb[75].mxu0 }
 0x1e9   : > { %v6145_v61 = vadd.f32 %v7863_v20, %v2080_v4  ;;  %v2083_v8 = vadd.f32 %v7819_v10, %v2082_v37 }
 0x1ea   : > { %v6149_v51 = vadd.f32 %v7877_v29, %v2091_v19 }
 0x1eb   : > { %v6153_v34 = vadd.f32 %v7867_v25, %v2083_v8 }
 0x1ed   : > { %v5978_v9 = vpop.f32.mrb[76].mxu0 }
 0x1ee   : > { %v2104_v43 = vadd.f32 %v5978_v9, %v7869_v0  ;;  %v2095_v13 = vpop.f32.mrb[77].mxu0 }
 0x1ef   : > { %v2096_v39 = vadd.f32 %v7856_v55, %v2095_v13  ;;  %v5979_v56 = vpop.f32.mrb[78].mxu0 }
 0x1f0   : > { %v7955_v60 = vadd.f32 %v7884_v50, %v2104_v43  ;;  %v2107_v26 = vadd.f32 %v5979_v56, %v7872_v11  ;;  %v2098_v18 = vpop.f32.mrb[79].mxu0 }
 0x1f1   : > { %v7959_v20 = vadd.f32 %v7879_v22, %v2096_v39  ;;  %v2099_v10 = vadd.f32 %v7859_v28, %v2098_v18 }
 0x1f2   : > { %v7963_v25 = vadd.f32 %v7886_v32, %v2107_v26 }
 0x1f3   : > { %v7966_v0 = vadd.f32 %v7882_v1, %v2099_v10 }
 0x1f5   : > { %v5828_v29 = vpop.f32.mrb[80].mxu0 }
 0x1f6   : > { %v5829_v55 = vpop.f32.mrb[81].mxu0 }
 0x1f7   : > { %v5830_v63 = vadd.f32 %v5829_v55, %v5828_v29  ;;  %v5831_v40 = vpop.f32.mrb[82].mxu0 }
 0x1f8   : > { %v5832_v50 = vpop.f32.mrb[83].mxu0 }
 0x1f9   : > { %v5833_v45 = vadd.f32 %v5832_v50, %v5831_v40  ;;  %v6114_v31 = vadd.f32 %v6113_v15, %v5830_v63 }
 0x1fb   : > { %v6122_v11 = vadd.f32 %v6121_v16, %v5833_v45 }
 0x1fd   : > { %v5834_v14 = vpop.f32.mrb[84].mxu0 }
 0x1fe   : > { %v5835_v42 = vpop.f32.mrb[85].mxu0 }
 0x1ff   : > { %v5836_v22 = vadd.f32 %v5835_v42, %v5834_v14  ;;  %v5837_v36 = vpop.f32.mrb[86].mxu0 }
 0x200   : > { %v5838_v35 = vpop.f32.mrb[87].mxu0 }
 0x201   : > { %v5839_v28 = vadd.f32 %v5838_v35, %v5837_v36  ;;  %v6110_v32 = vadd.f32 %v7915_v30, %v5836_v22  ;;  %v7987_v35 = vld [vmem:[%s8098_s5] ss:$0 sm:$0xff] }
 0x203   : > { %v6118_v52 = vadd.f32 %v7921_v27, %v5839_v28 }
 0x205   : > { %v5840_v1 = vpop.f32.mrb[88].mxu0 }
 0x206   : > { %v5841_v24 = vpop.f32.mrb[89].mxu0 }
 0x207   : > { %v5842_v57 = vadd.f32 %v5841_v24, %v5840_v1  ;;  %v5843_v38 = vpop.f32.mrb[90].mxu0 }
 0x208   : > { %v5844_v7 = vpop.f32.mrb[91].mxu0 }
 0x209   : > { %v5845_v6 = vadd.f32 %v5844_v7, %v5843_v38  ;;  %v7970_v4 = vadd.f32 %v6129_v46, %v5842_v57 }
 0x20b   : > { %v7972_v15 = vadd.f32 %v6137_v59, %v5845_v6 }
 0x20d   : > { %v5846_v16 = vpop.f32.mrb[92].mxu0 }
 0x20e   : > { %v5847_v53 = vpop.f32.mrb[93].mxu0 }
 0x20f   : > { %v5848_v19 = vadd.f32 %v5847_v53, %v5846_v16  ;;  %v5849_v37 = vpop.f32.mrb[94].mxu0 }
 0x210   : > { %v5850_v8 = vpop.f32.mrb[95].mxu0 }
 0x211   : > { %v5851_v9 = vadd.f32 %v5850_v8, %v5849_v37  ;;  %v6126_v30 = vadd.f32 %v7931_v5, %v5848_v19 }
 0x213   : > { %v6134_v43 = vadd.f32 %v6133_v58, %v5851_v9 }
 0x215   : > { %v5852_v27 = vpop.f32.mrb[96].mxu0 }
 0x216   : > { %v5853_v13 = vpop.f32.mrb[97].mxu0 }
 0x217   : > { %v5854_v39 = vadd.f32 %v5853_v13, %v5852_v27  ;;  %v5855_v56 = vpop.f32.mrb[98].mxu0 }
 0x218   : > { %v5856_v26 = vpop.f32.mrb[99].mxu0 }
 0x219   : > { %v5857_v18 = vadd.f32 %v5856_v26, %v5855_v56  ;;  %v7975_v10 = vadd.f32 %v6145_v61, %v5854_v39 }
 0x21b   : > { %v7977_v46 = vadd.f32 %v6153_v34, %v5857_v18 }
 0x21d   : > { %v5858_v59 = vpop.f32.mrb[100].mxu0 }
 0x21e   : > { %v5859_v29 = vpop.f32.mrb[101].mxu0 }
 0x21f   : > { %v5860_v55 = vadd.f32 %v5859_v29, %v5858_v59  ;;  %v5861_v63 = vpop.f32.mrb[102].mxu0 }
 0x220   : > { %v5862_v40 = vpop.f32.mrb[103].mxu0 }
 0x221   : > { %v5863_v50 = vadd.f32 %v5862_v40, %v5861_v63  ;;  %v7980_v45 = vadd.f32 %v7945_v49, %v5860_v55 }
 0x223   : > { %v7982_v5 = vadd.f32 %v6149_v51, %v5863_v50 }
 0x225   : > { %v5864_v58 = vpop.f32.mrb[104].mxu0 }
 0x226   : > { %v5865_v14 = vpop.f32.mrb[105].mxu0 }
 0x227   : > { %v5866_v42 = vadd.f32 %v5865_v14, %v5864_v58  ;;  %v5867_v22 = vpop.f32.mrb[106].mxu0 }
 0x228   : > { %v6062_v36 = vpop.f32.mrb[80].mxu1  ;;  %v5868_v61 = vpop.f32.mrb[107].mxu0 }
 0x229   : > { %v6111_v34 = vadd.f32 %v6110_v32, %v6062_v36  ;;  %v4262_v28 = vpop.f32.mrb[81].mxu1  ;;  %v5869_v1 = vadd.f32 %v5868_v61, %v5867_v22  ;;  %v7990_v51 = vadd.f32 %v7959_v20, %v5866_v42 }
 0x22a   : > { %v6115_v24 = vadd.f32 %v6114_v31, %v4262_v28  ;;  %v6063_v49 = vpop.f32.mrb[82].mxu1 }
 0x22b   : > { %v6119_v57 = vadd.f32 %v6118_v52, %v6063_v49  ;;  %v4265_v38 = vpop.f32.mrb[83].mxu1  ;;  %v7994_v16 = vadd.f32 %v7966_v0, %v5869_v1  ;;  %v4526_v32 = vadd.f32 %v6111_v34, %v7987_v35 }
 0x22c   : > { %v4524_v7 = vadd.f32 %v6115_v24, %v7987_v35  ;;  %v6123_v6 = vadd.f32 %v6122_v11, %v4265_v38 }
 0x22d   : > { %v4527_v53 = vadd.f32 %v6119_v57, %v7987_v35  ;;  %v5870_v19 = vpop.f32.mrb[108].mxu0  ;;  %v4755_v56 = vmul.f32 %v4526_v32, %v4526_v32 }
 0x22e   : > { %v4525_v20 = vadd.f32 %v6123_v6, %v7987_v35  ;;  %v5871_v31 = vpop.f32.mrb[109].mxu0  ;;  %v4753_v11 = vmul.f32 %v4524_v7, %v4524_v7 }
 0x22f   : > { %v5438_v52 = vpack.c.bf16 %v4527_v53, %v4526_v32  ;;  %v5872_v0 = vadd.f32 %v5871_v31, %v5870_v19  ;;  %v5873_v37 = vpop.f32.mrb[110].mxu0  ;;  %v4756_v50 = vmul.f32 %v4527_v53, %v4527_v53 }
 0x230   : > { %v5433_v8 = vpack.c.bf16 %v4525_v20, %v4524_v7  ;;  %v4716_v9 = vadd.f32 %v4525_v20, %v4524_v7  ;;  %v4754_v27 = vmul.f32 %v4525_v20, %v4525_v20  ;;  %v6066_v13 = vpop.f32.mrb[84].mxu1  ;;  %v5874_v39 = vpop.f32.mrb[111].mxu0 }
 0x231   : > { %5525 = vst [vmem:[%s8003_s26 + $0x8] sm:$0xff] %v5438_v52   ;;  %v6127_v26 = vadd.f32 %v6126_v30, %v6066_v13  ;;  %v4278_v18 = vpop.f32.mrb[85].mxu1  ;;  %v5875_v59 = vadd.f32 %v5874_v39, %v5873_v37  ;;  %v6158_v42 = vadd.f32 %v7955_v60, %v5872_v0 }
 0x232   : > { %5434 = vst [vmem:[%s8003_s26] sm:$0xff] %v5433_v8   ;;  %v4717_v29 = vadd.f32 %v4716_v9, %v4526_v32  ;;  %v4785_v55 = vadd.f32 %v4754_v27, %v4753_v11  ;;  %v6131_v63 = vadd.f32 %v7970_v4, %v4278_v18  ;;  %v6067_v40 = vpop.f32.mrb[86].mxu1 }
 0x233   : > { %v6135_v58 = vadd.f32 %v6134_v43, %v6067_v40  ;;  %v4281_v14 = vpop.f32.mrb[87].mxu1  ;;  %v4530_v30 = vadd.f32 %v6127_v26, %v7987_v35  ;;  %v8015_v1 = vadd.f32 %v7963_v25, %v5875_v59 }
 0x234   : > { %v4786_v22 = vadd.f32 %v4785_v55, %v4755_v56  ;;  %v4528_v36 = vadd.f32 %v6131_v63, %v7987_v35  ;;  %v4718_v61 = vadd.f32 %v4717_v29, %v4527_v53  ;;  %v6139_v34 = vadd.f32 %v7972_v15, %v4281_v14 }
 0x235   : > { %v4531_v28 = vadd.f32 %v6135_v58, %v7987_v35  ;;  %v5876_v4 = vpop.f32.mrb[112].mxu0  ;;  %v4759_v27 = vmul.f32 %v4530_v30, %v4530_v30 }
 0x236   : > { %v4719_v24 = vadd.f32 %v4718_v61, %v4528_v36  ;;  %v4757_v43 = vmul.f32 %v4528_v36, %v4528_v36  ;;  %v4787_v49 = vadd.f32 %v4786_v22, %v4756_v50  ;;  %v4529_v60 = vadd.f32 %v6139_v34, %v7987_v35  ;;  %v5877_v57 = vpop.f32.mrb[113].mxu0 }
 0x237   : > { %v5448_v38 = vpack.c.bf16 %v4531_v28, %v4530_v30  ;;  %v5878_v7 = vadd.f32 %v5877_v57, %v5876_v4  ;;  %v5879_v6 = vpop.f32.mrb[114].mxu0  ;;  %v4760_v29 = vmul.f32 %v4531_v28, %v4531_v28 }
 0x238   : > { %v4788_v15 = vadd.f32 %v4787_v49, %v4757_v43  ;;  %v5443_v32 = vpack.c.bf16 %v4529_v60, %v4528_v36  ;;  %v4720_v53 = vadd.f32 %v4719_v24, %v4529_v60  ;;  %v6070_v19 = vpop.f32.mrb[88].mxu1  ;;  %v5880_v20 = vpop.f32.mrb[115].mxu0  ;;  %v4758_v31 = vmul.f32 %v4529_v60, %v4529_v60 }
 0x239   : > { %5527 = vst [vmem:[%s8003_s26 + $0x18] sm:$0xff] %v5448_v38   ;;  %v6143_v25 = vadd.f32 %v7980_v45, %v6070_v19  ;;  %v4294_v11 = vpop.f32.mrb[89].mxu1  ;;  %v5881_v52 = vadd.f32 %v5880_v20, %v5879_v6  ;;  %v8023_v9 = vadd.f32 %v7888_v48, %v5878_v7 }
 0x23a   : > { %5526 = vst [vmem:[%s8003_s26 + $0x10] sm:$0xff] %v5443_v32   ;;  %v4721_v0 = vadd.f32 %v4720_v53, %v4530_v30  ;;  %v6147_v37 = vadd.f32 %v7975_v10, %v4294_v11  ;;  %v6071_v8 = vpop.f32.mrb[90].mxu1  ;;  %v4789_v13 = vadd.f32 %v4788_v15, %v4758_v31 }
 0x23b   : > { %v6151_v39 = vadd.f32 %v7982_v5, %v6071_v8  ;;  %v4297_v56 = vpop.f32.mrb[91].mxu1  ;;  %v8029_v59 = vadd.f32 %v7890_v21, %v5881_v52  ;;  %v4534_v10 = vadd.f32 %v6143_v25, %v7987_v35 }
 0x23c   : > { %v4532_v26 = vadd.f32 %v6147_v37, %v7987_v35  ;;  %v4722_v18 = vadd.f32 %v4721_v0, %v4531_v28  ;;  %v6155_v45 = vadd.f32 %v7977_v46, %v4297_v56  ;;  %v4790_v55 = vadd.f32 %v4789_v13, %v4759_v27 }
 0x23d   : > { %v4535_v48 = vadd.f32 %v6151_v39, %v7987_v35  ;;  %v5882_v63 = vpop.f32.mrb[116].mxu0  ;;  %v4763_v6 = vmul.f32 %v4534_v10, %v4534_v10 }
 0x23e   : > { %v4723_v40 = vadd.f32 %v4722_v18, %v4532_v26  ;;  %v4761_v50 = vmul.f32 %v4532_v26, %v4532_v26  ;;  %v4533_v5 = vadd.f32 %v6155_v45, %v7987_v35  ;;  %v5883_v58 = vpop.f32.mrb[117].mxu0  ;;  %v4791_v14 = vadd.f32 %v4790_v55, %v4760_v29 }
 0x23f   : > { %v5458_v22 = vpack.c.bf16 %v4535_v48, %v4534_v10  ;;  %v5884_v46 = vadd.f32 %v5883_v58, %v5882_v63  ;;  %v5885_v36 = vpop.f32.mrb[118].mxu0  ;;  %v4764_v25 = vmul.f32 %v4535_v48, %v4535_v48 }
 0x240   : > { %v5453_v21 = vpack.c.bf16 %v4533_v5, %v4532_v26  ;;  %v4724_v61 = vadd.f32 %v4723_v40, %v4533_v5  ;;  %v4762_v34 = vmul.f32 %v4533_v5, %v4533_v5  ;;  %v6074_v30 = vpop.f32.mrb[92].mxu1  ;;  %v5886_v28 = vpop.f32.mrb[119].mxu0  ;;  %v4792_v4 = vadd.f32 %v4791_v14, %v4761_v50 }
 0x241   : > { %5529 = vst [vmem:[%s8003_s26 + $0x28] sm:$0xff] %v5458_v22   ;;  %v6159_v24 = vadd.f32 %v6158_v42, %v6074_v30  ;;  %v4310_v43 = vpop.f32.mrb[93].mxu1  ;;  %v5887_v49 = vadd.f32 %v5886_v28, %v5885_v36  ;;  %v6173_v7 = vadd.f32 %v7892_v33, %v5884_v46 }
 0x242   : > { %5528 = vst [vmem:[%s8003_s26 + $0x20] sm:$0xff] %v5453_v21   ;;  %v4725_v60 = vadd.f32 %v4724_v61, %v4534_v10  ;;  %v6163_v57 = vadd.f32 %v7990_v51, %v4310_v43  ;;  %v6075_v38 = vpop.f32.mrb[94].mxu1  ;;  %v4793_v15 = vadd.f32 %v4792_v4, %v4762_v34  ;;  %v8113_v34 = vld [vmem:[#allocation4_spill] sm:$0xff] }
 0x243   : > { %v6167_v32 = vadd.f32 %v8015_v1, %v6075_v38  ;;  %v4313_v53 = vpop.f32.mrb[95].mxu1  ;;  %v6179_v42 = vadd.f32 %v7894_v54, %v5887_v49  ;;  %v4538_v52 = vadd.f32 %v6159_v24, %v7987_v35 }
 0x244   : > { %v4536_v19 = vadd.f32 %v6163_v57, %v7987_v35  ;;  %v4726_v20 = vadd.f32 %v4725_v60, %v4535_v48  ;;  %v6171_v31 = vadd.f32 %v7994_v16, %v4313_v53  ;;  %v4794_v11 = vadd.f32 %v4793_v15, %v4763_v6 }
 0x245   : > { %v4539_v51 = vadd.f32 %v6167_v32, %v7987_v35  ;;  %v5888_v33 = vpop.f32.mrb[120].mxu0  ;;  %v4767_v58 = vmul.f32 %v4538_v52, %v4538_v52 }
 0x246   : > { %v4727_v0 = vadd.f32 %v4726_v20, %v4536_v19  ;;  %v4765_v37 = vmul.f32 %v4536_v19, %v4536_v19  ;;  %v4537_v1 = vadd.f32 %v6171_v31, %v7987_v35  ;;  %v5889_v8 = vpop.f32.mrb[121].mxu0  ;;  %v4795_v27 = vadd.f32 %v4794_v11, %v4764_v25 }
 0x247   : > { %v5468_v13 = vpack.c.bf16 %v4539_v51, %v4538_v52  ;;  %v5890_v39 = vadd.f32 %v5889_v8, %v5888_v33  ;;  %v5891_v16 = vpop.f32.mrb[122].mxu0  ;;  %v4768_v28 = vmul.f32 %v4539_v51, %v4539_v51 }
 0x248   : > { %v5463_v56 = vpack.c.bf16 %v4537_v1, %v4536_v19  ;;  %v4728_v54 = vadd.f32 %v4727_v0, %v4537_v1  ;;  %v4766_v26 = vmul.f32 %v4537_v1, %v4537_v1  ;;  %v6078_v18 = vpop.f32.mrb[0].mxu1  ;;  %v5892_v45 = vpop.f32.mrb[123].mxu0  ;;  %v4796_v29 = vadd.f32 %v4795_v27, %v4765_v37 }
 0x249   : > { %5531 = vst [vmem:[%s8003_s26 + $0x38] sm:$0xff] %v5468_v13   ;;  %v6174_v55 = vadd.f32 %v6173_v7, %v6078_v18  ;;  %v4326_v10 = vpop.f32.mrb[1].mxu1  ;;  %v5893_v48 = vadd.f32 %v5892_v45, %v5891_v16  ;;  %v6188_v5 = vadd.f32 %v7896_v17, %v5890_v39  ;;  %v8115_v16 = vld [vmem:[#allocation6_spill] sm:$0xff] }
 0x24a   : > { %5530 = vst [vmem:[%s8003_s26 + $0x30] sm:$0xff] %v5463_v56   ;;  %v4729_v63 = vadd.f32 %v4728_v54, %v4538_v52  ;;  %v6177_v40 = vadd.f32 %v8023_v9, %v4326_v10  ;;  %v6079_v50 = vpop.f32.mrb[2].mxu1  ;;  %v4797_v14 = vadd.f32 %v4796_v29, %v4766_v26  ;;  %v8114_v52 = vld [vmem:[#allocation5_spill] sm:$0xff] }
 0x24b   : > { %v6180_v22 = vadd.f32 %v6179_v42, %v6079_v50  ;;  %v4329_v46 = vpop.f32.mrb[3].mxu1  ;;  %v6194_v30 = vadd.f32 %v8113_v34, %v5893_v48  ;;  %v4542_v24 = vadd.f32 %v6174_v55, %v7987_v35 }
 0x24c   : > { %v4540_v36 = vadd.f32 %v6177_v40, %v7987_v35  ;;  %v4730_v21 = vadd.f32 %v4729_v63, %v4539_v51  ;;  %v6183_v61 = vadd.f32 %v8029_v59, %v4329_v46  ;;  %v4798_v4 = vadd.f32 %v4797_v14, %v4767_v58 }
 0x24d   : > { %v4543_v9 = vadd.f32 %v6180_v22, %v7987_v35  ;;  %v5894_v43 = vpop.f32.mrb[124].mxu0  ;;  %v4771_v37 = vmul.f32 %v4542_v24, %v4542_v24 }
 0x24e   : > { %v4731_v17 = vadd.f32 %v4730_v21, %v4540_v36  ;;  %v4769_v49 = vmul.f32 %v4540_v36, %v4540_v36  ;;  %v4541_v60 = vadd.f32 %v6183_v61, %v7987_v35  ;;  %v5895_v57 = vpop.f32.mrb[125].mxu0  ;;  %v4799_v38 = vadd.f32 %v4798_v4, %v4768_v28 }
 0x24f   : > { %v5478_v7 = vpack.c.bf16 %v4543_v9, %v4542_v24  ;;  %v5896_v6 = vadd.f32 %v5895_v57, %v5894_v43  ;;  %v5897_v59 = vpop.f32.mrb[126].mxu0  ;;  %v4772_v54 = vmul.f32 %v4543_v9, %v4543_v9 }
 0x250   : > { %v5473_v15 = vpack.c.bf16 %v4541_v60, %v4540_v36  ;;  %v4732_v32 = vadd.f32 %v4731_v17, %v4541_v60  ;;  %v4770_v53 = vmul.f32 %v4541_v60, %v4541_v60  ;;  %v6082_v19 = vpop.f32.mrb[4].mxu1  ;;  %v5898_v20 = vpop.f32.mrb[127].mxu0  ;;  %v4800_v31 = vadd.f32 %v4799_v38, %v4769_v49 }
 0x251   : > { %5533 = vst [vmem:[%s8003_s26 + $0x48] sm:$0xff] %v5478_v7   ;;  %v4342_v42 = vpop.f32.mrb[5].mxu1  ;;  %v5899_v25 = vadd.f32 %v5898_v20, %v5897_v59  ;;  %v6185_v51 = vadd.f32 %v8114_v52, %v5896_v6 }
 0x252   : > { %5532 = vst [vmem:[%s8003_s26 + $0x40] sm:$0xff] %v5473_v15   ;;  %v4733_v11 = vadd.f32 %v4732_v32, %v4542_v24  ;;  %v6189_v33 = vadd.f32 %v6188_v5, %v4342_v42  ;;  %v6083_v0 = vpop.f32.mrb[6].mxu1  ;;  %v4801_v1 = vadd.f32 %v4800_v31, %v4770_v53 }
 0x253   : > { %v4345_v8 = vpop.f32.mrb[7].mxu1  ;;  %v6186_v27 = vadd.f32 %v6185_v51, %v6082_v19  ;;  %v6191_v56 = vadd.f32 %v8115_v16, %v5899_v25 }
 0x254   : > { %v4544_v13 = vadd.f32 %v6189_v33, %v7987_v35  ;;  %v4734_v39 = vadd.f32 %v4733_v11, %v4543_v9  ;;  %v4802_v26 = vadd.f32 %v4801_v1, %v4771_v37  ;;  %v6195_v18 = vadd.f32 %v6194_v30, %v4345_v8 }
 0x255   : > { %v5900_v45 = vpop.f32.mrb[128].mxu0  ;;  %v6192_v10 = vadd.f32 %v6191_v56, %v6083_v0  ;;  %v4546_v63 = vadd.f32 %v6186_v27, %v7987_v35 }
 0x256   : > { %v4735_v29 = vadd.f32 %v4734_v39, %v4544_v13  ;;  %v4773_v55 = vmul.f32 %v4544_v13, %v4544_v13  ;;  %v5901_v48 = vpop.f32.mrb[129].mxu0  ;;  %v4803_v40 = vadd.f32 %v4802_v26, %v4772_v54  ;;  %v4545_v50 = vadd.f32 %v6195_v18, %v7987_v35 }
 0x257   : > { %v5902_v5 = vadd.f32 %v5901_v48, %v5900_v45  ;;  %v5903_v58 = vpop.f32.mrb[130].mxu0  ;;  %v4547_v14 = vadd.f32 %v6192_v10, %v7987_v35  ;;  %v4775_v43 = vmul.f32 %v4546_v63, %v4546_v63 }
 0x258   : > { %v6086_v22 = vpop.f32.mrb[8].mxu1  ;;  %v5904_v46 = vpop.f32.mrb[131].mxu0  ;;  %v4804_v36 = vadd.f32 %v4803_v40, %v4773_v55  ;;  %v5483_v21 = vpack.c.bf16 %v4545_v50, %v4544_v13  ;;  %v4736_v61 = vadd.f32 %v4735_v29, %v4545_v50  ;;  %v4774_v34 = vmul.f32 %v4545_v50, %v4545_v50 }
 0x259   : > { %v4358_v30 = vpop.f32.mrb[9].mxu1  ;;  %v5905_v28 = vadd.f32 %v5904_v46, %v5903_v58  ;;  %v5488_v4 = vpack.c.bf16 %v4547_v14, %v4546_v63  ;;  %v6200_v24 = vadd.f32 %v7904_v2, %v5902_v5  ;;  %v4776_v7 = vmul.f32 %v4547_v14, %v4547_v14 }
 0x25a   : > { %v6087_v9 = vpop.f32.mrb[10].mxu1  ;;  %5534 = vst [vmem:[%s8003_s26 + $0x50] sm:$0xff] %v5483_v21   ;;  %v4737_v17 = vadd.f32 %v4736_v61, %v4546_v63  ;;  %v4805_v49 = vadd.f32 %v4804_v36, %v4774_v34 }
 0x25b   : > { %v4361_v60 = vpop.f32.mrb[11].mxu1  ;;  %5535 = vst [vmem:[%s8003_s26 + $0x58] sm:$0xff] %v5488_v4   ;;  %v6201_v57 = vadd.f32 %v6200_v24, %v4358_v30  ;;  %v6206_v38 = vadd.f32 %v7906_v62, %v5905_v28 }
 0x25c   : > { %v4806_v6 = vadd.f32 %v4805_v49, %v4775_v43  ;;  %v4738_v59 = vadd.f32 %v4737_v17, %v4547_v14 }
 0x25d   : > { %v5906_v15 = vpop.f32.mrb[132].mxu0  ;;  %v4548_v32 = vadd.f32 %v6201_v57, %v7987_v35  ;;  %v6207_v53 = vadd.f32 %v6206_v38, %v4361_v60 }
 0x25e   : > { %v5907_v19 = vpop.f32.mrb[133].mxu0  ;;  %v4807_v20 = vadd.f32 %v4806_v6, %v4776_v7 }
 0x25f   : > { %v5908_v2 = vadd.f32 %v5907_v19, %v5906_v15  ;;  %v5909_v31 = vpop.f32.mrb[134].mxu0  ;;  %v4739_v42 = vadd.f32 %v4738_v59, %v4548_v32  ;;  %v4777_v25 = vmul.f32 %v4548_v32, %v4548_v32  ;;  %v4549_v11 = vadd.f32 %v6207_v53, %v7987_v35 }
 0x260   : > { %v6090_v52 = vpop.f32.mrb[12].mxu1  ;;  %v5910_v51 = vpop.f32.mrb[135].mxu0 }
 0x261   : > { %v4374_v33 = vpop.f32.mrb[13].mxu1  ;;  %v5911_v62 = vadd.f32 %v5910_v51, %v5909_v31  ;;  %v6197_v0 = vadd.f32 %v7908_v44, %v5908_v2  ;;  %v4808_v37 = vadd.f32 %v4807_v20, %v4777_v25  ;;  %v5493_v1 = vpack.c.bf16 %v4549_v11, %v4548_v32 }
 0x262   : > { %v6091_v8 = vpop.f32.mrb[14].mxu1  ;;  %v4740_v27 = vadd.f32 %v4739_v42, %v4549_v11  ;;  %v4778_v13 = vmul.f32 %v4549_v11, %v4549_v11 }
 0x263   : > { %v4377_v39 = vpop.f32.mrb[15].mxu1  ;;  %v6198_v16 = vadd.f32 %v6197_v0, %v6086_v22  ;;  %v6203_v56 = vadd.f32 %v7910_v41, %v5911_v62  ;;  %5536 = vst [vmem:[%s8003_s26 + $0x60] sm:$0xff] %v5493_v1  }
 0x264   : > { %v4809_v54 = vadd.f32 %v4808_v37, %v4778_v13 }
 0x265   : > { %v5912_v26 = vpop.f32.mrb[136].mxu0  ;;  %v4550_v18 = vadd.f32 %v6198_v16, %v7987_v35  ;;  %v6204_v45 = vadd.f32 %v6203_v56, %v6087_v9 }
 0x266   : > { %v5913_v29 = vpop.f32.mrb[137].mxu0 }
 0x267   : > { %v5914_v55 = vadd.f32 %v5913_v29, %v5912_v26  ;;  %v5915_v10 = vpop.f32.mrb[138].mxu0  ;;  %v4779_v44 = vmul.f32 %v4550_v18, %v4550_v18  ;;  %v4551_v48 = vadd.f32 %v6204_v45, %v7987_v35  ;;  %v4741_v63 = vadd.f32 %v4740_v27, %v4550_v18 }
 0x268   : > { %v5916_v40 = vpop.f32.mrb[139].mxu0 }
 0x269   : > { %v5917_v50 = vadd.f32 %v5916_v40, %v5915_v10  ;;  %v5498_v5 = vpack.c.bf16 %v4551_v48, %v4550_v18  ;;  %v4780_v58 = vmul.f32 %v4551_v48, %v4551_v48  ;;  %v4810_v14 = vadd.f32 %v4809_v54, %v4779_v44 }
 0x26a   : > { %v6212_v41 = vadd.f32 %v7924_v23, %v5914_v55  ;;  %v4742_v22 = vadd.f32 %v4741_v63, %v4551_v48 }
 0x26b   : > { %5537 = vst [vmem:[%s8003_s26 + $0x68] sm:$0xff] %v5498_v5   ;;  %v4811_v46 = vadd.f32 %v4810_v14, %v4780_v58  ;;  %v6218_v36 = vadd.f32 %v7926_v12, %v5917_v50 }
 0x26c   : > { %v6213_v21 = vadd.f32 %v6212_v41, %v4374_v33 }
 0x26d   : > { %v5918_v61 = vpop.f32.mrb[140].mxu0  ;;  %v6219_v34 = vadd.f32 %v6218_v36, %v4377_v39 }
 0x26e   : > { %v5919_v30 = vpop.f32.mrb[141].mxu0  ;;  %v4552_v28 = vadd.f32 %v6213_v21, %v7987_v35 }
 0x26f   : > { %v5920_v4 = vadd.f32 %v5919_v30, %v5918_v61  ;;  %v5921_v24 = vpop.f32.mrb[142].mxu0  ;;  %v4553_v9 = vadd.f32 %v6219_v34, %v7987_v35 }
 0x270   : > { %v5922_v43 = vpop.f32.mrb[143].mxu0  ;;  %v4743_v17 = vadd.f32 %v4742_v22, %v4552_v28  ;;  %v4781_v49 = vmul.f32 %v4552_v28, %v4552_v28 }
 0x271   : > { %v5923_v23 = vadd.f32 %v5922_v43, %v5921_v24  ;;  %v6209_v60 = vadd.f32 %v7938_v3, %v5920_v4  ;;  %v5503_v57 = vpack.c.bf16 %v4553_v9, %v4552_v28  ;;  %v4782_v38 = vmul.f32 %v4553_v9, %v4553_v9 }
 0x272   : > { %v4812_v12 = vadd.f32 %v4811_v46, %v4781_v49  ;;  %v4744_v7 = vadd.f32 %v4743_v17, %v4553_v9 }
 0x273   : > { %v6210_v6 = vadd.f32 %v6209_v60, %v6090_v52  ;;  %v6215_v59 = vadd.f32 %v7940_v47, %v5923_v23  ;;  %5538 = vst [vmem:[%s8003_s26 + $0x70] sm:$0xff] %v5503_v57  }
 0x274   : > { %v4813_v15 = vadd.f32 %v4812_v12, %v4782_v38 }
 0x275   : > { %v4554_v32 = vadd.f32 %v6210_v6, %v7987_v35  ;;  %v6216_v53 = vadd.f32 %v6215_v59, %v6091_v8 }
 0x277   : > { %v4783_v19 = vmul.f32 %v4554_v32, %v4554_v32  ;;  %v4555_v20 = vadd.f32 %v6216_v53, %v7987_v35  ;;  %v4745_v2 = vadd.f32 %v4744_v7, %v4554_v32 }
 0x279   : > { %v5508_v31 = vpack.c.bf16 %v4555_v20, %v4554_v32  ;;  %v4784_v3 = vmul.f32 %v4555_v20, %v4555_v20  ;;  %v4746_v42 = vadd.f32 %v4745_v2, %v4555_v20  ;;  %v4814_v25 = vadd.f32 %v4813_v15, %v4783_v19 }
 0x27b   : > { %5539 = vst [vmem:[%s8003_s26 + $0x78] sm:$0xff] %v5508_v31   ;;  %v4747_v11 = vrot.slane %v4746_v42, 4  ;;  %v4815_v51 = vadd.f32 %v4814_v25, %v4784_v3 }
 0x27d   : > { %v4748_v52 = vadd.f32 %v4747_v11, %v4746_v42  ;;  %v4816_v33 = vrot.slane %v4815_v51, 4 }
 0x27f   : > { %v4749_v47 = vrot.slane %v4748_v52, 2  ;;  %v4817_v62 = vadd.f32 %v4816_v33, %v4815_v51 }
 0x281   : > { %v4750_v0 = vadd.f32 %v4749_v47, %v4748_v52  ;;  %v4818_v37 = vrot.slane %v4817_v62, 2 }
 0x283   : > { %v4751_v1 = vrot.slane %v4750_v0, 1  ;;  %v4819_v8 = vadd.f32 %v4818_v37, %v4817_v62 }
 0x285   : > { %v4820_v27 = vrot.slane %v4819_v8, 1  ;;  %v4752_v35 = vadd.f32 %v4751_v1, %v4750_v0 }
 0x287   : > { %v4821_v13 = vadd.f32 %v4820_v27, %v4819_v8 }
 0x289   : > { %v4823_v39 = vsel %vm500_vm0, %v4752_v35, %v4821_v13 }
 0x28a   : > { %4824 = vst [vmem:[%s289_s29] sm:$0x3] %v4823_v39 }
 0x28b PF: > { %s18_s24 = sadd.s32 1, %s6531_s24  }
 0x28c   : > { %p15_p4 = scmp.ge.s32.totalorder %s18_s24, 4  }
 0x28e   :  { %17 = sbr.rel (!%p15_p4) target bundleno = 1 (0x1), region = 91 }

</bundles_post_ra>
